<compile_context>
chip_gen: v7x
topology: tpu7x:2x2x1
jax: 0.10.0
libtpu: 0.0.40
codegen_flags: <defaults>
</compile_context>

<pallas_src>
import itertools

import numpy as np
import jax
import jax.numpy as jnp
from jax.experimental import pallas as pl
from jax.experimental.pallas import tpu as pltpu

# Run host-side XLA matmuls (reference + weight folding) at full f32 precision so
# the kernel (which uses Precision.HIGHEST explicitly) can be validated tightly.
jax.config.update("jax_default_matmul_precision", "highest")

# Small, module-consistent shapes.
DIM = 32        # per-head embedding dim
HID = 16        # lima hidden dim
HEADS = 4
DEPTH = 2
VOCAB = 64
LN_EPS = 1e-5
M_VAL = 1.0     # fix_max_value

FD = HEADS * DIM   # 128 : head-major flattened feature width (lane-dense)
FH = HEADS * HID   # 64
D2 = 2 * DIM       # 64  : packed [real | imag] predictor lanes

P_HI = jax.lax.Precision.HIGHEST
TT_MAX = 16        # timesteps folded into one grid step (launch-overhead amortization)


# ----------------------------------------------------------------------------
# Fused Pallas kernel: one grid step == TT timesteps (all DEPTH limas + rotate)
# ----------------------------------------------------------------------------
def _make_kernel(TT, Bpad):
    def kernel(theta_ref, e1_ref, e2_ref, ta_ref, init_hist_ref,
               w_in_ref, w_fold_ref, w2_ref, ba_ref, sc_ref,
               gamma_ref, beta_ref, mavg_ref, hsum_ref, dup_ref, clocks_ref,
               out_ref, hist_scr):
        @pl.when(pl.program_id(0) == 0)
        def _init():
            hist_scr[...] = init_hist_ref[...]          # [DEPTH, Bpad, FD]

        mavg = mavg_ref[...]            # [FD, FD]  block-diag per-head averaging
        hsum = hsum_ref[...]            # [FD, DIM] per-head sum (block identity)
        dup = dup_ref[...]              # [DIM, D2] duplicate lanes to [x | x]
        clocks = clocks_ref[...]        # [1, FD]

        def dot(a, b):
            return jnp.dot(a, b, precision=P_HI, preferred_element_type=jnp.float32)

        # Static unrolled loop over the TT timesteps of this block (serial history carry).
        for lt in range(TT):
            theta_t = theta_ref[lt]                     # [Bpad, DIM]
            accum = None                                # [Bpad, DIM] running head/depth sum
            for ln in range(DEPTH):
                d = theta_t if accum is None else theta_t - accum
                # fc_in with head replication folded into w_in_fold
                h = dot(d, w_fold_ref[ln]) - dot(hist_scr[ln], w_in_ref[ln])   # [Bpad, FH]

                # lima non-linearity; cos(2h) via double-angle identity (one EUP pass)
                ch = jnp.cos(h)
                cos2h = 2.0 * ch * ch - 1.0
                ba = ba_ref[ln]                                                 # [1, FH]
                o = M_VAL + sc_ref[ln] * (-1.0 - ba + ch + ba * cos2h)

                # folded Theta einsum + fc_out : W2 = blockdiag(Theta) @ w_out
                trans = dot(o, w2_ref[ln])                                      # [Bpad, FD]

                # per-head LayerNorm: single stacked matmul -> mean and E[x^2]
                stk = jnp.concatenate([trans, trans * trans], axis=0)           # [2*Bpad, FD]
                mm = dot(stk, mavg)
                mu = mm[0:Bpad]
                var = mm[Bpad:2 * Bpad] - mu * mu
                history = (trans - mu) * jax.lax.rsqrt(var + LN_EPS) * gamma_ref[ln] \
                    + beta_ref[ln]

                # carry history for the next timestep entirely in VMEM scratch
                hist_scr[ln] = history - clocks

                # accum += history.sum(over heads) via one MXU matmul
                hs = dot(history, hsum)                                          # [Bpad, DIM]
                accum = hs if accum is None else accum + hs

            # predictor: emb(src) * exp(i * ((t+1)*time_angle + accum)), packed lanes
            ang2 = dot(accum, dup) + ta_ref[lt]          # [Bpad, D2]  (= [ang | ang])
            out_ref[lt] = e1_ref[lt] * jnp.cos(ang2) + e2_ref[lt] * jnp.sin(ang2)

    return kernel


# ----------------------------------------------------------------------------
# Host-side precompute + single fused pallas_call over all timesteps
# ----------------------------------------------------------------------------
def _prep_lima(p):
    """Hoist parameter-only math out of the kernel."""
    ba = ((jax.nn.sigmoid(p["lima_shape"]) - 0.5) / 2.0).reshape(1, FH)
    sc = (M_VAL / (2.0 * (jnp.exp(p["proportion"]) + 1.0))).reshape(1, FH)
    w_out_h = p["w_out"].reshape(HEADS, HID, FD)
    w2 = jnp.einsum('hmn,hnd->hmd', p["Theta"], w_out_h).reshape(FH, FD)
    w_fold = p["w_in"].reshape(HEADS, DIM, FH).sum(axis=0)           # [DIM, FH]
    gamma = jnp.tile(p["ln_w"].reshape(1, DIM), (1, HEADS))
    beta = jnp.tile(p["ln_b"].reshape(1, DIM), (1, HEADS))
    return p["w_in"], w_fold, w2, ba, sc, gamma, beta


def _run_fused(params, data, src_pos, lbl_pos, t_vals, Bpad, TT):
    T_pad = src_pos.shape[0]
    NB = T_pad // TT

    # Batched gathers for ALL timesteps at once (one XLA op per table).
    src_tok = data[src_pos]                                   # [T_pad, Bpad]
    lbl_tok = data[lbl_pos]
    theta = params["angle_embedding"][src_tok]                # [T_pad, Bpad, DIM]
    er = params["emb_real"][src_tok]
    ei = params["emb_imag"][src_tok]
    lbl_r = params["emb_real"][lbl_tok]
    lbl_i = params["emb_imag"][lbl_tok]

    # Lane-dense packed predictor inputs:   out = e1*cos(ang) + e2*sin(ang)
    #   real = er*cos - ei*sin ; imag = ei*cos + er*sin
    e1 = jnp.concatenate([er, ei], axis=-1)                   # [T_pad, Bpad, D2]
    e2 = jnp.concatenate([-ei, er], axis=-1)                  # [T_pad, Bpad, D2]

    time_angle = 1.0 / params["rotary_denom"] ** (params["dim_idx"] / DIM)   # [DIM]
    ta = t_vals[:, None] * time_angle[None, :]                # [T_pad, DIM]
    ta2 = jnp.concatenate([ta, ta], axis=-1).reshape(T_pad, 1, D2)

    prepped = [_prep_lima(p) for p in params["limas"]]
    w_in_all = jnp.stack([pr[0] for pr in prepped])           # [DEPTH, FD, FH]
    w_fold_all = jnp.stack([pr[1] for pr in prepped])         # [DEPTH, DIM, FH]
    w2_all = jnp.stack([pr[2] for pr in prepped])             # [DEPTH, FH, FD]
    ba_all = jnp.stack([pr[3] for pr in prepped])             # [DEPTH, 1, FH]
    sc_all = jnp.stack([pr[4] for pr in prepped])             # [DEPTH, 1, FH]
    gamma_all = jnp.stack([pr[5] for pr in prepped])          # [DEPTH, 1, FD]
    beta_all = jnp.stack([pr[6] for pr in prepped])           # [DEPTH, 1, FD]

    init_hist = jnp.stack([h.reshape(1, FD) for h in params["initial_history"]])
    init_hist = jnp.broadcast_to(init_hist, (DEPTH, Bpad, FD))

    clocks = (1.0 / params["head_clock_denoms"][:, None] **
              (params["dim_idx"][None, :] / DIM)).reshape(1, FD)

    eye_d = jnp.eye(DIM, dtype=jnp.float32)
    # Block-diagonal per-head averaging matrix for the lane-dense LayerNorm.
    mavg = jnp.kron(jnp.eye(HEADS, dtype=jnp.float32),
                    jnp.full((DIM, DIM), 1.0 / DIM, jnp.float32))            # [FD, FD]
    # Per-head sum of history as one MXU matmul.
    hsum = jnp.kron(jnp.ones((HEADS, 1), jnp.float32), eye_d)                # [FD, DIM]
    # Lane duplication DIM -> [x | x] for the packed predictor angle.
    dup = jnp.concatenate([eye_d, eye_d], axis=1)                            # [DIM, D2]

    def stream(lanes):
        return pl.BlockSpec((TT, Bpad, lanes), lambda g: (g, 0, 0))

    def const3(a, b, c):
        return pl.BlockSpec((a, b, c), lambda g: (0, 0, 0))

    def const2(a, b):
        return pl.BlockSpec((a, b), lambda g: (0, 0))

    in_specs = [
        stream(DIM),                                        # theta  (natural 32-lane width)
        stream(D2),                                         # e1 = [er | ei]
        stream(D2),                                         # e2 = [-ei | er]
        pl.BlockSpec((TT, 1, D2), lambda g: (g, 0, 0)),     # ta2 = [t*angle | t*angle]
        const3(DEPTH, Bpad, FD),                            # init_hist
        const3(DEPTH, FD, FH),                              # w_in
        const3(DEPTH, DIM, FH),                             # w_in_fold
        const3(DEPTH, FH, FD),                              # w2 (folded Theta@w_out)
        const3(DEPTH, 1, FH),                               # b_a
        const3(DEPTH, 1, FH),                               # scale
        const3(DEPTH, 1, FD),                               # gamma
        const3(DEPTH, 1, FD),                               # beta
        const2(FD, FD),                                     # mavg
        const2(FD, DIM),                                    # hsum
        const2(DIM, D2),                                    # dup
        const2(1, FD),                                      # clocks
    ]
    out_specs = pl.BlockSpec((TT, Bpad, D2), lambda g: (g, 0, 0))

    out_packed = pl.pallas_call(
        _make_kernel(TT, Bpad),
        out_shape=jax.ShapeDtypeStruct((T_pad, Bpad, D2), jnp.float32),
        grid_spec=pltpu.PrefetchScalarGridSpec(
            num_scalar_prefetch=0,
            grid=(NB,),
            in_specs=in_specs,
            out_specs=out_specs,
            scratch_shapes=[pltpu.VMEM((DEPTH, Bpad, FD), jnp.float32)],
        ),
        compiler_params=pltpu.CompilerParams(
            dimension_semantics=("arbitrary",)),   # serial history carry: keep one core
    )(theta, e1, e2, ta2, init_hist, w_in_all, w_fold_all, w2_all,
      ba_all, sc_all, gamma_all, beta_all, mavg, hsum, dup, clocks)

    out_r = out_packed[..., :DIM]
    out_i = out_packed[..., DIM:]
    return out_r, out_i, lbl_r, lbl_i


_run_fused_jit = jax.jit(_run_fused, static_argnums=(5, 6))


def rotator_forward(params, data, batch_sizes):
    """Generator matching Rotator.forward semantics (yields (predicts, label_emb))."""
    nbs_list = batch_sizes[1:]                      # next_batch_size per step
    T = len(nbs_list)
    if T == 0:
        return
    accums = list(itertools.accumulate(batch_sizes, initial=0))
    Bpad = max(8, -(-max(nbs_list) // 8) * 8)       # pad batch to f32 sublane minimum
    TT = min(TT_MAX, T)                             # timesteps per grid step
    NB = -(-T // TT)
    T_pad = NB * TT

    src_pos = np.zeros((T_pad, Bpad), dtype=np.int32)
    lbl_pos = np.zeros((T_pad, Bpad), dtype=np.int32)
    for t, (acc, bs, nbs) in enumerate(zip(accums, batch_sizes, nbs_list)):
        if nbs > 0:
            sp = np.arange(acc, acc + nbs)
            lp = np.arange(acc + bs, acc + bs + nbs)
            src_pos[t, :nbs] = sp
            src_pos[t, nbs:] = sp[-1]
            lbl_pos[t, :nbs] = lp
            lbl_pos[t, nbs:] = lp[-1]
    # Pad timesteps (t >= T): repeat the last real row; their outputs are never read.
    if T_pad > T:
        src_pos[T:] = src_pos[T - 1]
        lbl_pos[T:] = lbl_pos[T - 1]

    t_vals = jnp.arange(1, T_pad + 1, dtype=jnp.float32)
    out_r, out_i, lbl_r, lbl_i = _run_fused_jit(
        params, data, jnp.asarray(src_pos), jnp.asarray(lbl_pos), t_vals, Bpad, TT)

    for t, nbs in enumerate(nbs_list):
        predicts = jax.lax.complex(out_r[t, :nbs], out_i[t, :nbs])
        label_emb = jax.lax.complex(lbl_r[t, :nbs], lbl_i[t, :nbs])
        yield predicts, label_emb


# ----------------------------------------------------------------------------
# Pure-JAX reference (for a sanity check)
# ----------------------------------------------------------------------------
def _lima_ref(diff, p):
    B = diff.shape[0]
    h = (diff.reshape(B, -1) @ p["w_in"]).reshape(B, HEADS, HID)
    b_a = (jax.nn.sigmoid(p["lima_shape"]) - 0.5) / 2
    scale = M_VAL / (2 * (jnp.exp(p["proportion"]) + 1))
    o = M_VAL + scale * (-1 - b_a + jnp.cos(h) + b_a * jnp.cos(2 * h))
    raw = jnp.einsum('bhm,hmn->bhn', o, p["Theta"])
    trans = (raw.reshape(B, -1) @ p["w_out"]).reshape(B, HEADS, DIM)
    mu = trans.mean(-1, keepdims=True)
    var = ((trans - mu) ** 2).mean(-1, keepdims=True)
    return (trans - mu) / jnp.sqrt(var + LN_EPS) * p["ln_w"].reshape(DIM) + p["ln_b"].reshape(DIM)


def rotator_forward_ref(params, data, batch_sizes):
    histories = [h for h in params["initial_history"]]
    head_clocks = 1.0 / params["head_clock_denoms"][:, None] ** (
        params["dim_idx"][None, :] / DIM)
    accums = list(itertools.accumulate(batch_sizes, initial=0))
    for t, (batch_accum, bs, nbs) in enumerate(zip(accums, batch_sizes, batch_sizes[1:])):
        batch = data[batch_accum:batch_accum + bs][:nbs]
        theta = params["angle_embedding"][batch]
        accum = jnp.zeros_like(theta)
        for ln in range(DEPTH):
            diff = (theta - accum)[:, None, :] - histories[ln][:theta.shape[0]]
            history = _lima_ref(diff, params["limas"][ln])
            histories[ln] = history - head_clocks
            accum = accum + history.sum(axis=1)
        time_angle = 1.0 / params["rotary_denom"] ** (params["dim_idx"] / DIM)
        ang = float(t + 1) * time_angle[None, :] + accum
        rot = jax.lax.complex(jnp.cos(ang), jnp.sin(ang))
        src_emb = jax.lax.complex(params["emb_real"][batch], params["emb_imag"][batch])
        labels = data[batch_accum + bs: batch_accum + bs + nbs]
        label_emb = jax.lax.complex(params["emb_real"][labels], params["emb_imag"][labels])
        yield src_emb * rot, label_emb


# ----------------------------------------------------------------------------
# Deterministic parameter init (synthetic; mirrors module __init__ shapes)
# ----------------------------------------------------------------------------
def init_params(seed=0):
    key = jax.random.PRNGKey(seed)
    keys = iter(jax.random.split(key, DEPTH * 6 + 3))
    k_in = 1.0 / jnp.sqrt(HEADS * DIM)
    k_out = 1.0 / jnp.sqrt(HEADS * HID)
    limas, hists = [], []
    for _ in range(DEPTH):
        limas.append(dict(
            proportion=jax.random.uniform(next(keys), (HEADS, HID), jnp.float32),
            lima_shape=jax.random.uniform(next(keys), (HEADS, HID), jnp.float32),
            w_in=jax.random.uniform(next(keys), (HEADS * DIM, HEADS * HID),
                                    jnp.float32, -k_in, k_in),
            Theta=jax.random.uniform(next(keys), (HEADS, HID, HID),
                                     jnp.float32) * 2 * jnp.pi - jnp.pi,
            w_out=jax.random.uniform(next(keys), (HEADS * HID, HEADS * DIM),
                                     jnp.float32, -k_out, k_out),
            ln_w=jnp.ones((1, DIM), jnp.float32),
            ln_b=jnp.zeros((1, DIM), jnp.float32),
        ))
        hists.append(jax.random.normal(next(keys), (1, HEADS, DIM), jnp.float32))
    return dict(
        limas=limas,
        initial_history=hists,
        angle_embedding=jax.random.normal(next(keys), (VOCAB, DIM), jnp.float32),
        emb_real=jax.random.normal(next(keys), (VOCAB, DIM), jnp.float32),
        emb_imag=jax.random.normal(next(keys), (VOCAB, DIM), jnp.float32),
        head_clock_denoms=jnp.full((HEADS,), 0.5, jnp.float32),
        rotary_denom=jnp.float32(0.5),
        dim_idx=jnp.arange(DIM, dtype=jnp.float32),
    )


def _check_case(params, data, batch_sizes, atol, rtol):
    got = list(rotator_forward(params, data, batch_sizes))
    want = list(rotator_forward_ref(params, data, batch_sizes))
    assert len(got) == len(want)
    for (pg, lg), (pw, lw) in zip(got, want):
        pg = jax.block_until_ready(pg)
        lg = jax.block_until_ready(lg)
        assert pg.shape == pw.shape and lg.shape == lw.shape
        assert bool(jnp.all(jnp.isfinite(pg.real)) & jnp.all(jnp.isfinite(pg.imag)))
        assert bool(jnp.allclose(pg.real, pw.real, atol=atol, rtol=rtol))
        assert bool(jnp.allclose(pg.imag, pw.imag, atol=atol, rtol=rtol))
        assert bool(jnp.allclose(lg.real, lw.real))
        assert bool(jnp.allclose(lg.imag, lw.imag))


if __name__ == "__main__":
    params = init_params(0)

    # Case 1: tiny sequence (single grid block).
    batch_sizes = [4, 4, 3, 2]            # non-increasing, as the packed-batch loop assumes
    data = jax.random.randint(jax.random.PRNGKey(0), (sum(batch_sizes),), 0, VOCAB,
                              dtype=jnp.int32)
    _check_case(params, data, batch_sizes, atol=5e-3, rtol=5e-3)

    # Case 2: longer sequence exercising multi-block history carry + time padding.
    batch_sizes2 = [8, 8, 8, 8, 8, 8, 7, 7, 6, 6, 5, 5, 4, 4, 3, 3, 2, 2, 2, 1, 1]
    data2 = jax.random.randint(jax.random.PRNGKey(1), (sum(batch_sizes2),), 0, VOCAB,
                               dtype=jnp.int32)
    _check_case(params, data2, batch_sizes2, atol=5e-3, rtol=5e-3)

    print("KERNEL_OK")
</pallas_src>

<mosaic_0001>
module attributes {stable_mosaic.version = 11 : i64} {
  func.func @kernel(%arg0: i32, %arg1: memref<3x8x32xf32, #tpu.memory_space<vmem>>, %arg2: memref<3x8x64xf32, #tpu.memory_space<vmem>>, %arg3: memref<3x8x64xf32, #tpu.memory_space<vmem>>, %arg4: memref<3x1x64xf32, #tpu.memory_space<vmem>>, %arg5: memref<2x8x128xf32, #tpu.memory_space<vmem>>, %arg6: memref<2x128x64xf32, #tpu.memory_space<vmem>>, %arg7: memref<2x32x64xf32, #tpu.memory_space<vmem>>, %arg8: memref<2x64x128xf32, #tpu.memory_space<vmem>>, %arg9: memref<2x1x64xf32, #tpu.memory_space<vmem>>, %arg10: memref<2x1x64xf32, #tpu.memory_space<vmem>>, %arg11: memref<2x1x128xf32, #tpu.memory_space<vmem>>, %arg12: memref<2x1x128xf32, #tpu.memory_space<vmem>>, %arg13: memref<128x128xf32, #tpu.memory_space<vmem>>, %arg14: memref<128x32xf32, #tpu.memory_space<vmem>>, %arg15: memref<32x64xf32, #tpu.memory_space<vmem>>, %arg16: memref<1x128xf32, #tpu.memory_space<vmem>>, %arg17: memref<3x8x64xf32, #tpu.memory_space<vmem>>, %arg18: memref<2x8x128xf32, #tpu.memory_space<vmem>>) attributes {dimension_semantics = [#tpu.dimension_semantics<arbitrary>], iteration_bounds = array<i64: 1>, scalar_prefetch = 0 : i64, scratch_operands = 1 : i64, tpu.core_type = #tpu.core_type<tc>, window_params = [{transform_indices = @transform_0, window_bounds = array<i64: 3, 8, 32>}, {transform_indices = @transform_1, window_bounds = array<i64: 3, 8, 64>}, {transform_indices = @transform_2, window_bounds = array<i64: 3, 8, 64>}, {transform_indices = @transform_3, window_bounds = array<i64: 3, 1, 64>}, {pipeline_mode = #tpu.pipeline_mode<synchronous>, transform_indices = @transform_4, window_bounds = array<i64: 2, 8, 128>}, {pipeline_mode = #tpu.pipeline_mode<synchronous>, transform_indices = @transform_5, window_bounds = array<i64: 2, 128, 64>}, {pipeline_mode = #tpu.pipeline_mode<synchronous>, transform_indices = @transform_6, window_bounds = array<i64: 2, 32, 64>}, {pipeline_mode = #tpu.pipeline_mode<synchronous>, transform_indices = @transform_7, window_bounds = array<i64: 2, 64, 128>}, {pipeline_mode = #tpu.pipeline_mode<synchronous>, transform_indices = @transform_8, window_bounds = array<i64: 2, 1, 64>}, {pipeline_mode = #tpu.pipeline_mode<synchronous>, transform_indices = @transform_9, window_bounds = array<i64: 2, 1, 64>}, {pipeline_mode = #tpu.pipeline_mode<synchronous>, transform_indices = @transform_10, window_bounds = array<i64: 2, 1, 128>}, {pipeline_mode = #tpu.pipeline_mode<synchronous>, transform_indices = @transform_11, window_bounds = array<i64: 2, 1, 128>}, {pipeline_mode = #tpu.pipeline_mode<synchronous>, transform_indices = @transform_12, window_bounds = array<i64: 128, 128>}, {pipeline_mode = #tpu.pipeline_mode<synchronous>, transform_indices = @transform_13, window_bounds = array<i64: 128, 32>}, {pipeline_mode = #tpu.pipeline_mode<synchronous>, transform_indices = @transform_14, window_bounds = array<i64: 32, 64>}, {pipeline_mode = #tpu.pipeline_mode<synchronous>, transform_indices = @transform_15, window_bounds = array<i64: 1, 128>}, {transform_indices = @transform_16, window_bounds = array<i64: 3, 8, 64>}]} {
    %c0_i32 = arith.constant 0 : i32
    %0 = arith.cmpi eq, %arg0, %c0_i32 : i32
    %1 = arith.extui %0 : i1 to i32
    %c0_i32_0 = arith.constant 0 : i32
    %2 = arith.cmpi ne, %1, %c0_i32_0 : i32
    scf.if %2 {
      %c0_275 = arith.constant 0 : index
      %c0_276 = arith.constant 0 : index
      %c0_277 = arith.constant 0 : index
      %424 = vector.load %arg5[%c0_275, %c0_276, %c0_277] : memref<2x8x128xf32, #tpu.memory_space<vmem>>, vector<2x8x128xf32>
      %c0_278 = arith.constant 0 : index
      %c0_279 = arith.constant 0 : index
      %c0_280 = arith.constant 0 : index
      %425 = vector.load %arg18[%c0_278, %c0_279, %c0_280] : memref<2x8x128xf32, #tpu.memory_space<vmem>>, vector<2x8x128xf32>
      tpu.vector_store %arg18[%c0_278, %c0_279, %c0_280], %424 {strides = array<i32>} : memref<2x8x128xf32, #tpu.memory_space<vmem>>, vector<2x8x128xf32>,
    } else {
    }
    %c0 = arith.constant 0 : index
    %c0_1 = arith.constant 0 : index
    %3 = vector.load %arg13[%c0, %c0_1] : memref<128x128xf32, #tpu.memory_space<vmem>>, vector<128x128xf32>
    %c0_2 = arith.constant 0 : index
    %c0_3 = arith.constant 0 : index
    %4 = vector.load %arg14[%c0_2, %c0_3] : memref<128x32xf32, #tpu.memory_space<vmem>>, vector<128x32xf32>
    %c0_4 = arith.constant 0 : index
    %c0_5 = arith.constant 0 : index
    %5 = vector.load %arg15[%c0_4, %c0_5] : memref<32x64xf32, #tpu.memory_space<vmem>>, vector<32x64xf32>
    %c0_6 = arith.constant 0 : index
    %c0_7 = arith.constant 0 : index
    %6 = vector.load %arg16[%c0_6, %c0_7] : memref<1x128xf32, #tpu.memory_space<vmem>>, vector<1x128xf32>
    %c0_8 = arith.constant 0 : index
    %c0_9 = arith.constant 0 : index
    %c0_10 = arith.constant 0 : index
    %7 = vector.load %arg1[%c0_8, %c0_9, %c0_10] : memref<3x8x32xf32, #tpu.memory_space<vmem>>, vector<1x8x32xf32>
    %8 = vector.shape_cast %7 : vector<1x8x32xf32> to vector<8x32xf32>
    %c0_11 = arith.constant 0 : index
    %c0_12 = arith.constant 0 : index
    %c0_13 = arith.constant 0 : index
    %9 = vector.load %arg7[%c0_11, %c0_12, %c0_13] : memref<2x32x64xf32, #tpu.memory_space<vmem>>, vector<1x32x64xf32>
    %10 = vector.shape_cast %9 : vector<1x32x64xf32> to vector<32x64xf32>
    %cst = arith.constant dense<0.000000e+00> : vector<8x64xf32>
    %11 = tpu.matmul %8, %10, %cst {dimension_numbers = #tpu.dot_dimension_numbers<[1], [0], [0], [1], [0, 0, 1, 1], [], []>, precision = #tpu.contract_precision<fp32>} : vector<8x32xf32>, vector<32x64xf32>, vector<8x64xf32> -> vector<8x64xf32>
    %c0_14 = arith.constant 0 : index
    %c0_15 = arith.constant 0 : index
    %c0_16 = arith.constant 0 : index
    %12 = vector.load %arg18[%c0_14, %c0_15, %c0_16] : memref<2x8x128xf32, #tpu.memory_space<vmem>>, vector<1x8x128xf32>
    %13 = vector.shape_cast %12 : vector<1x8x128xf32> to vector<8x128xf32>
    %c0_17 = arith.constant 0 : index
    %c0_18 = arith.constant 0 : index
    %c0_19 = arith.constant 0 : index
    %14 = vector.load %arg6[%c0_17, %c0_18, %c0_19] : memref<2x128x64xf32, #tpu.memory_space<vmem>>, vector<1x128x64xf32>
    %15 = vector.shape_cast %14 : vector<1x128x64xf32> to vector<128x64xf32>
    %cst_20 = arith.constant dense<0.000000e+00> : vector<8x64xf32>
    %16 = tpu.matmul %13, %15, %cst_20 {dimension_numbers = #tpu.dot_dimension_numbers<[1], [0], [0], [1], [0, 0, 1, 1], [], []>, precision = #tpu.contract_precision<fp32>} : vector<8x128xf32>, vector<128x64xf32>, vector<8x64xf32> -> vector<8x64xf32>
    %17 = arith.subf %11, %16 : vector<8x64xf32>
    %18 = math.cos %17 : vector<8x64xf32>
    %cst_21 = arith.constant 2.000000e+00 : f32
    %19 = vector.broadcast %cst_21 : f32 to vector<8x64xf32>
    %20 = arith.mulf %19, %18 : vector<8x64xf32>
    %21 = arith.mulf %20, %18 : vector<8x64xf32>
    %cst_22 = arith.constant 1.000000e+00 : f32
    %22 = vector.broadcast %cst_22 : f32 to vector<8x64xf32>
    %23 = arith.subf %21, %22 : vector<8x64xf32>
    %c0_23 = arith.constant 0 : index
    %c0_24 = arith.constant 0 : index
    %c0_25 = arith.constant 0 : index
    %24 = vector.load %arg9[%c0_23, %c0_24, %c0_25] : memref<2x1x64xf32, #tpu.memory_space<vmem>>, vector<1x1x64xf32>
    %25 = vector.shape_cast %24 : vector<1x1x64xf32> to vector<1x64xf32>
    %c0_26 = arith.constant 0 : index
    %c0_27 = arith.constant 0 : index
    %c0_28 = arith.constant 0 : index
    %26 = vector.load %arg10[%c0_26, %c0_27, %c0_28] : memref<2x1x64xf32, #tpu.memory_space<vmem>>, vector<1x1x64xf32>
    %27 = vector.shape_cast %26 : vector<1x1x64xf32> to vector<1x64xf32>
    %cst_29 = arith.constant -1.000000e+00 : f32
    %28 = vector.broadcast %cst_29 : f32 to vector<1x64xf32>
    %29 = arith.subf %28, %25 : vector<1x64xf32>
    %30 = vector.broadcast %29 : vector<1x64xf32> to vector<8x64xf32>
    %31 = arith.addf %30, %18 : vector<8x64xf32>
    %32 = vector.broadcast %25 : vector<1x64xf32> to vector<8x64xf32>
    %33 = arith.mulf %32, %23 : vector<8x64xf32>
    %34 = arith.addf %31, %33 : vector<8x64xf32>
    %35 = vector.broadcast %27 : vector<1x64xf32> to vector<8x64xf32>
    %36 = arith.mulf %35, %34 : vector<8x64xf32>
    %cst_30 = arith.constant 1.000000e+00 : f32
    %37 = vector.broadcast %cst_30 : f32 to vector<8x64xf32>
    %38 = arith.addf %37, %36 : vector<8x64xf32>
    %c0_31 = arith.constant 0 : index
    %c0_32 = arith.constant 0 : index
    %c0_33 = arith.constant 0 : index
    %39 = vector.load %arg8[%c0_31, %c0_32, %c0_33] : memref<2x64x128xf32, #tpu.memory_space<vmem>>, vector<1x64x128xf32>
    %40 = vector.shape_cast %39 : vector<1x64x128xf32> to vector<64x128xf32>
    %cst_34 = arith.constant dense<0.000000e+00> : vector<8x128xf32>
    %41 = tpu.matmul %38, %40, %cst_34 {dimension_numbers = #tpu.dot_dimension_numbers<[1], [0], [0], [1], [0, 0, 1, 1], [], []>, precision = #tpu.contract_precision<fp32>} : vector<8x64xf32>, vector<64x128xf32>, vector<8x128xf32> -> vector<8x128xf32>
    %42 = arith.mulf %41, %41 : vector<8x128xf32>
    %43 = tpu.concatenate %41, %42 in 0 : vector<8x128xf32>, vector<8x128xf32> -> vector<16x128xf32>
    %cst_35 = arith.constant dense<0.000000e+00> : vector<16x128xf32>
    %44 = tpu.matmul %43, %3, %cst_35 {dimension_numbers = #tpu.dot_dimension_numbers<[1], [0], [0], [1], [0, 0, 1, 1], [], []>, precision = #tpu.contract_precision<fp32>} : vector<16x128xf32>, vector<128x128xf32>, vector<16x128xf32> -> vector<16x128xf32>
    %45 = vector.extract_strided_slice %44 {offsets = [0, 0], sizes = [8, 128], strides = [1, 1]} : vector<16x128xf32> to vector<8x128xf32>
    %46 = vector.extract_strided_slice %44 {offsets = [8, 0], sizes = [8, 128], strides = [1, 1]} : vector<16x128xf32> to vector<8x128xf32>
    %47 = arith.mulf %45, %45 : vector<8x128xf32>
    %48 = arith.subf %46, %47 : vector<8x128xf32>
    %49 = arith.subf %41, %45 : vector<8x128xf32>
    %cst_36 = arith.constant 9.99999974E-6 : f32
    %50 = vector.broadcast %cst_36 : f32 to vector<8x128xf32>
    %51 = arith.addf %48, %50 : vector<8x128xf32>
    %52 = math.rsqrt %51 : vector<8x128xf32>
    %53 = arith.mulf %49, %52 : vector<8x128xf32>
    %c0_37 = arith.constant 0 : index
    %c0_38 = arith.constant 0 : index
    %c0_39 = arith.constant 0 : index
    %54 = vector.load %arg11[%c0_37, %c0_38, %c0_39] : memref<2x1x128xf32, #tpu.memory_space<vmem>>, vector<1x1x128xf32>
    %55 = vector.shape_cast %54 : vector<1x1x128xf32> to vector<1x128xf32>
    %56 = vector.broadcast %55 : vector<1x128xf32> to vector<8x128xf32>
    %57 = arith.mulf %53, %56 : vector<8x128xf32>
    %c0_40 = arith.constant 0 : index
    %c0_41 = arith.constant 0 : index
    %c0_42 = arith.constant 0 : index
    %58 = vector.load %arg12[%c0_40, %c0_41, %c0_42] : memref<2x1x128xf32, #tpu.memory_space<vmem>>, vector<1x1x128xf32>
    %59 = vector.shape_cast %58 : vector<1x1x128xf32> to vector<1x128xf32>
    %60 = vector.broadcast %59 : vector<1x128xf32> to vector<8x128xf32>
    %61 = arith.addf %57, %60 : vector<8x128xf32>
    %62 = vector.broadcast %6 : vector<1x128xf32> to vector<8x128xf32>
    %63 = arith.subf %61, %62 : vector<8x128xf32>
    %c0_43 = arith.constant 0 : index
    %c0_44 = arith.constant 0 : index
    %c0_45 = arith.constant 0 : index
    %64 = vector.load %arg18[%c0_43, %c0_44, %c0_45] : memref<2x8x128xf32, #tpu.memory_space<vmem>>, vector<1x8x128xf32>
    %65 = vector.shape_cast %64 : vector<1x8x128xf32> to vector<8x128xf32>
    %66 = vector.shape_cast %63 : vector<8x128xf32> to vector<1x8x128xf32>
    tpu.vector_store %arg18[%c0_43, %c0_44, %c0_45], %66 {strides = array<i32>} : memref<2x8x128xf32, #tpu.memory_space<vmem>>, vector<1x8x128xf32>,
    %cst_46 = arith.constant dense<0.000000e+00> : vector<8x32xf32>
    %67 = tpu.matmul %61, %4, %cst_46 {dimension_numbers = #tpu.dot_dimension_numbers<[1], [0], [0], [1], [0, 0, 1, 1], [], []>, precision = #tpu.contract_precision<fp32>} : vector<8x128xf32>, vector<128x32xf32>, vector<8x32xf32> -> vector<8x32xf32>
    %68 = arith.subf %8, %67 : vector<8x32xf32>
    %c1 = arith.constant 1 : index
    %c0_47 = arith.constant 0 : index
    %c0_48 = arith.constant 0 : index
    %69 = vector.load %arg7[%c1, %c0_47, %c0_48] : memref<2x32x64xf32, #tpu.memory_space<vmem>>, vector<1x32x64xf32>
    %70 = vector.shape_cast %69 : vector<1x32x64xf32> to vector<32x64xf32>
    %cst_49 = arith.constant dense<0.000000e+00> : vector<8x64xf32>
    %71 = tpu.matmul %68, %70, %cst_49 {dimension_numbers = #tpu.dot_dimension_numbers<[1], [0], [0], [1], [0, 0, 1, 1], [], []>, precision = #tpu.contract_precision<fp32>} : vector<8x32xf32>, vector<32x64xf32>, vector<8x64xf32> -> vector<8x64xf32>
    %c1_50 = arith.constant 1 : index
    %c0_51 = arith.constant 0 : index
    %c0_52 = arith.constant 0 : index
    %72 = vector.load %arg18[%c1_50, %c0_51, %c0_52] : memref<2x8x128xf32, #tpu.memory_space<vmem>>, vector<1x8x128xf32>
    %73 = vector.shape_cast %72 : vector<1x8x128xf32> to vector<8x128xf32>
    %c1_53 = arith.constant 1 : index
    %c0_54 = arith.constant 0 : index
    %c0_55 = arith.constant 0 : index
    %74 = vector.load %arg6[%c1_53, %c0_54, %c0_55] : memref<2x128x64xf32, #tpu.memory_space<vmem>>, vector<1x128x64xf32>
    %75 = vector.shape_cast %74 : vector<1x128x64xf32> to vector<128x64xf32>
    %cst_56 = arith.constant dense<0.000000e+00> : vector<8x64xf32>
    %76 = tpu.matmul %73, %75, %cst_56 {dimension_numbers = #tpu.dot_dimension_numbers<[1], [0], [0], [1], [0, 0, 1, 1], [], []>, precision = #tpu.contract_precision<fp32>} : vector<8x128xf32>, vector<128x64xf32>, vector<8x64xf32> -> vector<8x64xf32>
    %77 = arith.subf %71, %76 : vector<8x64xf32>
    %78 = math.cos %77 : vector<8x64xf32>
    %cst_57 = arith.constant 2.000000e+00 : f32
    %79 = vector.broadcast %cst_57 : f32 to vector<8x64xf32>
    %80 = arith.mulf %79, %78 : vector<8x64xf32>
    %81 = arith.mulf %80, %78 : vector<8x64xf32>
    %cst_58 = arith.constant 1.000000e+00 : f32
    %82 = vector.broadcast %cst_58 : f32 to vector<8x64xf32>
    %83 = arith.subf %81, %82 : vector<8x64xf32>
    %c1_59 = arith.constant 1 : index
    %c0_60 = arith.constant 0 : index
    %c0_61 = arith.constant 0 : index
    %84 = vector.load %arg9[%c1_59, %c0_60, %c0_61] : memref<2x1x64xf32, #tpu.memory_space<vmem>>, vector<1x1x64xf32>
    %85 = vector.shape_cast %84 : vector<1x1x64xf32> to vector<1x64xf32>
    %c1_62 = arith.constant 1 : index
    %c0_63 = arith.constant 0 : index
    %c0_64 = arith.constant 0 : index
    %86 = vector.load %arg10[%c1_62, %c0_63, %c0_64] : memref<2x1x64xf32, #tpu.memory_space<vmem>>, vector<1x1x64xf32>
    %87 = vector.shape_cast %86 : vector<1x1x64xf32> to vector<1x64xf32>
    %cst_65 = arith.constant -1.000000e+00 : f32
    %88 = vector.broadcast %cst_65 : f32 to vector<1x64xf32>
    %89 = arith.subf %88, %85 : vector<1x64xf32>
    %90 = vector.broadcast %89 : vector<1x64xf32> to vector<8x64xf32>
    %91 = arith.addf %90, %78 : vector<8x64xf32>
    %92 = vector.broadcast %85 : vector<1x64xf32> to vector<8x64xf32>
    %93 = arith.mulf %92, %83 : vector<8x64xf32>
    %94 = arith.addf %91, %93 : vector<8x64xf32>
    %95 = vector.broadcast %87 : vector<1x64xf32> to vector<8x64xf32>
    %96 = arith.mulf %95, %94 : vector<8x64xf32>
    %cst_66 = arith.constant 1.000000e+00 : f32
    %97 = vector.broadcast %cst_66 : f32 to vector<8x64xf32>
    %98 = arith.addf %97, %96 : vector<8x64xf32>
    %c1_67 = arith.constant 1 : index
    %c0_68 = arith.constant 0 : index
    %c0_69 = arith.constant 0 : index
    %99 = vector.load %arg8[%c1_67, %c0_68, %c0_69] : memref<2x64x128xf32, #tpu.memory_space<vmem>>, vector<1x64x128xf32>
    %100 = vector.shape_cast %99 : vector<1x64x128xf32> to vector<64x128xf32>
    %cst_70 = arith.constant dense<0.000000e+00> : vector<8x128xf32>
    %101 = tpu.matmul %98, %100, %cst_70 {dimension_numbers = #tpu.dot_dimension_numbers<[1], [0], [0], [1], [0, 0, 1, 1], [], []>, precision = #tpu.contract_precision<fp32>} : vector<8x64xf32>, vector<64x128xf32>, vector<8x128xf32> -> vector<8x128xf32>
    %102 = arith.mulf %101, %101 : vector<8x128xf32>
    %103 = tpu.concatenate %101, %102 in 0 : vector<8x128xf32>, vector<8x128xf32> -> vector<16x128xf32>
    %cst_71 = arith.constant dense<0.000000e+00> : vector<16x128xf32>
    %104 = tpu.matmul %103, %3, %cst_71 {dimension_numbers = #tpu.dot_dimension_numbers<[1], [0], [0], [1], [0, 0, 1, 1], [], []>, precision = #tpu.contract_precision<fp32>} : vector<16x128xf32>, vector<128x128xf32>, vector<16x128xf32> -> vector<16x128xf32>
    %105 = vector.extract_strided_slice %104 {offsets = [0, 0], sizes = [8, 128], strides = [1, 1]} : vector<16x128xf32> to vector<8x128xf32>
    %106 = vector.extract_strided_slice %104 {offsets = [8, 0], sizes = [8, 128], strides = [1, 1]} : vector<16x128xf32> to vector<8x128xf32>
    %107 = arith.mulf %105, %105 : vector<8x128xf32>
    %108 = arith.subf %106, %107 : vector<8x128xf32>
    %109 = arith.subf %101, %105 : vector<8x128xf32>
    %cst_72 = arith.constant 9.99999974E-6 : f32
    %110 = vector.broadcast %cst_72 : f32 to vector<8x128xf32>
    %111 = arith.addf %108, %110 : vector<8x128xf32>
    %112 = math.rsqrt %111 : vector<8x128xf32>
    %113 = arith.mulf %109, %112 : vector<8x128xf32>
    %c1_73 = arith.constant 1 : index
    %c0_74 = arith.constant 0 : index
    %c0_75 = arith.constant 0 : index
    %114 = vector.load %arg11[%c1_73, %c0_74, %c0_75] : memref<2x1x128xf32, #tpu.memory_space<vmem>>, vector<1x1x128xf32>
    %115 = vector.shape_cast %114 : vector<1x1x128xf32> to vector<1x128xf32>
    %116 = vector.broadcast %115 : vector<1x128xf32> to vector<8x128xf32>
    %117 = arith.mulf %113, %116 : vector<8x128xf32>
    %c1_76 = arith.constant 1 : index
    %c0_77 = arith.constant 0 : index
    %c0_78 = arith.constant 0 : index
    %118 = vector.load %arg12[%c1_76, %c0_77, %c0_78] : memref<2x1x128xf32, #tpu.memory_space<vmem>>, vector<1x1x128xf32>
    %119 = vector.shape_cast %118 : vector<1x1x128xf32> to vector<1x128xf32>
    %120 = vector.broadcast %119 : vector<1x128xf32> to vector<8x128xf32>
    %121 = arith.addf %117, %120 : vector<8x128xf32>
    %122 = vector.broadcast %6 : vector<1x128xf32> to vector<8x128xf32>
    %123 = arith.subf %121, %122 : vector<8x128xf32>
    %c1_79 = arith.constant 1 : index
    %c0_80 = arith.constant 0 : index
    %c0_81 = arith.constant 0 : index
    %124 = vector.load %arg18[%c1_79, %c0_80, %c0_81] : memref<2x8x128xf32, #tpu.memory_space<vmem>>, vector<1x8x128xf32>
    %125 = vector.shape_cast %124 : vector<1x8x128xf32> to vector<8x128xf32>
    %126 = vector.shape_cast %123 : vector<8x128xf32> to vector<1x8x128xf32>
    tpu.vector_store %arg18[%c1_79, %c0_80, %c0_81], %126 {strides = array<i32>} : memref<2x8x128xf32, #tpu.memory_space<vmem>>, vector<1x8x128xf32>,
    %cst_82 = arith.constant dense<0.000000e+00> : vector<8x32xf32>
    %127 = tpu.matmul %121, %4, %cst_82 {dimension_numbers = #tpu.dot_dimension_numbers<[1], [0], [0], [1], [0, 0, 1, 1], [], []>, precision = #tpu.contract_precision<fp32>} : vector<8x128xf32>, vector<128x32xf32>, vector<8x32xf32> -> vector<8x32xf32>
    %128 = arith.addf %67, %127 : vector<8x32xf32>
    %cst_83 = arith.constant dense<0.000000e+00> : vector<8x64xf32>
    %129 = tpu.matmul %128, %5, %cst_83 {dimension_numbers = #tpu.dot_dimension_numbers<[1], [0], [0], [1], [0, 0, 1, 1], [], []>, precision = #tpu.contract_precision<fp32>} : vector<8x32xf32>, vector<32x64xf32>, vector<8x64xf32> -> vector<8x64xf32>
    %c0_84 = arith.constant 0 : index
    %c0_85 = arith.constant 0 : index
    %c0_86 = arith.constant 0 : index
    %130 = vector.load %arg4[%c0_84, %c0_85, %c0_86] : memref<3x1x64xf32, #tpu.memory_space<vmem>>, vector<1x1x64xf32>
    %131 = vector.shape_cast %130 : vector<1x1x64xf32> to vector<1x64xf32>
    %132 = vector.broadcast %131 : vector<1x64xf32> to vector<8x64xf32>
    %133 = arith.addf %129, %132 : vector<8x64xf32>
    %c0_87 = arith.constant 0 : index
    %c0_88 = arith.constant 0 : index
    %c0_89 = arith.constant 0 : index
    %134 = vector.load %arg2[%c0_87, %c0_88, %c0_89] : memref<3x8x64xf32, #tpu.memory_space<vmem>>, vector<1x8x64xf32>
    %135 = vector.shape_cast %134 : vector<1x8x64xf32> to vector<8x64xf32>
    %136 = math.cos %133 : vector<8x64xf32>
    %137 = arith.mulf %135, %136 : vector<8x64xf32>
    %c0_90 = arith.constant 0 : index
    %c0_91 = arith.constant 0 : index
    %c0_92 = arith.constant 0 : index
    %138 = vector.load %arg3[%c0_90, %c0_91, %c0_92] : memref<3x8x64xf32, #tpu.memory_space<vmem>>, vector<1x8x64xf32>
    %139 = vector.shape_cast %138 : vector<1x8x64xf32> to vector<8x64xf32>
    %140 = math.sin %133 : vector<8x64xf32>
    %141 = arith.mulf %139, %140 : vector<8x64xf32>
    %142 = arith.addf %137, %141 : vector<8x64xf32>
    %c0_93 = arith.constant 0 : index
    %c0_94 = arith.constant 0 : index
    %c0_95 = arith.constant 0 : index
    %143 = vector.load %arg17[%c0_93, %c0_94, %c0_95] : memref<3x8x64xf32, #tpu.memory_space<vmem>>, vector<1x8x64xf32>
    %144 = vector.shape_cast %143 : vector<1x8x64xf32> to vector<8x64xf32>
    %145 = vector.shape_cast %142 : vector<8x64xf32> to vector<1x8x64xf32>
    tpu.vector_store %arg17[%c0_93, %c0_94, %c0_95], %145 {strides = array<i32>} : memref<3x8x64xf32, #tpu.memory_space<vmem>>, vector<1x8x64xf32>,
    %c1_96 = arith.constant 1 : index
    %c0_97 = arith.constant 0 : index
    %c0_98 = arith.constant 0 : index
    %146 = vector.load %arg1[%c1_96, %c0_97, %c0_98] : memref<3x8x32xf32, #tpu.memory_space<vmem>>, vector<1x8x32xf32>
    %147 = vector.shape_cast %146 : vector<1x8x32xf32> to vector<8x32xf32>
    %c0_99 = arith.constant 0 : index
    %c0_100 = arith.constant 0 : index
    %c0_101 = arith.constant 0 : index
    %148 = vector.load %arg7[%c0_99, %c0_100, %c0_101] : memref<2x32x64xf32, #tpu.memory_space<vmem>>, vector<1x32x64xf32>
    %149 = vector.shape_cast %148 : vector<1x32x64xf32> to vector<32x64xf32>
    %cst_102 = arith.constant dense<0.000000e+00> : vector<8x64xf32>
    %150 = tpu.matmul %147, %149, %cst_102 {dimension_numbers = #tpu.dot_dimension_numbers<[1], [0], [0], [1], [0, 0, 1, 1], [], []>, precision = #tpu.contract_precision<fp32>} : vector<8x32xf32>, vector<32x64xf32>, vector<8x64xf32> -> vector<8x64xf32>
    %c0_103 = arith.constant 0 : index
    %c0_104 = arith.constant 0 : index
    %c0_105 = arith.constant 0 : index
    %151 = vector.load %arg18[%c0_103, %c0_104, %c0_105] : memref<2x8x128xf32, #tpu.memory_space<vmem>>, vector<1x8x128xf32>
    %152 = vector.shape_cast %151 : vector<1x8x128xf32> to vector<8x128xf32>
    %c0_106 = arith.constant 0 : index
    %c0_107 = arith.constant 0 : index
    %c0_108 = arith.constant 0 : index
    %153 = vector.load %arg6[%c0_106, %c0_107, %c0_108] : memref<2x128x64xf32, #tpu.memory_space<vmem>>, vector<1x128x64xf32>
    %154 = vector.shape_cast %153 : vector<1x128x64xf32> to vector<128x64xf32>
    %cst_109 = arith.constant dense<0.000000e+00> : vector<8x64xf32>
    %155 = tpu.matmul %152, %154, %cst_109 {dimension_numbers = #tpu.dot_dimension_numbers<[1], [0], [0], [1], [0, 0, 1, 1], [], []>, precision = #tpu.contract_precision<fp32>} : vector<8x128xf32>, vector<128x64xf32>, vector<8x64xf32> -> vector<8x64xf32>
    %156 = arith.subf %150, %155 : vector<8x64xf32>
    %157 = math.cos %156 : vector<8x64xf32>
    %cst_110 = arith.constant 2.000000e+00 : f32
    %158 = vector.broadcast %cst_110 : f32 to vector<8x64xf32>
    %159 = arith.mulf %158, %157 : vector<8x64xf32>
    %160 = arith.mulf %159, %157 : vector<8x64xf32>
    %cst_111 = arith.constant 1.000000e+00 : f32
    %161 = vector.broadcast %cst_111 : f32 to vector<8x64xf32>
    %162 = arith.subf %160, %161 : vector<8x64xf32>
    %c0_112 = arith.constant 0 : index
    %c0_113 = arith.constant 0 : index
    %c0_114 = arith.constant 0 : index
    %163 = vector.load %arg9[%c0_112, %c0_113, %c0_114] : memref<2x1x64xf32, #tpu.memory_space<vmem>>, vector<1x1x64xf32>
    %164 = vector.shape_cast %163 : vector<1x1x64xf32> to vector<1x64xf32>
    %c0_115 = arith.constant 0 : index
    %c0_116 = arith.constant 0 : index
    %c0_117 = arith.constant 0 : index
    %165 = vector.load %arg10[%c0_115, %c0_116, %c0_117] : memref<2x1x64xf32, #tpu.memory_space<vmem>>, vector<1x1x64xf32>
    %166 = vector.shape_cast %165 : vector<1x1x64xf32> to vector<1x64xf32>
    %cst_118 = arith.constant -1.000000e+00 : f32
    %167 = vector.broadcast %cst_118 : f32 to vector<1x64xf32>
    %168 = arith.subf %167, %164 : vector<1x64xf32>
    %169 = vector.broadcast %168 : vector<1x64xf32> to vector<8x64xf32>
    %170 = arith.addf %169, %157 : vector<8x64xf32>
    %171 = vector.broadcast %164 : vector<1x64xf32> to vector<8x64xf32>
    %172 = arith.mulf %171, %162 : vector<8x64xf32>
    %173 = arith.addf %170, %172 : vector<8x64xf32>
    %174 = vector.broadcast %166 : vector<1x64xf32> to vector<8x64xf32>
    %175 = arith.mulf %174, %173 : vector<8x64xf32>
    %cst_119 = arith.constant 1.000000e+00 : f32
    %176 = vector.broadcast %cst_119 : f32 to vector<8x64xf32>
    %177 = arith.addf %176, %175 : vector<8x64xf32>
    %c0_120 = arith.constant 0 : index
    %c0_121 = arith.constant 0 : index
    %c0_122 = arith.constant 0 : index
    %178 = vector.load %arg8[%c0_120, %c0_121, %c0_122] : memref<2x64x128xf32, #tpu.memory_space<vmem>>, vector<1x64x128xf32>
    %179 = vector.shape_cast %178 : vector<1x64x128xf32> to vector<64x128xf32>
    %cst_123 = arith.constant dense<0.000000e+00> : vector<8x128xf32>
    %180 = tpu.matmul %177, %179, %cst_123 {dimension_numbers = #tpu.dot_dimension_numbers<[1], [0], [0], [1], [0, 0, 1, 1], [], []>, precision = #tpu.contract_precision<fp32>} : vector<8x64xf32>, vector<64x128xf32>, vector<8x128xf32> -> vector<8x128xf32>
    %181 = arith.mulf %180, %180 : vector<8x128xf32>
    %182 = tpu.concatenate %180, %181 in 0 : vector<8x128xf32>, vector<8x128xf32> -> vector<16x128xf32>
    %cst_124 = arith.constant dense<0.000000e+00> : vector<16x128xf32>
    %183 = tpu.matmul %182, %3, %cst_124 {dimension_numbers = #tpu.dot_dimension_numbers<[1], [0], [0], [1], [0, 0, 1, 1], [], []>, precision = #tpu.contract_precision<fp32>} : vector<16x128xf32>, vector<128x128xf32>, vector<16x128xf32> -> vector<16x128xf32>
    %184 = vector.extract_strided_slice %183 {offsets = [0, 0], sizes = [8, 128], strides = [1, 1]} : vector<16x128xf32> to vector<8x128xf32>
    %185 = vector.extract_strided_slice %183 {offsets = [8, 0], sizes = [8, 128], strides = [1, 1]} : vector<16x128xf32> to vector<8x128xf32>
    %186 = arith.mulf %184, %184 : vector<8x128xf32>
    %187 = arith.subf %185, %186 : vector<8x128xf32>
    %188 = arith.subf %180, %184 : vector<8x128xf32>
    %cst_125 = arith.constant 9.99999974E-6 : f32
    %189 = vector.broadcast %cst_125 : f32 to vector<8x128xf32>
    %190 = arith.addf %187, %189 : vector<8x128xf32>
    %191 = math.rsqrt %190 : vector<8x128xf32>
    %192 = arith.mulf %188, %191 : vector<8x128xf32>
    %c0_126 = arith.constant 0 : index
    %c0_127 = arith.constant 0 : index
    %c0_128 = arith.constant 0 : index
    %193 = vector.load %arg11[%c0_126, %c0_127, %c0_128] : memref<2x1x128xf32, #tpu.memory_space<vmem>>, vector<1x1x128xf32>
    %194 = vector.shape_cast %193 : vector<1x1x128xf32> to vector<1x128xf32>
    %195 = vector.broadcast %194 : vector<1x128xf32> to vector<8x128xf32>
    %196 = arith.mulf %192, %195 : vector<8x128xf32>
    %c0_129 = arith.constant 0 : index
    %c0_130 = arith.constant 0 : index
    %c0_131 = arith.constant 0 : index
    %197 = vector.load %arg12[%c0_129, %c0_130, %c0_131] : memref<2x1x128xf32, #tpu.memory_space<vmem>>, vector<1x1x128xf32>
    %198 = vector.shape_cast %197 : vector<1x1x128xf32> to vector<1x128xf32>
    %199 = vector.broadcast %198 : vector<1x128xf32> to vector<8x128xf32>
    %200 = arith.addf %196, %199 : vector<8x128xf32>
    %201 = vector.broadcast %6 : vector<1x128xf32> to vector<8x128xf32>
    %202 = arith.subf %200, %201 : vector<8x128xf32>
    %c0_132 = arith.constant 0 : index
    %c0_133 = arith.constant 0 : index
    %c0_134 = arith.constant 0 : index
    %203 = vector.load %arg18[%c0_132, %c0_133, %c0_134] : memref<2x8x128xf32, #tpu.memory_space<vmem>>, vector<1x8x128xf32>
    %204 = vector.shape_cast %203 : vector<1x8x128xf32> to vector<8x128xf32>
    %205 = vector.shape_cast %202 : vector<8x128xf32> to vector<1x8x128xf32>
    tpu.vector_store %arg18[%c0_132, %c0_133, %c0_134], %205 {strides = array<i32>} : memref<2x8x128xf32, #tpu.memory_space<vmem>>, vector<1x8x128xf32>,
    %cst_135 = arith.constant dense<0.000000e+00> : vector<8x32xf32>
    %206 = tpu.matmul %200, %4, %cst_135 {dimension_numbers = #tpu.dot_dimension_numbers<[1], [0], [0], [1], [0, 0, 1, 1], [], []>, precision = #tpu.contract_precision<fp32>} : vector<8x128xf32>, vector<128x32xf32>, vector<8x32xf32> -> vector<8x32xf32>
    %207 = arith.subf %147, %206 : vector<8x32xf32>
    %c1_136 = arith.constant 1 : index
    %c0_137 = arith.constant 0 : index
    %c0_138 = arith.constant 0 : index
    %208 = vector.load %arg7[%c1_136, %c0_137, %c0_138] : memref<2x32x64xf32, #tpu.memory_space<vmem>>, vector<1x32x64xf32>
    %209 = vector.shape_cast %208 : vector<1x32x64xf32> to vector<32x64xf32>
    %cst_139 = arith.constant dense<0.000000e+00> : vector<8x64xf32>
    %210 = tpu.matmul %207, %209, %cst_139 {dimension_numbers = #tpu.dot_dimension_numbers<[1], [0], [0], [1], [0, 0, 1, 1], [], []>, precision = #tpu.contract_precision<fp32>} : vector<8x32xf32>, vector<32x64xf32>, vector<8x64xf32> -> vector<8x64xf32>
    %c1_140 = arith.constant 1 : index
    %c0_141 = arith.constant 0 : index
    %c0_142 = arith.constant 0 : index
    %211 = vector.load %arg18[%c1_140, %c0_141, %c0_142] : memref<2x8x128xf32, #tpu.memory_space<vmem>>, vector<1x8x128xf32>
    %212 = vector.shape_cast %211 : vector<1x8x128xf32> to vector<8x128xf32>
    %c1_143 = arith.constant 1 : index
    %c0_144 = arith.constant 0 : index
    %c0_145 = arith.constant 0 : index
    %213 = vector.load %arg6[%c1_143, %c0_144, %c0_145] : memref<2x128x64xf32, #tpu.memory_space<vmem>>, vector<1x128x64xf32>
    %214 = vector.shape_cast %213 : vector<1x128x64xf32> to vector<128x64xf32>
    %cst_146 = arith.constant dense<0.000000e+00> : vector<8x64xf32>
    %215 = tpu.matmul %212, %214, %cst_146 {dimension_numbers = #tpu.dot_dimension_numbers<[1], [0], [0], [1], [0, 0, 1, 1], [], []>, precision = #tpu.contract_precision<fp32>} : vector<8x128xf32>, vector<128x64xf32>, vector<8x64xf32> -> vector<8x64xf32>
    %216 = arith.subf %210, %215 : vector<8x64xf32>
    %217 = math.cos %216 : vector<8x64xf32>
    %cst_147 = arith.constant 2.000000e+00 : f32
    %218 = vector.broadcast %cst_147 : f32 to vector<8x64xf32>
    %219 = arith.mulf %218, %217 : vector<8x64xf32>
    %220 = arith.mulf %219, %217 : vector<8x64xf32>
    %cst_148 = arith.constant 1.000000e+00 : f32
    %221 = vector.broadcast %cst_148 : f32 to vector<8x64xf32>
    %222 = arith.subf %220, %221 : vector<8x64xf32>
    %c1_149 = arith.constant 1 : index
    %c0_150 = arith.constant 0 : index
    %c0_151 = arith.constant 0 : index
    %223 = vector.load %arg9[%c1_149, %c0_150, %c0_151] : memref<2x1x64xf32, #tpu.memory_space<vmem>>, vector<1x1x64xf32>
    %224 = vector.shape_cast %223 : vector<1x1x64xf32> to vector<1x64xf32>
    %c1_152 = arith.constant 1 : index
    %c0_153 = arith.constant 0 : index
    %c0_154 = arith.constant 0 : index
    %225 = vector.load %arg10[%c1_152, %c0_153, %c0_154] : memref<2x1x64xf32, #tpu.memory_space<vmem>>, vector<1x1x64xf32>
    %226 = vector.shape_cast %225 : vector<1x1x64xf32> to vector<1x64xf32>
    %cst_155 = arith.constant -1.000000e+00 : f32
    %227 = vector.broadcast %cst_155 : f32 to vector<1x64xf32>
    %228 = arith.subf %227, %224 : vector<1x64xf32>
    %229 = vector.broadcast %228 : vector<1x64xf32> to vector<8x64xf32>
    %230 = arith.addf %229, %217 : vector<8x64xf32>
    %231 = vector.broadcast %224 : vector<1x64xf32> to vector<8x64xf32>
    %232 = arith.mulf %231, %222 : vector<8x64xf32>
    %233 = arith.addf %230, %232 : vector<8x64xf32>
    %234 = vector.broadcast %226 : vector<1x64xf32> to vector<8x64xf32>
    %235 = arith.mulf %234, %233 : vector<8x64xf32>
    %cst_156 = arith.constant 1.000000e+00 : f32
    %236 = vector.broadcast %cst_156 : f32 to vector<8x64xf32>
    %237 = arith.addf %236, %235 : vector<8x64xf32>
    %c1_157 = arith.constant 1 : index
    %c0_158 = arith.constant 0 : index
    %c0_159 = arith.constant 0 : index
    %238 = vector.load %arg8[%c1_157, %c0_158, %c0_159] : memref<2x64x128xf32, #tpu.memory_space<vmem>>, vector<1x64x128xf32>
    %239 = vector.shape_cast %238 : vector<1x64x128xf32> to vector<64x128xf32>
    %cst_160 = arith.constant dense<0.000000e+00> : vector<8x128xf32>
    %240 = tpu.matmul %237, %239, %cst_160 {dimension_numbers = #tpu.dot_dimension_numbers<[1], [0], [0], [1], [0, 0, 1, 1], [], []>, precision = #tpu.contract_precision<fp32>} : vector<8x64xf32>, vector<64x128xf32>, vector<8x128xf32> -> vector<8x128xf32>
    %241 = arith.mulf %240, %240 : vector<8x128xf32>
    %242 = tpu.concatenate %240, %241 in 0 : vector<8x128xf32>, vector<8x128xf32> -> vector<16x128xf32>
    %cst_161 = arith.constant dense<0.000000e+00> : vector<16x128xf32>
    %243 = tpu.matmul %242, %3, %cst_161 {dimension_numbers = #tpu.dot_dimension_numbers<[1], [0], [0], [1], [0, 0, 1, 1], [], []>, precision = #tpu.contract_precision<fp32>} : vector<16x128xf32>, vector<128x128xf32>, vector<16x128xf32> -> vector<16x128xf32>
    %244 = vector.extract_strided_slice %243 {offsets = [0, 0], sizes = [8, 128], strides = [1, 1]} : vector<16x128xf32> to vector<8x128xf32>
    %245 = vector.extract_strided_slice %243 {offsets = [8, 0], sizes = [8, 128], strides = [1, 1]} : vector<16x128xf32> to vector<8x128xf32>
    %246 = arith.mulf %244, %244 : vector<8x128xf32>
    %247 = arith.subf %245, %246 : vector<8x128xf32>
    %248 = arith.subf %240, %244 : vector<8x128xf32>
    %cst_162 = arith.constant 9.99999974E-6 : f32
    %249 = vector.broadcast %cst_162 : f32 to vector<8x128xf32>
    %250 = arith.addf %247, %249 : vector<8x128xf32>
    %251 = math.rsqrt %250 : vector<8x128xf32>
    %252 = arith.mulf %248, %251 : vector<8x128xf32>
    %c1_163 = arith.constant 1 : index
    %c0_164 = arith.constant 0 : index
    %c0_165 = arith.constant 0 : index
    %253 = vector.load %arg11[%c1_163, %c0_164, %c0_165] : memref<2x1x128xf32, #tpu.memory_space<vmem>>, vector<1x1x128xf32>
    %254 = vector.shape_cast %253 : vector<1x1x128xf32> to vector<1x128xf32>
    %255 = vector.broadcast %254 : vector<1x128xf32> to vector<8x128xf32>
    %256 = arith.mulf %252, %255 : vector<8x128xf32>
    %c1_166 = arith.constant 1 : index
    %c0_167 = arith.constant 0 : index
    %c0_168 = arith.constant 0 : index
    %257 = vector.load %arg12[%c1_166, %c0_167, %c0_168] : memref<2x1x128xf32, #tpu.memory_space<vmem>>, vector<1x1x128xf32>
    %258 = vector.shape_cast %257 : vector<1x1x128xf32> to vector<1x128xf32>
    %259 = vector.broadcast %258 : vector<1x128xf32> to vector<8x128xf32>
    %260 = arith.addf %256, %259 : vector<8x128xf32>
    %261 = vector.broadcast %6 : vector<1x128xf32> to vector<8x128xf32>
    %262 = arith.subf %260, %261 : vector<8x128xf32>
    %c1_169 = arith.constant 1 : index
    %c0_170 = arith.constant 0 : index
    %c0_171 = arith.constant 0 : index
    %263 = vector.load %arg18[%c1_169, %c0_170, %c0_171] : memref<2x8x128xf32, #tpu.memory_space<vmem>>, vector<1x8x128xf32>
    %264 = vector.shape_cast %263 : vector<1x8x128xf32> to vector<8x128xf32>
    %265 = vector.shape_cast %262 : vector<8x128xf32> to vector<1x8x128xf32>
    tpu.vector_store %arg18[%c1_169, %c0_170, %c0_171], %265 {strides = array<i32>} : memref<2x8x128xf32, #tpu.memory_space<vmem>>, vector<1x8x128xf32>,
    %cst_172 = arith.constant dense<0.000000e+00> : vector<8x32xf32>
    %266 = tpu.matmul %260, %4, %cst_172 {dimension_numbers = #tpu.dot_dimension_numbers<[1], [0], [0], [1], [0, 0, 1, 1], [], []>, precision = #tpu.contract_precision<fp32>} : vector<8x128xf32>, vector<128x32xf32>, vector<8x32xf32> -> vector<8x32xf32>
    %267 = arith.addf %206, %266 : vector<8x32xf32>
    %cst_173 = arith.constant dense<0.000000e+00> : vector<8x64xf32>
    %268 = tpu.matmul %267, %5, %cst_173 {dimension_numbers = #tpu.dot_dimension_numbers<[1], [0], [0], [1], [0, 0, 1, 1], [], []>, precision = #tpu.contract_precision<fp32>} : vector<8x32xf32>, vector<32x64xf32>, vector<8x64xf32> -> vector<8x64xf32>
    %c1_174 = arith.constant 1 : index
    %c0_175 = arith.constant 0 : index
    %c0_176 = arith.constant 0 : index
    %269 = vector.load %arg4[%c1_174, %c0_175, %c0_176] : memref<3x1x64xf32, #tpu.memory_space<vmem>>, vector<1x1x64xf32>
    %270 = vector.shape_cast %269 : vector<1x1x64xf32> to vector<1x64xf32>
    %271 = vector.broadcast %270 : vector<1x64xf32> to vector<8x64xf32>
    %272 = arith.addf %268, %271 : vector<8x64xf32>
    %c1_177 = arith.constant 1 : index
    %c0_178 = arith.constant 0 : index
    %c0_179 = arith.constant 0 : index
    %273 = vector.load %arg2[%c1_177, %c0_178, %c0_179] : memref<3x8x64xf32, #tpu.memory_space<vmem>>, vector<1x8x64xf32>
    %274 = vector.shape_cast %273 : vector<1x8x64xf32> to vector<8x64xf32>
    %275 = math.cos %272 : vector<8x64xf32>
    %276 = arith.mulf %274, %275 : vector<8x64xf32>
    %c1_180 = arith.constant 1 : index
    %c0_181 = arith.constant 0 : index
    %c0_182 = arith.constant 0 : index
    %277 = vector.load %arg3[%c1_180, %c0_181, %c0_182] : memref<3x8x64xf32, #tpu.memory_space<vmem>>, vector<1x8x64xf32>
    %278 = vector.shape_cast %277 : vector<1x8x64xf32> to vector<8x64xf32>
    %279 = math.sin %272 : vector<8x64xf32>
    %280 = arith.mulf %278, %279 : vector<8x64xf32>
    %281 = arith.addf %276, %280 : vector<8x64xf32>
    %c1_183 = arith.constant 1 : index
    %c0_184 = arith.constant 0 : index
    %c0_185 = arith.constant 0 : index
    %282 = vector.load %arg17[%c1_183, %c0_184, %c0_185] : memref<3x8x64xf32, #tpu.memory_space<vmem>>, vector<1x8x64xf32>
    %283 = vector.shape_cast %282 : vector<1x8x64xf32> to vector<8x64xf32>
    %284 = vector.shape_cast %281 : vector<8x64xf32> to vector<1x8x64xf32>
    tpu.vector_store %arg17[%c1_183, %c0_184, %c0_185], %284 {strides = array<i32>} : memref<3x8x64xf32, #tpu.memory_space<vmem>>, vector<1x8x64xf32>,
    %c2 = arith.constant 2 : index
    %c0_186 = arith.constant 0 : index
    %c0_187 = arith.constant 0 : index
    %285 = vector.load %arg1[%c2, %c0_186, %c0_187] : memref<3x8x32xf32, #tpu.memory_space<vmem>>, vector<1x8x32xf32>
    %286 = vector.shape_cast %285 : vector<1x8x32xf32> to vector<8x32xf32>
    %c0_188 = arith.constant 0 : index
    %c0_189 = arith.constant 0 : index
    %c0_190 = arith.constant 0 : index
    %287 = vector.load %arg7[%c0_188, %c0_189, %c0_190] : memref<2x32x64xf32, #tpu.memory_space<vmem>>, vector<1x32x64xf32>
    %288 = vector.shape_cast %287 : vector<1x32x64xf32> to vector<32x64xf32>
    %cst_191 = arith.constant dense<0.000000e+00> : vector<8x64xf32>
    %289 = tpu.matmul %286, %288, %cst_191 {dimension_numbers = #tpu.dot_dimension_numbers<[1], [0], [0], [1], [0, 0, 1, 1], [], []>, precision = #tpu.contract_precision<fp32>} : vector<8x32xf32>, vector<32x64xf32>, vector<8x64xf32> -> vector<8x64xf32>
    %c0_192 = arith.constant 0 : index
    %c0_193 = arith.constant 0 : index
    %c0_194 = arith.constant 0 : index
    %290 = vector.load %arg18[%c0_192, %c0_193, %c0_194] : memref<2x8x128xf32, #tpu.memory_space<vmem>>, vector<1x8x128xf32>
    %291 = vector.shape_cast %290 : vector<1x8x128xf32> to vector<8x128xf32>
    %c0_195 = arith.constant 0 : index
    %c0_196 = arith.constant 0 : index
    %c0_197 = arith.constant 0 : index
    %292 = vector.load %arg6[%c0_195, %c0_196, %c0_197] : memref<2x128x64xf32, #tpu.memory_space<vmem>>, vector<1x128x64xf32>
    %293 = vector.shape_cast %292 : vector<1x128x64xf32> to vector<128x64xf32>
    %cst_198 = arith.constant dense<0.000000e+00> : vector<8x64xf32>
    %294 = tpu.matmul %291, %293, %cst_198 {dimension_numbers = #tpu.dot_dimension_numbers<[1], [0], [0], [1], [0, 0, 1, 1], [], []>, precision = #tpu.contract_precision<fp32>} : vector<8x128xf32>, vector<128x64xf32>, vector<8x64xf32> -> vector<8x64xf32>
    %295 = arith.subf %289, %294 : vector<8x64xf32>
    %296 = math.cos %295 : vector<8x64xf32>
    %cst_199 = arith.constant 2.000000e+00 : f32
    %297 = vector.broadcast %cst_199 : f32 to vector<8x64xf32>
    %298 = arith.mulf %297, %296 : vector<8x64xf32>
    %299 = arith.mulf %298, %296 : vector<8x64xf32>
    %cst_200 = arith.constant 1.000000e+00 : f32
    %300 = vector.broadcast %cst_200 : f32 to vector<8x64xf32>
    %301 = arith.subf %299, %300 : vector<8x64xf32>
    %c0_201 = arith.constant 0 : index
    %c0_202 = arith.constant 0 : index
    %c0_203 = arith.constant 0 : index
    %302 = vector.load %arg9[%c0_201, %c0_202, %c0_203] : memref<2x1x64xf32, #tpu.memory_space<vmem>>, vector<1x1x64xf32>
    %303 = vector.shape_cast %302 : vector<1x1x64xf32> to vector<1x64xf32>
    %c0_204 = arith.constant 0 : index
    %c0_205 = arith.constant 0 : index
    %c0_206 = arith.constant 0 : index
    %304 = vector.load %arg10[%c0_204, %c0_205, %c0_206] : memref<2x1x64xf32, #tpu.memory_space<vmem>>, vector<1x1x64xf32>
    %305 = vector.shape_cast %304 : vector<1x1x64xf32> to vector<1x64xf32>
    %cst_207 = arith.constant -1.000000e+00 : f32
    %306 = vector.broadcast %cst_207 : f32 to vector<1x64xf32>
    %307 = arith.subf %306, %303 : vector<1x64xf32>
    %308 = vector.broadcast %307 : vector<1x64xf32> to vector<8x64xf32>
    %309 = arith.addf %308, %296 : vector<8x64xf32>
    %310 = vector.broadcast %303 : vector<1x64xf32> to vector<8x64xf32>
    %311 = arith.mulf %310, %301 : vector<8x64xf32>
    %312 = arith.addf %309, %311 : vector<8x64xf32>
    %313 = vector.broadcast %305 : vector<1x64xf32> to vector<8x64xf32>
    %314 = arith.mulf %313, %312 : vector<8x64xf32>
    %cst_208 = arith.constant 1.000000e+00 : f32
    %315 = vector.broadcast %cst_208 : f32 to vector<8x64xf32>
    %316 = arith.addf %315, %314 : vector<8x64xf32>
    %c0_209 = arith.constant 0 : index
    %c0_210 = arith.constant 0 : index
    %c0_211 = arith.constant 0 : index
    %317 = vector.load %arg8[%c0_209, %c0_210, %c0_211] : memref<2x64x128xf32, #tpu.memory_space<vmem>>, vector<1x64x128xf32>
    %318 = vector.shape_cast %317 : vector<1x64x128xf32> to vector<64x128xf32>
    %cst_212 = arith.constant dense<0.000000e+00> : vector<8x128xf32>
    %319 = tpu.matmul %316, %318, %cst_212 {dimension_numbers = #tpu.dot_dimension_numbers<[1], [0], [0], [1], [0, 0, 1, 1], [], []>, precision = #tpu.contract_precision<fp32>} : vector<8x64xf32>, vector<64x128xf32>, vector<8x128xf32> -> vector<8x128xf32>
    %320 = arith.mulf %319, %319 : vector<8x128xf32>
    %321 = tpu.concatenate %319, %320 in 0 : vector<8x128xf32>, vector<8x128xf32> -> vector<16x128xf32>
    %cst_213 = arith.constant dense<0.000000e+00> : vector<16x128xf32>
    %322 = tpu.matmul %321, %3, %cst_213 {dimension_numbers = #tpu.dot_dimension_numbers<[1], [0], [0], [1], [0, 0, 1, 1], [], []>, precision = #tpu.contract_precision<fp32>} : vector<16x128xf32>, vector<128x128xf32>, vector<16x128xf32> -> vector<16x128xf32>
    %323 = vector.extract_strided_slice %322 {offsets = [0, 0], sizes = [8, 128], strides = [1, 1]} : vector<16x128xf32> to vector<8x128xf32>
    %324 = vector.extract_strided_slice %322 {offsets = [8, 0], sizes = [8, 128], strides = [1, 1]} : vector<16x128xf32> to vector<8x128xf32>
    %325 = arith.mulf %323, %323 : vector<8x128xf32>
    %326 = arith.subf %324, %325 : vector<8x128xf32>
    %327 = arith.subf %319, %323 : vector<8x128xf32>
    %cst_214 = arith.constant 9.99999974E-6 : f32
    %328 = vector.broadcast %cst_214 : f32 to vector<8x128xf32>
    %329 = arith.addf %326, %328 : vector<8x128xf32>
    %330 = math.rsqrt %329 : vector<8x128xf32>
    %331 = arith.mulf %327, %330 : vector<8x128xf32>
    %c0_215 = arith.constant 0 : index
    %c0_216 = arith.constant 0 : index
    %c0_217 = arith.constant 0 : index
    %332 = vector.load %arg11[%c0_215, %c0_216, %c0_217] : memref<2x1x128xf32, #tpu.memory_space<vmem>>, vector<1x1x128xf32>
    %333 = vector.shape_cast %332 : vector<1x1x128xf32> to vector<1x128xf32>
    %334 = vector.broadcast %333 : vector<1x128xf32> to vector<8x128xf32>
    %335 = arith.mulf %331, %334 : vector<8x128xf32>
    %c0_218 = arith.constant 0 : index
    %c0_219 = arith.constant 0 : index
    %c0_220 = arith.constant 0 : index
    %336 = vector.load %arg12[%c0_218, %c0_219, %c0_220] : memref<2x1x128xf32, #tpu.memory_space<vmem>>, vector<1x1x128xf32>
    %337 = vector.shape_cast %336 : vector<1x1x128xf32> to vector<1x128xf32>
    %338 = vector.broadcast %337 : vector<1x128xf32> to vector<8x128xf32>
    %339 = arith.addf %335, %338 : vector<8x128xf32>
    %340 = vector.broadcast %6 : vector<1x128xf32> to vector<8x128xf32>
    %341 = arith.subf %339, %340 : vector<8x128xf32>
    %c0_221 = arith.constant 0 : index
    %c0_222 = arith.constant 0 : index
    %c0_223 = arith.constant 0 : index
    %342 = vector.load %arg18[%c0_221, %c0_222, %c0_223] : memref<2x8x128xf32, #tpu.memory_space<vmem>>, vector<1x8x128xf32>
    %343 = vector.shape_cast %342 : vector<1x8x128xf32> to vector<8x128xf32>
    %344 = vector.shape_cast %341 : vector<8x128xf32> to vector<1x8x128xf32>
    tpu.vector_store %arg18[%c0_221, %c0_222, %c0_223], %344 {strides = array<i32>} : memref<2x8x128xf32, #tpu.memory_space<vmem>>, vector<1x8x128xf32>,
    %cst_224 = arith.constant dense<0.000000e+00> : vector<8x32xf32>
    %345 = tpu.matmul %339, %4, %cst_224 {dimension_numbers = #tpu.dot_dimension_numbers<[1], [0], [0], [1], [0, 0, 1, 1], [], []>, precision = #tpu.contract_precision<fp32>} : vector<8x128xf32>, vector<128x32xf32>, vector<8x32xf32> -> vector<8x32xf32>
    %346 = arith.subf %286, %345 : vector<8x32xf32>
    %c1_225 = arith.constant 1 : index
    %c0_226 = arith.constant 0 : index
    %c0_227 = arith.constant 0 : index
    %347 = vector.load %arg7[%c1_225, %c0_226, %c0_227] : memref<2x32x64xf32, #tpu.memory_space<vmem>>, vector<1x32x64xf32>
    %348 = vector.shape_cast %347 : vector<1x32x64xf32> to vector<32x64xf32>
    %cst_228 = arith.constant dense<0.000000e+00> : vector<8x64xf32>
    %349 = tpu.matmul %346, %348, %cst_228 {dimension_numbers = #tpu.dot_dimension_numbers<[1], [0], [0], [1], [0, 0, 1, 1], [], []>, precision = #tpu.contract_precision<fp32>} : vector<8x32xf32>, vector<32x64xf32>, vector<8x64xf32> -> vector<8x64xf32>
    %c1_229 = arith.constant 1 : index
    %c0_230 = arith.constant 0 : index
    %c0_231 = arith.constant 0 : index
    %350 = vector.load %arg18[%c1_229, %c0_230, %c0_231] : memref<2x8x128xf32, #tpu.memory_space<vmem>>, vector<1x8x128xf32>
    %351 = vector.shape_cast %350 : vector<1x8x128xf32> to vector<8x128xf32>
    %c1_232 = arith.constant 1 : index
    %c0_233 = arith.constant 0 : index
    %c0_234 = arith.constant 0 : index
    %352 = vector.load %arg6[%c1_232, %c0_233, %c0_234] : memref<2x128x64xf32, #tpu.memory_space<vmem>>, vector<1x128x64xf32>
    %353 = vector.shape_cast %352 : vector<1x128x64xf32> to vector<128x64xf32>
    %cst_235 = arith.constant dense<0.000000e+00> : vector<8x64xf32>
    %354 = tpu.matmul %351, %353, %cst_235 {dimension_numbers = #tpu.dot_dimension_numbers<[1], [0], [0], [1], [0, 0, 1, 1], [], []>, precision = #tpu.contract_precision<fp32>} : vector<8x128xf32>, vector<128x64xf32>, vector<8x64xf32> -> vector<8x64xf32>
    %355 = arith.subf %349, %354 : vector<8x64xf32>
    %356 = math.cos %355 : vector<8x64xf32>
    %cst_236 = arith.constant 2.000000e+00 : f32
    %357 = vector.broadcast %cst_236 : f32 to vector<8x64xf32>
    %358 = arith.mulf %357, %356 : vector<8x64xf32>
    %359 = arith.mulf %358, %356 : vector<8x64xf32>
    %cst_237 = arith.constant 1.000000e+00 : f32
    %360 = vector.broadcast %cst_237 : f32 to vector<8x64xf32>
    %361 = arith.subf %359, %360 : vector<8x64xf32>
    %c1_238 = arith.constant 1 : index
    %c0_239 = arith.constant 0 : index
    %c0_240 = arith.constant 0 : index
    %362 = vector.load %arg9[%c1_238, %c0_239, %c0_240] : memref<2x1x64xf32, #tpu.memory_space<vmem>>, vector<1x1x64xf32>
    %363 = vector.shape_cast %362 : vector<1x1x64xf32> to vector<1x64xf32>
    %c1_241 = arith.constant 1 : index
    %c0_242 = arith.constant 0 : index
    %c0_243 = arith.constant 0 : index
    %364 = vector.load %arg10[%c1_241, %c0_242, %c0_243] : memref<2x1x64xf32, #tpu.memory_space<vmem>>, vector<1x1x64xf32>
    %365 = vector.shape_cast %364 : vector<1x1x64xf32> to vector<1x64xf32>
    %cst_244 = arith.constant -1.000000e+00 : f32
    %366 = vector.broadcast %cst_244 : f32 to vector<1x64xf32>
    %367 = arith.subf %366, %363 : vector<1x64xf32>
    %368 = vector.broadcast %367 : vector<1x64xf32> to vector<8x64xf32>
    %369 = arith.addf %368, %356 : vector<8x64xf32>
    %370 = vector.broadcast %363 : vector<1x64xf32> to vector<8x64xf32>
    %371 = arith.mulf %370, %361 : vector<8x64xf32>
    %372 = arith.addf %369, %371 : vector<8x64xf32>
    %373 = vector.broadcast %365 : vector<1x64xf32> to vector<8x64xf32>
    %374 = arith.mulf %373, %372 : vector<8x64xf32>
    %cst_245 = arith.constant 1.000000e+00 : f32
    %375 = vector.broadcast %cst_245 : f32 to vector<8x64xf32>
    %376 = arith.addf %375, %374 : vector<8x64xf32>
    %c1_246 = arith.constant 1 : index
    %c0_247 = arith.constant 0 : index
    %c0_248 = arith.constant 0 : index
    %377 = vector.load %arg8[%c1_246, %c0_247, %c0_248] : memref<2x64x128xf32, #tpu.memory_space<vmem>>, vector<1x64x128xf32>
    %378 = vector.shape_cast %377 : vector<1x64x128xf32> to vector<64x128xf32>
    %cst_249 = arith.constant dense<0.000000e+00> : vector<8x128xf32>
    %379 = tpu.matmul %376, %378, %cst_249 {dimension_numbers = #tpu.dot_dimension_numbers<[1], [0], [0], [1], [0, 0, 1, 1], [], []>, precision = #tpu.contract_precision<fp32>} : vector<8x64xf32>, vector<64x128xf32>, vector<8x128xf32> -> vector<8x128xf32>
    %380 = arith.mulf %379, %379 : vector<8x128xf32>
    %381 = tpu.concatenate %379, %380 in 0 : vector<8x128xf32>, vector<8x128xf32> -> vector<16x128xf32>
    %cst_250 = arith.constant dense<0.000000e+00> : vector<16x128xf32>
    %382 = tpu.matmul %381, %3, %cst_250 {dimension_numbers = #tpu.dot_dimension_numbers<[1], [0], [0], [1], [0, 0, 1, 1], [], []>, precision = #tpu.contract_precision<fp32>} : vector<16x128xf32>, vector<128x128xf32>, vector<16x128xf32> -> vector<16x128xf32>
    %383 = vector.extract_strided_slice %382 {offsets = [0, 0], sizes = [8, 128], strides = [1, 1]} : vector<16x128xf32> to vector<8x128xf32>
    %384 = vector.extract_strided_slice %382 {offsets = [8, 0], sizes = [8, 128], strides = [1, 1]} : vector<16x128xf32> to vector<8x128xf32>
    %385 = arith.mulf %383, %383 : vector<8x128xf32>
    %386 = arith.subf %384, %385 : vector<8x128xf32>
    %387 = arith.subf %379, %383 : vector<8x128xf32>
    %cst_251 = arith.constant 9.99999974E-6 : f32
    %388 = vector.broadcast %cst_251 : f32 to vector<8x128xf32>
    %389 = arith.addf %386, %388 : vector<8x128xf32>
    %390 = math.rsqrt %389 : vector<8x128xf32>
    %391 = arith.mulf %387, %390 : vector<8x128xf32>
    %c1_252 = arith.constant 1 : index
    %c0_253 = arith.constant 0 : index
    %c0_254 = arith.constant 0 : index
    %392 = vector.load %arg11[%c1_252, %c0_253, %c0_254] : memref<2x1x128xf32, #tpu.memory_space<vmem>>, vector<1x1x128xf32>
    %393 = vector.shape_cast %392 : vector<1x1x128xf32> to vector<1x128xf32>
    %394 = vector.broadcast %393 : vector<1x128xf32> to vector<8x128xf32>
    %395 = arith.mulf %391, %394 : vector<8x128xf32>
    %c1_255 = arith.constant 1 : index
    %c0_256 = arith.constant 0 : index
    %c0_257 = arith.constant 0 : index
    %396 = vector.load %arg12[%c1_255, %c0_256, %c0_257] : memref<2x1x128xf32, #tpu.memory_space<vmem>>, vector<1x1x128xf32>
    %397 = vector.shape_cast %396 : vector<1x1x128xf32> to vector<1x128xf32>
    %398 = vector.broadcast %397 : vector<1x128xf32> to vector<8x128xf32>
    %399 = arith.addf %395, %398 : vector<8x128xf32>
    %400 = vector.broadcast %6 : vector<1x128xf32> to vector<8x128xf32>
    %401 = arith.subf %399, %400 : vector<8x128xf32>
    %c1_258 = arith.constant 1 : index
    %c0_259 = arith.constant 0 : index
    %c0_260 = arith.constant 0 : index
    %402 = vector.load %arg18[%c1_258, %c0_259, %c0_260] : memref<2x8x128xf32, #tpu.memory_space<vmem>>, vector<1x8x128xf32>
    %403 = vector.shape_cast %402 : vector<1x8x128xf32> to vector<8x128xf32>
    %404 = vector.shape_cast %401 : vector<8x128xf32> to vector<1x8x128xf32>
    tpu.vector_store %arg18[%c1_258, %c0_259, %c0_260], %404 {strides = array<i32>} : memref<2x8x128xf32, #tpu.memory_space<vmem>>, vector<1x8x128xf32>,
    %cst_261 = arith.constant dense<0.000000e+00> : vector<8x32xf32>
    %405 = tpu.matmul %399, %4, %cst_261 {dimension_numbers = #tpu.dot_dimension_numbers<[1], [0], [0], [1], [0, 0, 1, 1], [], []>, precision = #tpu.contract_precision<fp32>} : vector<8x128xf32>, vector<128x32xf32>, vector<8x32xf32> -> vector<8x32xf32>
    %406 = arith.addf %345, %405 : vector<8x32xf32>
    %cst_262 = arith.constant dense<0.000000e+00> : vector<8x64xf32>
    %407 = tpu.matmul %406, %5, %cst_262 {dimension_numbers = #tpu.dot_dimension_numbers<[1], [0], [0], [1], [0, 0, 1, 1], [], []>, precision = #tpu.contract_precision<fp32>} : vector<8x32xf32>, vector<32x64xf32>, vector<8x64xf32> -> vector<8x64xf32>
    %c2_263 = arith.constant 2 : index
    %c0_264 = arith.constant 0 : index
    %c0_265 = arith.constant 0 : index
    %408 = vector.load %arg4[%c2_263, %c0_264, %c0_265] : memref<3x1x64xf32, #tpu.memory_space<vmem>>, vector<1x1x64xf32>
    %409 = vector.shape_cast %408 : vector<1x1x64xf32> to vector<1x64xf32>
    %410 = vector.broadcast %409 : vector<1x64xf32> to vector<8x64xf32>
    %411 = arith.addf %407, %410 : vector<8x64xf32>
    %c2_266 = arith.constant 2 : index
    %c0_267 = arith.constant 0 : index
    %c0_268 = arith.constant 0 : index
    %412 = vector.load %arg2[%c2_266, %c0_267, %c0_268] : memref<3x8x64xf32, #tpu.memory_space<vmem>>, vector<1x8x64xf32>
    %413 = vector.shape_cast %412 : vector<1x8x64xf32> to vector<8x64xf32>
    %414 = math.cos %411 : vector<8x64xf32>
    %415 = arith.mulf %413, %414 : vector<8x64xf32>
    %c2_269 = arith.constant 2 : index
    %c0_270 = arith.constant 0 : index
    %c0_271 = arith.constant 0 : index
    %416 = vector.load %arg3[%c2_269, %c0_270, %c0_271] : memref<3x8x64xf32, #tpu.memory_space<vmem>>, vector<1x8x64xf32>
    %417 = vector.shape_cast %416 : vector<1x8x64xf32> to vector<8x64xf32>
    %418 = math.sin %411 : vector<8x64xf32>
    %419 = arith.mulf %417, %418 : vector<8x64xf32>
    %420 = arith.addf %415, %419 : vector<8x64xf32>
    %c2_272 = arith.constant 2 : index
    %c0_273 = arith.constant 0 : index
    %c0_274 = arith.constant 0 : index
    %421 = vector.load %arg17[%c2_272, %c0_273, %c0_274] : memref<3x8x64xf32, #tpu.memory_space<vmem>>, vector<1x8x64xf32>
    %422 = vector.shape_cast %421 : vector<1x8x64xf32> to vector<8x64xf32>
    %423 = vector.shape_cast %420 : vector<8x64xf32> to vector<1x8x64xf32>
    tpu.vector_store %arg17[%c2_272, %c0_273, %c0_274], %423 {strides = array<i32>} : memref<3x8x64xf32, #tpu.memory_space<vmem>>, vector<1x8x64xf32>,
    return
  }
  func.func @transform_0(%arg0: i32) -> (i32, i32, i32) {
    %c0_i32 = arith.constant 0 : i32
    %c0_i32_0 = arith.constant 0 : i32
    %c0_i32_1 = arith.constant 0 : i32
    return %arg0, %c0_i32, %c0_i32_0 : i32, i32, i32
  }
  func.func @transform_1(%arg0: i32) -> (i32, i32, i32) {
    %c0_i32 = arith.constant 0 : i32
    %c0_i32_0 = arith.constant 0 : i32
    %c0_i32_1 = arith.constant 0 : i32
    return %arg0, %c0_i32, %c0_i32_0 : i32, i32, i32
  }
  func.func @transform_2(%arg0: i32) -> (i32, i32, i32) {
    %c0_i32 = arith.constant 0 : i32
    %c0_i32_0 = arith.constant 0 : i32
    %c0_i32_1 = arith.constant 0 : i32
    return %arg0, %c0_i32, %c0_i32_0 : i32, i32, i32
  }
  func.func @transform_3(%arg0: i32) -> (i32, i32, i32) {
    %c0_i32 = arith.constant 0 : i32
    %c0_i32_0 = arith.constant 0 : i32
    %c0_i32_1 = arith.constant 0 : i32
    return %arg0, %c0_i32, %c0_i32_0 : i32, i32, i32
  }
  func.func @transform_4(%arg0: i32) -> (i32, i32, i32) {
    %c0_i32 = arith.constant 0 : i32
    %c0_i32_0 = arith.constant 0 : i32
    %c0_i32_1 = arith.constant 0 : i32
    %c0_i32_2 = arith.constant 0 : i32
    return %c0_i32, %c0_i32_0, %c0_i32_1 : i32, i32, i32
  }
  func.func @transform_5(%arg0: i32) -> (i32, i32, i32) {
    %c0_i32 = arith.constant 0 : i32
    %c0_i32_0 = arith.constant 0 : i32
    %c0_i32_1 = arith.constant 0 : i32
    %c0_i32_2 = arith.constant 0 : i32
    return %c0_i32, %c0_i32_0, %c0_i32_1 : i32, i32, i32
  }
  func.func @transform_6(%arg0: i32) -> (i32, i32, i32) {
    %c0_i32 = arith.constant 0 : i32
    %c0_i32_0 = arith.constant 0 : i32
    %c0_i32_1 = arith.constant 0 : i32
    %c0_i32_2 = arith.constant 0 : i32
    return %c0_i32, %c0_i32_0, %c0_i32_1 : i32, i32, i32
  }
  func.func @transform_7(%arg0: i32) -> (i32, i32, i32) {
    %c0_i32 = arith.constant 0 : i32
    %c0_i32_0 = arith.constant 0 : i32
    %c0_i32_1 = arith.constant 0 : i32
    %c0_i32_2 = arith.constant 0 : i32
    return %c0_i32, %c0_i32_0, %c0_i32_1 : i32, i32, i32
  }
  func.func @transform_8(%arg0: i32) -> (i32, i32, i32) {
    %c0_i32 = arith.constant 0 : i32
    %c0_i32_0 = arith.constant 0 : i32
    %c0_i32_1 = arith.constant 0 : i32
    %c0_i32_2 = arith.constant 0 : i32
    return %c0_i32, %c0_i32_0, %c0_i32_1 : i32, i32, i32
  }
  func.func @transform_9(%arg0: i32) -> (i32, i32, i32) {
    %c0_i32 = arith.constant 0 : i32
    %c0_i32_0 = arith.constant 0 : i32
    %c0_i32_1 = arith.constant 0 : i32
    %c0_i32_2 = arith.constant 0 : i32
    return %c0_i32, %c0_i32_0, %c0_i32_1 : i32, i32, i32
  }
  func.func @transform_10(%arg0: i32) -> (i32, i32, i32) {
    %c0_i32 = arith.constant 0 : i32
    %c0_i32_0 = arith.constant 0 : i32
    %c0_i32_1 = arith.constant 0 : i32
    %c0_i32_2 = arith.constant 0 : i32
    return %c0_i32, %c0_i32_0, %c0_i32_1 : i32, i32, i32
  }
  func.func @transform_11(%arg0: i32) -> (i32, i32, i32) {
    %c0_i32 = arith.constant 0 : i32
    %c0_i32_0 = arith.constant 0 : i32
    %c0_i32_1 = arith.constant 0 : i32
    %c0_i32_2 = arith.constant 0 : i32
    return %c0_i32, %c0_i32_0, %c0_i32_1 : i32, i32, i32
  }
  func.func @transform_12(%arg0: i32) -> (i32, i32) {
    %c0_i32 = arith.constant 0 : i32
    %c0_i32_0 = arith.constant 0 : i32
    %c0_i32_1 = arith.constant 0 : i32
    return %c0_i32, %c0_i32_0 : i32, i32
  }
  func.func @transform_13(%arg0: i32) -> (i32, i32) {
    %c0_i32 = arith.constant 0 : i32
    %c0_i32_0 = arith.constant 0 : i32
    %c0_i32_1 = arith.constant 0 : i32
    return %c0_i32, %c0_i32_0 : i32, i32
  }
  func.func @transform_14(%arg0: i32) -> (i32, i32) {
    %c0_i32 = arith.constant 0 : i32
    %c0_i32_0 = arith.constant 0 : i32
    %c0_i32_1 = arith.constant 0 : i32
    return %c0_i32, %c0_i32_0 : i32, i32
  }
  func.func @transform_15(%arg0: i32) -> (i32, i32) {
    %c0_i32 = arith.constant 0 : i32
    %c0_i32_0 = arith.constant 0 : i32
    %c0_i32_1 = arith.constant 0 : i32
    return %c0_i32, %c0_i32_0 : i32, i32
  }
  func.func @transform_16(%arg0: i32) -> (i32, i32, i32) {
    %c0_i32 = arith.constant 0 : i32
    %c0_i32_0 = arith.constant 0 : i32
    %c0_i32_1 = arith.constant 0 : i32
    return %arg0, %c0_i32, %c0_i32_0 : i32, i32, i32
  }
}

</mosaic_0001>

<bundles_post_ra>
// kernel: _run_fused.1
= control target key start
LH: loop header
LB: loop body
LE: loop exit
PB: predicated region body
PF: predicated region fallthrough
CT: control target
= control target key end

     0   :  { %vm103_vm0 = vcmask 261120   ;;  %v39457_v0 = vmov 0.0|0.0   ;;  %vm33090_vm1 = vmmov 0   ;;  %v39455_v4 = vmov 0.0   ;;  %s39425_s6 = inlined_call_operand.vmem [shape: f32[2,32,64], index: 6, kind: input, shape index: {}]   ;;  %s39426_s0 = inlined_call_operand.vmem [shape: f32[3,8,32], index: 0, kind: input, shape index: {}]   ;;  %s39427_s5 = inlined_call_operand.vmem [shape: f32[2,128,64], index: 5, kind: input, shape index: {}]   ;;  %s39428_s4 = inlined_call_operand.vmem [shape: f32[2,8,128], index: 4, kind: input, shape index: {}]   ;;  %s39429_s7 = inlined_call_operand.vmem [shape: f32[2,64,128], index: 7, kind: input, shape index: {}]   ;;  %s39430_s8 = inlined_call_operand.vmem [shape: f32[2,1,64], index: 8, kind: input, shape index: {}]   ;;  %s39431_s9 = inlined_call_operand.vmem [shape: f32[2,1,64], index: 9, kind: input, shape index: {}]   ;;  %s39432_s12 = inlined_call_operand.vmem [shape: f32[128,128], index: 12, kind: input, shape index: {}]   ;;  %s39433_s13 = inlined_call_operand.vmem [shape: f32[128,32], index: 13, kind: input, shape index: {}]   ;;  %s39434_s10 = inlined_call_operand.vmem [shape: f32[2,1,128], index: 10, kind: input, shape index: {}]   ;;  %s39435_s11 = inlined_call_operand.vmem [shape: f32[2,1,128], index: 11, kind: input, shape index: {}]   ;;  %s39436_s14 = inlined_call_operand.vmem [shape: f32[32,64], index: 14, kind: input, shape index: {}]   ;;  %s39437_s15 = inlined_call_operand.vmem [shape: f32[1,128], index: 15, kind: input, shape index: {}]   ;;  %s39438_s3 = inlined_call_operand.vmem [shape: f32[3,1,64], index: 3, kind: input, shape index: {}]   ;;  %s39439_s1 = inlined_call_operand.vmem [shape: f32[3,8,64], index: 1, kind: input, shape index: {}]   ;;  %s39440_s2 = inlined_call_operand.vmem [shape: f32[3,8,64], index: 2, kind: input, shape index: {}]   ;;  %s39441_s16 = inlined_call_operand.vmem [shape: f32[3,8,64], index: 16, kind: output, shape index: {}]  }
   0x1   :  { %39828 = sst [smem:[#allocation71_spill]] %s39425_s6  ;;  %29053 = vmatprep.subr.bf16.mxu1 %v39457_v0  ;;  %24003 = vmatprep.mubr.msk.f32.mxu1 %vm33090_vm1, %v39455_v4  ;;  %v98_v9 = vld [vmem:[%s39426_s0] sm:$0xff]  ;;  %v33225_v19 = vld [vmem:[%s39427_s5 + $0x8] sm:$0xff]  ;;  %v595_v33 = vld [vmem:[%s39427_s5 + $0x10] sm:$0xff]  ;;  %vm1391_vm15 = vcmask 523264  }
   0x2   :  { %s39829_s23 = sld [smem:[#allocation71_spill]]  ;;  %29059 = vmatprep.subr.bf16.mxu0 %v39457_v0  ;;  %24014 = vmatprep.mubr.msk.f32.mxu0 %vm33090_vm1, %v39455_v4  ;;  %v105_v11 = vsel %vm103_vm0, %v98_v9, 0  ;;  %v33216_v16 = vld [vmem:[%s39427_s5] sm:$0xff]  ;;  %v613_v29 = vand.u32 4294901760, %v33225_v19  ;;  %v596_v34 = vld [vmem:[%s39427_s5 + $0x18] sm:$0xff]  ;;  %v616_v42 = vand.u32 4294901760, %v595_v33 }
   0x3   :  { %v33220_v18 = vand.u32 4294901760, %v105_v11  ;;  %v610_v25 = vand.u32 4294901760, %v33216_v16  ;;  %v619_v43 = vand.u32 4294901760, %v596_v34  ;;  %v597_v45 = vld [vmem:[%s39427_s5 + $0x20] sm:$0xff]  ;;  %v598_v46 = vld [vmem:[%s39427_s5 + $0x28] sm:$0xff]  ;;  %v599_v51 = vld [vmem:[%s39427_s5 + $0x30] sm:$0xff] }
   0x4   :  { %v622_v49 = vand.u32 4294901760, %v597_v45  ;;  %v625_v50 = vand.u32 4294901760, %v598_v46  ;;  %v600_v52 = vld [vmem:[%s39427_s5 + $0x38] sm:$0xff]  ;;  %v628_v55 = vand.u32 4294901760, %v599_v51  ;;  %v601_v57 = vld [vmem:[%s39427_s5 + $0x40] sm:$0xff]  ;;  %v602_v58 = vld [vmem:[%s39427_s5 + $0x48] sm:$0xff]  ;;  %v33331_v9 = vsub.f32 %v595_v33, %v616_v42 }
   0x5   :  { %v33235_v24 = vsub.f32 %v105_v11, %v33220_v18  ;;  %v33264_v41 = vpack.c.bf16 %v613_v29, %v610_v25  ;;  %v33274_v48 = vpack.c.bf16 %v619_v43, %v616_v42  ;;  %v631_v56 = vand.u32 4294901760, %v600_v52  ;;  %v57_v59 = vld [vmem:[%s39428_s4] sm:$0xff]  ;;  %v603_v61 = vld [vmem:[%s39427_s5 + $0x50] sm:$0xff]  ;;  %v604_v62 = vld [vmem:[%s39427_s5 + $0x58] sm:$0xff] }
   0x6   :  { %v33289_v54 = vpack.c.bf16 %v625_v50, %v622_v49  ;;  %v643_v11 = vand.u32 4294901760, %v604_v62 }
   0x7   :  { %v178_v31 = vand.u32 4294901760, %v33235_v24  ;;  %v33314_v63 = vpack.c.bf16 %v631_v56, %v628_v55 }
   0x8   :  { %v99_v1 = vld [vmem:[%s39829_s23] sm:$0xff]  ;;  %v100_v2 = vld [vmem:[%s39829_s23 + $0x8] sm:$0xff]  ;;  %v101_v3 = vld [vmem:[%s39829_s23 + $0x10] sm:$0xff] }
   0x9   :  { %v108_v5 = vand.u32 4294901760, %v99_v1  ;;  %v111_v6 = vand.u32 4294901760, %v100_v2  ;;  %v102_v7 = vld [vmem:[%s39829_s23 + $0x18] sm:$0xff]  ;;  %v114_v8 = vand.u32 4294901760, %v101_v3  ;;  %v179_v38 = vsub.f32 %v33235_v24, %v178_v31 }
   0xa   :  { %v117_v10 = vand.u32 4294901760, %v102_v7 }
   0xb   :  { %v33205_v12 = vpack.c.bf16 %v111_v6, %v108_v5  ;;  %v33207_v13 = vsub.f32 %v99_v1, %v108_v5  ;;  %v33209_v14 = vsub.f32 %v100_v2, %v111_v6  ;;  %v33211_v15 = vsub.f32 %v101_v3, %v114_v8  ;;  %v605_v6 = vld [vmem:[%s39427_s5 + $0x60] sm:$0xff] }
   0xc   :  { %v33218_v17 = vsub.f32 %v102_v7, %v117_v10  ;;  %v33228_v20 = vpack.c.bf16 %v117_v10, %v114_v8  ;;  %v180_v44 = vand.u32 4294901760, %v179_v38  ;;  %v634_v1 = vand.u32 4294901760, %v601_v57  ;;  %v606_v7 = vld [vmem:[%s39427_s5 + $0x68] sm:$0xff] }
   0xd   :  { %29055 = vmatpush3.bf16.msra.mxu1 %v33205_v12  ;;  %v189_v21 = vand.u32 4294901760, %v33207_v13  ;;  %v196_v22 = vand.u32 4294901760, %v33209_v14  ;;  %v203_v23 = vand.u32 4294901760, %v33211_v15  ;;  %v29066_v53 = vpack.c.bf16 %v33209_v14, %v33207_v13 }
   0xe   :  { %29056 = vmatprep.subr.bf16.mxu1 %v39457_v0  ;;  %v210_v26 = vand.u32 4294901760, %v33218_v17  ;;  %v29069_v60 = vpack.c.bf16 %v33218_v17, %v33211_v15  ;;  %v637_v2 = vand.u32 4294901760, %v602_v58  ;;  %v33316_v3 = vand.u32 4294901760, %v57_v59 }
   0xf   :  { %v190_v27 = vsub.f32 %v33207_v13, %v189_v21  ;;  %v197_v28 = vsub.f32 %v33209_v14, %v196_v22  ;;  %v204_v30 = vsub.f32 %v33211_v15, %v203_v23  ;;  %v33319_v5 = vsub.f32 %v33216_v16, %v610_v25 }
  0x10   :  { %v211_v32 = vsub.f32 %v33218_v17, %v210_v26  ;;  %v33329_v8 = vsub.f32 %v33225_v19, %v613_v29  ;;  %v640_v10 = vand.u32 4294901760, %v603_v61  ;;  %v33333_v16 = vsub.f32 %v596_v34, %v619_v43  ;;  %v607_v19 = vld [vmem:[%s39427_s5 + $0x70] sm:$0xff]  ;;  %v608_v29 = vld [vmem:[%s39427_s5 + $0x78] sm:$0xff] }
  0x11   :  { %29058 = vmatpush3.bf16.msra.mxu1 %v33228_v20  ;;  %v191_v35 = vand.u32 4294901760, %v190_v27  ;;  %v198_v36 = vand.u32 4294901760, %v197_v28  ;;  %v205_v37 = vand.u32 4294901760, %v204_v30  ;;  %v33335_v25 = vsub.f32 %v597_v45, %v622_v49 }
  0x12   :  { %29089 = vmatprep.subr.bf16.mxu1 %v39457_v0  ;;  %v212_v39 = vand.u32 4294901760, %v211_v32  ;;  %v33337_v27 = vsub.f32 %v598_v46, %v625_v50  ;;  %v33339_v28 = vsub.f32 %v599_v51, %v628_v55  ;;  %v33349_v30 = vpack.c.bf16 %v637_v2, %v634_v1 }
  0x13   :  { %v29060_v40 = vpack.c.bf16 %v198_v36, %v191_v35  ;;  %v646_v32 = vand.u32 4294901760, %v605_v6  ;;  %v649_v33 = vand.u32 4294901760, %v606_v7  ;;  %v33352_v34 = vsub.f32 %v57_v59, %v33316_v3 }
  0x14   :  { %v29063_v47 = vpack.c.bf16 %v212_v39, %v205_v37  ;;  %24004 = vmatmul.mubr.f32.vlgmr.msra.gmra.mrb[0].mxu1 %v180_v44  ;;  %v33354_v35 = vsub.f32 %v600_v52, %v631_v56  ;;  %v33358_v36 = vsub.f32 %v601_v57, %v634_v1  ;;  %v29078_v37 = vpack.c.bf16 %v196_v22, %v189_v21 }
  0x15   :  { %29061 = vmatpush3.bf16.msra.mxu0 %v29060_v40  ;;  %29091 = vmatpush3.bf16.msra.mxu1 %v33264_v41  ;;  %v33365_v38 = vsub.f32 %v602_v58, %v637_v2  ;;  %v33367_v39 = vpack.c.bf16 %v643_v11, %v640_v10  ;;  %v652_v40 = vand.u32 4294901760, %v607_v19  ;;  %v655_v42 = vand.u32 4294901760, %v608_v29 }
  0x16   :  { %29062 = vmatprep.subr.bf16.mxu0 %v39457_v0  ;;  %24093 = vmatprep.mubr.msk.f32.mxu1 %vm33090_vm1, %v39455_v4  ;;  %v33372_v43 = vsub.f32 %v603_v61, %v640_v10  ;;  %v703_v13 = vand.u32 4294901760, %v33319_v5  ;;  %v710_v14 = vand.u32 4294901760, %v33329_v8  ;;  %v717_v21 = vand.u32 4294901760, %v33331_v9 }
  0x17   :  { %29092 = vmatprep.subr.bf16.mxu1 %v39457_v0  ;;  %v33378_v22 = vsub.f32 %v604_v62, %v643_v11  ;;  %v33380_v44 = vpack.c.bf16 %v649_v33, %v646_v32  ;;  %v29081_v45 = vpack.c.bf16 %v210_v26, %v203_v23  ;;  %v692_v46 = vand.u32 4294901760, %v33352_v34 }
  0x18   :  { %v33390_v49 = vsub.f32 %v606_v7, %v649_v33  ;;  %v33392_v50 = vsub.f32 %v607_v19, %v652_v40  ;;  %v724_v51 = vand.u32 4294901760, %v33333_v16  ;;  %v33396_v52 = vpack.c.bf16 %v655_v42, %v652_v40 }
  0x19   :  { %29064 = vmatpush3.bf16.msra.mxu0 %v29063_v47  ;;  %29094 = vmatpush3.bf16.msra.mxu1 %v33274_v48  ;;  %v33388_v47 = vsub.f32 %v605_v6, %v646_v32  ;;  %v33398_v15 = vsub.f32 %v608_v29, %v655_v42  ;;  %v731_v17 = vand.u32 4294901760, %v33335_v25  ;;  %v738_v23 = vand.u32 4294901760, %v33337_v27 }
  0x1a   :  { %29065 = vmatprep.subr.bf16.mxu0 %v39457_v0  ;;  %29095 = vmatprep.subr.bf16.mxu1 %v39457_v0  ;;  %v704_v26 = vsub.f32 %v33319_v5, %v703_v13  ;;  %v718_v55 = vsub.f32 %v33331_v9, %v717_v21  ;;  %v745_v56 = vand.u32 4294901760, %v33339_v28  ;;  %v693_v57 = vsub.f32 %v33352_v34, %v692_v46 }
  0x1b   :  { %v752_v58 = vand.u32 4294901760, %v33354_v35  ;;  %v759_v59 = vand.u32 4294901760, %v33358_v36  ;;  %v773_v61 = vand.u32 4294901760, %v33372_v43  ;;  %v780_v62 = vand.u32 4294901760, %v33378_v22 }
  0x1c   :  { %24015 = vmatmul.mubr.f32.vlgmr.msra.gmra.mrb[0].mxu0 %v33220_v18  ;;  %v787_v1 = vand.u32 4294901760, %v33388_v47  ;;  %v794_v2 = vand.u32 4294901760, %v33390_v49  ;;  %v801_v6 = vand.u32 4294901760, %v33392_v50  ;;  %v33424_v7 = vpack.c.bf16 %v710_v14, %v703_v13 }
  0x1d   :  { %29067 = vmatpush3.bf16.msra.mxu0 %v29066_v53  ;;  %24025 = vmatprep.mubr.msk.f32.mxu0 %vm33090_vm1, %v39455_v4  ;;  %v711_v53 = vsub.f32 %v33329_v8, %v710_v14  ;;  %v808_v10 = vand.u32 4294901760, %v33398_v15  ;;  %v33432_v11 = vpack.c.bf16 %v752_v58, %v745_v56  ;;  %v33436_v29 = vpack.c.bf16 %v780_v62, %v773_v61 }
  0x1e   :  { %29068 = vmatprep.subr.bf16.mxu0 %v39457_v0  ;;  %29097 = vmatpush3.bf16.msra.mxu1 %v33289_v54  ;;  %v705_v32 = vand.u32 4294901760, %v704_v26  ;;  %v33442_v40 = vpack.c.bf16 %v794_v2, %v787_v1  ;;  %v694_v13 = vand.u32 4294901760, %v693_v57  ;;  %v732_v14 = vsub.f32 %v33335_v25, %v731_v17 }
  0x1f   :  { %29098 = vmatprep.subr.bf16.mxu1 %v39457_v0  ;;  %v712_v33 = vand.u32 4294901760, %v711_v53  ;;  %v33449_v42 = vpack.c.bf16 %v808_v10, %v801_v6  ;;  %v739_v53 = vsub.f32 %v33337_v27, %v738_v23 }
  0x21   :  { %29070 = vmatpush3.bf16.msra.mxu0 %v29069_v60  ;;  %v766_v60 = vand.u32 4294901760, %v33365_v38  ;;  %v740_v57 = vand.u32 4294901760, %v739_v53 }
  0x22   :  { %29071 = vmatprep.subr.bf16.mxu0 %v39457_v0  ;;  %29100 = vmatpush3.bf16.msra.mxu1 %v33314_v63 }
  0x23   :  { %29101 = vmatprep.subr.bf16.mxu1 %v39457_v0  ;;  %v33434_v19 = vpack.c.bf16 %v766_v60, %v759_v59 }
  0x24   :  { %24026 = vmatmul.mubr.f32.vlgmr.msra.gmra.mrb[0].mxu0 %v33235_v24  ;;  %v33426_v24 = vpack.c.bf16 %v724_v51, %v717_v21  ;;  %v29114_v21 = vpack.c.bf16 %v712_v33, %v705_v32 }
  0x25   :  { %29073 = vmatpush3.bf16.msra.mxu0 %v33205_v12  ;;  %24036 = vmatprep.mubr.msk.f32.mxu0 %vm33090_vm1, %v39455_v4 }
  0x26   :  { %29074 = vmatprep.subr.bf16.mxu0 %v39457_v0  ;;  %29103 = vmatpush3.bf16.msra.mxu1 %v33349_v30 }
  0x27   :  { %29104 = vmatprep.subr.bf16.mxu1 %v39457_v0 }
  0x29   :  { %29076 = vmatpush3.bf16.msra.mxu0 %v33228_v20 }
  0x2a   :  { %29077 = vmatprep.subr.bf16.mxu0 %v39457_v0  ;;  %29106 = vmatpush3.bf16.msra.mxu1 %v33367_v39 }
  0x2b   :  { %29107 = vmatprep.subr.bf16.mxu1 %v39457_v0 }
  0x2c   :  { %24037 = vmatmul.mubr.f32.vlgmr.msra.gmra.mrb[0].mxu0 %v178_v31  ;;  %v33428_v31 = vpack.c.bf16 %v738_v23, %v731_v17  ;;  %v753_v23 = vsub.f32 %v33354_v35, %v752_v58 }
  0x2d   :  { %29079 = vmatpush3.bf16.msra.mxu0 %v29078_v37  ;;  %24047 = vmatprep.mubr.msk.f32.mxu0 %vm33090_vm1, %v39455_v4  ;;  %v725_v37 = vsub.f32 %v33333_v16, %v724_v51  ;;  %v719_v51 = vand.u32 4294901760, %v718_v55  ;;  %v746_v55 = vsub.f32 %v33339_v28, %v745_v56 }
  0x2e   :  { %29080 = vmatprep.subr.bf16.mxu0 %v39457_v0  ;;  %29109 = vmatpush3.bf16.msra.mxu1 %v33380_v44 }
  0x2f   :  { %29110 = vmatprep.subr.bf16.mxu1 %v39457_v0  ;;  %v726_v26 = vand.u32 4294901760, %v725_v37  ;;  %v747_v33 = vand.u32 4294901760, %v746_v55  ;;  %v754_v37 = vand.u32 4294901760, %v753_v23  ;;  %v29144_v23 = vpack.c.bf16 %v33337_v27, %v33335_v25 }
  0x30   :  { %v29159_v25 = vpack.c.bf16 %v33398_v15, %v33392_v50 }
  0x31   :  { %29082 = vmatpush3.bf16.msra.mxu0 %v29081_v45  ;;  %v733_v45 = vand.u32 4294901760, %v732_v14  ;;  %v29117_v17 = vpack.c.bf16 %v726_v26, %v719_v51  ;;  %v781_v14 = vsub.f32 %v33378_v22, %v780_v62  ;;  %v795_v26 = vsub.f32 %v33390_v49, %v794_v2 }
  0x32   :  { %29083 = vmatprep.subr.bf16.mxu0 %v39457_v0  ;;  %29112 = vmatpush3.bf16.msra.mxu1 %v33396_v52 }
  0x33   :  { %29113 = vmatprep.subr.bf16.mxu1 %v39457_v0  ;;  %v29120_v32 = vpack.c.bf16 %v740_v57, %v733_v45  ;;  %v782_v51 = vand.u32 4294901760, %v781_v14  ;;  %v796_v45 = vand.u32 4294901760, %v795_v26 }
  0x34   :  { %24048 = vmatmul.mubr.f32.vlgmr.msra.gmra.mrb[0].mxu0 %v33220_v18 }
  0x35   :  { %29085 = vmatpush3.bf16.msra.mxu0 %v33205_v12  ;;  %24058 = vmatprep.mubr.msk.f32.mxu0 %vm33090_vm1, %v39455_v4  ;;  %v760_v12 = vsub.f32 %v33358_v36, %v759_v59  ;;  %v774_v59 = vsub.f32 %v33372_v43, %v773_v61  ;;  %v802_v61 = vsub.f32 %v33392_v50, %v801_v6 }
  0x36   :  { %24094 = vmatmul.mubr.f32.vlgmr.msra.gmra.mrb[2].mxu1 %v694_v13  ;;  %29086 = vmatprep.subr.bf16.mxu0 %v39457_v0  ;;  %v767_v13 = vsub.f32 %v33365_v38, %v766_v60  ;;  %v29138_v6 = vpack.c.bf16 %v33329_v8, %v33319_v5  ;;  %v29147_v5 = vpack.c.bf16 %v33354_v35, %v33339_v28  ;;  %v1383_v28 = vld [vmem:[%s39429_s7] sm:$0xff] }
  0x37   :  { %29115 = vmatpush3.bf16.msra.mxu1 %v29114_v21  ;;  %24128 = vmatprep.mubr.msk.f32.mxu1 %vm33090_vm1, %v39455_v4  ;;  %v761_v56 = vand.u32 4294901760, %v760_v12  ;;  %v788_v21 = vsub.f32 %v33388_v47, %v787_v1  ;;  %v809_v1 = vsub.f32 %v33398_v15, %v808_v10  ;;  %v803_v57 = vand.u32 4294901760, %v802_v61  ;;  %v1387_v15 = vld [vmem:[%s39429_s7 + $0x20] sm:$0xff] }
  0x38   :  { %29116 = vmatprep.subr.bf16.mxu1 %v39457_v0  ;;  %v768_v58 = vand.u32 4294901760, %v767_v13  ;;  %v29141_v10 = vpack.c.bf16 %v33333_v16, %v33331_v9  ;;  %v29150_v8 = vpack.c.bf16 %v33365_v38, %v33358_v36  ;;  %v29153_v9 = vpack.c.bf16 %v33378_v22, %v33372_v43  ;;  %v1385_v38 = vld [vmem:[%s39429_s7 + $0x10] sm:$0xff] }
  0x39   :  { %29088 = vmatpush3.bf16.msra.mxu0 %v33228_v20  ;;  %v29123_v20 = vpack.c.bf16 %v754_v37, %v747_v33  ;;  %v789_v53 = vand.u32 4294901760, %v788_v21  ;;  %v810_v2 = vand.u32 4294901760, %v809_v1  ;;  %v29156_v16 = vpack.c.bf16 %v33390_v49, %v33388_v47  ;;  %v1389_v13 = vld [vmem:[%s39429_s7 + $0x30] sm:$0xff] }
  0x3a   :  { %29245 = vmatprep.subr.bf16.mxu0 %v39457_v0  ;;  %v29126_v60 = vpack.c.bf16 %v768_v58, %v761_v56  ;;  %v1390_v56 = vld [vmem:[%s39429_s7 + $0x38] sm:$0xff] }
  0x3b   :  { %29118 = vmatpush3.bf16.msra.mxu1 %v29117_v17  ;;  %v29132_v17 = vpack.c.bf16 %v796_v45, %v789_v53  ;;  %v29135_v55 = vpack.c.bf16 %v810_v2, %v803_v57  ;;  %v1417_v14 = vand.u32 4294901760, %v1390_v56 }
  0x3c   :  { %24059 = vmatmul.mubr.f32.vlgmr.msra.gmra.mrb[0].mxu0 %v33220_v18  ;;  %29119 = vmatprep.subr.bf16.mxu1 %v39457_v0  ;;  %v775_v18 = vand.u32 4294901760, %v774_v59  ;;  %v1414_v59 = vand.u32 4294901760, %v1389_v13 }
  0x3d   :  { %24306 = vmatprep.mubr.msk.f32.mxu0 %vm33090_vm1, %v39455_v4  ;;  %v33641_v61 = vsub.f32 %v1390_v56, %v1417_v14 }
  0x3e   :  { %v29129_v62 = vpack.c.bf16 %v782_v51, %v775_v18  ;;  %v33639_v26 = vsub.f32 %v1389_v13, %v1414_v59  ;;  %v39447_v13 = vmov 2102212464  }
  0x3f   :  { %29121 = vmatpush3.bf16.msra.mxu1 %v29120_v32  ;;  %v1530_v1 = vand.u32 4294901760, %v33641_v61 }
  0x40   :  { %29122 = vmatprep.subr.bf16.mxu1 %v39457_v0  ;;  %v1523_v45 = vand.u32 4294901760, %v33639_v26 }
  0x43   :  { %29124 = vmatpush3.bf16.msra.mxu1 %v29123_v20 }
  0x44   :  { %29125 = vmatprep.subr.bf16.mxu1 %v39457_v0 }
  0x47   :  { %29127 = vmatpush3.bf16.msra.mxu1 %v29126_v60 }
  0x48   :  { %29128 = vmatprep.subr.bf16.mxu1 %v39457_v0 }
  0x4b   :  { %29130 = vmatpush3.bf16.msra.mxu1 %v29129_v62 }
  0x4c   :  { %29131 = vmatprep.subr.bf16.mxu1 %v39457_v0 }
  0x4f   :  { %29133 = vmatpush3.bf16.msra.mxu1 %v29132_v17 }
  0x50   :  { %29134 = vmatprep.subr.bf16.mxu1 %v39457_v0 }
  0x53   :  { %29136 = vmatpush3.bf16.msra.mxu1 %v29135_v55  ;;  %v1524_v55 = vsub.f32 %v33639_v26, %v1523_v45 }
  0x54   :  { %29137 = vmatprep.subr.bf16.mxu1 %v39457_v0 }
  0x56   :  { %24129 = vmatmul.mubr.f32.vlgmr.msra.gmra.mrb[2].mxu1 %v33316_v3 }
  0x57   :  { %29139 = vmatpush3.bf16.msra.mxu1 %v29138_v6  ;;  %24163 = vmatprep.mubr.msk.f32.mxu1 %vm33090_vm1, %v39455_v4  ;;  %v1531_v6 = vsub.f32 %v33641_v61, %v1530_v1 }
  0x58   :  { %29140 = vmatprep.subr.bf16.mxu1 %v39457_v0 }
  0x5b   :  { %29142 = vmatpush3.bf16.msra.mxu1 %v29141_v10 }
  0x5c   :  { %29143 = vmatprep.subr.bf16.mxu1 %v39457_v0 }
  0x5f   :  { %29145 = vmatpush3.bf16.msra.mxu1 %v29144_v23  ;;  %v1525_v23 = vand.u32 4294901760, %v1524_v55 }
  0x60   :  { %29146 = vmatprep.subr.bf16.mxu1 %v39457_v0 }
  0x63   :  { %29148 = vmatpush3.bf16.msra.mxu1 %v29147_v5  ;;  %v1532_v5 = vand.u32 4294901760, %v1531_v6 }
  0x64   :  { %29149 = vmatprep.subr.bf16.mxu1 %v39457_v0 }
  0x67   :  { %29151 = vmatpush3.bf16.msra.mxu1 %v29150_v8  ;;  %v29255_v8 = vpack.c.bf16 %v1532_v5, %v1525_v23 }
  0x68   :  { %29152 = vmatprep.subr.bf16.mxu1 %v39457_v0 }
  0x6b   :  { %29154 = vmatpush3.bf16.msra.mxu1 %v29153_v9 }
  0x6c   :  { %29155 = vmatprep.subr.bf16.mxu1 %v39457_v0 }
  0x6f   :  { %29157 = vmatpush3.bf16.msra.mxu1 %v29156_v16 }
  0x70   :  { %29158 = vmatprep.subr.bf16.mxu1 %v39457_v0 }
  0x73   :  { %29160 = vmatpush3.bf16.msra.mxu1 %v29159_v25 }
  0x74   :  { %29161 = vmatprep.subr.bf16.mxu1 %v39457_v0 }
  0x76   :  { %24164 = vmatmul.mubr.f32.vlgmr.msra.gmra.mrb[2].mxu1 %v33352_v34  ;;  %v1396_v34 = vand.u32 4294901760, %v1383_v28 }
  0x77   :  { %29163 = vmatpush3.bf16.msra.mxu1 %v33264_v41  ;;  %24198 = vmatprep.mubr.msk.f32.mxu1 %vm33090_vm1, %v39455_v4 }
  0x78   :  { %29164 = vmatprep.subr.bf16.mxu1 %v39457_v0 }
  0x7b   :  { %29166 = vmatpush3.bf16.msra.mxu1 %v33274_v48 }
  0x7c   :  { %29167 = vmatprep.subr.bf16.mxu1 %v39457_v0 }
  0x7f   :  { %29169 = vmatpush3.bf16.msra.mxu1 %v33289_v54 }
  0x80   :  { %29170 = vmatprep.subr.bf16.mxu1 %v39457_v0 }
  0x83   :  { %29172 = vmatpush3.bf16.msra.mxu1 %v33314_v63 }
  0x84   :  { %29173 = vmatprep.subr.bf16.mxu1 %v39457_v0 }
  0x87   :  { %29175 = vmatpush3.bf16.msra.mxu1 %v33349_v30 }
  0x88   :  { %29176 = vmatprep.subr.bf16.mxu1 %v39457_v0 }
  0x8b   :  { %29178 = vmatpush3.bf16.msra.mxu1 %v33367_v39 }
  0x8c   :  { %29179 = vmatprep.subr.bf16.mxu1 %v39457_v0 }
  0x8f   :  { %29181 = vmatpush3.bf16.msra.mxu1 %v33380_v44 }
  0x90   :  { %29182 = vmatprep.subr.bf16.mxu1 %v39457_v0 }
  0x93   :  { %29184 = vmatpush3.bf16.msra.mxu1 %v33396_v52 }
  0x94   :  { %29185 = vmatprep.subr.bf16.mxu1 %v39457_v0 }
  0x96   :  { %24199 = vmatmul.mubr.f32.vlgmr.msra.gmra.mrb[2].mxu1 %v692_v46 }
  0x97   :  { %29187 = vmatpush3.bf16.msra.mxu1 %v33424_v7  ;;  %24233 = vmatprep.mubr.msk.f32.mxu1 %vm33090_vm1, %v39455_v4  ;;  %v1388_v7 = vld [vmem:[%s39429_s7 + $0x28] sm:$0xff] }
  0x98   :  { %29188 = vmatprep.subr.bf16.mxu1 %v39457_v0 }
  0x9b   :  { %29190 = vmatpush3.bf16.msra.mxu1 %v33426_v24 }
  0x9c   :  { %29191 = vmatprep.subr.bf16.mxu1 %v39457_v0 }
  0x9f   :  { %29193 = vmatpush3.bf16.msra.mxu1 %v33428_v31 }
  0xa0   :  { %29194 = vmatprep.subr.bf16.mxu1 %v39457_v0 }
  0xa3   :  { %29196 = vmatpush3.bf16.msra.mxu1 %v33432_v11 }
  0xa4   :  { %29197 = vmatprep.subr.bf16.mxu1 %v39457_v0 }
  0xa7   :  { %29199 = vmatpush3.bf16.msra.mxu1 %v33434_v19 }
  0xa8   :  { %29200 = vmatprep.subr.bf16.mxu1 %v39457_v0 }
  0xab   :  { %29202 = vmatpush3.bf16.msra.mxu1 %v33436_v29  ;;  %v1408_v29 = vand.u32 4294901760, %v1387_v15 }
  0xac   :  { %29203 = vmatprep.subr.bf16.mxu1 %v39457_v0 }
  0xad   :  { %v33624_v33 = vsub.f32 %v1387_v15, %v1408_v29 }
  0xaf   :  { %29205 = vmatpush3.bf16.msra.mxu1 %v33442_v40  ;;  %v1411_v40 = vand.u32 4294901760, %v1388_v7  ;;  %v1509_v21 = vand.u32 4294901760, %v33624_v33 }
  0xb0   :  { %29206 = vmatprep.subr.bf16.mxu1 %v39457_v0 }
  0xb1   :  { %v33626_v37 = vsub.f32 %v1388_v7, %v1411_v40  ;;  %v1510_v62 = vsub.f32 %v33624_v33, %v1509_v21  ;;  %v33664_v16 = vpack.c.bf16 %v1411_v40, %v1408_v29  ;;  %v39451_v40 = vmov 2475754826  }
  0xb3   :  { %29208 = vmatpush3.bf16.msra.mxu1 %v33449_v42  ;;  %v1516_v60 = vand.u32 4294901760, %v33626_v37  ;;  %v1511_v57 = vand.u32 4294901760, %v1510_v62 }
  0xb4   :  { %29209 = vmatprep.subr.bf16.mxu1 %v39457_v0 }
  0xb5   :  { %v1517_v53 = vsub.f32 %v33626_v37, %v1516_v60  ;;  %v33697_v15 = vpack.c.bf16 %v1516_v60, %v1509_v21  ;;  %v39443_v21 = vmov 1326507024  }
  0xb6   :  { %24234 = vmatmul.mubr.f32.vlgmr.msra.gmra.mrb[2].mxu1 %v33316_v3 }
  0xb7   :  { %29211 = vmatpush3.bf16.msra.mxu1 %v33264_v41  ;;  %24268 = vmatprep.mubr.msk.f32.mxu1 %vm33090_vm1, %v39455_v4  ;;  %v1518_v2 = vand.u32 4294901760, %v1517_v53 }
  0xb8   :  { %29212 = vmatprep.subr.bf16.mxu1 %v39457_v0 }
  0xb9   :  { %v29252_v10 = vpack.c.bf16 %v1518_v2, %v1511_v57  ;;  %v33713_v57 = vpack.c.bf16 %v1530_v1, %v1523_v45 }
  0xbb   :  { %29214 = vmatpush3.bf16.msra.mxu1 %v33274_v48 }
  0xbc   :  { %29215 = vmatprep.subr.bf16.mxu1 %v39457_v0 }
  0xbf   :  { %29217 = vmatpush3.bf16.msra.mxu1 %v33289_v54 }
  0xc0   :  { %29218 = vmatprep.subr.bf16.mxu1 %v39457_v0 }
  0xc3   :  { %29220 = vmatpush3.bf16.msra.mxu1 %v33314_v63 }
  0xc4   :  { %29221 = vmatprep.subr.bf16.mxu1 %v39457_v0 }
  0xc7   :  { %29223 = vmatpush3.bf16.msra.mxu1 %v33349_v30  ;;  %v1384_v30 = vld [vmem:[%s39429_s7 + $0x8] sm:$0xff] }
  0xc8   :  { %29224 = vmatprep.subr.bf16.mxu1 %v39457_v0  ;;  %v1399_v35 = vand.u32 4294901760, %v1384_v30 }
  0xca   :  { %v33590_v36 = vsub.f32 %v1384_v30, %v1399_v35  ;;  %v33637_v51 = vpack.c.bf16 %v1399_v35, %v1396_v34 }
  0xcb   :  { %29226 = vmatpush3.bf16.msra.mxu1 %v33367_v39  ;;  %v1386_v39 = vld [vmem:[%s39429_s7 + $0x18] sm:$0xff] }
  0xcc   :  { %29227 = vmatprep.subr.bf16.mxu1 %v39457_v0  ;;  %v1488_v22 = vand.u32 4294901760, %v33590_v36  ;;  %v1405_v46 = vand.u32 4294901760, %v1386_v39 }
  0xce   :  { %v1489_v49 = vsub.f32 %v33590_v36, %v1488_v22 }
  0xcf   :  { %29229 = vmatpush3.bf16.msra.mxu1 %v33380_v44  ;;  %v1402_v44 = vand.u32 4294901760, %v1385_v38 }
  0xd0   :  { %29230 = vmatprep.subr.bf16.mxu1 %v39457_v0  ;;  %v1490_v31 = vand.u32 4294901760, %v1489_v49 }
  0xd1   :  { %v33606_v50 = vsub.f32 %v1385_v38, %v1402_v44  ;;  %v33648_v17 = vpack.c.bf16 %v1405_v46, %v1402_v44 }
  0xd3   :  { %29232 = vmatpush3.bf16.msra.mxu1 %v33396_v52  ;;  %v33608_v52 = vsub.f32 %v1386_v39, %v1405_v46  ;;  %v1495_v11 = vand.u32 4294901760, %v33606_v50 }
  0xd4   :  { %29233 = vmatprep.subr.bf16.mxu1 %v39457_v0 }
  0xd5   :  { %v1502_v19 = vand.u32 4294901760, %v33608_v52  ;;  %v1496_v12 = vsub.f32 %v33606_v50, %v1495_v11  ;;  %v29261_v25 = vpack.c.bf16 %v33608_v52, %v33606_v50  ;;  %v63_v50 = vld [vmem:[%s39432_s12 + $0x10] sm:$0xff] }
  0xd6   :  { %24269 = vmatmul.mubr.f32.vlgmr.msra.gmra.mrb[2].mxu1 %v33316_v3  ;;  %v33588_v3 = vsub.f32 %v1383_v28, %v1396_v34 }
  0xd7   :  { %24287 = vmatprep.mubr.msk.f32.mxu1 %vm33090_vm1, %v39455_v4  ;;  %v1503_v32 = vsub.f32 %v33608_v52, %v1502_v19  ;;  %v1497_v20 = vand.u32 4294901760, %v1496_v12  ;;  %29235 = vmatpush3.bf16.msra.mxu1 %v33637_v51  ;;  %v33693_v46 = vpack.c.bf16 %v1502_v19, %v1495_v11  ;;  %v39449_v19 = vmov 2131351028  }
  0xd8   :  { %v1481_v43 = vand.u32 4294901760, %v33588_v3  ;;  %29236 = vmatprep.subr.bf16.mxu1 %v39457_v0  ;;  %v29258_v9 = vpack.c.bf16 %v33590_v36, %v33588_v3  ;;  %v62_v36 = vld [vmem:[%s39432_s12 + $0x8] sm:$0xff] }
  0xd9   :  { %v1504_v58 = vand.u32 4294901760, %v1503_v32 }
  0xda   :  { %v1482_v47 = vsub.f32 %v33588_v3, %v1481_v43  ;;  %v33686_v38 = vpack.c.bf16 %v1488_v22, %v1481_v43  ;;  %v61_v3 = vld [vmem:[%s39432_s12] sm:$0xff] }
  0xdb   :  { %v29249_v18 = vpack.c.bf16 %v1504_v58, %v1497_v20  ;;  %29238 = vmatpush3.bf16.msra.mxu1 %v33648_v17  ;;  %v39445_v58 = vmov 920167782   ;;  %v1934_v52 = vand.u32 4294901760, %v61_v3 }
  0xdc   :  { %v1483_v24 = vand.u32 4294901760, %v1482_v47  ;;  %29239 = vmatprep.subr.bf16.mxu1 %v39457_v0 }
  0xde   :  { %v29246_v42 = vpack.c.bf16 %v1490_v31, %v1483_v24  ;;  %v39453_v31 = vmov 683565275  }
  0xdf   :  { %29241 = vmatpush3.bf16.msra.mxu1 %v33664_v16 }
  0xe0   :  { %29247 = vmatpush3.bf16.msra.mxu0 %v29246_v42  ;;  %29242 = vmatprep.subr.bf16.mxu1 %v39457_v0 }
  0xe1   :  { %29248 = vmatprep.subr.bf16.mxu0 %v39457_v0 }
  0xe4   :  { %29250 = vmatpush3.bf16.msra.mxu0 %v29249_v18 }
  0xe5   :  { %29251 = vmatprep.subr.bf16.mxu0 %v39457_v0 }
  0xe7   :  { %v182_v41 = vpop.f32.mrb[0].mxu1 }
  0xe8   :  { %v24005_v48 = vpop.f32.mrb[1].mxu1  ;;  %29253 = vmatpush3.bf16.msra.mxu0 %v29252_v10 }
  0xe9   :  { %29254 = vmatprep.subr.bf16.mxu0 %v39457_v0  ;;  %v29264_v48 = vpack.c.bf16 %v33626_v37, %v33624_v33  ;;  %v1937_v33 = vand.u32 4294901760, %v62_v36  ;;  %v64_v37 = vld [vmem:[%s39432_s12 + $0x18] sm:$0xff] }
  0xec   :  { %29256 = vmatpush3.bf16.msra.mxu0 %v29255_v8 }
  0xed   :  { %29257 = vmatprep.subr.bf16.mxu0 %v39457_v0 }
 0x10f   :  { %v588_v54 = vpop.f32.mrb[0].mxu0 }
 0x110   :  { %v33580_v63 = vadd.f32 %v588_v54, %v182_v41  ;;  %v24060_v27 = vpop.f32.mrb[1].mxu0  ;;  %v33670_v41 = vpack.c.bf16 %v1417_v14, %v1414_v59  ;;  %v29267_v54 = vpack.c.bf16 %v33641_v61, %v33639_v26  ;;  %v33806_v26 = vld [vmem:[%s39432_s12 + $0x20] sm:$0xff]  ;;  %v33811_v61 = vld [vmem:[%s39432_s12 + $0x28] sm:$0xff] }
 0x112   :  { %29244 = vmatpush3.bf16.msra.mxu1 %v33670_v41 }
 0x113   :  { %29497 = vmatprep.subr.bf16.mxu1 %v39457_v0 }
 0x1a9   :  { %v1246_v27 = vpop.f32.mrb[2].mxu1 }
 0x1aa   :  { %v33679_v28 = vsub.f32 %v33580_v63, %v1246_v27  ;;  %v24270_v30 = vpop.f32.mrb[3].mxu1 }
 0x1ac   :  { %v1254_v34 = vand.u32 2139095040, %v33679_v28  ;;  %v1251_v44 = vand.u32 2147483647, %v33679_v28  ;;  %vm1253_vm9 = vcmp.lt.s32.totalorder %v33679_v28, 0  ;;  %vm1343_vm14 = vweird.f32 %v33679_v28 }
 0x1ae   :  { %v1255_v35 = vshrl.u32 %v1254_v34, 23  ;;  %v1258_v47 = vand.u32 8388607, %v1251_v44  ;;  %vm1252_vm10 = vcmp.le.f32.partialorder %v1251_v44, 0.7853982 }
 0x1af   :  { %v1357_v44 = vld [vmem:[%s39430_s8] sm:$0x1] }
 0x1b0   :  { %v21347_v39 = vadd.s32 4294967169, %v1255_v35  ;;  %v1259_v22 = vor.u32 8388608, %v1258_v47 }
 0x1b2   :  { %v1261_v63 = vadd.s32 1, %v21347_v39  ;;  %v1299_v35 = vshll.u32 %v1259_v22, 8 }
 0x1b4   :  { %vm1262_vm2 = vcmp.gt.s32.totalorder %v1261_v63, 0 }
 0x1b5   :  { %v1263_v49 = vsel %vm1262_vm2, %v1261_v63, 0 }
 0x1b6   :  { %v1265_v7 = vand.u32 31, %v1263_v49  ;;  %v1264_v24 = vshrl.u32 %v1263_v49, 5 }
 0x1b8   :  { %v1266_v43 = vsub.s32 32, %v1265_v7  ;;  %v1268_v29 = vshll.u32 %v39453_v31, %v1265_v7  ;;  %v1271_v42 = vshll.u32 %v39451_v40, %v1265_v7  ;;  %v1274_v32 = vshll.u32 %v39449_v19, %v1265_v7 }
 0x1b9   :  { %v1277_v20 = vshll.u32 %v39447_v13, %v1265_v7  ;;  %v1280_v14 = vshll.u32 %v39445_v58, %v1265_v7  ;;  %vm1283_vm3 = vcmp.lt.s32.totalorder %v1264_v24, 1  ;;  %vm1286_vm4 = vcmp.lt.s32.totalorder %v1264_v24, 4 }
 0x1ba   :  { %v1269_v11 = vshrl.u32 %v39451_v40, %v1266_v43  ;;  %v1272_v12 = vshrl.u32 %v39449_v19, %v1266_v43  ;;  %v1275_v56 = vshrl.u32 %v39447_v13, %v1266_v43  ;;  %v1278_v59 = vshrl.u32 %v39445_v58, %v1266_v43 }
 0x1bb   :  { %v1281_v60 = vshrl.u32 %v39443_v21, %v1266_v43  ;;  %v1267_v5 = vshrl.u32 %v39453_v31, %v1266_v43  ;;  %vm1285_vm5 = vcmp.lt.s32.totalorder %v1264_v24, 3  ;;  %vm1284_vm6 = vcmp.lt.s32.totalorder %v1264_v24, 2 }
 0x1bc   :  { %v1270_v18 = vor.u32 %v1269_v11, %v1268_v29  ;;  %v1273_v62 = vor.u32 %v1272_v12, %v1271_v42  ;;  %v1276_v53 = vor.u32 %v1275_v56, %v1274_v32  ;;  %v1279_v2 = vor.u32 %v1278_v59, %v1277_v20 }
 0x1bd   :  { %v1282_v55 = vor.u32 %v1281_v60, %v1280_v14 }
 0x1be   :  { %v1288_v6 = vsel %vm1286_vm4, %v1276_v53, 2102212464  ;;  %v1291_v10 = vsel %vm1283_vm3, %v1270_v18, %v1273_v62  ;;  %v1295_v23 = vsel %vm1283_vm3, %v1273_v62, %v1276_v53  ;;  %v1292_v8 = vsel %vm1286_vm4, %v1279_v2, 920167782 }
 0x1bf   :  { %v1296_v27 = vsel %vm1286_vm4, %v1282_v55, 1326507024  ;;  %v1293_v30 = vsel %vm1285_vm5, %v1276_v53, %v1292_v8  ;;  %v1287_v39 = vsel %vm1283_vm3, %v1267_v5, %v1270_v18  ;;  %v1289_v63 = vsel %vm1285_vm5, %v1273_v62, %v1288_v6 }
 0x1c0   :  { %v1297_v34 = vsel %vm1285_vm5, %v1279_v2, %v1296_v27  ;;  %v1294_v45 = vsel %vm1284_vm6, %v1291_v10, %v1293_v30  ;;  %v1290_v42 = vsel %vm1284_vm6, %v1287_v39, %v1289_v63 }
 0x1c1   :  { %v1298_v1 = vsel %vm1284_vm6, %v1295_v23, %v1297_v34  ;;  %v33719_v7 = vmul.u32.u64.low %v1299_v35, %v1294_v45  ;;  %v33720_v29 = vmul.u32.u64.high %v1299_v35, %v1294_v45, %v33719_v7  ;;  %v1306_v11 = vmul.u32 %v1299_v35, %v1290_v42 }
 0x1c2   :  { %v33716_v47 = vmul.u32.u64.low %v1299_v35, %v1298_v1  ;;  %v33717_v49 = vmul.u32.u64.high %v1299_v35, %v1298_v1, %v33716_v47 }
 0x1c3   :  { %v1309_v43 = vadd.s32 1, %v33720_v29 }
 0x1c4   :  { %vm1308_vm7 = vc.u32 %v33717_v49, %v33719_v7  ;;  %v1307_v53 = vadd.s32 %v33719_v7, %v33717_v49  ;;  %v1361_v7 = vlaneseq }
 0x1c5   :  { %v1310_v24 = vsel %vm1308_vm7, %v1309_v43, %v33720_v29 }
 0x1c6   :  { %v1311_v12 = vadd.s32 %v1310_v24, %v1306_v11  ;;  %v1362_v24 = vshrl.u32 %v1361_v7, 7  ;;  %v71_v7 = vld [vmem:[%s39432_s12 + $0x50] sm:$0xff] }
 0x1c8   :  { %v1312_v22 = vadd.s32 536870912, %v1311_v12 }
 0x1ca   :  { %v1313_v32 = vshrl.u32 %v1312_v22, 30 }
 0x1cc   :  { %v1314_v56 = vshll.u32 %v1313_v32, 30  ;;  %v1337_v45 = vsub.s32 4, %v1313_v32 }
 0x1ce   :  { %v1315_v20 = vsub.s32 %v1311_v12, %v1314_v56  ;;  %v1338_v47 = vsel %vm1253_vm9, %v1337_v45, %v1313_v32 }
 0x1cf   :  { %v1340_v49 = vsel %vm1252_vm10, 0, %v1338_v47 }
 0x1d0   :  { %v1317_v59 = vsub.s32 0, %v1315_v20  ;;  %v1344_v29 = vand.u32 3, %v1340_v49 }
 0x1d2   :  { %v21348_v14 = vmin.u32 %v1317_v59, %v1315_v20  ;;  %vm1349_vm11 = vcmp.eq.s32.totalorder %v1344_v29, 2  ;;  %vm1346_vm12 = vcmp.eq.s32.totalorder %v1344_v29, 0  ;;  %vm1345_vm13 = vcmp.lt.s32.totalorder %v1344_v29, 2  ;;  %v72_v29 = vld [vmem:[%s39432_s12 + $0x58] sm:$0xff] }
 0x1d3   :  { %v33734_v59 = vsub.s32 0, %v1362_v24  ;;  %v73_v24 = vld [vmem:[%s39432_s12 + $0x60] sm:$0xff] }
 0x1d4   :  { %v1319_v60 = vclz %v21348_v14 }
 0x1d5   :  { %39830 = vst [vmem:[#allocation3_spill] sm:$0xff] %v33734_v59 }
 0x1d6   :  { %v21349_v18 = vadd.s32 4294967294, %v1319_v60 }
 0x1d8   :  { %vm21350_vm8 = vcmp.lt.s32.totalorder %v21349_v18, 0 }
 0x1d9   :  { %v1322_v62 = vsel %vm21350_vm8, 0, %v21349_v18 }
 0x1da   :  { %v1323_v2 = vsub.s32 32, %v1322_v62  ;;  %v1327_v55 = vsub.s32 4294967266, %v1322_v62  ;;  %v1324_v6 = vshll.u32 %v1315_v20, %v1322_v62  ;;  %v1359_v20 = vsub.f32 -1.0, %v1357_v44 }
 0x1dc   :  { %v1325_v10 = vshrl.u32 %v1307_v53, %v1323_v2  ;;  %v1328_v23 = vadd.s32 127, %v1327_v55  ;;  %v1364_v62 = vrot.slane %v1359_v20, %v33734_v59  ;;  %v1371_v53 = vrot.slane %v1357_v44, %v33734_v59 }
 0x1dd   :  { %v1970_v44 = vand.u32 4294901760, %v73_v24  ;;  %v33887_v20 = vsub.f32 %v62_v36, %v1937_v33 }
 0x1de   :  { %v1326_v5 = vor.u32 %v1325_v10, %v1324_v6  ;;  %v1329_v8 = vshll.u32 %v1328_v23, 23  ;;  %v21352_v10 = vld [vmem:[%s39431_s9] ss:$0 sm:$0xff] }
 0x1e0   :  { %v1330_v27 = vor.u32 4788187, %v1329_v8  ;;  %v1333_v34 = vcvt.s32.f32 %v1326_v5 }
 0x1e2   :  { %v1331_v30 = vand.u32 2147483647, %v1330_v27 }
 0x1e4   :  { %v1334_v35 = vmul.f32 %v1333_v34, %v1331_v30 }
 0x1e6   :  { %v1335_v39 = vxor.u32 2147483648, %v1334_v35 }
 0x1e8   :  { %v1336_v63 = vsel %vm1253_vm9, %v1335_v39, %v1334_v35 }
 0x1e9   :  { %v1339_v1 = vsel %vm1252_vm10, %v33679_v28, %v1336_v63  ;;  %v33844_v63 = vld [vmem:[%s39432_s12 + $0x48] sm:$0xff] }
 0x1ea   :  { %33035 = vcosq.f32 %v1339_v1  ;;  %v1961_v47 = vand.u32 4294901760, %v33844_v63 }
 0x1eb   :  { %33037 = vsinq.f32 %v1339_v1 }
 0x1f4   :  { %v33036_v42 = vpop.eup %33035 }
 0x1f5   :  { %v33038_v43 = vpop.eup %33037  ;;  %v1350_v11 = vxor.u32 2147483648, %v33036_v42 }
 0x1f6   :  { %v1347_v12 = vxor.u32 2147483648, %v33038_v43 }
 0x1f7   :  { %v1351_v22 = vsel %vm1349_vm11, %v1350_v11, %v33038_v43  ;;  %v1967_v43 = vand.u32 4294901760, %v72_v29 }
 0x1f8   :  { %v1348_v56 = vsel %vm1346_vm12, %v33036_v42, %v1347_v12  ;;  %v1964_v42 = vand.u32 4294901760, %v71_v7  ;;  %v74_v12 = vld [vmem:[%s39432_s12 + $0x68] sm:$0xff] }
 0x1f9   :  { %v1352_v32 = vsel %vm1345_vm13, %v1348_v56, %v1351_v22  ;;  %v1973_v22 = vand.u32 4294901760, %v74_v12 }
 0x1fa   :  { %v1353_v14 = vsel %vm1343_vm14, nan, %v1352_v32  ;;  %v33873_v11 = vpack.c.bf16 %v1967_v43, %v1964_v42  ;;  %v33885_v32 = vsub.f32 %v61_v3, %v1934_v52 }
 0x1fb   :  { %v1354_v60 = vmul.f32 2.0, %v1353_v14  ;;  %v1366_v55 = vadd.f32 %v1364_v62, %v1353_v14  ;;  %v33883_v56 = vpack.c.bf16 %v1973_v22, %v1970_v44 }
 0x1fc   :  { %39836 = vst [vmem:[#allocation9_spill] sm:$0xff] %v33873_v11 }
 0x1fd   :  { %v1355_v18 = vmul.f32 %v1354_v60, %v1353_v14  ;;  %39837 = vst [vmem:[#allocation10_spill] sm:$0xff] %v33883_v56  ;;  %v75_v14 = vld [vmem:[%s39432_s12 + $0x70] sm:$0xff]  ;;  %v76_v60 = vld [vmem:[%s39432_s12 + $0x78] sm:$0xff] }
 0x1fe   :  { %v1979_v62 = vand.u32 4294901760, %v76_v60 }
 0x1ff   :  { %v21351_v2 = vadd.f32 -1.0, %v1355_v18  ;;  %v1976_v18 = vand.u32 4294901760, %v75_v14 }
 0x201   :  { %v1373_v6 = vmul.f32 %v21351_v2, %v1371_v53  ;;  %v2037_v53 = vand.u32 4294901760, %v33885_v32  ;;  %v2044_v2 = vand.u32 4294901760, %v33887_v20 }
 0x203   :  { %v1374_v23 = vadd.f32 %v1373_v6, %v1366_v55  ;;  %v33899_v55 = vpack.c.bf16 %v1979_v62, %v1976_v18  ;;  %v2038_v6 = vsub.f32 %v33885_v32, %v2037_v53 }
 0x205   :  { %v1381_v28 = vmul.f32 %v21352_v10, %v1374_v23  ;;  %39838 = vst [vmem:[#allocation11_spill] sm:$0xff] %v33899_v55  ;;  %v2045_v10 = vsub.f32 %v33887_v20, %v2044_v2 }
 0x207   :  { %v1382_v5 = vadd.f32 1.0, %v1381_v28 }
 0x209   :  { %v1393_v8 = vsel %vm1391_vm15, %v1382_v5, 0  ;;  %v2039_v5 = vand.u32 4294901760, %v2038_v6  ;;  %v33942_v6 = vsub.f32 %v71_v7, %v1964_v42 }
 0x20a   :  { %v1468_v27 = vand.u32 4294901760, %v1393_v8 }
 0x20c   :  { %v1469_v30 = vsub.f32 %v1393_v8, %v1468_v27  ;;  %24307 = vmatmul.mubr.f32.vlgmr.msra.gmra.mrb[2].mxu0 %v1468_v27  ;;  %v2046_v8 = vand.u32 4294901760, %v2045_v10  ;;  %v33944_v10 = vsub.f32 %v72_v29, %v1967_v43 }
 0x20d   :  { %29259 = vmatpush3.bf16.msra.mxu0 %v29258_v9  ;;  %24325 = vmatprep.mubr.msk.f32.mxu0 %vm33090_vm1, %v39455_v4  ;;  %v33813_v9 = vpack.c.bf16 %v1937_v33, %v1934_v52 }
 0x20e   :  { %29260 = vmatprep.subr.bf16.mxu0 %v39457_v0  ;;  %v1470_v34 = vand.u32 4294901760, %v1469_v30 }
 0x20f   :  { %39831 = vst [vmem:[#allocation4_spill] sm:$0xff] %v33813_v9 }
 0x210   :  { %v1471_v35 = vsub.f32 %v1469_v30, %v1470_v34 }
 0x211   :  { %29262 = vmatpush3.bf16.msra.mxu0 %v29261_v25  ;;  %v1949_v25 = vand.u32 4294901760, %v33811_v61 }
 0x212   :  { %29263 = vmatprep.subr.bf16.mxu0 %v39457_v0  ;;  %v1472_v39 = vand.u32 4294901760, %v1471_v35 }
 0x213   :  { %v33927_v36 = vsub.f32 %v33811_v61, %v1949_v25 }
 0x214   :  { %24288 = vmatmul.mubr.f32.vlgmr.msra.gmra.mrb[4].mxu1 %v1472_v39 }
 0x215   :  { %29265 = vmatpush3.bf16.msra.mxu0 %v29264_v48  ;;  %24627 = vmatprep.mubr.msk.f32.mxu1 %vm33090_vm1, %v39455_v4  ;;  %v33822_v48 = vld [vmem:[%s39432_s12 + $0x30] sm:$0xff] }
 0x216   :  { %29266 = vmatprep.subr.bf16.mxu0 %v39457_v0 }
 0x219   :  { %29268 = vmatpush3.bf16.msra.mxu0 %v29267_v54  ;;  %v33827_v54 = vld [vmem:[%s39432_s12 + $0x38] sm:$0xff] }
 0x21a   :  { %29269 = vmatprep.subr.bf16.mxu0 %v39457_v0 }
 0x21c   :  { %24326 = vmatmul.mubr.f32.vlgmr.msra.gmra.mrb[2].mxu0 %v1469_v30 }
 0x21d   :  { %29271 = vmatpush3.bf16.msra.mxu0 %v33637_v51  ;;  %24344 = vmatprep.mubr.msk.f32.mxu0 %vm33090_vm1, %v39455_v4 }
 0x21e   :  { %29272 = vmatprep.subr.bf16.mxu0 %v39457_v0 }
 0x221   :  { %29274 = vmatpush3.bf16.msra.mxu0 %v33648_v17 }
 0x222   :  { %29275 = vmatprep.subr.bf16.mxu0 %v39457_v0 }
 0x225   :  { %29277 = vmatpush3.bf16.msra.mxu0 %v33664_v16 }
 0x226   :  { %29278 = vmatprep.subr.bf16.mxu0 %v39457_v0 }
 0x229   :  { %29280 = vmatpush3.bf16.msra.mxu0 %v33670_v41 }
 0x22a   :  { %29281 = vmatprep.subr.bf16.mxu0 %v39457_v0 }
 0x22c   :  { %24345 = vmatmul.mubr.f32.vlgmr.msra.gmra.mrb[2].mxu0 %v1470_v34  ;;  %v33915_v34 = vpack.c.bf16 %v2046_v8, %v2039_v5  ;;  %v2107_v5 = vand.u32 4294901760, %v33942_v6  ;;  %v39463_v8 = vand.u32 4294901760, %v33944_v10 }
 0x22d   :  { %29283 = vmatpush3.bf16.msra.mxu0 %v33686_v38  ;;  %24363 = vmatprep.mubr.msk.f32.mxu0 %vm33090_vm1, %v39455_v4 }
 0x22e   :  { %29284 = vmatprep.subr.bf16.mxu0 %v39457_v0  ;;  %39839 = vst [vmem:[#allocation12_spill] sm:$0xff] %v33915_v34 }
 0x231   :  { %29286 = vmatpush3.bf16.msra.mxu0 %v33693_v46  ;;  %v1952_v46 = vand.u32 4294901760, %v33822_v48 }
 0x232   :  { %29287 = vmatprep.subr.bf16.mxu0 %v39457_v0 }
 0x233   :  { %v34018_v40 = vsub.f32 %v33822_v48, %v1952_v46 }
 0x235   :  { %29289 = vmatpush3.bf16.msra.mxu0 %v33697_v15  ;;  %v1955_v15 = vand.u32 4294901760, %v33827_v54 }
 0x236   :  { %29290 = vmatprep.subr.bf16.mxu0 %v39457_v0 }
 0x237   :  { %v33852_v45 = vpack.c.bf16 %v1955_v15, %v1952_v46  ;;  %v34023_v31 = vsub.f32 %v33827_v54, %v1955_v15 }
 0x239   :  { %29292 = vmatpush3.bf16.msra.mxu0 %v33713_v57  ;;  %v33839_v57 = vld [vmem:[%s39432_s12 + $0x40] sm:$0xff]  ;;  %39834 = vst [vmem:[#allocation7_spill] sm:$0xff] %v33852_v45  ;;  %v2086_v48 = vand.u32 4294901760, %v34023_v31 }
 0x23a   :  { %29293 = vmatprep.subr.bf16.mxu0 %v39457_v0  ;;  %v1958_v1 = vand.u32 4294901760, %v33839_v57 }
 0x23c   :  { %24364 = vmatmul.mubr.f32.vlgmr.msra.gmra.mrb[2].mxu0 %v1468_v27  ;;  %v33862_v49 = vpack.c.bf16 %v1961_v47, %v1958_v1  ;;  %v34042_v15 = vsub.f32 %v33839_v57, %v1958_v1  ;;  %v2087_v57 = vsub.f32 %v34023_v31, %v2086_v48 }
 0x23d   :  { %29295 = vmatpush3.bf16.msra.mxu0 %v33637_v51  ;;  %24382 = vmatprep.mubr.msk.f32.mxu0 %vm33090_vm1, %v39455_v4  ;;  %v1940_v51 = vand.u32 4294901760, %v63_v50  ;;  %v2079_v4 = vand.u32 4294901760, %v34018_v40 }
 0x23e   :  { %29296 = vmatprep.subr.bf16.mxu0 %v39457_v0  ;;  %39835 = vst [vmem:[#allocation8_spill] sm:$0xff] %v33862_v49  ;;  %v2093_v1 = vand.u32 4294901760, %v34042_v15 }
 0x23f   :  { %v33907_v23 = vsub.f32 %v63_v50, %v1940_v51 }
 0x241   :  { %29298 = vmatpush3.bf16.msra.mxu0 %v33648_v17  ;;  %v1943_v17 = vand.u32 4294901760, %v64_v37 }
 0x242   :  { %29299 = vmatprep.subr.bf16.mxu0 %v39457_v0 }
 0x243   :  { %v33909_v28 = vsub.f32 %v64_v37, %v1943_v17  ;;  %v2072_v37 = vand.u32 4294901760, %v33927_v36 }
 0x245   :  { %29301 = vmatpush3.bf16.msra.mxu0 %v33664_v16  ;;  %v1946_v16 = vand.u32 4294901760, %v33806_v26  ;;  %v2058_v30 = vand.u32 4294901760, %v33909_v28 }
 0x246   :  { %29302 = vmatprep.subr.bf16.mxu0 %v39457_v0 }
 0x247   :  { %v33832_v38 = vpack.c.bf16 %v1949_v25, %v1946_v16  ;;  %v2059_v39 = vsub.f32 %v33909_v28, %v2058_v30  ;;  %v33924_v3 = vsub.f32 %v33806_v26, %v1946_v16  ;;  %v2073_v26 = vsub.f32 %v33927_v36, %v2072_v37 }
 0x249   :  { %29304 = vmatpush3.bf16.msra.mxu0 %v33670_v41  ;;  %v33817_v41 = vpack.c.bf16 %v1943_v17, %v1940_v51  ;;  %39833 = vst [vmem:[#allocation6_spill] sm:$0xff] %v33832_v38  ;;  %v2060_v52 = vand.u32 4294901760, %v2059_v39  ;;  %v2065_v33 = vand.u32 4294901760, %v33924_v3  ;;  %v2074_v16 = vand.u32 4294901760, %v2073_v26 }
 0x24a   :  { %29306 = vmatprep.subr.bf16.mxu0 %v33813_v9  ;;  %v2115_v39 = vsub.f32 %v33944_v10, %v39463_v8 }
 0x24b   :  { %39832 = vst [vmem:[#allocation5_spill] sm:$0xff] %v33817_v41  ;;  %v2066_v17 = vsub.f32 %v33924_v3, %v2065_v33 }
 0x24c   :  { %24383 = vmatmul.mubr.f32.vlgmr.msra.gmra.mrb[2].mxu0 %v1468_v27  ;;  %v2051_v27 = vand.u32 4294901760, %v33907_v23  ;;  %v2116_v42 = vand.u32 4294901760, %v2115_v39 }
 0x24d   :  { %29308 = vmatpush3.bf16.msra.mxu0 %v33813_v9  ;;  %v2067_v61 = vand.u32 4294901760, %v2066_v17 }
 0x24e   :  { %29310 = vmatprep.subr.bf16.mxu0 %v33817_v41  ;;  %v2052_v35 = vsub.f32 %v33907_v23, %v2051_v27 }
 0x24f   :  { %v33940_v25 = vpack.c.bf16 %v2074_v16, %v2067_v61  ;;  %v33965_v61 = vsub.f32 %v75_v14, %v1976_v18  ;;  %v33967_v16 = vsub.f32 %v76_v60, %v1979_v62 }
 0x250   :  { %v2053_v50 = vand.u32 4294901760, %v2052_v35  ;;  %v2108_v35 = vsub.f32 %v33942_v6, %v2107_v5 }
 0x251   :  { %29312 = vmatpush3.bf16.msra.mxu0 %v33817_v41  ;;  %39841 = vst [vmem:[#allocation14_spill] sm:$0xff] %v33940_v25 }
 0x252   :  { %29314 = vmatprep.subr.bf16.mxu0 %v33832_v38  ;;  %v33932_v51 = vpack.c.bf16 %v2060_v52, %v2053_v50  ;;  %v33954_v50 = vsub.f32 %v73_v24, %v1970_v44  ;;  %v33956_v52 = vsub.f32 %v74_v12, %v1973_v22  ;;  %v2109_v7 = vand.u32 4294901760, %v2108_v35 }
 0x253   :  { %v39460_v44 = vand.u32 4294901760, %v33965_v61  ;;  %v39459_v22 = vand.u32 4294901760, %v33967_v16 }
 0x254   :  { %39840 = vst [vmem:[#allocation13_spill] sm:$0xff] %v33932_v51  ;;  %v39462_v29 = vand.u32 4294901760, %v33954_v50  ;;  %v39461_v43 = vand.u32 4294901760, %v33956_v52  ;;  %v33960_v17 = vpack.c.bf16 %v2116_v42, %v2109_v7  ;;  %v33986_v42 = vpack.c.bf16 %v33887_v20, %v33885_v32 }
 0x255   :  { %29316 = vmatpush3.bf16.msra.mxu0 %v33832_v38  ;;  %v2136_v39 = vsub.f32 %v33965_v61, %v39460_v44  ;;  %v2143_v14 = vsub.f32 %v33967_v16, %v39459_v22  ;;  %v2080_v44 = vsub.f32 %v34018_v40, %v2079_v4  ;;  %v34151_v32 = vpack.c.bf16 %v2072_v37, %v2065_v33  ;;  %v78_v33 = vld [vmem:[%s39433_s13 + $0x8] sm:$0xff] }
 0x256   :  { %29318 = vmatprep.subr.bf16.mxu0 %v33852_v45  ;;  %39842 = vst [vmem:[#allocation15_spill] sm:$0xff] %v33960_v17  ;;  %v2122_v26 = vsub.f32 %v33954_v50, %v39462_v29  ;;  %v2129_v24 = vsub.f32 %v33956_v52, %v39461_v43  ;;  %39845 = vst [vmem:[#allocation18_spill] sm:$0xff] %v33986_v42  ;;  %v34159_v20 = vpack.c.bf16 %v2086_v48, %v2079_v4 }
 0x257   :  { %v2137_v18 = vand.u32 4294901760, %v2136_v39  ;;  %v2144_v62 = vand.u32 4294901760, %v2143_v14  ;;  %v34006_v14 = vpack.c.bf16 %v33967_v16, %v33965_v61  ;;  %39857 = vst [vmem:[#allocation30_spill] sm:$0xff] %v34151_v32 }
 0x258   :  { %v2123_v12 = vand.u32 4294901760, %v2122_v26  ;;  %v2130_v35 = vand.u32 4294901760, %v2129_v24  ;;  %v33990_v26 = vpack.c.bf16 %v33909_v28, %v33907_v23  ;;  %v33994_v24 = vpack.c.bf16 %v33927_v36, %v33924_v3  ;;  %39858 = vst [vmem:[#allocation31_spill] sm:$0xff] %v34159_v20  ;;  %v77_v36 = vld [vmem:[%s39433_s13] sm:$0xff] }
 0x259   :  { %29320 = vmatpush3.bf16.msra.mxu0 %v33852_v45  ;;  %v33982_v7 = vpack.c.bf16 %v2144_v62, %v2137_v18  ;;  %39850 = vst [vmem:[#allocation23_spill] sm:$0xff] %v34006_v14  ;;  %v39865_v28 = vand.u32 4294901760, %v33965_v61  ;;  %v39869_v3 = vmov 0.0   ;;  %v2648_v37 = vand.u32 4294901760, %v77_v36 }
 0x25a   :  { %29322 = vmatprep.subr.bf16.mxu0 %v33862_v49  ;;  %v33980_v60 = vpack.c.bf16 %v2130_v35, %v2123_v12  ;;  %39846 = vst [vmem:[#allocation19_spill] sm:$0xff] %v33990_v26  ;;  %39847 = vst [vmem:[#allocation20_spill] sm:$0xff] %v33994_v24  ;;  %v33998_v12 = vpack.c.bf16 %v33944_v10, %v33942_v6  ;;  %v34002_v35 = vpack.c.bf16 %v33956_v52, %v33954_v50 }
 0x25b   :  { %39844 = vst [vmem:[#allocation17_spill] sm:$0xff] %v33982_v7  ;;  %v2651_v6 = vand.u32 4294901760, %v78_v33 }
 0x25c   :  { %39843 = vst [vmem:[#allocation16_spill] sm:$0xff] %v33980_v60  ;;  %39848 = vst [vmem:[#allocation21_spill] sm:$0xff] %v33998_v12 }
 0x25d   :  { %29324 = vmatpush3.bf16.msra.mxu0 %v33862_v49  ;;  %39849 = vst [vmem:[#allocation22_spill] sm:$0xff] %v34002_v35 }
 0x25e   :  { %29326 = vmatprep.subr.bf16.mxu0 %v33873_v11 }
 0x261   :  { %29328 = vmatpush3.bf16.msra.mxu0 %v33873_v11 }
 0x262   :  { %29330 = vmatprep.subr.bf16.mxu0 %v33883_v56 }
 0x265   :  { %29332 = vmatpush3.bf16.msra.mxu0 %v33883_v56 }
 0x266   :  { %29334 = vmatprep.subr.bf16.mxu0 %v33899_v55 }
 0x269   :  { %29336 = vmatpush3.bf16.msra.mxu0 %v33899_v55 }
 0x26a   :  { %29338 = vmatprep.subr.bf16.mxu0 %v33915_v34 }
 0x2e7   :  { %v1474_v39 = vpop.f32.mrb[4].mxu1 }
 0x2e8   :  { %v24289_v18 = vpop.f32.mrb[5].mxu1 }
 0x31f   :  { %v1928_v62 = vpop.f32.mrb[2].mxu0 }
 0x320   :  { %v34008_v21 = vadd.f32 %v1928_v62, %v1474_v39  ;;  %v24384_v58 = vpop.f32.mrb[3].mxu0 }
 0x322   :  { %v1932_v13 = vmul.f32 %v34008_v21, %v34008_v21  ;;  %v34013_v19 = vand.u32 4294901760, %v34008_v21 }
 0x324   :  { %v34027_v39 = vsub.f32 %v34008_v21, %v34013_v19  ;;  %v34029_v58 = vand.u32 4294901760, %v1932_v13 }
 0x326   :  { %v34032_v18 = vsub.f32 %v1932_v13, %v34029_v58  ;;  %v2016_v62 = vand.u32 4294901760, %v34027_v39  ;;  %v34047_v13 = vsub.f32 %v33844_v63, %v1961_v47  ;;  %v2081_v47 = vand.u32 4294901760, %v2080_v44 }
 0x328   :  { %v2017_v46 = vsub.f32 %v34027_v39, %v2016_v62  ;;  %v2026_v54 = vand.u32 4294901760, %v34032_v18  ;;  %v2100_v63 = vand.u32 4294901760, %v34047_v13 }
 0x32a   :  { %v2018_v0 = vand.u32 4294901760, %v2017_v46  ;;  %v2027_v22 = vsub.f32 %v34032_v18, %v2026_v54  ;;  %v2088_v46 = vand.u32 4294901760, %v2087_v57  ;;  %v84_v57 = vld [vmem:[%s39433_s13 + $0x38] sm:$0xff] }
 0x32c   :  { %24417 = vmatprep.mubr.f32.mxu0 %v2018_v0  ;;  %v2028_v43 = vand.u32 4294901760, %v2027_v22  ;;  %v2094_v0 = vsub.f32 %v34042_v15, %v2093_v1  ;;  %v2101_v22 = vsub.f32 %v34047_v13, %v2100_v63 }
 0x32e   :  { %24418 = vmatmul.mubr.f32.vlgmr.msra.gmra.mrb[4].mxu0 %v2028_v43  ;;  %v34071_v43 = vpack.c.bf16 %v2088_v46, %v2081_v47  ;;  %v2095_v29 = vand.u32 4294901760, %v2094_v0  ;;  %v2102_v8 = vand.u32 4294901760, %v2101_v22  ;;  %v85_v46 = vld [vmem:[%s39433_s13 + $0x40] sm:$0xff]  ;;  %v86_v0 = vld [vmem:[%s39433_s13 + $0x48] sm:$0xff] }
 0x32f   :  { %29340 = vmatpush3.bf16.msra.mxu0 %v33915_v34  ;;  %24452 = vmatprep.mubr.f32.mxu0 %v34013_v19  ;;  %v2672_v22 = vand.u32 4294901760, %v85_v46 }
 0x330   :  { %29342 = vmatprep.subr.bf16.mxu0 %v33932_v51  ;;  %39851 = vst [vmem:[#allocation24_spill] sm:$0xff] %v34071_v43  ;;  %v34075_v44 = vpack.c.bf16 %v2102_v8, %v2095_v29  ;;  %v34095_v8 = vpack.c.bf16 %v34023_v31, %v34018_v40  ;;  %v34101_v29 = vpack.c.bf16 %v34047_v13, %v34042_v15  ;;  %v39860_v31 = vand.u32 4294901760, %v33944_v10  ;;  %v83_v13 = vld [vmem:[%s39433_s13 + $0x30] sm:$0xff] }
 0x331   :  { %v39862_v40 = vand.u32 4294901760, %v33954_v50  ;;  %v34224_v10 = vpack.c.bf16 %v2651_v6, %v2648_v37  ;;  %v80_v50 = vld [vmem:[%s39433_s13 + $0x18] sm:$0xff] }
 0x332   :  { %39852 = vst [vmem:[#allocation25_spill] sm:$0xff] %v34075_v44  ;;  %39853 = vst [vmem:[#allocation26_spill] sm:$0xff] %v34095_v8  ;;  %v34175_v4 = vpack.c.bf16 %v39860_v31, %v2107_v5  ;;  %v79_v5 = vld [vmem:[%s39433_s13 + $0x10] sm:$0xff]  ;;  %v2657_v61 = vand.u32 4294901760, %v80_v50  ;;  %v2675_v31 = vand.u32 4294901760, %v86_v0 }
 0x333   :  { %29344 = vmatpush3.bf16.msra.mxu0 %v33932_v51  ;;  %39854 = vst [vmem:[#allocation27_spill] sm:$0xff] %v34101_v29  ;;  %29499 = vmatpush3.bf16.msra.mxu1 %v34224_v10 }
 0x334   :  { %29346 = vmatprep.subr.bf16.mxu0 %v33940_v25  ;;  %39861 = vst [vmem:[#allocation33_spill] sm:$0xff] %v34175_v4 }
 0x337   :  { %29348 = vmatpush3.bf16.msra.mxu0 %v33940_v25  ;;  %v21354_v25 = vld [vmem:[%s39435_s11] ss:$0 sm:$0xff] }
 0x338   :  { %29350 = vmatprep.subr.bf16.mxu0 %v34071_v43 }
 0x33b   :  { %29352 = vmatpush3.bf16.msra.mxu0 %v34071_v43 }
 0x33c   :  { %29354 = vmatprep.subr.bf16.mxu0 %v34075_v44 }
 0x33f   :  { %29356 = vmatpush3.bf16.msra.mxu0 %v34075_v44  ;;  %v21353_v44 = vld [vmem:[%s39434_s10] ss:$0 sm:$0xff] }
 0x340   :  { %29358 = vmatprep.subr.bf16.mxu0 %v33960_v17 }
 0x343   :  { %29360 = vmatpush3.bf16.msra.mxu0 %v33960_v17 }
 0x344   :  { %29362 = vmatprep.subr.bf16.mxu0 %v33980_v60 }
 0x347   :  { %29364 = vmatpush3.bf16.msra.mxu0 %v33980_v60 }
 0x348   :  { %29366 = vmatprep.subr.bf16.mxu0 %v33982_v7 }
 0x34b   :  { %29368 = vmatpush3.bf16.msra.mxu0 %v33982_v7 }
 0x34c   :  { %29370 = vmatprep.subr.bf16.mxu0 %v33986_v42 }
 0x34e   :  { %24453 = vmatmul.mubr.f32.vlgmr.msra.gmra.mrb[4].mxu0 %v34029_v58 }
 0x34f   :  { %29372 = vmatpush3.bf16.msra.mxu0 %v33986_v42  ;;  %24487 = vmatprep.mubr.f32.mxu0 %v34027_v39  ;;  %v34132_v39 = vpack.c.bf16 %v2044_v2, %v2037_v53  ;;  %v34167_v53 = vpack.c.bf16 %v2100_v63, %v2093_v1  ;;  %v39863_v2 = vand.u32 4294901760, %v33956_v52  ;;  %v2654_v52 = vand.u32 4294901760, %v79_v5 }
 0x350   :  { %29374 = vmatprep.subr.bf16.mxu0 %v33990_v26  ;;  %v2666_v1 = vand.u32 4294901760, %v83_v13  ;;  %v2669_v63 = vand.u32 4294901760, %v84_v57 }
 0x351   :  { %39855 = vst [vmem:[#allocation28_spill] sm:$0xff] %v34132_v39  ;;  %39859 = vst [vmem:[#allocation32_spill] sm:$0xff] %v34167_v53  ;;  %v34183_v23 = vpack.c.bf16 %v39863_v2, %v39862_v40  ;;  %v34264_v40 = vpack.c.bf16 %v2675_v31, %v2672_v22  ;;  %v34269_v2 = vld [vmem:[%s39433_s13 + $0x50] sm:$0xff] }
 0x352   :  { %v34254_v47 = vpack.c.bf16 %v2669_v63, %v2666_v1 }
 0x353   :  { %29376 = vmatpush3.bf16.msra.mxu0 %v33990_v26  ;;  %39864 = vst [vmem:[#allocation34_spill] sm:$0xff] %v34183_v23 }
 0x354   :  { %29378 = vmatprep.subr.bf16.mxu0 %v33994_v24 }
 0x357   :  { %29380 = vmatpush3.bf16.msra.mxu0 %v33994_v24  ;;  %v34336_v24 = vsub.f32 %v80_v50, %v2657_v61 }
 0x358   :  { %29382 = vmatprep.subr.bf16.mxu0 %v34095_v8 }
 0x35b   :  { %29384 = vmatpush3.bf16.msra.mxu0 %v34095_v8  ;;  %v34334_v8 = vsub.f32 %v79_v5, %v2654_v52 }
 0x35c   :  { %29386 = vmatprep.subr.bf16.mxu0 %v34101_v29 }
 0x35f   :  { %29388 = vmatpush3.bf16.msra.mxu0 %v34101_v29 }
 0x360   :  { %29390 = vmatprep.subr.bf16.mxu0 %v33998_v12 }
 0x363   :  { %29392 = vmatpush3.bf16.msra.mxu0 %v33998_v12  ;;  %v34314_v12 = vld [vmem:[%s39433_s13 + $0x78] sm:$0xff] }
 0x364   :  { %29394 = vmatprep.subr.bf16.mxu0 %v34002_v35 }
 0x367   :  { %29396 = vmatpush3.bf16.msra.mxu0 %v34002_v35  ;;  %v34309_v35 = vld [vmem:[%s39433_s13 + $0x70] sm:$0xff] }
 0x368   :  { %29398 = vmatprep.subr.bf16.mxu0 %v34006_v14  ;;  %v39499_v29 = vand.u32 4294901760, %v34309_v35 }
 0x36b   :  { %29400 = vmatpush3.bf16.msra.mxu0 %v34006_v14  ;;  %v34304_v14 = vsub.f32 %v78_v33, %v2651_v6 }
 0x36c   :  { %29402 = vmatprep.subr.bf16.mxu0 %v33813_v9 }
 0x36d   :  { %v39502_v33 = vand.u32 4294901760, %v34304_v14 }
 0x36e   :  { %24488 = vmatmul.mubr.f32.vlgmr.msra.gmra.mrb[4].mxu0 %v34032_v18  ;;  %v82_v18 = vld [vmem:[%s39433_s13 + $0x28] sm:$0xff] }
 0x36f   :  { %29404 = vmatpush3.bf16.msra.mxu0 %v33813_v9  ;;  %24522 = vmatprep.mubr.f32.mxu0 %v2016_v62  ;;  %v34140_v62 = vpack.c.bf16 %v2058_v30, %v2051_v27  ;;  %v39866_v27 = vand.u32 4294901760, %v33967_v16  ;;  %v34234_v16 = vpack.c.bf16 %v2657_v61, %v2654_v52 }
 0x370   :  { %29406 = vmatprep.subr.bf16.mxu0 %v33817_v41 }
 0x371   :  { %39856 = vst [vmem:[#allocation29_spill] sm:$0xff] %v34140_v62  ;;  %v34191_v30 = vpack.c.bf16 %v39866_v27, %v39865_v28  ;;  %v34274_v28 = vld [vmem:[%s39433_s13 + $0x58] sm:$0xff]  ;;  %v2678_v27 = vand.u32 4294901760, %v34269_v2 }
 0x373   :  { %29408 = vmatpush3.bf16.msra.mxu0 %v33817_v41  ;;  %39867 = vst [vmem:[#allocation35_spill] sm:$0xff] %v34191_v30 }
 0x374   :  { %29410 = vmatprep.subr.bf16.mxu0 %v33832_v38 }
 0x377   :  { %29412 = vmatpush3.bf16.msra.mxu0 %v33832_v38 }
 0x378   :  { %29414 = vmatprep.subr.bf16.mxu0 %v33852_v45 }
 0x37b   :  { %29416 = vmatpush3.bf16.msra.mxu0 %v33852_v45 }
 0x37c   :  { %29418 = vmatprep.subr.bf16.mxu0 %v33862_v49 }
 0x37f   :  { %29420 = vmatpush3.bf16.msra.mxu0 %v33862_v49 }
 0x380   :  { %29422 = vmatprep.subr.bf16.mxu0 %v33873_v11 }
 0x383   :  { %29424 = vmatpush3.bf16.msra.mxu0 %v33873_v11 }
 0x384   :  { %29426 = vmatprep.subr.bf16.mxu0 %v33883_v56 }
 0x387   :  { %29428 = vmatpush3.bf16.msra.mxu0 %v33883_v56 }
 0x388   :  { %29430 = vmatprep.subr.bf16.mxu0 %v33899_v55 }
 0x38b   :  { %29432 = vmatpush3.bf16.msra.mxu0 %v33899_v55 }
 0x38c   :  { %29434 = vmatprep.subr.bf16.mxu0 %v34132_v39 }
 0x38e   :  { %24523 = vmatmul.mubr.f32.vlgmr.msra.gmra.mrb[4].mxu0 %v2026_v54  ;;  %v2663_v54 = vand.u32 4294901760, %v82_v18 }
 0x38f   :  { %29436 = vmatpush3.bf16.msra.mxu0 %v34132_v39  ;;  %24557 = vmatprep.mubr.f32.mxu0 %v34013_v19  ;;  %v34302_v39 = vsub.f32 %v77_v36, %v2648_v37 }
 0x390   :  { %29438 = vmatprep.subr.bf16.mxu0 %v34140_v62  ;;  %v34352_v52 = vsub.f32 %v82_v18, %v2663_v54  ;;  %v34366_v18 = vsub.f32 %v84_v57, %v2669_v63 }
 0x391   :  { %v39503_v36 = vand.u32 4294901760, %v34302_v39 }
 0x393   :  { %29440 = vmatpush3.bf16.msra.mxu0 %v34140_v62  ;;  %v2742_v6 = vsub.f32 %v34302_v39, %v39503_v36  ;;  %v39517_v36 = vand.u32 4294901760, %v34352_v52 }
 0x394   :  { %29442 = vmatprep.subr.bf16.mxu0 %v34151_v32 }
 0x395   :  { %v2743_v26 = vand.u32 4294901760, %v2742_v6 }
 0x397   :  { %29444 = vmatpush3.bf16.msra.mxu0 %v34151_v32 }
 0x398   :  { %29446 = vmatprep.subr.bf16.mxu0 %v34159_v20 }
 0x39b   :  { %29448 = vmatpush3.bf16.msra.mxu0 %v34159_v20 }
 0x39c   :  { %29450 = vmatprep.subr.bf16.mxu0 %v34167_v53 }
 0x39f   :  { %29452 = vmatpush3.bf16.msra.mxu0 %v34167_v53  ;;  %v34290_v53 = vld [vmem:[%s39433_s13 + $0x68] sm:$0xff] }
 0x3a0   :  { %29454 = vmatprep.subr.bf16.mxu0 %v34175_v4  ;;  %v39488_v32 = vand.u32 4294901760, %v34290_v53 }
 0x3a3   :  { %29456 = vmatpush3.bf16.msra.mxu0 %v34175_v4  ;;  %v34285_v4 = vld [vmem:[%s39433_s13 + $0x60] sm:$0xff] }
 0x3a4   :  { %29458 = vmatprep.subr.bf16.mxu0 %v34183_v23  ;;  %v39489_v20 = vand.u32 4294901760, %v34285_v4 }
 0x3a6   :  { %v34300_v62 = vpack.c.bf16 %v39488_v32, %v39489_v20  ;;  %v39498_v32 = vand.u32 4294901760, %v34314_v12  ;;  %v2749_v20 = vsub.f32 %v34304_v14, %v39502_v33 }
 0x3a7   :  { %29460 = vmatpush3.bf16.msra.mxu0 %v34183_v23 }
 0x3a8   :  { %29462 = vmatprep.subr.bf16.mxu0 %v34191_v30  ;;  %v34326_v37 = vpack.c.bf16 %v39498_v32, %v39499_v29  ;;  %v2750_v42 = vand.u32 4294901760, %v2749_v20  ;;  %v39506_v32 = vand.u32 4294901760, %v34334_v8  ;;  %v39504_v29 = vand.u32 4294901760, %v34336_v24 }
 0x3aa   :  { %v34342_v7 = vpack.c.bf16 %v2750_v42, %v2743_v26  ;;  %v2756_v33 = vsub.f32 %v34334_v8, %v39506_v32  ;;  %v2763_v5 = vsub.f32 %v34336_v24, %v39504_v29  ;;  %v2777_v29 = vsub.f32 %v34352_v52, %v39517_v36 }
 0x3ab   :  { %29464 = vmatpush3.bf16.msra.mxu0 %v34191_v30  ;;  %v2681_v30 = vand.u32 4294901760, %v34274_v28  ;;  %v34377_v32 = vsub.f32 %v86_v0, %v2675_v31  ;;  %v34391_v0 = vsub.f32 %v34269_v2, %v2678_v27 }
 0x3ac   :  { %29466 = vmatprep.subr.bf16.mxu0 %v33813_v9  ;;  %39870 = vst [vmem:[#allocation36_spill] sm:$0xff] %v34342_v7  ;;  %v2757_v20 = vand.u32 4294901760, %v2756_v33  ;;  %v2764_v61 = vand.u32 4294901760, %v2763_v5  ;;  %v39507_v5 = vand.u32 4294901760, %v34366_v18 }
 0x3ad   :  { %v34280_v23 = vpack.c.bf16 %v2681_v30, %v2678_v27  ;;  %v39876_v27 = vand.u32 4294901760, %v34290_v53 }
 0x3ae   :  { %24558 = vmatmul.mubr.f32.vlgmr.msra.gmra.mrb[4].mxu0 %v34029_v58  ;;  %v34356_v42 = vpack.c.bf16 %v2764_v61, %v2757_v20 }
 0x3af   :  { %29468 = vmatpush3.bf16.msra.mxu0 %v33813_v9  ;;  %24592 = vmatprep.mubr.f32.mxu0 %v34013_v19  ;;  %v39868_v19 = vmov 0.0|0.0  }
 0x3b0   :  { %29470 = vmatprep.subr.bf16.mxu0 %v33817_v41  ;;  %29500 = vmatprep.subr.bf16.mxu1 %v39868_v19  ;;  %39871 = vst [vmem:[#allocation37_spill] sm:$0xff] %v34356_v42 }
 0x3b1   :  { %29502 = vmatpush3.bf16.msra.mxu1 %v34234_v16 }
 0x3b2   :  { %29503 = vmatprep.subr.bf16.mxu1 %v39868_v19 }
 0x3b3   :  { %29472 = vmatpush3.bf16.msra.mxu0 %v33817_v41 }
 0x3b4   :  { %29474 = vmatprep.subr.bf16.mxu0 %v33832_v38 }
 0x3b7   :  { %29476 = vmatpush3.bf16.msra.mxu0 %v33832_v38 }
 0x3b8   :  { %29478 = vmatprep.subr.bf16.mxu0 %v33852_v45 }
 0x3bb   :  { %29480 = vmatpush3.bf16.msra.mxu0 %v33852_v45 }
 0x3bc   :  { %29482 = vmatprep.subr.bf16.mxu0 %v33862_v49 }
 0x3bf   :  { %29484 = vmatpush3.bf16.msra.mxu0 %v33862_v49 }
 0x3c0   :  { %29486 = vmatprep.subr.bf16.mxu0 %v33873_v11 }
 0x3c3   :  { %29488 = vmatpush3.bf16.msra.mxu0 %v33873_v11 }
 0x3c4   :  { %29490 = vmatprep.subr.bf16.mxu0 %v33883_v56 }
 0x3c7   :  { %29492 = vmatpush3.bf16.msra.mxu0 %v33883_v56 }
 0x3c8   :  { %29494 = vmatprep.subr.bf16.mxu0 %v33899_v55 }
 0x3cb   :  { %29496 = vmatpush3.bf16.msra.mxu0 %v33899_v55 }
 0x3cc   :  { %29641 = vmatprep.subr.bf16.mxu0 %v39868_v19 }
 0x3ce   :  { %24593 = vmatmul.mubr.f32.vlgmr.msra.gmra.mrb[4].mxu0 %v34029_v58  ;;  %v81_v58 = vld [vmem:[%s39433_s13 + $0x20] sm:$0xff] }
 0x3cf   :  { %24813 = vmatprep.mubr.msk.f32.mxu0 %vm33090_vm1, %v39869_v3  ;;  %v2660_v48 = vand.u32 4294901760, %v81_v58 }
 0x3d1   :  { %v34244_v15 = vpack.c.bf16 %v2663_v54, %v2660_v48  ;;  %v34350_v50 = vsub.f32 %v81_v58, %v2660_v48  ;;  %v34364_v58 = vsub.f32 %v83_v13, %v2666_v1  ;;  %v2778_v54 = vand.u32 4294901760, %v2777_v29 }
 0x3d2   :  { %v2791_v13 = vsub.f32 %v34366_v18, %v39507_v5  ;;  %v39508_v1 = vand.u32 4294901760, %v34377_v32 }
 0x3d3   :  { %29505 = vmatpush3.bf16.msra.mxu1 %v34244_v15  ;;  %v39505_v6 = vand.u32 4294901760, %v34350_v50  ;;  %v39516_v33 = vand.u32 4294901760, %v34364_v58 }
 0x3d4   :  { %29506 = vmatprep.subr.bf16.mxu1 %v39868_v19  ;;  %v2792_v63 = vand.u32 4294901760, %v2791_v13 }
 0x3d5   :  { %v2770_v26 = vsub.f32 %v34350_v50, %v39505_v6  ;;  %v2784_v61 = vsub.f32 %v34364_v58, %v39516_v33  ;;  %v34375_v6 = vsub.f32 %v85_v46, %v2672_v22  ;;  %v2805_v46 = vsub.f32 %v34377_v32, %v39508_v1 }
 0x3d6   :  { %v34394_v22 = vsub.f32 %v34274_v28, %v2681_v30  ;;  %v39875_v30 = vand.u32 4294901760, %v34285_v4 }
 0x3d7   :  { %29508 = vmatpush3.bf16.msra.mxu1 %v34254_v47  ;;  %v2771_v48 = vand.u32 4294901760, %v2770_v26  ;;  %v2785_v57 = vand.u32 4294901760, %v2784_v61  ;;  %v39512_v29 = vand.u32 4294901760, %v34375_v6  ;;  %v39511_v61 = vand.u32 4294901760, %v34391_v0 }
 0x3d8   :  { %29509 = vmatprep.subr.bf16.mxu1 %v39868_v19  ;;  %v39509_v13 = vand.u32 4294901760, %v34394_v22  ;;  %v34411_v28 = vsub.f32 %v34285_v4, %v39875_v30  ;;  %v39878_v4 = vand.u32 4294901760, %v34309_v35 }
 0x3d9   :  { %v34370_v20 = vpack.c.bf16 %v2778_v54, %v2771_v48  ;;  %v2798_v26 = vsub.f32 %v34375_v6, %v39512_v29  ;;  %v34396_v31 = vpack.c.bf16 %v2792_v63, %v2785_v57  ;;  %v2806_v54 = vand.u32 4294901760, %v2805_v46 }
 0x3da   :  { %v2812_v1 = vsub.f32 %v34391_v0, %v39511_v61  ;;  %v2819_v2 = vsub.f32 %v34394_v22, %v39509_v13  ;;  %v34416_v57 = vsub.f32 %v34290_v53, %v39876_v27  ;;  %v39510_v46 = vand.u32 4294901760, %v34411_v28 }
 0x3db   :  { %29511 = vmatpush3.bf16.msra.mxu1 %v34264_v40  ;;  %39872 = vst [vmem:[#allocation38_spill] sm:$0xff] %v34370_v20  ;;  %39873 = vst [vmem:[#allocation39_spill] sm:$0xff] %v34396_v31  ;;  %v2799_v48 = vand.u32 4294901760, %v2798_v26  ;;  %v34428_v30 = vsub.f32 %v34309_v35, %v39878_v4  ;;  %v39879_v53 = vand.u32 4294901760, %v34314_v12 }
 0x3dc   :  { %29512 = vmatprep.subr.bf16.mxu1 %v39868_v19  ;;  %v2813_v63 = vand.u32 4294901760, %v2812_v1  ;;  %v2820_v26 = vand.u32 4294901760, %v2819_v2  ;;  %v2826_v13 = vsub.f32 %v34411_v28, %v39510_v46 }
 0x3dd   :  { %v34400_v5 = vpack.c.bf16 %v2806_v54, %v2799_v48  ;;  %v39515_v48 = vand.u32 4294901760, %v34416_v57  ;;  %v34433_v1 = vsub.f32 %v34314_v12, %v39879_v53 }
 0x3de   :  { %v34420_v54 = vpack.c.bf16 %v2820_v26, %v2813_v63  ;;  %v2827_v27 = vand.u32 4294901760, %v2826_v13  ;;  %v39513_v63 = vand.u32 4294901760, %v34428_v30  ;;  %v34452_v13 = vpack.c.bf16 %v34304_v14, %v34302_v39 }
 0x3df   :  { %29514 = vmatpush3.bf16.msra.mxu1 %v34280_v23  ;;  %39874 = vst [vmem:[#allocation40_spill] sm:$0xff] %v34400_v5  ;;  %v2833_v2 = vsub.f32 %v34416_v57, %v39515_v48  ;;  %v39514_v26 = vand.u32 4294901760, %v34433_v1 }
 0x3e0   :  { %29515 = vmatprep.subr.bf16.mxu1 %v39868_v19  ;;  %39877 = vst [vmem:[#allocation41_spill] sm:$0xff] %v34420_v54  ;;  %v2840_v35 = vsub.f32 %v34428_v30, %v39513_v63  ;;  %39882 = vst [vmem:[#allocation44_spill] sm:$0xff] %v34452_v13  ;;  %v34460_v63 = vpack.c.bf16 %v34352_v52, %v34350_v50 }
 0x3e1   :  { %v2834_v46 = vand.u32 4294901760, %v2833_v2  ;;  %v2847_v4 = vsub.f32 %v34433_v1, %v39514_v26  ;;  %v34456_v2 = vpack.c.bf16 %v34336_v24, %v34334_v8 }
 0x3e2   :  { %v2841_v53 = vand.u32 4294901760, %v2840_v35  ;;  %39884 = vst [vmem:[#allocation46_spill] sm:$0xff] %v34460_v63  ;;  %v34476_v35 = vpack.c.bf16 %v34416_v57, %v34411_v28 }
 0x3e3   :  { %29517 = vmatpush3.bf16.msra.mxu1 %v34300_v62  ;;  %v34446_v12 = vpack.c.bf16 %v2834_v46, %v2827_v27  ;;  %v2848_v61 = vand.u32 4294901760, %v2847_v4  ;;  %39883 = vst [vmem:[#allocation45_spill] sm:$0xff] %v34456_v2  ;;  %v34464_v46 = vpack.c.bf16 %v34366_v18, %v34364_v58  ;;  %v34472_v27 = vpack.c.bf16 %v34394_v22, %v34391_v0 }
 0x3e4   :  { %29518 = vmatprep.subr.bf16.mxu1 %v39868_v19  ;;  %39888 = vst [vmem:[#allocation50_spill] sm:$0xff] %v34476_v35  ;;  %v34480_v4 = vpack.c.bf16 %v34433_v1, %v34428_v30 }
 0x3e5   :  { %39880 = vst [vmem:[#allocation42_spill] sm:$0xff] %v34446_v12  ;;  %v34448_v29 = vpack.c.bf16 %v2848_v61, %v2841_v53  ;;  %39885 = vst [vmem:[#allocation47_spill] sm:$0xff] %v34464_v46  ;;  %v34468_v61 = vpack.c.bf16 %v34377_v32, %v34375_v6 }
 0x3e6   :  { %39887 = vst [vmem:[#allocation49_spill] sm:$0xff] %v34472_v27  ;;  %39889 = vst [vmem:[#allocation51_spill] sm:$0xff] %v34480_v4 }
 0x3e7   :  { %29520 = vmatpush3.bf16.msra.mxu1 %v34326_v37  ;;  %39881 = vst [vmem:[#allocation43_spill] sm:$0xff] %v34448_v29  ;;  %39886 = vst [vmem:[#allocation48_spill] sm:$0xff] %v34468_v61 }
 0x3e8   :  { %29521 = vmatprep.subr.bf16.mxu1 %v39868_v19 }
 0x4a1   :  { %v24594_v53 = vpop.f32.mrb[4].mxu0 }
 0x4a2   :  { %v2607_v26 = vpop.f32.mrb[5].mxu0 }
 0x4a3   :  { %v2617_v48 = vmul.f32 %v2607_v26, %v2607_v26  ;;  %v2619_v60 = vsub.f32 %v34008_v21, %v2607_v26 }
 0x4a5   :  { %v2618_v33 = vsub.f32 %v24594_v53, %v2617_v48 }
 0x4a7   :  { %v2620_v36 = vadd.f32 1e-05, %v2618_v33 }
 0x4a9   :  { %33039 = vrsqrt.f32 %v2620_v36 }
 0x4b3   :  { %v33040_v17 = vpop.eup %33039 }
 0x4b4   :  { %v2622_v43 = vmul.f32 %v33040_v17, %v2619_v60  ;;  %v39894_v60 = vand.u32 4294901760, %v34334_v8  ;;  %v39901_v8 = vand.u32 4294901760, %v34366_v18  ;;  %v39907_v18 = vand.u32 4294901760, %v34394_v22 }
 0x4b5   :  { %v39913_v22 = vand.u32 4294901760, %v34433_v1 }
 0x4b6   :  { %v2630_v51 = vmul.f32 %v21353_v44, %v2622_v43  ;;  %v39895_v43 = vand.u32 4294901760, %v34336_v24  ;;  %v39900_v24 = vand.u32 4294901760, %v34364_v58  ;;  %v39906_v58 = vand.u32 4294901760, %v34391_v0 }
 0x4b7   :  { %v39912_v0 = vand.u32 4294901760, %v34428_v30 }
 0x4b8   :  { %v34489_v34 = vadd.f32 %v21354_v25, %v2630_v51  ;;  %v39891_v51 = vand.u32 4294901760, %v34302_v39  ;;  %v39892_v25 = vand.u32 4294901760, %v34304_v14  ;;  %v34562_v44 = vpack.c.bf16 %v39895_v43, %v39894_v60  ;;  %v21359_v43 = vld [vmem:[%s39829_s23 + $0x38] sm:$0xff] }
 0x4b9   :  { %v39897_v14 = vand.u32 4294901760, %v34350_v50  ;;  %v39898_v39 = vand.u32 4294901760, %v34352_v52  ;;  %v34580_v53 = vpack.c.bf16 %v39901_v8, %v39900_v24  ;;  %v39903_v50 = vand.u32 4294901760, %v34375_v6 }
 0x4ba   :  { %39890 = vst [vmem:[#allocation52_spill] sm:$0xff] %v34489_v34  ;;  %v34492_v55 = vand.u32 4294901760, %v34489_v34  ;;  %v34554_v17 = vpack.c.bf16 %v39892_v25, %v39891_v51  ;;  %39896 = vst [vmem:[#allocation54_spill] sm:$0xff] %v34562_v44  ;;  %v39904_v52 = vand.u32 4294901760, %v34377_v32  ;;  %v39909_v6 = vand.u32 4294901760, %v34411_v28  ;;  %v21356_v28 = vld [vmem:[%s39829_s23 + $0x20] sm:$0xff] }
 0x4bb   :  { %v34572_v26 = vpack.c.bf16 %v39898_v39, %v39897_v14  ;;  %39902 = vst [vmem:[#allocation56_spill] sm:$0xff] %v34580_v53  ;;  %v39910_v32 = vand.u32 4294901760, %v34416_v57  ;;  %v21357_v57 = vld [vmem:[%s39829_s23 + $0x28] sm:$0xff]  ;;  %v3298_v30 = vand.u32 4294901760, %v21356_v28  ;;  %v3307_v39 = vand.u32 4294901760, %v21359_v43 }
 0x4bc   :  { %v2729_v36 = vsub.f32 %v34489_v34, %v34492_v55  ;;  %39893 = vst [vmem:[#allocation53_spill] sm:$0xff] %v34554_v17  ;;  %v3301_v1 = vand.u32 4294901760, %v21357_v57 }
 0x4bd   :  { %39899 = vst [vmem:[#allocation55_spill] sm:$0xff] %v34572_v26  ;;  %v3378_v25 = vsub.f32 %v21356_v28, %v3298_v30 }
 0x4be   :  { %v2730_v21 = vand.u32 4294901760, %v2729_v36  ;;  %v34645_v51 = vpack.c.bf16 %v3301_v1, %v3298_v30  ;;  %v3385_v60 = vsub.f32 %v21357_v57, %v3301_v1 }
 0x4bf   :  { %v3379_v24 = vand.u32 4294901760, %v3378_v25 }
 0x4c0   :  { %v2731_v33 = vsub.f32 %v2729_v36, %v2730_v21  ;;  %29643 = vmatpush3.bf16.msra.mxu0 %v34645_v51  ;;  %v3386_v8 = vand.u32 4294901760, %v3385_v60 }
 0x4c1   :  { %29644 = vmatprep.subr.bf16.mxu0 %v39868_v19 }
 0x4c2   :  { %v2732_v48 = vand.u32 4294901760, %v2731_v33  ;;  %v34604_v33 = vpack.c.bf16 %v39910_v32, %v39909_v6  ;;  %v3387_v6 = vsub.f32 %v3385_v60, %v3386_v8 }
 0x4c4   :  { %24628 = vmatmul.mubr.f32.vlgmr.msra.gmra.mrb[6].mxu1 %v2732_v48  ;;  %39911 = vst [vmem:[#allocation59_spill] sm:$0xff] %v34604_v33  ;;  %v34612_v48 = vpack.c.bf16 %v39913_v22, %v39912_v0  ;;  %v3388_v0 = vand.u32 4294901760, %v3387_v6 }
 0x4c5   :  { %29523 = vmatpush3.bf16.msra.mxu1 %v34342_v7  ;;  %24662 = vmatprep.mubr.msk.f32.mxu1 %vm33090_vm1, %v39869_v3 }
 0x4c6   :  { %29524 = vmatprep.subr.bf16.mxu1 %v39868_v19  ;;  %39914 = vst [vmem:[#allocation60_spill] sm:$0xff] %v34612_v48 }
 0x4c9   :  { %29526 = vmatpush3.bf16.msra.mxu1 %v34356_v42 }
 0x4ca   :  { %29527 = vmatprep.subr.bf16.mxu1 %v39868_v19 }
 0x4cd   :  { %29529 = vmatpush3.bf16.msra.mxu1 %v34370_v20 }
 0x4ce   :  { %29530 = vmatprep.subr.bf16.mxu1 %v39868_v19 }
 0x4d1   :  { %29532 = vmatpush3.bf16.msra.mxu1 %v34396_v31 }
 0x4d2   :  { %29533 = vmatprep.subr.bf16.mxu1 %v39868_v19 }
 0x4d5   :  { %29535 = vmatpush3.bf16.msra.mxu1 %v34400_v5  ;;  %v34758_v5 = vld [vmem:[%s39427_s5 + $0xe0] sm:$0xff] }
 0x4d6   :  { %29536 = vmatprep.subr.bf16.mxu1 %v39868_v19  ;;  %v3838_v7 = vand.u32 4294901760, %v34758_v5 }
 0x4d9   :  { %29538 = vmatpush3.bf16.msra.mxu1 %v34420_v54 }
 0x4da   :  { %29539 = vmatprep.subr.bf16.mxu1 %v39868_v19 }
 0x4dd   :  { %29541 = vmatpush3.bf16.msra.mxu1 %v34446_v12 }
 0x4de   :  { %29542 = vmatprep.subr.bf16.mxu1 %v39868_v19 }
 0x4e1   :  { %29544 = vmatpush3.bf16.msra.mxu1 %v34448_v29 }
 0x4e2   :  { %29545 = vmatprep.subr.bf16.mxu1 %v39868_v19 }
 0x4e4   :  { %24663 = vmatmul.mubr.f32.vlgmr.msra.gmra.mrb[6].mxu1 %v34492_v55 }
 0x4e5   :  { %29547 = vmatpush3.bf16.msra.mxu1 %v34452_v13  ;;  %24697 = vmatprep.mubr.msk.f32.mxu1 %vm33090_vm1, %v39869_v3 }
 0x4e6   :  { %29548 = vmatprep.subr.bf16.mxu1 %v39868_v19 }
 0x4e9   :  { %29550 = vmatpush3.bf16.msra.mxu1 %v34456_v2 }
 0x4ea   :  { %29551 = vmatprep.subr.bf16.mxu1 %v39868_v19 }
 0x4ed   :  { %29553 = vmatpush3.bf16.msra.mxu1 %v34460_v63 }
 0x4ee   :  { %29554 = vmatprep.subr.bf16.mxu1 %v39868_v19 }
 0x4f1   :  { %29556 = vmatpush3.bf16.msra.mxu1 %v34464_v46 }
 0x4f2   :  { %29557 = vmatprep.subr.bf16.mxu1 %v39868_v19 }
 0x4f5   :  { %29559 = vmatpush3.bf16.msra.mxu1 %v34468_v61 }
 0x4f6   :  { %29560 = vmatprep.subr.bf16.mxu1 %v39868_v19 }
 0x4f9   :  { %29562 = vmatpush3.bf16.msra.mxu1 %v34472_v27  ;;  %v29654_v27 = vpack.c.bf16 %v3385_v60, %v3378_v25 }
 0x4fa   :  { %29563 = vmatprep.subr.bf16.mxu1 %v39868_v19 }
 0x4fd   :  { %29565 = vmatpush3.bf16.msra.mxu1 %v34476_v35 }
 0x4fe   :  { %29566 = vmatprep.subr.bf16.mxu1 %v39868_v19 }
 0x501   :  { %29568 = vmatpush3.bf16.msra.mxu1 %v34480_v4 }
 0x502   :  { %29569 = vmatprep.subr.bf16.mxu1 %v39868_v19 }
 0x504   :  { %24698 = vmatmul.mubr.f32.vlgmr.msra.gmra.mrb[6].mxu1 %v2729_v36  ;;  %v34588_v36 = vpack.c.bf16 %v39904_v52, %v39903_v50 }
 0x505   :  { %29571 = vmatpush3.bf16.msra.mxu1 %v34224_v10  ;;  %24732 = vmatprep.mubr.msk.f32.mxu1 %vm33090_vm1, %v39869_v3 }
 0x506   :  { %29572 = vmatprep.subr.bf16.mxu1 %v39868_v19  ;;  %39905 = vst [vmem:[#allocation57_spill] sm:$0xff] %v34588_v36 }
 0x509   :  { %29574 = vmatpush3.bf16.msra.mxu1 %v34234_v16 }
 0x50a   :  { %29575 = vmatprep.subr.bf16.mxu1 %v39868_v19 }
 0x50d   :  { %29577 = vmatpush3.bf16.msra.mxu1 %v34244_v15 }
 0x50e   :  { %29578 = vmatprep.subr.bf16.mxu1 %v39868_v19 }
 0x511   :  { %29580 = vmatpush3.bf16.msra.mxu1 %v34254_v47 }
 0x512   :  { %29581 = vmatprep.subr.bf16.mxu1 %v39868_v19 }
 0x515   :  { %29583 = vmatpush3.bf16.msra.mxu1 %v34264_v40 }
 0x516   :  { %29584 = vmatprep.subr.bf16.mxu1 %v39868_v19 }
 0x519   :  { %29586 = vmatpush3.bf16.msra.mxu1 %v34280_v23 }
 0x51a   :  { %29587 = vmatprep.subr.bf16.mxu1 %v39868_v19 }
 0x51d   :  { %29589 = vmatpush3.bf16.msra.mxu1 %v34300_v62 }
 0x51e   :  { %29590 = vmatprep.subr.bf16.mxu1 %v39868_v19 }
 0x521   :  { %29592 = vmatpush3.bf16.msra.mxu1 %v34326_v37 }
 0x522   :  { %29593 = vmatprep.subr.bf16.mxu1 %v39868_v19 }
 0x524   :  { %24733 = vmatmul.mubr.f32.vlgmr.msra.gmra.mrb[6].mxu1 %v2730_v21  ;;  %v34596_v21 = vpack.c.bf16 %v39907_v18, %v39906_v58  ;;  %v3399_v58 = vsub.f32 %v21359_v43, %v3307_v39  ;;  %v3380_v18 = vsub.f32 %v3378_v25, %v3379_v24  ;;  %v21363_v25 = vld [vmem:[%s39427_s5 + $0x98] sm:$0xff] }
 0x525   :  { %29595 = vmatpush3.bf16.msra.mxu1 %v34554_v17  ;;  %24767 = vmatprep.mubr.msk.f32.mxu1 %vm33090_vm1, %v39869_v3 }
 0x526   :  { %29596 = vmatprep.subr.bf16.mxu1 %v39868_v19  ;;  %39908 = vst [vmem:[#allocation58_spill] sm:$0xff] %v34596_v21  ;;  %v3381_v32 = vand.u32 4294901760, %v3380_v18  ;;  %v3400_v28 = vand.u32 4294901760, %v3399_v58 }
 0x528   :  { %v29648_v57 = vpack.c.bf16 %v3388_v0, %v3381_v32  ;;  %v3401_v1 = vsub.f32 %v3399_v58, %v3400_v28 }
 0x529   :  { %29598 = vmatpush3.bf16.msra.mxu1 %v34562_v44 }
 0x52a   :  { %29599 = vmatprep.subr.bf16.mxu1 %v39868_v19  ;;  %v3402_v4 = vand.u32 4294901760, %v3401_v1 }
 0x52d   :  { %29601 = vmatpush3.bf16.msra.mxu1 %v34572_v26 }
 0x52e   :  { %29602 = vmatprep.subr.bf16.mxu1 %v39868_v19 }
 0x531   :  { %29604 = vmatpush3.bf16.msra.mxu1 %v34580_v53 }
 0x532   :  { %29605 = vmatprep.subr.bf16.mxu1 %v39868_v19 }
 0x535   :  { %29607 = vmatpush3.bf16.msra.mxu1 %v34588_v36 }
 0x536   :  { %29608 = vmatprep.subr.bf16.mxu1 %v39868_v19 }
 0x539   :  { %29610 = vmatpush3.bf16.msra.mxu1 %v34596_v21 }
 0x53a   :  { %29611 = vmatprep.subr.bf16.mxu1 %v39868_v19 }
 0x53d   :  { %29613 = vmatpush3.bf16.msra.mxu1 %v34604_v33 }
 0x53e   :  { %29614 = vmatprep.subr.bf16.mxu1 %v39868_v19 }
 0x541   :  { %29616 = vmatpush3.bf16.msra.mxu1 %v34612_v48 }
 0x542   :  { %29617 = vmatprep.subr.bf16.mxu1 %v39868_v19 }
 0x544   :  { %24768 = vmatmul.mubr.f32.vlgmr.msra.gmra.mrb[6].mxu1 %v34492_v55 }
 0x545   :  { %29619 = vmatpush3.bf16.msra.mxu1 %v34224_v10  ;;  %24802 = vmatprep.mubr.msk.f32.mxu1 %vm33090_vm1, %v39869_v3 }
 0x546   :  { %29620 = vmatprep.subr.bf16.mxu1 %v39868_v19 }
 0x549   :  { %29622 = vmatpush3.bf16.msra.mxu1 %v34234_v16 }
 0x54a   :  { %29623 = vmatprep.subr.bf16.mxu1 %v39868_v19 }
 0x54d   :  { %29625 = vmatpush3.bf16.msra.mxu1 %v34244_v15 }
 0x54e   :  { %29626 = vmatprep.subr.bf16.mxu1 %v39868_v19 }
 0x551   :  { %29628 = vmatpush3.bf16.msra.mxu1 %v34254_v47 }
 0x552   :  { %29629 = vmatprep.subr.bf16.mxu1 %v39868_v19 }
 0x555   :  { %29631 = vmatpush3.bf16.msra.mxu1 %v34264_v40 }
 0x556   :  { %29632 = vmatprep.subr.bf16.mxu1 %v39868_v19 }
 0x559   :  { %29634 = vmatpush3.bf16.msra.mxu1 %v34280_v23 }
 0x55a   :  { %29635 = vmatprep.subr.bf16.mxu1 %v39868_v19 }
 0x55d   :  { %29637 = vmatpush3.bf16.msra.mxu1 %v34300_v62 }
 0x55e   :  { %29638 = vmatprep.subr.bf16.mxu1 %v39868_v19 }
 0x561   :  { %29640 = vmatpush3.bf16.msra.mxu1 %v34326_v37 }
 0x562   :  { %29821 = vmatprep.subr.bf16.mxu1 %v39868_v19 }
 0x564   :  { %24803 = vmatmul.mubr.f32.vlgmr.msra.gmra.mrb[6].mxu1 %v34492_v55  ;;  %v21358_v55 = vld [vmem:[%s39829_s23 + $0x30] sm:$0xff] }
 0x565   :  { %25097 = vmatprep.mubr.msk.f32.mxu1 %vm33090_vm1, %v39869_v3  ;;  %v3304_v14 = vand.u32 4294901760, %v21358_v55 }
 0x567   :  { %v34655_v50 = vpack.c.bf16 %v3307_v39, %v3304_v14  ;;  %v3392_v52 = vsub.f32 %v21358_v55, %v3304_v14  ;;  %v29666_v55 = vpack.c.bf16 %v3386_v8, %v3379_v24  ;;  %v33083_v39 = vld [vmem:[%s39426_s0] sm:$0xff]  ;;  %v3811_v24 = vand.u32 4294901760, %v21363_v25 }
 0x568   :  { %v21364_v8 = vld [vmem:[%s39427_s5 + $0xa0] sm:$0xff] }
 0x569   :  { %29646 = vmatpush3.bf16.msra.mxu0 %v34655_v50  ;;  %v3393_v22 = vand.u32 4294901760, %v3392_v52  ;;  %v29657_v61 = vpack.c.bf16 %v3399_v58, %v3392_v52 }
 0x56a   :  { %29647 = vmatprep.subr.bf16.mxu0 %v39868_v19 }
 0x56b   :  { %v3394_v30 = vsub.f32 %v3392_v52, %v3393_v22  ;;  %v29669_v43 = vpack.c.bf16 %v3400_v28, %v3393_v22  ;;  %v21365_v52 = vld [vmem:[%s39427_s5 + $0xa8] sm:$0xff]  ;;  %v21366_v28 = vld [vmem:[%s39427_s5 + $0xb0] sm:$0xff] }
 0x56c   :  { %v3817_v22 = vand.u32 4294901760, %v21365_v52 }
 0x56d   :  { %v3395_v34 = vand.u32 4294901760, %v3394_v30 }
 0x56e   :  { %v34799_v53 = vsub.f32 %v21365_v52, %v3817_v22 }
 0x56f   :  { %v29651_v35 = vpack.c.bf16 %v3402_v4, %v3395_v34  ;;  %v21362_v4 = vld [vmem:[%s39427_s5 + $0x90] sm:$0xff] }
 0x637   :  { %v34659_v14 = vpop.f32.mrb[6].mxu1 }
 0x638   :  { %39915 = vst [vmem:[#allocation61_spill] sm:$0xff] %v34659_v14  ;;  %v3288_v18 = vsub.f32 %v33083_v39, %v34659_v14  ;;  %v24804_v6 = vpop.f32.mrb[7].mxu1  ;;  %v21371_v14 = vld [vmem:[%s39427_s5 + $0xd8] sm:$0xff] }
 0x639   :  { %v21369_v6 = vld [vmem:[%s39427_s5 + $0xc8] sm:$0xff]  ;;  %v3835_v54 = vand.u32 4294901760, %v21371_v14 }
 0x63a   :  { %v3295_v32 = vsel %vm103_vm0, %v3288_v18, 0  ;;  %v21368_v18 = vld [vmem:[%s39427_s5 + $0xc0] sm:$0xff] }
 0x63b   :  { %v3366_v0 = vand.u32 4294901760, %v3295_v32 }
 0x63d   :  { %v3367_v46 = vsub.f32 %v3295_v32, %v3366_v0  ;;  %v58_v32 = vld [vmem:[%s39428_s4 + $0x8] sm:$0xff] }
 0x63e   :  { %v34745_v63 = vand.u32 4294901760, %v58_v32 }
 0x63f   :  { %v3368_v30 = vand.u32 4294901760, %v3367_v46 }
 0x641   :  { %v3369_v1 = vsub.f32 %v3367_v46, %v3368_v30 }
 0x643   :  { %v3370_v34 = vand.u32 4294901760, %v3369_v1  ;;  %v3829_v1 = vand.u32 4294901760, %v21369_v6 }
 0x645   :  { %24814 = vmatmul.mubr.f32.vlgmr.msra.gmra.mrb[6].mxu0 %v3370_v34  ;;  %v21370_v34 = vld [vmem:[%s39427_s5 + $0xd0] sm:$0xff] }
 0x646   :  { %29649 = vmatpush3.bf16.msra.mxu0 %v29648_v57  ;;  %24824 = vmatprep.mubr.msk.f32.mxu0 %vm33090_vm1, %v39869_v3  ;;  %v21367_v57 = vld [vmem:[%s39427_s5 + $0xb8] sm:$0xff]  ;;  %v3832_v12 = vand.u32 4294901760, %v21370_v34 }
 0x647   :  { %29650 = vmatprep.subr.bf16.mxu0 %v39868_v19  ;;  %v3823_v39 = vand.u32 4294901760, %v21367_v57 }
 0x648   :  { %v34775_v42 = vpack.c.bf16 %v3835_v54, %v3832_v12 }
 0x649   :  { %v34817_v56 = vsub.f32 %v21367_v57, %v3823_v39 }
 0x64a   :  { %29652 = vmatpush3.bf16.msra.mxu0 %v29651_v35 }
 0x64b   :  { %29653 = vmatprep.subr.bf16.mxu0 %v39868_v19 }
 0x64d   :  { %24825 = vmatmul.mubr.f32.vlgmr.msra.gmra.mrb[6].mxu0 %v3366_v0 }
 0x64e   :  { %29655 = vmatpush3.bf16.msra.mxu0 %v29654_v27  ;;  %24835 = vmatprep.mubr.msk.f32.mxu0 %vm33090_vm1, %v39869_v3 }
 0x64f   :  { %29656 = vmatprep.subr.bf16.mxu0 %v39868_v19 }
 0x652   :  { %29658 = vmatpush3.bf16.msra.mxu0 %v29657_v61  ;;  %v21361_v61 = vld [vmem:[%s39427_s5 + $0x88] sm:$0xff] }
 0x653   :  { %29659 = vmatprep.subr.bf16.mxu0 %v39868_v19  ;;  %v3805_v35 = vand.u32 4294901760, %v21361_v61 }
 0x655   :  { %24836 = vmatmul.mubr.f32.vlgmr.msra.gmra.mrb[6].mxu0 %v3367_v46  ;;  %v21360_v46 = vld [vmem:[%s39427_s5 + $0x80] sm:$0xff]  ;;  %v34749_v13 = vsub.f32 %v21361_v61, %v3805_v35  ;;  %v34766_v61 = vsub.f32 %v58_v32, %v34745_v63 }
 0x656   :  { %29661 = vmatpush3.bf16.msra.mxu0 %v34645_v51  ;;  %24846 = vmatprep.mubr.msk.f32.mxu0 %vm33090_vm1, %v39869_v3  ;;  %v3802_v27 = vand.u32 4294901760, %v21360_v46 }
 0x657   :  { %29662 = vmatprep.subr.bf16.mxu0 %v39868_v19  ;;  %v39581_v20 = vand.u32 4294901760, %v34749_v13  ;;  %v39916_v26 = vand.u32 4294901760, %v34766_v61 }
 0x658   :  { %v34701_v60 = vpack.c.bf16 %v3805_v35, %v3802_v27  ;;  %v34747_v2 = vsub.f32 %v21360_v46, %v3802_v27  ;;  %v34763_v46 = vld [vmem:[%s39427_s5 + $0xe8] sm:$0xff]  ;;  %v34770_v35 = vsub.f32 %v21363_v25, %v3811_v24  ;;  %v34786_v25 = vld [vmem:[%s39427_s5 + $0xf8] sm:$0xff] }
 0x659   :  { %v3841_v48 = vand.u32 4294901760, %v34763_v46  ;;  %v3903_v33 = vsub.f32 %v34749_v13, %v39581_v20  ;;  %v3885_v20 = vsub.f32 %v34766_v61, %v39916_v26  ;;  %v3930_v26 = vand.u32 4294901760, %v34799_v53 }
 0x65a   :  { %29664 = vmatpush3.bf16.msra.mxu0 %v34655_v50  ;;  %v39578_v31 = vand.u32 4294901760, %v34747_v2  ;;  %v39592_v36 = vand.u32 4294901760, %v34770_v35 }
 0x65b   :  { %29665 = vmatprep.subr.bf16.mxu0 %v39868_v19  ;;  %v3904_v44 = vand.u32 4294901760, %v3903_v33 }
 0x65c   :  { %v3896_v32 = vsub.f32 %v34747_v2, %v39578_v31  ;;  %v3917_v17 = vsub.f32 %v34770_v35, %v39592_v36 }
 0x65d   :  { %24847 = vmatmul.mubr.f32.vlgmr.msra.gmra.mrb[6].mxu0 %v3368_v30  ;;  %v3826_v30 = vand.u32 4294901760, %v21368_v18 }
 0x65e   :  { %29667 = vmatpush3.bf16.msra.mxu0 %v29666_v55  ;;  %24857 = vmatprep.mubr.msk.f32.mxu0 %vm33090_vm1, %v39869_v3  ;;  %v3897_v21 = vand.u32 4294901760, %v3896_v32  ;;  %v34827_v32 = vsub.f32 %v21369_v6, %v3829_v1  ;;  %v3918_v36 = vand.u32 4294901760, %v3917_v17 }
 0x65f   :  { %29668 = vmatprep.subr.bf16.mxu0 %v39868_v19  ;;  %v34752_v29 = vpack.c.bf16 %v3829_v1, %v3826_v30  ;;  %v34825_v33 = vsub.f32 %v21368_v18, %v3826_v30  ;;  %v39597_v18 = vand.u32 4294901760, %v34817_v56 }
 0x660   :  { %v29702_v11 = vpack.c.bf16 %v3904_v44, %v3897_v21  ;;  %v34841_v44 = vsub.f32 %v21371_v14, %v3835_v54  ;;  %v39596_v6 = vand.u32 4294901760, %v34827_v32 }
 0x661   :  { %v39595_v21 = vand.u32 4294901760, %v34825_v33 }
 0x662   :  { %29670 = vmatpush3.bf16.msra.mxu0 %v29669_v43  ;;  %v3820_v43 = vand.u32 4294901760, %v21366_v28  ;;  %v3959_v54 = vsub.f32 %v34827_v32, %v39596_v6  ;;  %v3972_v14 = vand.u32 4294901760, %v34841_v44 }
 0x663   :  { %29671 = vmatprep.subr.bf16.mxu0 %v39868_v19 }
 0x664   :  { %v34806_v31 = vsub.f32 %v21366_v28, %v3820_v43 }
 0x665   :  { %24858 = vmatmul.mubr.f32.vlgmr.msra.gmra.mrb[6].mxu0 %v3366_v0 }
 0x666   :  { %29673 = vmatpush3.bf16.msra.mxu0 %v34645_v51  ;;  %24868 = vmatprep.mubr.msk.f32.mxu0 %vm33090_vm1, %v39869_v3  ;;  %v3808_v51 = vand.u32 4294901760, %v21362_v4  ;;  %v3937_v45 = vand.u32 4294901760, %v34806_v31 }
 0x667   :  { %29674 = vmatprep.subr.bf16.mxu0 %v39868_v19 }
 0x668   :  { %v34711_v58 = vpack.c.bf16 %v3811_v24, %v3808_v51  ;;  %v34768_v27 = vsub.f32 %v21362_v4, %v3808_v51  ;;  %v21374_v4 = vld [vmem:[%s39427_s5 + $0xf0] sm:$0xff]  ;;  %v3847_v24 = vand.u32 4294901760, %v34786_v25 }
 0x66a   :  { %29676 = vmatpush3.bf16.msra.mxu0 %v34655_v50  ;;  %v3814_v50 = vand.u32 4294901760, %v21364_v8  ;;  %v39917_v52 = vand.u32 4294901760, %v34768_v27 }
 0x66b   :  { %29677 = vmatprep.subr.bf16.mxu0 %v39868_v19 }
 0x66c   :  { %v34723_v55 = vpack.c.bf16 %v3817_v22, %v3814_v50  ;;  %v34788_v51 = vsub.f32 %v21364_v8, %v3814_v50  ;;  %v34802_v8 = vpack.c.bf16 %v3841_v48, %v3838_v7  ;;  %v3844_v50 = vand.u32 4294901760, %v21374_v4 }
 0x66d   :  { %24869 = vmatmul.mubr.f32.vlgmr.msra.gmra.mrb[6].mxu0 %v3366_v0  ;;  %v34736_v0 = vpack.c.bf16 %v3823_v39, %v3820_v43  ;;  %v3910_v22 = vsub.f32 %v34768_v27, %v39917_v52  ;;  %v3886_v52 = vand.u32 4294901760, %v3885_v20  ;;  %v3931_v39 = vsub.f32 %v34799_v53, %v3930_v26 }
 0x66e   :  { %29679 = vmatpush3.bf16.msra.mxu0 %v34701_v60  ;;  %24903 = vmatprep.mubr.msk.f32.mxu0 %vm33090_vm1, %v39869_v3  ;;  %v34820_v28 = vpack.c.bf16 %v3847_v24, %v3844_v50  ;;  %v3923_v43 = vand.u32 4294901760, %v34788_v51  ;;  %v34839_v20 = vsub.f32 %v21370_v34, %v3832_v12  ;;  %v3945_v12 = vsub.f32 %v34817_v56, %v39597_v18 }
 0x66f   :  { %29680 = vmatprep.subr.bf16.mxu0 %v39868_v19  ;;  %v3911_v49 = vand.u32 4294901760, %v3910_v22  ;;  %v3932_v1 = vand.u32 4294901760, %v3931_v39  ;;  %v3938_v22 = vsub.f32 %v34806_v31, %v3937_v45  ;;  %v34866_v34 = vsub.f32 %v34763_v46, %v3841_v48 }
 0x670   :  { %v3924_v57 = vsub.f32 %v34788_v51, %v3923_v43  ;;  %v3973_v18 = vsub.f32 %v34841_v44, %v3972_v14  ;;  %v34878_v48 = vsub.f32 %v34786_v25, %v3847_v24 }
 0x671   :  { %v29705_v17 = vpack.c.bf16 %v3918_v36, %v3911_v49  ;;  %v34855_v49 = vsub.f32 %v34758_v5, %v3838_v7  ;;  %v3965_v36 = vand.u32 4294901760, %v34839_v20  ;;  %v3946_v7 = vand.u32 4294901760, %v3945_v12 }
 0x672   :  { %29682 = vmatpush3.bf16.msra.mxu0 %v34711_v58  ;;  %v3925_v30 = vand.u32 4294901760, %v3924_v57  ;;  %v3939_v57 = vand.u32 4294901760, %v3938_v22  ;;  %v34869_v5 = vsub.f32 %v21374_v4, %v3844_v50  ;;  %v3986_v4 = vand.u32 4294901760, %v34866_v34 }
 0x673   :  { %29683 = vmatprep.subr.bf16.mxu0 %v39868_v19  ;;  %v3966_v6 = vsub.f32 %v34839_v20, %v3965_v36  ;;  %v4000_v12 = vand.u32 4294901760, %v34878_v48 }
 0x674   :  { %v29711_v46 = vpack.c.bf16 %v3946_v7, %v3939_v57  ;;  %v3987_v25 = vsub.f32 %v34866_v34, %v3986_v4  ;;  %v3993_v24 = vand.u32 4294901760, %v34869_v5 }
 0x676   :  { %29685 = vmatpush3.bf16.msra.mxu0 %v34723_v55 }
 0x677   :  { %29686 = vmatprep.subr.bf16.mxu0 %v39868_v19 }
 0x67a   :  { %29688 = vmatpush3.bf16.msra.mxu0 %v34736_v0 }
 0x67b   :  { %29689 = vmatprep.subr.bf16.mxu0 %v39868_v19 }
 0x67e   :  { %29691 = vmatpush3.bf16.msra.mxu0 %v34752_v29 }
 0x67f   :  { %29692 = vmatprep.subr.bf16.mxu0 %v39868_v19 }
 0x682   :  { %29694 = vmatpush3.bf16.msra.mxu0 %v34775_v42 }
 0x683   :  { %29695 = vmatprep.subr.bf16.mxu0 %v39868_v19 }
 0x686   :  { %29697 = vmatpush3.bf16.msra.mxu0 %v34802_v8 }
 0x687   :  { %29698 = vmatprep.subr.bf16.mxu0 %v39868_v19 }
 0x68a   :  { %29700 = vmatpush3.bf16.msra.mxu0 %v34820_v28 }
 0x68b   :  { %29701 = vmatprep.subr.bf16.mxu0 %v39868_v19 }
 0x68d   :  { %24904 = vmatmul.mubr.f32.vlgmr.msra.gmra.mrb[8].mxu0 %v3886_v52  ;;  %v29708_v52 = vpack.c.bf16 %v3932_v1, %v3925_v30  ;;  %v3967_v30 = vand.u32 4294901760, %v3966_v6  ;;  %v3974_v1 = vand.u32 4294901760, %v3973_v18  ;;  %v3988_v6 = vand.u32 4294901760, %v3987_v25 }
 0x68e   :  { %29703 = vmatpush3.bf16.msra.mxu0 %v29702_v11  ;;  %24938 = vmatprep.mubr.msk.f32.mxu0 %vm33090_vm1, %v39869_v3  ;;  %v3952_v11 = vsub.f32 %v34825_v33, %v39595_v21  ;;  %v3960_v21 = vand.u32 4294901760, %v3959_v54  ;;  %v3994_v18 = vsub.f32 %v34869_v5, %v3993_v24  ;;  %v4001_v54 = vsub.f32 %v34878_v48, %v4000_v12 }
 0x68f   :  { %29704 = vmatprep.subr.bf16.mxu0 %v39868_v19  ;;  %v29741_v25 = vpack.c.bf16 %v34841_v44, %v34839_v20 }
 0x690   :  { %v3953_v39 = vand.u32 4294901760, %v3952_v11  ;;  %v29717_v11 = vpack.c.bf16 %v3974_v1, %v3967_v30  ;;  %v3995_v57 = vand.u32 4294901760, %v3994_v18  ;;  %v4002_v7 = vand.u32 4294901760, %v4001_v54 }
 0x691   :  { %v29732_v30 = vpack.c.bf16 %v34799_v53, %v34788_v51  ;;  %v29735_v1 = vpack.c.bf16 %v34817_v56, %v34806_v31  ;;  %v39919_v18 = vand.u32 4294901760, %v34749_v13  ;;  %v29789_v53 = vpack.c.bf16 %v3972_v14, %v3965_v36  ;;  %v21384_v31 = vld [vmem:[%s39429_s7 + $0x40] sm:$0xff] }
 0x692   :  { %29706 = vmatpush3.bf16.msra.mxu0 %v29705_v17  ;;  %v3979_v17 = vand.u32 4294901760, %v34855_v49  ;;  %v29714_v50 = vpack.c.bf16 %v3960_v21, %v3953_v39  ;;  %v29723_v39 = vpack.c.bf16 %v4002_v7, %v3995_v57  ;;  %v39921_v57 = vand.u32 4294901760, %v34768_v27  ;;  %v21388_v51 = vld [vmem:[%s39429_s7 + $0x60] sm:$0xff] }
 0x693   :  { %29707 = vmatprep.subr.bf16.mxu0 %v39868_v19  ;;  %v39922_v7 = vand.u32 4294901760, %v34770_v35 }
 0x694   :  { %v3980_v22 = vsub.f32 %v34855_v49, %v3979_v17 }
 0x696   :  { %29709 = vmatpush3.bf16.msra.mxu0 %v29708_v52  ;;  %v3981_v21 = vand.u32 4294901760, %v3980_v22  ;;  %v29738_v22 = vpack.c.bf16 %v34827_v32, %v34825_v33 }
 0x697   :  { %29710 = vmatprep.subr.bf16.mxu0 %v39868_v19 }
 0x698   :  { %v29720_v52 = vpack.c.bf16 %v3988_v6, %v3981_v21  ;;  %v29747_v21 = vpack.c.bf16 %v34878_v48, %v34869_v5  ;;  %v39918_v6 = vand.u32 4294901760, %v34747_v2 }
 0x69a   :  { %29712 = vmatpush3.bf16.msra.mxu0 %v29711_v46  ;;  %v29726_v46 = vpack.c.bf16 %v34749_v13, %v34747_v2  ;;  %v29774_v54 = vpack.c.bf16 %v39919_v18, %v39918_v6  ;;  %v29780_v13 = vpack.c.bf16 %v3930_v26, %v3923_v43  ;;  %v39923_v2 = vand.u32 4294901760, %v34817_v56  ;;  %v21389_v43 = vld [vmem:[%s39429_s7 + $0x68] sm:$0xff] }
 0x69b   :  { %29713 = vmatprep.subr.bf16.mxu0 %v39868_v19  ;;  %v29795_v56 = vpack.c.bf16 %v4000_v12, %v3993_v24  ;;  %v4602_v26 = vand.u32 4294901760, %v21388_v51  ;;  %v4605_v36 = vand.u32 4294901760, %v21389_v43 }
 0x69d   :  { %v35066_v5 = vsub.f32 %v21388_v51, %v4602_v26 }
 0x69e   :  { %29715 = vmatpush3.bf16.msra.mxu0 %v29714_v50  ;;  %v29729_v50 = vpack.c.bf16 %v34770_v35, %v34768_v27  ;;  %v39924_v27 = vand.u32 4294901760, %v34825_v33  ;;  %v39925_v35 = vand.u32 4294901760, %v34827_v32  ;;  %v21390_v33 = vld [vmem:[%s39429_s7 + $0x70] sm:$0xff]  ;;  %v21391_v32 = vld [vmem:[%s39429_s7 + $0x78] sm:$0xff] }
 0x69f   :  { %29716 = vmatprep.subr.bf16.mxu0 %v39868_v19  ;;  %v4611_v24 = vand.u32 4294901760, %v21391_v32 }
 0x6a2   :  { %29718 = vmatpush3.bf16.msra.mxu0 %v29717_v11  ;;  %v29744_v11 = vpack.c.bf16 %v34866_v34, %v34855_v49 }
 0x6a3   :  { %29719 = vmatprep.subr.bf16.mxu0 %v39868_v19 }
 0x6a6   :  { %29721 = vmatpush3.bf16.msra.mxu0 %v29720_v52  ;;  %v39920_v52 = vand.u32 4294901760, %v34766_v61 }
 0x6a7   :  { %29722 = vmatprep.subr.bf16.mxu0 %v39868_v19 }
 0x6aa   :  { %29724 = vmatpush3.bf16.msra.mxu0 %v29723_v39  ;;  %v29777_v39 = vpack.c.bf16 %v39922_v7, %v39921_v57 }
 0x6ab   :  { %29725 = vmatprep.subr.bf16.mxu0 %v39868_v19 }
 0x6ad   :  { %24939 = vmatmul.mubr.f32.vlgmr.msra.gmra.mrb[8].mxu0 %v34745_v63 }
 0x6ae   :  { %29727 = vmatpush3.bf16.msra.mxu0 %v29726_v46  ;;  %24973 = vmatprep.mubr.msk.f32.mxu0 %vm33090_vm1, %v39869_v3  ;;  %v29786_v46 = vpack.c.bf16 %v39925_v35, %v39924_v27 }
 0x6af   :  { %29728 = vmatprep.subr.bf16.mxu0 %v39868_v19 }
 0x6b2   :  { %29730 = vmatpush3.bf16.msra.mxu0 %v29729_v50  ;;  %v35076_v50 = vsub.f32 %v21391_v32, %v4611_v24 }
 0x6b3   :  { %29731 = vmatprep.subr.bf16.mxu0 %v39868_v19 }
 0x6b6   :  { %29733 = vmatpush3.bf16.msra.mxu0 %v29732_v30  ;;  %v35079_v30 = vpack.c.bf16 %v4605_v36, %v4602_v26 }
 0x6b7   :  { %29734 = vmatprep.subr.bf16.mxu0 %v39868_v19 }
 0x6ba   :  { %29736 = vmatpush3.bf16.msra.mxu0 %v29735_v1 }
 0x6bb   :  { %29737 = vmatprep.subr.bf16.mxu0 %v39868_v19 }
 0x6be   :  { %29739 = vmatpush3.bf16.msra.mxu0 %v29738_v22 }
 0x6bf   :  { %29740 = vmatprep.subr.bf16.mxu0 %v39868_v19 }
 0x6c2   :  { %29742 = vmatpush3.bf16.msra.mxu0 %v29741_v25 }
 0x6c3   :  { %29743 = vmatprep.subr.bf16.mxu0 %v39868_v19 }
 0x6c6   :  { %29745 = vmatpush3.bf16.msra.mxu0 %v29744_v11 }
 0x6c7   :  { %29746 = vmatprep.subr.bf16.mxu0 %v39868_v19 }
 0x6ca   :  { %29748 = vmatpush3.bf16.msra.mxu0 %v29747_v21 }
 0x6cb   :  { %29749 = vmatprep.subr.bf16.mxu0 %v39868_v19 }
 0x6cd   :  { %24974 = vmatmul.mubr.f32.vlgmr.msra.gmra.mrb[8].mxu0 %v34766_v61  ;;  %v29783_v61 = vpack.c.bf16 %v39923_v2, %v3937_v45  ;;  %v29792_v45 = vpack.c.bf16 %v3986_v4, %v3979_v17  ;;  %v35071_v17 = vsub.f32 %v21389_v43, %v4605_v36  ;;  %v4608_v4 = vand.u32 4294901760, %v21390_v33 }
 0x6ce   :  { %29751 = vmatpush3.bf16.msra.mxu0 %v34701_v60  ;;  %25008 = vmatprep.mubr.msk.f32.mxu0 %vm33090_vm1, %v39869_v3 }
 0x6cf   :  { %29752 = vmatprep.subr.bf16.mxu0 %v39868_v19  ;;  %v35074_v12 = vsub.f32 %v21390_v33, %v4608_v4  ;;  %v35083_v1 = vpack.c.bf16 %v4611_v24, %v4608_v4  ;;  %v39601_v27 = vand.u32 4294901760, %v35071_v17 }
 0x6d2   :  { %29754 = vmatpush3.bf16.msra.mxu0 %v34711_v58 }
 0x6d3   :  { %29755 = vmatprep.subr.bf16.mxu0 %v39868_v19 }
 0x6d6   :  { %29757 = vmatpush3.bf16.msra.mxu0 %v34723_v55 }
 0x6d7   :  { %29758 = vmatprep.subr.bf16.mxu0 %v39868_v19 }
 0x6da   :  { %29760 = vmatpush3.bf16.msra.mxu0 %v34736_v0 }
 0x6db   :  { %29761 = vmatprep.subr.bf16.mxu0 %v39868_v19 }
 0x6de   :  { %29763 = vmatpush3.bf16.msra.mxu0 %v34752_v29 }
 0x6df   :  { %29764 = vmatprep.subr.bf16.mxu0 %v39868_v19 }
 0x6e2   :  { %29766 = vmatpush3.bf16.msra.mxu0 %v34775_v42 }
 0x6e3   :  { %29767 = vmatprep.subr.bf16.mxu0 %v39868_v19 }
 0x6e6   :  { %29769 = vmatpush3.bf16.msra.mxu0 %v34802_v8 }
 0x6e7   :  { %29770 = vmatprep.subr.bf16.mxu0 %v39868_v19 }
 0x6ea   :  { %29772 = vmatpush3.bf16.msra.mxu0 %v34820_v28 }
 0x6eb   :  { %29773 = vmatprep.subr.bf16.mxu0 %v39868_v19 }
 0x6ed   :  { %25009 = vmatmul.mubr.f32.vlgmr.msra.gmra.mrb[8].mxu0 %v39920_v52 }
 0x6ee   :  { %29775 = vmatpush3.bf16.msra.mxu0 %v29774_v54  ;;  %25043 = vmatprep.mubr.msk.f32.mxu0 %vm33090_vm1, %v39869_v3 }
 0x6ef   :  { %29776 = vmatprep.subr.bf16.mxu0 %v39868_v19 }
 0x6f2   :  { %29778 = vmatpush3.bf16.msra.mxu0 %v29777_v39 }
 0x6f3   :  { %29779 = vmatprep.subr.bf16.mxu0 %v39868_v19 }
 0x6f6   :  { %29781 = vmatpush3.bf16.msra.mxu0 %v29780_v13 }
 0x6f7   :  { %29782 = vmatprep.subr.bf16.mxu0 %v39868_v19 }
 0x6fa   :  { %29784 = vmatpush3.bf16.msra.mxu0 %v29783_v61  ;;  %v39602_v61 = vand.u32 4294901760, %v35066_v5 }
 0x6fb   :  { %29785 = vmatprep.subr.bf16.mxu0 %v39868_v19 }
 0x6fe   :  { %29787 = vmatpush3.bf16.msra.mxu0 %v29786_v46  ;;  %v4704_v46 = vsub.f32 %v35066_v5, %v39602_v61 }
 0x6ff   :  { %29788 = vmatprep.subr.bf16.mxu0 %v39868_v19 }
 0x702   :  { %29790 = vmatpush3.bf16.msra.mxu0 %v29789_v53  ;;  %v4711_v53 = vsub.f32 %v35071_v17, %v39601_v27 }
 0x703   :  { %29791 = vmatprep.subr.bf16.mxu0 %v39868_v19 }
 0x706   :  { %29793 = vmatpush3.bf16.msra.mxu0 %v29792_v45  ;;  %v4705_v45 = vand.u32 4294901760, %v4704_v46 }
 0x707   :  { %29794 = vmatprep.subr.bf16.mxu0 %v39868_v19 }
 0x70a   :  { %29796 = vmatpush3.bf16.msra.mxu0 %v29795_v56  ;;  %v4712_v56 = vand.u32 4294901760, %v4711_v53  ;;  %v39927_v53 = vmov 2475754826  }
 0x70b   :  { %29797 = vmatprep.subr.bf16.mxu0 %v39868_v19 }
 0x70d   :  { %25044 = vmatmul.mubr.f32.vlgmr.msra.gmra.mrb[8].mxu0 %v34745_v63 }
 0x70e   :  { %29799 = vmatpush3.bf16.msra.mxu0 %v34701_v60  ;;  %25078 = vmatprep.mubr.msk.f32.mxu0 %vm33090_vm1, %v39869_v3  ;;  %v4590_v60 = vand.u32 4294901760, %v21384_v31 }
 0x70f   :  { %29800 = vmatprep.subr.bf16.mxu0 %v39868_v19 }
 0x710   :  { %v35058_v44 = vsub.f32 %v21384_v31, %v4590_v60  ;;  %v39599_v31 = vand.u32 4294901760, %v35076_v50 }
 0x712   :  { %29802 = vmatpush3.bf16.msra.mxu0 %v34711_v58  ;;  %v39606_v22 = vand.u32 4294901760, %v35058_v44 }
 0x713   :  { %29803 = vmatprep.subr.bf16.mxu0 %v39868_v19 }
 0x714   :  { %v4676_v11 = vsub.f32 %v35058_v44, %v39606_v22 }
 0x716   :  { %29805 = vmatpush3.bf16.msra.mxu0 %v34723_v55  ;;  %v21386_v55 = vld [vmem:[%s39429_s7 + $0x50] sm:$0xff]  ;;  %v4677_v6 = vand.u32 4294901760, %v4676_v11 }
 0x717   :  { %29806 = vmatprep.subr.bf16.mxu0 %v39868_v19 }
 0x71a   :  { %29808 = vmatpush3.bf16.msra.mxu0 %v34736_v0  ;;  %v21387_v0 = vld [vmem:[%s39429_s7 + $0x58] sm:$0xff] }
 0x71b   :  { %29809 = vmatprep.subr.bf16.mxu0 %v39868_v19 }
 0x71e   :  { %29811 = vmatpush3.bf16.msra.mxu0 %v34752_v29 }
 0x71f   :  { %29812 = vmatprep.subr.bf16.mxu0 %v39868_v19 }
 0x722   :  { %29814 = vmatpush3.bf16.msra.mxu0 %v34775_v42 }
 0x723   :  { %29815 = vmatprep.subr.bf16.mxu0 %v39868_v19 }
 0x726   :  { %29817 = vmatpush3.bf16.msra.mxu0 %v34802_v8  ;;  %v4596_v8 = vand.u32 4294901760, %v21386_v55 }
 0x727   :  { %29818 = vmatprep.subr.bf16.mxu0 %v39868_v19 }
 0x728   :  { %v35062_v14 = vsub.f32 %v21386_v55, %v4596_v8 }
 0x72a   :  { %29820 = vmatpush3.bf16.msra.mxu0 %v34820_v28  ;;  %v4599_v28 = vand.u32 4294901760, %v21387_v0  ;;  %v39604_v54 = vand.u32 4294901760, %v35062_v14 }
 0x72b   :  { %30085 = vmatprep.subr.bf16.mxu0 %v39868_v19 }
 0x72c   :  { %v35064_v34 = vsub.f32 %v21387_v0, %v4599_v28  ;;  %v35069_v48 = vpack.c.bf16 %v4599_v28, %v4596_v8  ;;  %v4690_v7 = vsub.f32 %v35062_v14, %v39604_v54 }
 0x72d   :  { %25079 = vmatmul.mubr.f32.vlgmr.msra.gmra.mrb[8].mxu0 %v34745_v63  ;;  %v21385_v63 = vld [vmem:[%s39429_s7 + $0x48] sm:$0xff] }
 0x72e   :  { %30087 = vmatpush3.bf16.msra.mxu0 %v34224_v10  ;;  %25437 = vmatprep.mubr.msk.f32.mxu0 %vm33090_vm1, %v39869_v3  ;;  %v4593_v58 = vand.u32 4294901760, %v21385_v63  ;;  %v39603_v52 = vand.u32 4294901760, %v35064_v34  ;;  %v4691_v13 = vand.u32 4294901760, %v4690_v7 }
 0x72f   :  { %30088 = vmatprep.subr.bf16.mxu0 %v39868_v19 }
 0x730   :  { %v35056_v20 = vpack.c.bf16 %v4593_v58, %v4590_v60  ;;  %v35060_v49 = vsub.f32 %v21385_v63, %v4593_v58  ;;  %v4697_v39 = vsub.f32 %v35064_v34, %v39603_v52  ;;  %v35118_v63 = vpack.c.bf16 %v4712_v56, %v4705_v45 }
 0x731   :  { %v4725_v58 = vsub.f32 %v35076_v50, %v39599_v31 }
 0x732   :  { %30090 = vmatpush3.bf16.msra.mxu0 %v34234_v16  ;;  %29823 = vmatpush3.bf16.msra.mxu1 %v35056_v20  ;;  %v39605_v25 = vand.u32 4294901760, %v35060_v49  ;;  %v4698_v2 = vand.u32 4294901760, %v4697_v39 }
 0x733   :  { %30091 = vmatprep.subr.bf16.mxu0 %v39868_v19  ;;  %29824 = vmatprep.subr.bf16.mxu1 %v39868_v19  ;;  %v4726_v0 = vand.u32 4294901760, %v4725_v58 }
 0x734   :  { %v4683_v21 = vsub.f32 %v35060_v49, %v39605_v25  ;;  %v35108_v35 = vpack.c.bf16 %v4698_v2, %v4691_v13  ;;  %v39926_v2 = vmov 683565275  }
 0x736   :  { %30093 = vmatpush3.bf16.msra.mxu0 %v34244_v15  ;;  %29826 = vmatpush3.bf16.msra.mxu1 %v35069_v48  ;;  %v4684_v18 = vand.u32 4294901760, %v4683_v21 }
 0x737   :  { %30094 = vmatprep.subr.bf16.mxu0 %v39868_v19  ;;  %29827 = vmatprep.subr.bf16.mxu1 %v39868_v19 }
 0x738   :  { %v35098_v57 = vpack.c.bf16 %v4684_v18, %v4677_v6 }
 0x73a   :  { %30096 = vmatpush3.bf16.msra.mxu0 %v34254_v47  ;;  %29829 = vmatpush3.bf16.msra.mxu1 %v35079_v30 }
 0x73b   :  { %30097 = vmatprep.subr.bf16.mxu0 %v39868_v19  ;;  %29830 = vmatprep.subr.bf16.mxu1 %v39868_v19 }
 0x73e   :  { %30099 = vmatpush3.bf16.msra.mxu0 %v34264_v40  ;;  %29832 = vmatpush3.bf16.msra.mxu1 %v35083_v1 }
 0x73f   :  { %30100 = vmatprep.subr.bf16.mxu0 %v39868_v19  ;;  %29833 = vmatprep.subr.bf16.mxu1 %v39868_v19 }
 0x740   :  { %v35024_v42 = vpop.f32.mrb[6].mxu0 }
 0x741   :  { %v24870_v29 = vpop.f32.mrb[7].mxu0 }
 0x742   :  { %30102 = vmatpush3.bf16.msra.mxu0 %v34280_v23  ;;  %v39600_v29 = vand.u32 4294901760, %v35074_v12 }
 0x743   :  { %30103 = vmatprep.subr.bf16.mxu0 %v39868_v19 }
 0x744   :  { %v4718_v60 = vsub.f32 %v35074_v12, %v39600_v29 }
 0x746   :  { %30105 = vmatpush3.bf16.msra.mxu0 %v34300_v62  ;;  %v4719_v55 = vand.u32 4294901760, %v4718_v60  ;;  %v39928_v60 = vmov 2131351028  }
 0x747   :  { %30106 = vmatprep.subr.bf16.mxu0 %v39868_v19 }
 0x748   :  { %v35126_v51 = vpack.c.bf16 %v4726_v0, %v4719_v55  ;;  %v39929_v0 = vmov 2102212464  }
 0x74a   :  { %30108 = vmatpush3.bf16.msra.mxu0 %v34326_v37 }
 0x74b   :  { %30109 = vmatprep.subr.bf16.mxu0 %v39868_v19 }
 0x800   :  { %v4438_v28 = vpop.f32.mrb[8].mxu0 }
 0x801   :  { %v35133_v26 = vsub.f32 %v35024_v42, %v4438_v28  ;;  %v25080_v33 = vpop.f32.mrb[9].mxu0 }
 0x803   :  { %v4446_v32 = vand.u32 2139095040, %v35133_v26  ;;  %v39598_v6 = vand.u32 2147483647, %v35133_v26  ;;  %vm4445_vm9 = vcmp.lt.s32.totalorder %v35133_v26, 0  ;;  %vm4535_vm14 = vweird.f32 %v35133_v26 }
 0x805   :  { %v4447_v4 = vshrl.u32 %v4446_v32, 23  ;;  %v4450_v42 = vand.u32 8388607, %v39598_v6  ;;  %v39930_v32 = vmov 920167782  }
 0x807   :  { %v21376_v24 = vadd.s32 4294967169, %v4447_v4  ;;  %v4451_v11 = vor.u32 8388608, %v4450_v42 }
 0x809   :  { %v4453_v21 = vadd.s32 1, %v21376_v24 }
 0x80b   :  { %vm4454_vm2 = vcmp.gt.s32.totalorder %v4453_v21, 0 }
 0x80c   :  { %v4455_v18 = vsel %vm4454_vm2, %v4453_v21, 0  ;;  %v39931_v21 = vmov 1326507024  }
 0x80d   :  { %v4457_v7 = vand.u32 31, %v4455_v18  ;;  %v4456_v13 = vshrl.u32 %v4455_v18, 5 }
 0x80f   :  { %v4458_v39 = vsub.s32 32, %v4457_v7  ;;  %v4460_v46 = vshll.u32 %v39926_v2, %v4457_v7  ;;  %v4463_v45 = vshll.u32 %v39927_v53, %v4457_v7  ;;  %v4466_v55 = vshll.u32 %v39928_v60, %v4457_v7 }
 0x810   :  { %v4469_v33 = vshll.u32 %v39929_v0, %v4457_v7  ;;  %v4472_v24 = vshll.u32 %v39930_v32, %v4457_v7  ;;  %vm4475_vm3 = vcmp.lt.s32.totalorder %v4456_v13, 1  ;;  %vm4478_vm4 = vcmp.lt.s32.totalorder %v4456_v13, 4 }
 0x811   :  { %v4461_v56 = vshrl.u32 %v39927_v53, %v4458_v39  ;;  %v4464_v58 = vshrl.u32 %v39928_v60, %v4458_v39  ;;  %v4467_v28 = vshrl.u32 %v39929_v0, %v4458_v39  ;;  %v4470_v4 = vshrl.u32 %v39930_v32, %v4458_v39 }
 0x812   :  { %v4473_v18 = vshrl.u32 %v39931_v21, %v4458_v39  ;;  %v4459_v52 = vshrl.u32 %v39926_v2, %v4458_v39  ;;  %vm4477_vm5 = vcmp.lt.s32.totalorder %v4456_v13, 3  ;;  %vm4476_vm6 = vcmp.lt.s32.totalorder %v4456_v13, 2 }
 0x813   :  { %v4462_v36 = vor.u32 %v4461_v56, %v4460_v46  ;;  %v4465_v43 = vor.u32 %v4464_v58, %v4463_v45  ;;  %v4468_v8 = vor.u32 %v4467_v28, %v4466_v55  ;;  %v4471_v6 = vor.u32 %v4470_v4, %v4469_v33 }
 0x814   :  { %v4474_v31 = vor.u32 %v4473_v18, %v4472_v24  ;;  %v4491_v21 = vshll.u32 %v4451_v11, 8  ;;  %v39936_v11 = vand.u32 4294901760, %v35066_v5 }
 0x815   :  { %v4480_v29 = vsel %vm4478_vm4, %v4468_v8, 2102212464  ;;  %v4483_v27 = vsel %vm4475_vm3, %v4462_v36, %v4465_v43  ;;  %v4487_v61 = vsel %vm4475_vm3, %v4465_v43, %v4468_v8  ;;  %v4484_v54 = vsel %vm4478_vm4, %v4471_v6, 920167782 }
 0x816   :  { %v4488_v25 = vsel %vm4478_vm4, %v4474_v31, 1326507024  ;;  %v4485_v7 = vsel %vm4477_vm5, %v4468_v8, %v4484_v54  ;;  %v4479_v42 = vsel %vm4475_vm3, %v4459_v52, %v4462_v36  ;;  %v4481_v46 = vsel %vm4477_vm5, %v4465_v43, %v4480_v29 }
 0x817   :  { %v4489_v22 = vsel %vm4477_vm5, %v4471_v6, %v4488_v25  ;;  %v4486_v45 = vsel %vm4476_vm6, %v4483_v27, %v4485_v7  ;;  %v4482_v4 = vsel %vm4476_vm6, %v4479_v42, %v4481_v46  ;;  %v39932_v31 = vand.u32 4294901760, %v35058_v44 }
 0x818   :  { %v4490_v56 = vsel %vm4476_vm6, %v4487_v61, %v4489_v22  ;;  %v35157_v28 = vmul.u32.u64.low %v4491_v21, %v4486_v45  ;;  %v35158_v33 = vmul.u32.u64.high %v4491_v21, %v4486_v45, %v35157_v28  ;;  %v39933_v25 = vand.u32 4294901760, %v35060_v49 }
 0x819   :  { %v35154_v58 = vmul.u32.u64.low %v4491_v21, %v4490_v56  ;;  %v35155_v55 = vmul.u32.u64.high %v4491_v21, %v4490_v56, %v35154_v58  ;;  %v4498_v52 = vmul.u32 %v4491_v21, %v4482_v4  ;;  %v39934_v27 = vand.u32 4294901760, %v35062_v14 }
 0x81a   :  { %v4501_v39 = vadd.s32 1, %v35158_v33  ;;  %v35166_v54 = vpack.c.bf16 %v39933_v25, %v39932_v31  ;;  %v39935_v29 = vand.u32 4294901760, %v35064_v34  ;;  %v39937_v6 = vand.u32 4294901760, %v35071_v17 }
 0x81b   :  { %vm4500_vm7 = vc.u32 %v35155_v55, %v35157_v28  ;;  %v39938_v21 = vand.u32 4294901760, %v35074_v12  ;;  %v39939_v7 = vand.u32 4294901760, %v35076_v50  ;;  %v4499_v4 = vadd.s32 %v35157_v28, %v35155_v55 }
 0x81c   :  { %v4502_v22 = vsel %vm4500_vm7, %v4501_v39, %v35158_v33  ;;  %v35173_v8 = vpack.c.bf16 %v39935_v29, %v39934_v27  ;;  %v35179_v13 = vpack.c.bf16 %v39937_v6, %v39936_v11 }
 0x81d   :  { %v4503_v61 = vadd.s32 %v4502_v22, %v4498_v52  ;;  %v35185_v42 = vpack.c.bf16 %v39939_v7, %v39938_v21  ;;  %v39940_v21 = vand.u32 2147483647, %v35133_v26 }
 0x81f   :  { %v4504_v43 = vadd.s32 536870912, %v4503_v61  ;;  %vm4444_vm10 = vcmp.le.f32.partialorder %v39940_v21, 0.7853982  ;;  %v21383_v21 = vld [vmem:[%s39431_s9 + $0x1] ss:$0 sm:$0xff] }
 0x821   :  { %v4505_v36 = vshrl.u32 %v4504_v43, 30 }
 0x823   :  { %v4506_v24 = vshll.u32 %v4505_v36, 30 }
 0x825   :  { %v4507_v18 = vsub.s32 %v4503_v61, %v4506_v24 }
 0x827   :  { %v4509_v46 = vsub.s32 0, %v4507_v18 }
 0x829   :  { %v21377_v45 = vmin.u32 %v4509_v46, %v4507_v18  ;;  %v4529_v46 = vsub.s32 4, %v4505_v36 }
 0x82b   :  { %v4511_v56 = vclz %v21377_v45  ;;  %v4530_v28 = vsel %vm4445_vm9, %v4529_v46, %v4505_v36 }
 0x82d   :  { %v21378_v58 = vadd.s32 4294967294, %v4511_v56 }
 0x82f   :  { %vm21379_vm8 = vcmp.lt.s32.totalorder %v21378_v58, 0 }
 0x830   :  { %v4514_v33 = vsel %vm21379_vm8, 0, %v21378_v58 }
 0x831   :  { %v4515_v39 = vsub.s32 32, %v4514_v33  ;;  %v4519_v31 = vsub.s32 4294967266, %v4514_v33  ;;  %v4516_v25 = vshll.u32 %v4507_v18, %v4514_v33  ;;  %v4532_v18 = vsel %vm4444_vm10, 0, %v4530_v28 }
 0x832   :  { %v4536_v45 = vand.u32 3, %v4532_v18 }
 0x833   :  { %v4517_v52 = vshrl.u32 %v4499_v4, %v4515_v39  ;;  %v4520_v22 = vadd.s32 127, %v4519_v31  ;;  %v21381_v39 = vld [vmem:[%s39430_s8 + $0x1] sm:$0x1] }
 0x834   :  { %vm4541_vm11 = vcmp.eq.s32.totalorder %v4536_v45, 2  ;;  %vm4538_vm12 = vcmp.eq.s32.totalorder %v4536_v45, 0  ;;  %vm4537_vm13 = vcmp.lt.s32.totalorder %v4536_v45, 2 }
 0x835   :  { %v4518_v61 = vor.u32 %v4517_v52, %v4516_v25  ;;  %v4521_v27 = vshll.u32 %v4520_v22, 23  ;;  %v4553_v22 = vsub.f32 -1.0, %v21381_v39 }
 0x837   :  { %v4522_v29 = vor.u32 4788187, %v4521_v27  ;;  %v4525_v11 = vcvt.s32.f32 %v4518_v61 }
 0x839   :  { %v4523_v43 = vand.u32 2147483647, %v4522_v29  ;;  %v4558_v29 = vrot.slane %v4553_v22, %v33734_v59  ;;  %v39954_v22 = vld [vmem:[#allocation25_spill] sm:$0xff] }
 0x83b   :  { %v4526_v6 = vmul.f32 %v4525_v11, %v4523_v43  ;;  %v4565_v43 = vrot.slane %v21381_v39, %v33734_v59 }
 0x83d   :  { %v4527_v24 = vxor.u32 2147483648, %v4526_v6 }
 0x83f   :  { %v4528_v7 = vsel %vm4445_vm9, %v4527_v24, %v4526_v6 }
 0x840   :  { %v4531_v55 = vsel %vm4444_vm10, %v35133_v26, %v4528_v7 }
 0x841   :  { %33041 = vcosq.f32 %v4531_v55 }
 0x842   :  { %33043 = vsinq.f32 %v4531_v55 }
 0x84b   :  { %v33042_v56 = vpop.eup %33041 }
 0x84c   :  { %v33044_v58 = vpop.eup %33043  ;;  %v4542_v33 = vxor.u32 2147483648, %v33042_v56 }
 0x84d   :  { %v4539_v4 = vxor.u32 2147483648, %v33044_v58 }
 0x84e   :  { %v4543_v31 = vsel %vm4541_vm11, %v4542_v33, %v33044_v58 }
 0x84f   :  { %v4540_v25 = vsel %vm4538_vm12, %v33042_v56, %v4539_v4 }
 0x850   :  { %v4544_v52 = vsel %vm4537_vm13, %v4540_v25, %v4543_v31  ;;  %v39951_v31 = vld [vmem:[#allocation13_spill] sm:$0xff]  ;;  %v39952_v25 = vld [vmem:[#allocation14_spill] sm:$0xff] }
 0x851   :  { %v4545_v36 = vsel %vm4535_vm14, nan, %v4544_v52  ;;  %v39953_v52 = vld [vmem:[#allocation24_spill] sm:$0xff] }
 0x852   :  { %v4546_v61 = vmul.f32 2.0, %v4545_v36  ;;  %v4560_v6 = vadd.f32 %v4558_v29, %v4545_v36  ;;  %v39958_v29 = vld [vmem:[#allocation18_spill] sm:$0xff] }
 0x854   :  { %v4547_v27 = vmul.f32 %v4546_v61, %v4545_v36  ;;  %v39955_v36 = vld [vmem:[#allocation15_spill] sm:$0xff]  ;;  %v39956_v61 = vld [vmem:[#allocation16_spill] sm:$0xff] }
 0x856   :  { %v21380_v11 = vadd.f32 -1.0, %v4547_v27  ;;  %v39957_v27 = vld [vmem:[#allocation17_spill] sm:$0xff] }
 0x858   :  { %v4567_v24 = vmul.f32 %v21380_v11, %v4565_v43  ;;  %v39959_v43 = vld [vmem:[#allocation19_spill] sm:$0xff]  ;;  %v39960_v11 = vld [vmem:[#allocation20_spill] sm:$0xff] }
 0x85a   :  { %v4568_v7 = vadd.f32 %v4567_v24, %v4560_v6  ;;  %v39961_v6 = vld [vmem:[#allocation26_spill] sm:$0xff]  ;;  %v39962_v24 = vld [vmem:[#allocation27_spill] sm:$0xff] }
 0x85c   :  { %v4575_v46 = vmul.f32 %v21383_v21, %v4568_v7  ;;  %v39963_v21 = vld [vmem:[#allocation21_spill] sm:$0xff]  ;;  %v39964_v7 = vld [vmem:[#allocation22_spill] sm:$0xff] }
 0x85e   :  { %v4576_v55 = vadd.f32 1.0, %v4575_v46  ;;  %v39965_v46 = vld [vmem:[#allocation23_spill] sm:$0xff] }
 0x860   :  { %v4587_v26 = vsel %vm1391_vm15, %v4576_v55, 0  ;;  %v39966_v55 = vld [vmem:[#allocation28_spill] sm:$0xff] }
 0x861   :  { %v4662_v28 = vand.u32 4294901760, %v4587_v26 }
 0x863   :  { %v4663_v18 = vsub.f32 %v4587_v26, %v4662_v28  ;;  %v39967_v26 = vld [vmem:[#allocation29_spill] sm:$0xff] }
 0x865   :  { %v4664_v45 = vand.u32 4294901760, %v4663_v18 }
 0x867   :  { %v4665_v56 = vsub.f32 %v4663_v18, %v4664_v45 }
 0x869   :  { %v4666_v58 = vand.u32 4294901760, %v4665_v56  ;;  %v39971_v56 = vld [vmem:[#allocation33_spill] sm:$0xff] }
 0x86b   :  { %25098 = vmatmul.mubr.f32.vlgmr.msra.gmra.mrb[8].mxu1 %v4666_v58  ;;  %v39972_v58 = vld [vmem:[#allocation34_spill] sm:$0xff] }
 0x86c   :  { %29835 = vmatpush3.bf16.msra.mxu1 %v35098_v57  ;;  %25116 = vmatprep.mubr.msk.f32.mxu1 %vm33090_vm1, %v39869_v3  ;;  %v39941_v57 = vpack.c.bf16 %v35060_v49, %v35058_v44  ;;  %v39944_v44 = vpack.c.bf16 %v35076_v50, %v35074_v12  ;;  %v39946_v49 = vld [vmem:[#allocation8_spill] sm:$0xff] }
 0x86d   :  { %29836 = vmatprep.subr.bf16.mxu1 %v39868_v19 }
 0x870   :  { %29838 = vmatpush3.bf16.msra.mxu1 %v35108_v35  ;;  %v39942_v35 = vpack.c.bf16 %v35064_v34, %v35062_v14  ;;  %v39947_v14 = vld [vmem:[#allocation9_spill] sm:$0xff]  ;;  %v39948_v34 = vld [vmem:[#allocation10_spill] sm:$0xff] }
 0x871   :  { %29839 = vmatprep.subr.bf16.mxu1 %v39868_v19 }
 0x874   :  { %29841 = vmatpush3.bf16.msra.mxu1 %v35118_v63  ;;  %v39943_v63 = vpack.c.bf16 %v35071_v17, %v35066_v5  ;;  %v39949_v5 = vld [vmem:[#allocation11_spill] sm:$0xff] }
 0x875   :  { %29842 = vmatprep.subr.bf16.mxu1 %v39868_v19 }
 0x878   :  { %29844 = vmatpush3.bf16.msra.mxu1 %v35126_v51 }
 0x879   :  { %29845 = vmatprep.subr.bf16.mxu1 %v39868_v19 }
 0x87b   :  { %25117 = vmatmul.mubr.f32.vlgmr.msra.gmra.mrb[8].mxu1 %v4662_v28 }
 0x87c   :  { %29847 = vmatpush3.bf16.msra.mxu1 %v39941_v57  ;;  %25135 = vmatprep.mubr.msk.f32.mxu1 %vm33090_vm1, %v39869_v3  ;;  %v39973_v57 = vld [vmem:[#allocation35_spill] sm:$0xff] }
 0x87d   :  { %29848 = vmatprep.subr.bf16.mxu1 %v39868_v19 }
 0x880   :  { %29850 = vmatpush3.bf16.msra.mxu1 %v39942_v35  ;;  %v39974_v35 = vld [vmem:[#allocation53_spill] sm:$0xff] }
 0x881   :  { %29851 = vmatprep.subr.bf16.mxu1 %v39868_v19 }
 0x884   :  { %29853 = vmatpush3.bf16.msra.mxu1 %v39943_v63  ;;  %v39975_v63 = vld [vmem:[#allocation54_spill] sm:$0xff] }
 0x885   :  { %29854 = vmatprep.subr.bf16.mxu1 %v39868_v19 }
 0x888   :  { %29856 = vmatpush3.bf16.msra.mxu1 %v39944_v44  ;;  %v39976_v44 = vld [vmem:[#allocation55_spill] sm:$0xff] }
 0x889   :  { %29857 = vmatprep.subr.bf16.mxu1 %v39868_v19 }
 0x88b   :  { %25136 = vmatmul.mubr.f32.vlgmr.msra.gmra.mrb[8].mxu1 %v4663_v18  ;;  %v39969_v18 = vld [vmem:[#allocation31_spill] sm:$0xff] }
 0x88c   :  { %29859 = vmatpush3.bf16.msra.mxu1 %v35056_v20  ;;  %25154 = vmatprep.mubr.msk.f32.mxu1 %vm33090_vm1, %v39869_v3 }
 0x88d   :  { %29860 = vmatprep.subr.bf16.mxu1 %v39868_v19 }
 0x890   :  { %29862 = vmatpush3.bf16.msra.mxu1 %v35069_v48 }
 0x891   :  { %29863 = vmatprep.subr.bf16.mxu1 %v39868_v19 }
 0x894   :  { %29865 = vmatpush3.bf16.msra.mxu1 %v35079_v30 }
 0x895   :  { %29866 = vmatprep.subr.bf16.mxu1 %v39868_v19 }
 0x898   :  { %29868 = vmatpush3.bf16.msra.mxu1 %v35083_v1 }
 0x899   :  { %29869 = vmatprep.subr.bf16.mxu1 %v39868_v19 }
 0x89b   :  { %25155 = vmatmul.mubr.f32.vlgmr.msra.gmra.mrb[8].mxu1 %v4664_v45  ;;  %v39970_v45 = vld [vmem:[#allocation32_spill] sm:$0xff] }
 0x89c   :  { %29871 = vmatpush3.bf16.msra.mxu1 %v35166_v54  ;;  %25173 = vmatprep.mubr.msk.f32.mxu1 %vm33090_vm1, %v39869_v3 }
 0x89d   :  { %29872 = vmatprep.subr.bf16.mxu1 %v39868_v19 }
 0x8a0   :  { %29874 = vmatpush3.bf16.msra.mxu1 %v35173_v8 }
 0x8a1   :  { %29875 = vmatprep.subr.bf16.mxu1 %v39868_v19 }
 0x8a4   :  { %29877 = vmatpush3.bf16.msra.mxu1 %v35179_v13 }
 0x8a5   :  { %29878 = vmatprep.subr.bf16.mxu1 %v39868_v19 }
 0x8a8   :  { %29880 = vmatpush3.bf16.msra.mxu1 %v35185_v42 }
 0x8a9   :  { %29881 = vmatprep.subr.bf16.mxu1 %v39868_v19 }
 0x8ab   :  { %25174 = vmatmul.mubr.f32.vlgmr.msra.gmra.mrb[8].mxu1 %v4662_v28 }
 0x8ac   :  { %29883 = vmatpush3.bf16.msra.mxu1 %v35056_v20  ;;  %25192 = vmatprep.mubr.msk.f32.mxu1 %vm33090_vm1, %v39869_v3  ;;  %v39945_v20 = vld [vmem:[#allocation7_spill] sm:$0xff] }
 0x8ad   :  { %29884 = vmatprep.subr.bf16.mxu1 %v39868_v19 }
 0x8b0   :  { %29886 = vmatpush3.bf16.msra.mxu1 %v35069_v48  ;;  %v39950_v48 = vld [vmem:[#allocation12_spill] sm:$0xff] }
 0x8b1   :  { %29887 = vmatprep.subr.bf16.mxu1 %v39868_v19 }
 0x8b4   :  { %29889 = vmatpush3.bf16.msra.mxu1 %v35079_v30 }
 0x8b5   :  { %29890 = vmatprep.subr.bf16.mxu1 %v39868_v19 }
 0x8b8   :  { %29892 = vmatpush3.bf16.msra.mxu1 %v35083_v1 }
 0x8b9   :  { %29894 = vmatprep.subr.bf16.mxu1 %v33813_v9 }
 0x8bb   :  { %25193 = vmatmul.mubr.f32.vlgmr.msra.gmra.mrb[8].mxu1 %v4662_v28  ;;  %v39968_v28 = vld [vmem:[#allocation30_spill] sm:$0xff] }
 0x8bc   :  { %29896 = vmatpush3.bf16.msra.mxu1 %v33813_v9 }
 0x8bd   :  { %29898 = vmatprep.subr.bf16.mxu1 %v33817_v41 }
 0x8c0   :  { %29900 = vmatpush3.bf16.msra.mxu1 %v33817_v41 }
 0x8c1   :  { %29902 = vmatprep.subr.bf16.mxu1 %v33832_v38 }
 0x8c4   :  { %29904 = vmatpush3.bf16.msra.mxu1 %v33832_v38 }
 0x8c5   :  { %29906 = vmatprep.subr.bf16.mxu1 %v39945_v20 }
 0x8c8   :  { %29908 = vmatpush3.bf16.msra.mxu1 %v39945_v20 }
 0x8c9   :  { %29910 = vmatprep.subr.bf16.mxu1 %v39946_v49 }
 0x8cc   :  { %29912 = vmatpush3.bf16.msra.mxu1 %v39946_v49 }
 0x8cd   :  { %29914 = vmatprep.subr.bf16.mxu1 %v39947_v14 }
 0x8d0   :  { %29916 = vmatpush3.bf16.msra.mxu1 %v39947_v14 }
 0x8d1   :  { %29918 = vmatprep.subr.bf16.mxu1 %v39948_v34 }
 0x8d4   :  { %29920 = vmatpush3.bf16.msra.mxu1 %v39948_v34 }
 0x8d5   :  { %29922 = vmatprep.subr.bf16.mxu1 %v39949_v5 }
 0x8d8   :  { %29924 = vmatpush3.bf16.msra.mxu1 %v39949_v5 }
 0x8d9   :  { %29926 = vmatprep.subr.bf16.mxu1 %v39950_v48 }
 0x98e   :  { %v35276_v17 = vpop.f32.mrb[8].mxu1 }
 0x98f   :  { %v5126_v12 = vmul.f32 %v35276_v17, %v35276_v17  ;;  %v35281_v50 = vand.u32 4294901760, %v35276_v17  ;;  %v25194_v30 = vpop.f32.mrb[9].mxu1 }
 0x990   :  { %v39979_v30 = vld [vmem:[#allocation58_spill] sm:$0xff] }
 0x991   :  { %v5209_v1 = vsub.f32 %v35276_v17, %v35281_v50  ;;  %v35285_v51 = vand.u32 4294901760, %v5126_v12 }
 0x993   :  { %v5219_v54 = vsub.f32 %v5126_v12, %v35285_v51  ;;  %v5210_v8 = vand.u32 4294901760, %v5209_v1  ;;  %v39977_v12 = vld [vmem:[#allocation56_spill] sm:$0xff] }
 0x995   :  { %v5211_v13 = vsub.f32 %v5209_v1, %v5210_v8  ;;  %v5220_v42 = vand.u32 4294901760, %v5219_v54 }
 0x997   :  { %v5212_v33 = vand.u32 4294901760, %v5211_v13  ;;  %v5221_v4 = vsub.f32 %v5219_v54, %v5220_v42 }
 0x999   :  { %25227 = vmatprep.mubr.f32.mxu1 %v5212_v33  ;;  %v5222_v39 = vand.u32 4294901760, %v5221_v4 }
 0x99b   :  { %25228 = vmatmul.mubr.f32.vlgmr.msra.gmra.mrb[10].mxu1 %v5222_v39 }
 0x99c   :  { %29928 = vmatpush3.bf16.msra.mxu1 %v39950_v48  ;;  %25262 = vmatprep.mubr.f32.mxu1 %v35281_v50 }
 0x99d   :  { %29930 = vmatprep.subr.bf16.mxu1 %v39951_v31 }
 0x9a0   :  { %29932 = vmatpush3.bf16.msra.mxu1 %v39951_v31 }
 0x9a1   :  { %29934 = vmatprep.subr.bf16.mxu1 %v39952_v25 }
 0x9a4   :  { %29936 = vmatpush3.bf16.msra.mxu1 %v39952_v25 }
 0x9a5   :  { %29938 = vmatprep.subr.bf16.mxu1 %v39953_v52 }
 0x9a8   :  { %29940 = vmatpush3.bf16.msra.mxu1 %v39953_v52 }
 0x9a9   :  { %29942 = vmatprep.subr.bf16.mxu1 %v39954_v22 }
 0x9ac   :  { %29944 = vmatpush3.bf16.msra.mxu1 %v39954_v22  ;;  %v40011_v22 = vld [vmem:[#allocation52_spill] sm:$0xff] }
 0x9ad   :  { %29946 = vmatprep.subr.bf16.mxu1 %v39955_v36 }
 0x9b0   :  { %29948 = vmatpush3.bf16.msra.mxu1 %v39955_v36 }
 0x9b1   :  { %29950 = vmatprep.subr.bf16.mxu1 %v39956_v61 }
 0x9b4   :  { %29952 = vmatpush3.bf16.msra.mxu1 %v39956_v61 }
 0x9b5   :  { %29954 = vmatprep.subr.bf16.mxu1 %v39957_v27 }
 0x9b8   :  { %29956 = vmatpush3.bf16.msra.mxu1 %v39957_v27 }
 0x9b9   :  { %29958 = vmatprep.subr.bf16.mxu1 %v39958_v29 }
 0x9bb   :  { %25263 = vmatmul.mubr.f32.vlgmr.msra.gmra.mrb[10].mxu1 %v35285_v51 }
 0x9bc   :  { %29960 = vmatpush3.bf16.msra.mxu1 %v39958_v29  ;;  %25297 = vmatprep.mubr.f32.mxu1 %v5209_v1  ;;  %v39980_v1 = vld [vmem:[#allocation59_spill] sm:$0xff] }
 0x9bd   :  { %29962 = vmatprep.subr.bf16.mxu1 %v39959_v43 }
 0x9c0   :  { %29964 = vmatpush3.bf16.msra.mxu1 %v39959_v43 }
 0x9c1   :  { %29966 = vmatprep.subr.bf16.mxu1 %v39960_v11 }
 0x9c4   :  { %29968 = vmatpush3.bf16.msra.mxu1 %v39960_v11 }
 0x9c5   :  { %29970 = vmatprep.subr.bf16.mxu1 %v39961_v6 }
 0x9c8   :  { %29972 = vmatpush3.bf16.msra.mxu1 %v39961_v6 }
 0x9c9   :  { %29974 = vmatprep.subr.bf16.mxu1 %v39962_v24 }
 0x9cc   :  { %29976 = vmatpush3.bf16.msra.mxu1 %v39962_v24 }
 0x9cd   :  { %29978 = vmatprep.subr.bf16.mxu1 %v39963_v21 }
 0x9d0   :  { %29980 = vmatpush3.bf16.msra.mxu1 %v39963_v21 }
 0x9d1   :  { %29982 = vmatprep.subr.bf16.mxu1 %v39964_v7 }
 0x9d4   :  { %29984 = vmatpush3.bf16.msra.mxu1 %v39964_v7 }
 0x9d5   :  { %29986 = vmatprep.subr.bf16.mxu1 %v39965_v46 }
 0x9d8   :  { %29988 = vmatpush3.bf16.msra.mxu1 %v39965_v46 }
 0x9d9   :  { %29990 = vmatprep.subr.bf16.mxu1 %v33813_v9 }
 0x9db   :  { %25298 = vmatmul.mubr.f32.vlgmr.msra.gmra.mrb[10].mxu1 %v5219_v54 }
 0x9dc   :  { %29992 = vmatpush3.bf16.msra.mxu1 %v33813_v9  ;;  %25332 = vmatprep.mubr.f32.mxu1 %v5210_v8 }
 0x9dd   :  { %29994 = vmatprep.subr.bf16.mxu1 %v33817_v41 }
 0x9e0   :  { %29996 = vmatpush3.bf16.msra.mxu1 %v33817_v41 }
 0x9e1   :  { %29998 = vmatprep.subr.bf16.mxu1 %v33832_v38 }
 0x9e4   :  { %30000 = vmatpush3.bf16.msra.mxu1 %v33832_v38 }
 0x9e5   :  { %30002 = vmatprep.subr.bf16.mxu1 %v39945_v20 }
 0x9e8   :  { %30004 = vmatpush3.bf16.msra.mxu1 %v39945_v20 }
 0x9e9   :  { %30006 = vmatprep.subr.bf16.mxu1 %v39946_v49 }
 0x9ec   :  { %30008 = vmatpush3.bf16.msra.mxu1 %v39946_v49 }
 0x9ed   :  { %30010 = vmatprep.subr.bf16.mxu1 %v39947_v14 }
 0x9f0   :  { %30012 = vmatpush3.bf16.msra.mxu1 %v39947_v14 }
 0x9f1   :  { %30014 = vmatprep.subr.bf16.mxu1 %v39948_v34 }
 0x9f4   :  { %30016 = vmatpush3.bf16.msra.mxu1 %v39948_v34 }
 0x9f5   :  { %30018 = vmatprep.subr.bf16.mxu1 %v39949_v5 }
 0x9f8   :  { %30020 = vmatpush3.bf16.msra.mxu1 %v39949_v5 }
 0x9f9   :  { %30022 = vmatprep.subr.bf16.mxu1 %v39966_v55 }
 0x9fb   :  { %25333 = vmatmul.mubr.f32.vlgmr.msra.gmra.mrb[10].mxu1 %v5220_v42 }
 0x9fc   :  { %30024 = vmatpush3.bf16.msra.mxu1 %v39966_v55  ;;  %25367 = vmatprep.mubr.f32.mxu1 %v35281_v50 }
 0x9fd   :  { %30026 = vmatprep.subr.bf16.mxu1 %v39967_v26 }
 0xa00   :  { %30028 = vmatpush3.bf16.msra.mxu1 %v39967_v26 }
 0xa01   :  { %30030 = vmatprep.subr.bf16.mxu1 %v39968_v28 }
 0xa04   :  { %30032 = vmatpush3.bf16.msra.mxu1 %v39968_v28 }
 0xa05   :  { %30034 = vmatprep.subr.bf16.mxu1 %v39969_v18 }
 0xa08   :  { %30036 = vmatpush3.bf16.msra.mxu1 %v39969_v18 }
 0xa09   :  { %30038 = vmatprep.subr.bf16.mxu1 %v39970_v45 }
 0xa0c   :  { %30040 = vmatpush3.bf16.msra.mxu1 %v39970_v45 }
 0xa0d   :  { %30042 = vmatprep.subr.bf16.mxu1 %v39971_v56 }
 0xa10   :  { %30044 = vmatpush3.bf16.msra.mxu1 %v39971_v56 }
 0xa11   :  { %30046 = vmatprep.subr.bf16.mxu1 %v39972_v58 }
 0xa14   :  { %30048 = vmatpush3.bf16.msra.mxu1 %v39972_v58 }
 0xa15   :  { %30050 = vmatprep.subr.bf16.mxu1 %v39973_v57 }
 0xa18   :  { %30052 = vmatpush3.bf16.msra.mxu1 %v39973_v57 }
 0xa19   :  { %30054 = vmatprep.subr.bf16.mxu1 %v33813_v9 }
 0xa1b   :  { %25368 = vmatmul.mubr.f32.vlgmr.msra.gmra.mrb[10].mxu1 %v35285_v51 }
 0xa1c   :  { %30056 = vmatpush3.bf16.msra.mxu1 %v33813_v9  ;;  %25402 = vmatprep.mubr.f32.mxu1 %v35281_v50  ;;  %v39978_v50 = vld [vmem:[#allocation57_spill] sm:$0xff] }
 0xa1d   :  { %30058 = vmatprep.subr.bf16.mxu1 %v33817_v41 }
 0xa20   :  { %30060 = vmatpush3.bf16.msra.mxu1 %v33817_v41 }
 0xa21   :  { %30062 = vmatprep.subr.bf16.mxu1 %v33832_v38 }
 0xa24   :  { %30064 = vmatpush3.bf16.msra.mxu1 %v33832_v38 }
 0xa25   :  { %30066 = vmatprep.subr.bf16.mxu1 %v39945_v20 }
 0xa28   :  { %30068 = vmatpush3.bf16.msra.mxu1 %v39945_v20 }
 0xa29   :  { %30070 = vmatprep.subr.bf16.mxu1 %v39946_v49 }
 0xa2c   :  { %30072 = vmatpush3.bf16.msra.mxu1 %v39946_v49 }
 0xa2d   :  { %30074 = vmatprep.subr.bf16.mxu1 %v39947_v14 }
 0xa30   :  { %30076 = vmatpush3.bf16.msra.mxu1 %v39947_v14 }
 0xa31   :  { %30078 = vmatprep.subr.bf16.mxu1 %v39948_v34 }
 0xa34   :  { %30080 = vmatpush3.bf16.msra.mxu1 %v39948_v34 }
 0xa35   :  { %30082 = vmatprep.subr.bf16.mxu1 %v39949_v5 }
 0xa38   :  { %30084 = vmatpush3.bf16.msra.mxu1 %v39949_v5 }
 0xa39   :  { %30181 = vmatprep.subr.bf16.mxu1 %v39868_v19 }
 0xa3b   :  { %25403 = vmatmul.mubr.f32.vlgmr.msra.gmra.mrb[10].mxu1 %v35285_v51  ;;  %v39981_v51 = vld [vmem:[#allocation60_spill] sm:$0xff] }
 0xa3c   :  { %30183 = vmatpush3.bf16.msra.mxu1 %v39974_v35  ;;  %25577 = vmatprep.mubr.msk.f32.mxu1 %vm33090_vm1, %v39869_v3  ;;  %v39995_v35 = vld [vmem:[#allocation48_spill] sm:$0xff] }
 0xa3d   :  { %30184 = vmatprep.subr.bf16.mxu1 %v39868_v19 }
 0xa40   :  { %30186 = vmatpush3.bf16.msra.mxu1 %v39975_v63  ;;  %v39994_v63 = vld [vmem:[#allocation47_spill] sm:$0xff] }
 0xa41   :  { %30187 = vmatprep.subr.bf16.mxu1 %v39868_v19 }
 0xa44   :  { %30189 = vmatpush3.bf16.msra.mxu1 %v39976_v44 }
 0xa45   :  { %30190 = vmatprep.subr.bf16.mxu1 %v39868_v19 }
 0xa48   :  { %30192 = vmatpush3.bf16.msra.mxu1 %v39977_v12 }
 0xa49   :  { %30193 = vmatprep.subr.bf16.mxu1 %v39868_v19 }
 0xa4c   :  { %30195 = vmatpush3.bf16.msra.mxu1 %v39978_v50 }
 0xa4d   :  { %30196 = vmatprep.subr.bf16.mxu1 %v39868_v19 }
 0xa50   :  { %30198 = vmatpush3.bf16.msra.mxu1 %v39979_v30  ;;  %v21393_v30 = vld [vmem:[%s39434_s10 + $0x1] ss:$0 sm:$0xff] }
 0xa51   :  { %30199 = vmatprep.subr.bf16.mxu1 %v39868_v19 }
 0xa54   :  { %30201 = vmatpush3.bf16.msra.mxu1 %v39980_v1 }
 0xa55   :  { %30202 = vmatprep.subr.bf16.mxu1 %v39868_v19 }
 0xa58   :  { %30204 = vmatpush3.bf16.msra.mxu1 %v39981_v51  ;;  %v21395_v51 = vld [vmem:[%s39435_s11 + $0x1] ss:$0 sm:$0xff] }
 0xa59   :  { %30229 = vmatprep.subr.bf16.mxu1 %v39868_v19 }
 0xb0e   :  { %v25404_v54 = vpop.f32.mrb[10].mxu1 }
 0xb0f   :  { %v5801_v8 = vpop.f32.mrb[11].mxu1 }
 0xb10   :  { %v5811_v13 = vmul.f32 %v5801_v8, %v5801_v8  ;;  %v5813_v42 = vsub.f32 %v35276_v17, %v5801_v8 }
 0xb12   :  { %v5812_v33 = vsub.f32 %v25404_v54, %v5811_v13 }
 0xb14   :  { %v5814_v4 = vadd.f32 1e-05, %v5812_v33  ;;  %v39988_v33 = vld [vmem:[#allocation41_spill] sm:$0xff] }
 0xb16   :  { %33045 = vrsqrt.f32 %v5814_v4  ;;  %v39989_v4 = vld [vmem:[#allocation42_spill] sm:$0xff] }
 0xb20   :  { %v33046_v39 = vpop.eup %33045 }
 0xb21   :  { %v5816_v1 = vmul.f32 %v33046_v39, %v5813_v42  ;;  %v39983_v42 = vld [vmem:[#allocation36_spill] sm:$0xff]  ;;  %v39990_v39 = vld [vmem:[#allocation43_spill] sm:$0xff] }
 0xb23   :  { %v5825_v50 = vmul.f32 %v21393_v30, %v5816_v1  ;;  %v39985_v30 = vld [vmem:[#allocation38_spill] sm:$0xff]  ;;  %v39986_v1 = vld [vmem:[#allocation39_spill] sm:$0xff] }
 0xb25   :  { %v35399_v12 = vadd.f32 %v21395_v51, %v5825_v50  ;;  %v39984_v50 = vld [vmem:[#allocation37_spill] sm:$0xff]  ;;  %v39987_v51 = vld [vmem:[#allocation40_spill] sm:$0xff] }
 0xb27   :  { %39982 = vst [vmem:[#allocation62_spill] sm:$0xff] %v35399_v12  ;;  %v35402_v44 = vand.u32 4294901760, %v35399_v12 }
 0xb29   :  { %25578 = vmatmul.mubr.f32.vlgmr.msra.gmra.mrb[12].mxu1 %v35402_v44  ;;  %v5919_v17 = vsub.f32 %v35399_v12, %v35402_v44  ;;  %v39993_v12 = vld [vmem:[#allocation46_spill] sm:$0xff] }
 0xb2a   :  { %25623 = vmatprep.mubr.msk.f32.mxu1 %vm33090_vm1, %v39869_v3 }
 0xb2b   :  { %v5920_v54 = vand.u32 4294901760, %v5919_v17 }
 0xb2d   :  { %v5921_v8 = vsub.f32 %v5919_v17, %v5920_v54 }
 0xb2f   :  { %v5922_v13 = vand.u32 4294901760, %v5921_v8  ;;  %v39991_v8 = vld [vmem:[#allocation44_spill] sm:$0xff] }
 0xb31   :  { %25438 = vmatmul.mubr.f32.vlgmr.msra.gmra.mrb[10].mxu0 %v5922_v13  ;;  %v39992_v13 = vld [vmem:[#allocation45_spill] sm:$0xff] }
 0xb32   :  { %30111 = vmatpush3.bf16.msra.mxu0 %v39983_v42  ;;  %25472 = vmatprep.mubr.msk.f32.mxu0 %vm33090_vm1, %v39869_v3 }
 0xb33   :  { %30112 = vmatprep.subr.bf16.mxu0 %v39868_v19 }
 0xb36   :  { %30114 = vmatpush3.bf16.msra.mxu0 %v39984_v50 }
 0xb37   :  { %30115 = vmatprep.subr.bf16.mxu0 %v39868_v19 }
 0xb3a   :  { %30117 = vmatpush3.bf16.msra.mxu0 %v39985_v30 }
 0xb3b   :  { %30118 = vmatprep.subr.bf16.mxu0 %v39868_v19 }
 0xb3e   :  { %30120 = vmatpush3.bf16.msra.mxu0 %v39986_v1 }
 0xb3f   :  { %30121 = vmatprep.subr.bf16.mxu0 %v39868_v19 }
 0xb42   :  { %30123 = vmatpush3.bf16.msra.mxu0 %v39987_v51 }
 0xb43   :  { %30124 = vmatprep.subr.bf16.mxu0 %v39868_v19 }
 0xb46   :  { %30126 = vmatpush3.bf16.msra.mxu0 %v39988_v33 }
 0xb47   :  { %30127 = vmatprep.subr.bf16.mxu0 %v39868_v19 }
 0xb4a   :  { %30129 = vmatpush3.bf16.msra.mxu0 %v39989_v4 }
 0xb4b   :  { %30130 = vmatprep.subr.bf16.mxu0 %v39868_v19 }
 0xb4e   :  { %30132 = vmatpush3.bf16.msra.mxu0 %v39990_v39  ;;  %v39997_v39 = vld [vmem:[#allocation50_spill] sm:$0xff] }
 0xb4f   :  { %30133 = vmatprep.subr.bf16.mxu0 %v39868_v19 }
 0xb51   :  { %25473 = vmatmul.mubr.f32.vlgmr.msra.gmra.mrb[12].mxu0 %v35402_v44 }
 0xb52   :  { %30135 = vmatpush3.bf16.msra.mxu0 %v39991_v8  ;;  %25507 = vmatprep.mubr.msk.f32.mxu0 %vm33090_vm1, %v39869_v3  ;;  %v39996_v8 = vld [vmem:[#allocation49_spill] sm:$0xff] }
 0xb53   :  { %30136 = vmatprep.subr.bf16.mxu0 %v39868_v19 }
 0xb56   :  { %30138 = vmatpush3.bf16.msra.mxu0 %v39992_v13  ;;  %v39998_v13 = vld [vmem:[#allocation51_spill] sm:$0xff] }
 0xb57   :  { %30139 = vmatprep.subr.bf16.mxu0 %v39868_v19 }
 0xb5a   :  { %30141 = vmatpush3.bf16.msra.mxu0 %v39993_v12 }
 0xb5b   :  { %30142 = vmatprep.subr.bf16.mxu0 %v39868_v19 }
 0xb5e   :  { %30144 = vmatpush3.bf16.msra.mxu0 %v39994_v63 }
 0xb5f   :  { %30145 = vmatprep.subr.bf16.mxu0 %v39868_v19 }
 0xb62   :  { %30147 = vmatpush3.bf16.msra.mxu0 %v39995_v35  ;;  %v94_v35 = vld [vmem:[%s39436_s14 + $0x8] sm:$0xff] }
 0xb63   :  { %30148 = vmatprep.subr.bf16.mxu0 %v39868_v19  ;;  %v6493_v12 = vand.u32 4294901760, %v94_v35 }
 0xb65   :  { %v6577_v33 = vsub.f32 %v94_v35, %v6493_v12 }
 0xb66   :  { %30150 = vmatpush3.bf16.msra.mxu0 %v39996_v8  ;;  %v93_v8 = vld [vmem:[%s39436_s14] sm:$0xff] }
 0xb67   :  { %30151 = vmatprep.subr.bf16.mxu0 %v39868_v19  ;;  %v6490_v63 = vand.u32 4294901760, %v93_v8  ;;  %v6578_v50 = vand.u32 4294901760, %v6577_v33 }
 0xb69   :  { %v35491_v4 = vpack.c.bf16 %v6493_v12, %v6490_v63  ;;  %v6579_v35 = vsub.f32 %v6577_v33, %v6578_v50 }
 0xb6a   :  { %30153 = vmatpush3.bf16.msra.mxu0 %v39997_v39 }
 0xb6b   :  { %30154 = vmatprep.subr.bf16.mxu0 %v39868_v19  ;;  %39999 = vst [vmem:[#allocation63_spill] sm:$0xff] %v35491_v4  ;;  %30231 = vmatpush3.bf16.msra.mxu1 %v35491_v4  ;;  %v6580_v58 = vand.u32 4294901760, %v6579_v35 }
 0xb6c   :  { %30232 = vmatprep.subr.bf16.mxu1 %v39868_v19 }
 0xb6e   :  { %30156 = vmatpush3.bf16.msra.mxu0 %v39998_v13 }
 0xb6f   :  { %30157 = vmatprep.subr.bf16.mxu0 %v39868_v19 }
 0xb71   :  { %25508 = vmatmul.mubr.f32.vlgmr.msra.gmra.mrb[14].mxu0 %v5919_v17 }
 0xb72   :  { %30159 = vmatpush3.bf16.msra.mxu0 %v34224_v10  ;;  %25542 = vmatprep.mubr.msk.f32.mxu0 %vm33090_vm1, %v39869_v3 }
 0xb73   :  { %30160 = vmatprep.subr.bf16.mxu0 %v39868_v19 }
 0xb76   :  { %30162 = vmatpush3.bf16.msra.mxu0 %v34234_v16 }
 0xb77   :  { %30163 = vmatprep.subr.bf16.mxu0 %v39868_v19 }
 0xb7a   :  { %30165 = vmatpush3.bf16.msra.mxu0 %v34244_v15 }
 0xb7b   :  { %30166 = vmatprep.subr.bf16.mxu0 %v39868_v19 }
 0xb7e   :  { %30168 = vmatpush3.bf16.msra.mxu0 %v34254_v47 }
 0xb7f   :  { %30169 = vmatprep.subr.bf16.mxu0 %v39868_v19 }
 0xb82   :  { %30171 = vmatpush3.bf16.msra.mxu0 %v34264_v40 }
 0xb83   :  { %30172 = vmatprep.subr.bf16.mxu0 %v39868_v19 }
 0xb86   :  { %30174 = vmatpush3.bf16.msra.mxu0 %v34280_v23 }
 0xb87   :  { %30175 = vmatprep.subr.bf16.mxu0 %v39868_v19 }
 0xb8a   :  { %30177 = vmatpush3.bf16.msra.mxu0 %v34300_v62 }
 0xb8b   :  { %30178 = vmatprep.subr.bf16.mxu0 %v39868_v19 }
 0xb8e   :  { %30180 = vmatpush3.bf16.msra.mxu0 %v34326_v37 }
 0xb8f   :  { %30205 = vmatprep.subr.bf16.mxu0 %v39868_v19 }
 0xb91   :  { %25543 = vmatmul.mubr.f32.vlgmr.msra.gmra.mrb[16].mxu0 %v5920_v54 }
 0xb92   :  { %30207 = vmatpush3.bf16.msra.mxu0 %v34224_v10  ;;  %25612 = vmatprep.mubr.msk.f32.mxu0 %vm33090_vm1, %v39869_v3 }
 0xb93   :  { %30208 = vmatprep.subr.bf16.mxu0 %v39868_v19 }
 0xb96   :  { %30210 = vmatpush3.bf16.msra.mxu0 %v34234_v16 }
 0xb97   :  { %30211 = vmatprep.subr.bf16.mxu0 %v39868_v19 }
 0xb9a   :  { %30213 = vmatpush3.bf16.msra.mxu0 %v34244_v15 }
 0xb9b   :  { %30214 = vmatprep.subr.bf16.mxu0 %v39868_v19 }
 0xb9e   :  { %30216 = vmatpush3.bf16.msra.mxu0 %v34254_v47 }
 0xb9f   :  { %30217 = vmatprep.subr.bf16.mxu0 %v39868_v19 }
 0xba2   :  { %30219 = vmatpush3.bf16.msra.mxu0 %v34264_v40 }
 0xba3   :  { %30220 = vmatprep.subr.bf16.mxu0 %v39868_v19 }
 0xba6   :  { %30222 = vmatpush3.bf16.msra.mxu0 %v34280_v23 }
 0xba7   :  { %30223 = vmatprep.subr.bf16.mxu0 %v39868_v19 }
 0xbaa   :  { %30225 = vmatpush3.bf16.msra.mxu0 %v34300_v62 }
 0xbab   :  { %30226 = vmatprep.subr.bf16.mxu0 %v39868_v19 }
 0xbae   :  { %30228 = vmatpush3.bf16.msra.mxu0 %v34326_v37 }
 0xbaf   :  { %30265 = vmatprep.subr.bf16.mxu0 %v39868_v19 }
 0xbb1   :  { %25613 = vmatmul.mubr.f32.vlgmr.msra.gmra.mrb[18].mxu0 %v35402_v44  ;;  %v6570_v44 = vsub.f32 %v93_v8, %v6490_v63 }
 0xbb2   :  { %25689 = vmatprep.mubr.msk.f32.mxu0 %vm33090_vm1, %v39869_v3 }
 0xbb3   :  { %v6571_v30 = vand.u32 4294901760, %v6570_v44  ;;  %v35509_v21 = vpack.c.bf16 %v6577_v33, %v6570_v44 }
 0xbb5   :  { %v6572_v63 = vsub.f32 %v6570_v44, %v6571_v30  ;;  %40003 = vst [vmem:[#allocation67_spill] sm:$0xff] %v35509_v21  ;;  %v40007_v44 = vld [vmem:[#allocation61_spill] sm:$0xff] }
 0xbb7   :  { %v6573_v57 = vand.u32 4294901760, %v6572_v63  ;;  %v35513_v63 = vpack.c.bf16 %v6578_v50, %v6571_v30 }
 0xbb9   :  { %v35505_v18 = vpack.c.bf16 %v6580_v58, %v6573_v57  ;;  %40005 = vst [vmem:[#allocation69_spill] sm:$0xff] %v35513_v63 }
 0xbbb   :  { %40001 = vst [vmem:[#allocation65_spill] sm:$0xff] %v35505_v18 }
 0xbfc   :  { %v6387_v17 = vpop.f32.mrb[12].mxu1 }
 0xbfd   :  { %v25579_v54 = vpop.f32.mrb[13].mxu1 }
 0xbfe   :  { %v95_v54 = vld [vmem:[%s39436_s14 + $0x10] sm:$0xff] }
 0xbff   :  { %v6496_v51 = vand.u32 4294901760, %v95_v54 }
 0xc01   :  { %v6584_v12 = vsub.f32 %v95_v54, %v6496_v51 }
 0xc03   :  { %v6585_v56 = vand.u32 4294901760, %v6584_v12 }
 0xc04   :  { %v5924_v13 = vpop.f32.mrb[10].mxu0 }
 0xc05   :  { %v25439_v39 = vpop.f32.mrb[11].mxu0  ;;  %v6586_v28 = vsub.f32 %v6584_v12, %v6585_v56 }
 0xc06   :  { %v96_v39 = vld [vmem:[%s39436_s14 + $0x18] sm:$0xff] }
 0xc07   :  { %v6499_v1 = vand.u32 4294901760, %v96_v39  ;;  %v6587_v55 = vand.u32 4294901760, %v6586_v28 }
 0xc09   :  { %v35501_v42 = vpack.c.bf16 %v6499_v1, %v6496_v51  ;;  %v6591_v8 = vsub.f32 %v96_v39, %v6499_v1 }
 0xc0b   :  { %40000 = vst [vmem:[#allocation64_spill] sm:$0xff] %v35501_v42  ;;  %30234 = vmatpush3.bf16.msra.mxu1 %v35501_v42  ;;  %v6592_v45 = vand.u32 4294901760, %v6591_v8  ;;  %v35511_v51 = vpack.c.bf16 %v6591_v8, %v6584_v12 }
 0xc0c   :  { %30235 = vmatprep.subr.bf16.mxu1 %v39868_v19 }
 0xc0d   :  { %v6593_v26 = vsub.f32 %v6591_v8, %v6592_v45  ;;  %40004 = vst [vmem:[#allocation68_spill] sm:$0xff] %v35511_v51  ;;  %v35515_v35 = vpack.c.bf16 %v6592_v45, %v6585_v56 }
 0xc0f   :  { %v6594_v46 = vand.u32 4294901760, %v6593_v26  ;;  %40006 = vst [vmem:[#allocation70_spill] sm:$0xff] %v35515_v35 }
 0xc11   :  { %v35507_v7 = vpack.c.bf16 %v6594_v46, %v6587_v55 }
 0xc13   :  { %40002 = vst [vmem:[#allocation66_spill] sm:$0xff] %v35507_v7 }
 0xc24   :  { %v6075_v1 = vpop.f32.mrb[12].mxu0 }
 0xc25   :  { %v6076_v54 = vadd.f32 %v6075_v1, %v5924_v13  ;;  %v25474_v39 = vpop.f32.mrb[13].mxu0 }
 0xc44   :  { %v6179_v24 = vpop.f32.mrb[14].mxu0 }
 0xc45   :  { %v6180_v58 = vadd.f32 %v6179_v24, %v6076_v54  ;;  %v25509_v57 = vpop.f32.mrb[15].mxu0  ;;  %v21405_v24 = vld [vmem:[%s39426_s0 + $0x8] sm:$0xff] }
 0xc46   :  { %v7194_v54 = vsel %vm103_vm0, %v21405_v24, 0 }
 0xc47   :  { %v35544_v39 = vand.u32 4294901760, %v7194_v54 }
 0xc64   :  { %v6268_v6 = vpop.f32.mrb[16].mxu0 }
 0xc65   :  { %v6269_v11 = vadd.f32 %v6268_v6, %v6180_v58  ;;  %v25544_v28 = vpop.f32.mrb[17].mxu0  ;;  %v7190_v6 = vld [vmem:[%s39829_s23 + $0x8] sm:$0xff] }
 0xc66   :  { %v7200_v1 = vand.u32 4294901760, %v7190_v6 }
 0xc67   :  { %v6388_v26 = vadd.f32 %v6387_v17, %v6269_v11  ;;  %v7189_v11 = vld [vmem:[%s39829_s23] sm:$0xff] }
 0xc68   :  { %v7197_v17 = vand.u32 4294901760, %v7189_v11  ;;  %v35551_v28 = vsub.f32 %v7190_v6, %v7200_v1 }
 0xc6a   :  { %v35547_v58 = vpack.c.bf16 %v7200_v1, %v7197_v17  ;;  %v35549_v57 = vsub.f32 %v7189_v11, %v7197_v17 }
 0xc6c   :  { %30267 = vmatpush3.bf16.msra.mxu0 %v35547_v58 }
 0xc6d   :  { %30268 = vmatprep.subr.bf16.mxu0 %v39868_v19 }
 0xc84   :  { %v6474_v46 = vpop.f32.mrb[18].mxu0 }
 0xc85   :  { %v6475_v55 = vadd.f32 %v6474_v46, %v6388_v26  ;;  %v25614_v33 = vpop.f32.mrb[19].mxu0  ;;  %v7191_v26 = vld [vmem:[%s39829_s23 + $0x10] sm:$0xff]  ;;  %v7192_v46 = vld [vmem:[%s39829_s23 + $0x18] sm:$0xff] }
 0xc86   :  { %v7203_v33 = vand.u32 4294901760, %v7191_v26 }
 0xc87   :  { %v6478_v12 = vadd.f32 %v6475_v55, %v40007_v44  ;;  %v35560_v55 = vsub.f32 %v7194_v54, %v35544_v39  ;;  %v7206_v44 = vand.u32 4294901760, %v7192_v46 }
 0xc89   :  { %v6487_v8 = vsel %vm103_vm0, %v6478_v12, 0  ;;  %v39624_v12 = vand.u32 4294901760, %v35549_v57  ;;  %v35575_v11 = vsub.f32 %v7192_v46, %v7206_v44 }
 0xc8a   :  { %v35519_v13 = vand.u32 4294901760, %v6487_v8 }
 0xc8b   :  { %v7279_v24 = vsub.f32 %v35549_v57, %v39624_v12  ;;  %v39627_v54 = vand.u32 4294901760, %v35575_v11 }
 0xc8c   :  { %v6559_v50 = vsub.f32 %v6487_v8, %v35519_v13  ;;  %v39623_v8 = vand.u32 4294901760, %v35551_v28 }
 0xc8d   :  { %v7280_v46 = vand.u32 4294901760, %v7279_v24  ;;  %v35630_v24 = vld [vmem:[%s39427_s5 + $0x10] sm:$0xff] }
 0xc8e   :  { %v6560_v45 = vand.u32 4294901760, %v6559_v50  ;;  %v7286_v17 = vsub.f32 %v35551_v28, %v39623_v8 }
 0xc90   :  { %v6561_v56 = vsub.f32 %v6559_v50, %v6560_v45 }
 0xc92   :  { %v6562_v30 = vand.u32 4294901760, %v6561_v56  ;;  %v39622_v56 = vand.u32 4294901760, %v35560_v55 }
 0xc94   :  { %25624 = vmatmul.mubr.f32.vlgmr.msra.gmra.mrb[14].mxu1 %v6562_v30  ;;  %v35573_v30 = vsub.f32 %v7191_v26, %v7203_v33  ;;  %v7268_v6 = vsub.f32 %v35560_v55, %v39622_v56  ;;  %v7300_v56 = vsub.f32 %v35575_v11, %v39627_v54 }
 0xc95   :  { %30237 = vmatpush3.bf16.msra.mxu1 %v35505_v18  ;;  %25634 = vmatprep.mubr.msk.f32.mxu1 %vm33090_vm1, %v39869_v3  ;;  %v35695_v18 = vld [vmem:[%s39427_s5 + $0x40] sm:$0xff] }
 0xc96   :  { %30238 = vmatprep.subr.bf16.mxu1 %v39868_v19  ;;  %v39628_v1 = vand.u32 4294901760, %v35573_v30  ;;  %v7269_v26 = vand.u32 4294901760, %v7268_v6  ;;  %v39653_v61 = vand.u32 4294901760, %v35695_v18 }
 0xc99   :  { %30240 = vmatpush3.bf16.msra.mxu1 %v35507_v7  ;;  %v40008_v7 = vand.u32 4294901760, %v35549_v57 }
 0xc9a   :  { %30241 = vmatprep.subr.bf16.mxu1 %v39868_v19 }
 0xc9c   :  { %25635 = vmatmul.mubr.f32.vlgmr.msra.gmra.mrb[14].mxu1 %v35519_v13 }
 0xc9d   :  { %30243 = vmatpush3.bf16.msra.mxu1 %v35509_v21  ;;  %25645 = vmatprep.mubr.msk.f32.mxu1 %vm33090_vm1, %v39869_v3 }
 0xc9e   :  { %30244 = vmatprep.subr.bf16.mxu1 %v39868_v19 }
 0xca1   :  { %30246 = vmatpush3.bf16.msra.mxu1 %v35511_v51  ;;  %v7301_v51 = vand.u32 4294901760, %v7300_v56  ;;  %v35615_v56 = vld [vmem:[%s39427_s5 + $0x8] sm:$0xff] }
 0xca2   :  { %30247 = vmatprep.subr.bf16.mxu1 %v39868_v19 }
 0xca4   :  { %25646 = vmatmul.mubr.f32.vlgmr.msra.gmra.mrb[14].mxu1 %v6559_v50  ;;  %v35571_v50 = vpack.c.bf16 %v7206_v44, %v7203_v33  ;;  %v7287_v33 = vand.u32 4294901760, %v7286_v17  ;;  %v7293_v44 = vsub.f32 %v35573_v30, %v39628_v1  ;;  %v35635_v17 = vld [vmem:[%s39427_s5 + $0x18] sm:$0xff] }
 0xca5   :  { %30249 = vmatpush3.bf16.msra.mxu1 %v35491_v4  ;;  %25656 = vmatprep.mubr.msk.f32.mxu1 %vm33090_vm1, %v39869_v3 }
 0xca6   :  { %30250 = vmatprep.subr.bf16.mxu1 %v39868_v19  ;;  %30270 = vmatpush3.bf16.msra.mxu0 %v35571_v50  ;;  %v30272_v8 = vpack.c.bf16 %v7287_v33, %v7280_v46  ;;  %v7294_v12 = vand.u32 4294901760, %v7293_v44  ;;  %v7705_v33 = vand.u32 4294901760, %v35630_v24  ;;  %v7708_v44 = vand.u32 4294901760, %v35635_v17 }
 0xca7   :  { %30271 = vmatprep.subr.bf16.mxu0 %v39868_v19 }
 0xca8   :  { %v30275_v6 = vpack.c.bf16 %v7301_v51, %v7294_v12  ;;  %v30278_v51 = vpack.c.bf16 %v35551_v28, %v35549_v57  ;;  %v35662_v54 = vpack.c.bf16 %v7708_v44, %v7705_v33  ;;  %v40013_v57 = vand.u32 4294901760, %v35573_v30 }
 0xca9   :  { %30252 = vmatpush3.bf16.msra.mxu1 %v35501_v42  ;;  %25690 = vmatmul.mubr.f32.vlgmr.msra.gmra.mrb[20].mxu0 %v7269_v26  ;;  %v30281_v26 = vpack.c.bf16 %v35575_v11, %v35573_v30 }
 0xcaa   :  { %30253 = vmatprep.subr.bf16.mxu1 %v39868_v19  ;;  %25700 = vmatprep.mubr.msk.f32.mxu0 %vm33090_vm1, %v39869_v3 }
 0xcab   :  { %30273 = vmatpush3.bf16.msra.mxu0 %v30272_v8  ;;  %v7702_v8 = vand.u32 4294901760, %v35615_v56 }
 0xcac   :  { %25657 = vmatmul.mubr.f32.vlgmr.msra.gmra.mrb[14].mxu1 %v6560_v45  ;;  %30274 = vmatprep.subr.bf16.mxu0 %v39868_v19  ;;  %v35610_v45 = vld [vmem:[%s39427_s5] sm:$0xff] }
 0xcad   :  { %30255 = vmatpush3.bf16.msra.mxu1 %v35513_v63  ;;  %25667 = vmatprep.mubr.msk.f32.mxu1 %vm33090_vm1, %v39869_v3  ;;  %v7699_v12 = vand.u32 4294901760, %v35610_v45  ;;  %v35742_v36 = vsub.f32 %v35615_v56, %v7702_v8  ;;  %v35765_v56 = vld [vmem:[%s39427_s5 + $0x68] sm:$0xff] }
 0xcae   :  { %30256 = vmatprep.subr.bf16.mxu1 %v39868_v19 }
 0xcaf   :  { %30276 = vmatpush3.bf16.msra.mxu0 %v30275_v6  ;;  %v35644_v46 = vpack.c.bf16 %v7702_v8, %v7699_v12  ;;  %v35652_v6 = vld [vmem:[%s39427_s5 + $0x20] sm:$0xff]  ;;  %v35771_v8 = vsub.f32 %v35635_v17, %v7708_v44  ;;  %v35789_v17 = vld [vmem:[%s39427_s5 + $0x70] sm:$0xff]  ;;  %v35794_v44 = vld [vmem:[%s39427_s5 + $0x78] sm:$0xff] }
 0xcb0   :  { %30277 = vmatprep.subr.bf16.mxu0 %v39868_v19  ;;  %v7711_v1 = vand.u32 4294901760, %v35652_v6 }
 0xcb1   :  { %30258 = vmatpush3.bf16.msra.mxu1 %v35515_v35 }
 0xcb2   :  { %30259 = vmatprep.subr.bf16.mxu1 %v39868_v19  ;;  %25701 = vmatmul.mubr.f32.vlgmr.msra.gmra.mrb[20].mxu0 %v35544_v39 }
 0xcb3   :  { %30279 = vmatpush3.bf16.msra.mxu0 %v30278_v51  ;;  %25711 = vmatprep.mubr.msk.f32.mxu0 %vm33090_vm1, %v39869_v3  ;;  %v35657_v51 = vld [vmem:[%s39427_s5 + $0x28] sm:$0xff] }
 0xcb4   :  { %25668 = vmatmul.mubr.f32.vlgmr.msra.gmra.mrb[14].mxu1 %v35519_v13  ;;  %30280 = vmatprep.subr.bf16.mxu0 %v39868_v19  ;;  %v39641_v35 = vand.u32 4294901760, %v35657_v51 }
 0xcb5   :  { %30261 = vmatpush3.bf16.msra.mxu1 %v35491_v4  ;;  %25678 = vmatprep.mubr.msk.f32.mxu1 %vm33090_vm1, %v39869_v3  ;;  %v40009_v4 = vand.u32 4294901760, %v35551_v28  ;;  %v35739_v28 = vsub.f32 %v35610_v45, %v7699_v12  ;;  %v35760_v45 = vld [vmem:[%s39427_s5 + $0x60] sm:$0xff]  ;;  %v35768_v12 = vsub.f32 %v35630_v24, %v7705_v33 }
 0xcb6   :  { %30262 = vmatprep.subr.bf16.mxu1 %v39868_v19  ;;  %v35687_v63 = vpack.c.bf16 %v39641_v35, %v7711_v1  ;;  %v21355_v35 = vld [vmem:[%s39437_s15] ss:$0 sm:$0xff]  ;;  %v39658_v24 = vand.u32 4294901760, %v35760_v45 }
 0xcb7   :  { %30282 = vmatpush3.bf16.msra.mxu0 %v30281_v26  ;;  %v35672_v26 = vld [vmem:[%s39427_s5 + $0x30] sm:$0xff]  ;;  %v30290_v43 = vpack.c.bf16 %v40009_v4, %v40008_v7  ;;  %v2645_v52 = vsub.f32 %v40011_v22, %v21355_v35  ;;  %v35728_v4 = vld [vmem:[%s39427_s5 + $0x58] sm:$0xff]  ;;  %v40014_v22 = vand.u32 4294901760, %v35575_v11  ;;  %v40018_v31 = vand.u32 4294901760, %v35768_v12 }
 0xcb8   :  { %30283 = vmatprep.subr.bf16.mxu0 %v39868_v19  ;;  %v7717_v21 = vand.u32 4294901760, %v35672_v26  ;;  %v35723_v7 = vld [vmem:[%s39427_s5 + $0x50] sm:$0xff]  ;;  %v39651_v11 = vand.u32 4294901760, %v35728_v4 }
 0xcb9   :  { %30264 = vmatpush3.bf16.msra.mxu1 %v35501_v42  ;;  %v35700_v42 = vld [vmem:[%s39427_s5 + $0x48] sm:$0xff]  ;;  %v30293_v35 = vpack.c.bf16 %v40014_v22, %v40013_v57  ;;  %v39652_v30 = vand.u32 4294901760, %v35723_v7  ;;  %v39654_v57 = vand.u32 4294901760, %v35739_v28  ;;  %v39655_v22 = vand.u32 4294901760, %v35742_v36 }
 0xcba   :  { %30301 = vmatprep.subr.bf16.mxu1 %v39868_v19  ;;  %25712 = vmatmul.mubr.f32.vlgmr.msra.gmra.mrb[20].mxu0 %v35560_v55  ;;  %v35832_v25 = vsub.f32 %v35672_v26, %v7717_v21 }
 0xcbb   :  { %30285 = vmatpush3.bf16.msra.mxu0 %v35547_v58  ;;  %25722 = vmatprep.mubr.msk.f32.mxu0 %vm33090_vm1, %v39869_v3 }
 0xcbc   :  { %25679 = vmatmul.mubr.f32.vlgmr.msra.gmra.mrb[14].mxu1 %v35519_v13  ;;  %v35677_v13 = vld [vmem:[%s39427_s5 + $0x38] sm:$0xff]  ;;  %30286 = vmatprep.subr.bf16.mxu0 %v39868_v19  ;;  %v39666_v14 = vand.u32 4294901760, %v35832_v25 }
 0xcbd   :  { %30303 = vmatpush3.bf16.msra.mxu1 %v35644_v46  ;;  %25779 = vmatprep.mubr.msk.f32.mxu1 %vm33090_vm1, %v39869_v3  ;;  %v40010_v29 = vand.u32 4294901760, %v35677_v13  ;;  %v40020_v5 = vand.u32 4294901760, %v35677_v13 }
 0xcbe   :  { %30304 = vmatprep.subr.bf16.mxu1 %v39868_v19  ;;  %v7835_v49 = vsub.f32 %v35832_v25, %v39666_v14 }
 0xcbf   :  { %30288 = vmatpush3.bf16.msra.mxu0 %v35571_v50  ;;  %v35714_v27 = vpack.c.bf16 %v40010_v29, %v7717_v21  ;;  %v40012_v29 = vand.u32 4294901760, %v35560_v55  ;;  %v35845_v33 = vsub.f32 %v35677_v13, %v40020_v5  ;;  %v40023_v13 = vand.u32 4294901760, %v35700_v42 }
 0xcc0   :  { %30289 = vmatprep.subr.bf16.mxu0 %v39868_v19 }
 0xcc1   :  { %30306 = vmatpush3.bf16.msra.mxu1 %v35662_v54 }
 0xcc2   :  { %30307 = vmatprep.subr.bf16.mxu1 %v39868_v19  ;;  %25723 = vmatmul.mubr.f32.vlgmr.msra.gmra.mrb[20].mxu0 %v40012_v29  ;;  %v35754_v29 = vand.u32 4294901760, %v2645_v52 }
 0xcc3   :  { %30291 = vmatpush3.bf16.msra.mxu0 %v30290_v43  ;;  %25733 = vmatprep.mubr.msk.f32.mxu0 %vm33090_vm1, %v39869_v3  ;;  %v40015_v43 = vand.u32 4294901760, %v35700_v42 }
 0xcc4   :  { %30292 = vmatprep.subr.bf16.mxu0 %v39868_v19 }
 0xcc5   :  { %30309 = vmatpush3.bf16.msra.mxu1 %v35687_v63  ;;  %v35750_v55 = vpack.c.bf16 %v40015_v43, %v39653_v61  ;;  %v35781_v43 = vpack.c.bf16 %v39651_v11, %v39652_v30  ;;  %v35801_v11 = vsub.f32 %v35652_v6, %v7711_v1  ;;  %v7793_v30 = vsub.f32 %v35739_v28, %v39654_v57 }
 0xcc6   :  { %30310 = vmatprep.subr.bf16.mxu1 %v39868_v19  ;;  %v7800_v61 = vsub.f32 %v35742_v36, %v39655_v22  ;;  %v40016_v1 = vand.u32 4294901760, %v35657_v51  ;;  %v40017_v6 = vand.u32 4294901760, %v35765_v56  ;;  %v7741_v22 = vand.u32 4294901760, %v35789_v17 }
 0xcc7   :  { %30294 = vmatpush3.bf16.msra.mxu0 %v30293_v35  ;;  %v35797_v35 = vsub.f32 %v2645_v52, %v35754_v29  ;;  %v7744_v52 = vand.u32 4294901760, %v35794_v44 }
 0xcc8   :  { %30295 = vmatprep.subr.bf16.mxu0 %v39868_v19  ;;  %v35825_v57 = vpack.c.bf16 %v40017_v6, %v39658_v24  ;;  %v7807_v6 = vsub.f32 %v35768_v12, %v40018_v31  ;;  %v40019_v24 = vand.u32 4294901760, %v35771_v8 }
 0xcc9   :  { %30312 = vmatpush3.bf16.msra.mxu1 %v35714_v27  ;;  %v35848_v21 = vpack.c.bf16 %v7744_v52, %v7741_v22  ;;  %v40021_v31 = vand.u32 4294901760, %v35797_v35 }
 0xcca   :  { %30313 = vmatprep.subr.bf16.mxu1 %v39868_v19  ;;  %25734 = vmatmul.mubr.f32.vlgmr.msra.gmra.mrb[20].mxu0 %v35544_v39  ;;  %v7814_v48 = vsub.f32 %v35771_v8, %v40019_v24  ;;  %v35867_v24 = vsub.f32 %v35700_v42, %v40023_v13  ;;  %v40026_v42 = vand.u32 4294901760, %v35723_v7 }
 0xccb   :  { %30297 = vmatpush3.bf16.msra.mxu0 %v35547_v58  ;;  %25744 = vmatprep.mubr.msk.f32.mxu0 %vm33090_vm1, %v39869_v3  ;;  %v35818_v58 = vsub.f32 %v35657_v51, %v40016_v1  ;;  %v7794_v51 = vand.u32 4294901760, %v7793_v30  ;;  %v7801_v1 = vand.u32 4294901760, %v7800_v61  ;;  %v7782_v26 = vsub.f32 %v35797_v35, %v40021_v31 }
 0xccc   :  { %30298 = vmatprep.subr.bf16.mxu0 %v39868_v19  ;;  %v40022_v30 = vand.u32 4294901760, %v35695_v18  ;;  %v7808_v61 = vand.u32 4294901760, %v7807_v6  ;;  %v7815_v34 = vand.u32 4294901760, %v7814_v48  ;;  %v35882_v48 = vsub.f32 %v35723_v7, %v40026_v42 }
 0xccd   :  { %30315 = vmatpush3.bf16.msra.mxu1 %v35750_v55  ;;  %v7783_v20 = vand.u32 4294901760, %v7782_v26  ;;  %v40028_v7 = vand.u32 4294901760, %v35845_v33 }
 0xcce   :  { %30316 = vmatprep.subr.bf16.mxu1 %v39868_v19  ;;  %v35860_v5 = vsub.f32 %v35695_v18, %v40022_v30  ;;  %v40025_v18 = vand.u32 4294901760, %v35818_v58  ;;  %v30329_v6 = vpack.c.bf16 %v7815_v34, %v7808_v61 }
 0xccf   :  { %30300 = vmatpush3.bf16.msra.mxu0 %v35571_v50  ;;  %v30326_v50 = vpack.c.bf16 %v7801_v1, %v7794_v51  ;;  %v40027_v51 = vand.u32 4294901760, %v35728_v4  ;;  %v7842_v42 = vsub.f32 %v35845_v33, %v40028_v7  ;;  %v7836_v7 = vand.u32 4294901760, %v7835_v49 }
 0xcd0   :  { %30445 = vmatprep.subr.bf16.mxu0 %v39868_v19  ;;  %v7828_v30 = vsub.f32 %v35818_v58, %v40025_v18  ;;  %v39665_v13 = vand.u32 4294901760, %v35860_v5 }
 0xcd1   :  { %30318 = vmatpush3.bf16.msra.mxu1 %v35781_v43  ;;  %v35887_v1 = vsub.f32 %v35728_v4, %v40027_v51 }
 0xcd2   :  { %30319 = vmatprep.subr.bf16.mxu1 %v39868_v19  ;;  %25745 = vmatmul.mubr.f32.vlgmr.msra.gmra.mrb[20].mxu0 %v35544_v39  ;;  %v40024_v39 = vand.u32 4294901760, %v35801_v11  ;;  %v7829_v18 = vand.u32 4294901760, %v7828_v30  ;;  %v7849_v4 = vsub.f32 %v35860_v5, %v39665_v13  ;;  %v40030_v30 = vand.u32 4294901760, %v35765_v56 }
 0xcd3   :  { %25973 = vmatprep.mubr.msk.f32.mxu0 %vm33090_vm1, %v39869_v3  ;;  %v35920_v13 = vsub.f32 %v35789_v17, %v7741_v22  ;;  %v40031_v38 = vand.u32 4294901760, %v35887_v1 }
 0xcd4   :  { %v7821_v31 = vsub.f32 %v35801_v11, %v40024_v39  ;;  %v39667_v39 = vand.u32 4294901760, %v35867_v24  ;;  %v35916_v51 = vsub.f32 %v35765_v56, %v40030_v30  ;;  %v7850_v14 = vand.u32 4294901760, %v7849_v4 }
 0xcd5   :  { %30321 = vmatpush3.bf16.msra.mxu1 %v35825_v57  ;;  %v7870_v56 = vsub.f32 %v35887_v1, %v40031_v38 }
 0xcd6   :  { %30322 = vmatprep.subr.bf16.mxu1 %v39868_v19  ;;  %v7822_v26 = vand.u32 4294901760, %v7821_v31  ;;  %v7856_v61 = vsub.f32 %v35867_v24, %v39667_v39  ;;  %v7883_v22 = vand.u32 4294901760, %v35916_v51 }
 0xcd8   :  { %v7857_v39 = vand.u32 4294901760, %v7856_v61  ;;  %v7884_v38 = vsub.f32 %v35916_v51, %v7883_v22 }
 0xcd9   :  { %30324 = vmatpush3.bf16.msra.mxu1 %v35848_v21 }
 0xcda   :  { %30325 = vmatprep.subr.bf16.mxu1 %v39868_v19  ;;  %v30338_v17 = vpack.c.bf16 %v7857_v39, %v7850_v14  ;;  %v7885_v39 = vand.u32 4294901760, %v7884_v38  ;;  %v30365_v38 = vpack.c.bf16 %v35887_v1, %v35882_v48 }
 0xcdc   :  { %25780 = vmatmul.mubr.f32.vlgmr.msra.gmra.mrb[16].mxu1 %v7783_v20  ;;  %v40029_v20 = vand.u32 4294901760, %v35760_v45 }
 0xcdd   :  { %30327 = vmatpush3.bf16.msra.mxu1 %v30326_v50  ;;  %25814 = vmatprep.mubr.msk.f32.mxu1 %vm33090_vm1, %v39869_v3  ;;  %v7862_v50 = vand.u32 4294901760, %v35882_v48 }
 0xcde   :  { %30328 = vmatprep.subr.bf16.mxu1 %v39868_v19  ;;  %v35903_v34 = vsub.f32 %v35760_v45, %v40029_v20  ;;  %v30332_v45 = vpack.c.bf16 %v7829_v18, %v7822_v26  ;;  %v7843_v20 = vand.u32 4294901760, %v7842_v42  ;;  %v7871_v42 = vand.u32 4294901760, %v7870_v56 }
 0xcdf   :  { %v7863_v31 = vsub.f32 %v35882_v48, %v7862_v50 }
 0xce0   :  { %v30335_v49 = vpack.c.bf16 %v7843_v20, %v7836_v7  ;;  %v7876_v26 = vand.u32 4294901760, %v35903_v34 }
 0xce1   :  { %30330 = vmatpush3.bf16.msra.mxu1 %v30329_v6  ;;  %v35929_v6 = vsub.f32 %v35794_v44, %v7744_v52  ;;  %v7864_v18 = vand.u32 4294901760, %v7863_v31  ;;  %v7890_v44 = vand.u32 4294901760, %v35920_v13 }
 0xce2   :  { %30331 = vmatprep.subr.bf16.mxu1 %v39868_v19  ;;  %v7877_v4 = vsub.f32 %v35903_v34, %v7876_v26 }
 0xce3   :  { %v7897_v52 = vand.u32 4294901760, %v35929_v6  ;;  %v30341_v61 = vpack.c.bf16 %v7871_v42, %v7864_v18  ;;  %v7891_v31 = vsub.f32 %v35920_v13, %v7890_v44  ;;  %v30356_v18 = vpack.c.bf16 %v35818_v58, %v35801_v11 }
 0xce4   :  { %v7878_v14 = vand.u32 4294901760, %v7877_v4  ;;  %v30359_v42 = vpack.c.bf16 %v35845_v33, %v35832_v25  ;;  %v30362_v4 = vpack.c.bf16 %v35867_v24, %v35860_v5 }
 0xce5   :  { %30333 = vmatpush3.bf16.msra.mxu1 %v30332_v45  ;;  %v7898_v30 = vsub.f32 %v35929_v6, %v7897_v52  ;;  %v7892_v7 = vand.u32 4294901760, %v7891_v31  ;;  %v40033_v31 = vand.u32 4294901760, %v35742_v36 }
 0xce6   :  { %30334 = vmatprep.subr.bf16.mxu1 %v39868_v19  ;;  %v30344_v45 = vpack.c.bf16 %v7885_v39, %v7878_v14  ;;  %v30371_v14 = vpack.c.bf16 %v35929_v6, %v35920_v13  ;;  %v40032_v39 = vand.u32 4294901760, %v35739_v28 }
 0xce7   :  { %v7899_v20 = vand.u32 4294901760, %v7898_v30 }
 0xce8   :  { %v30398_v30 = vpack.c.bf16 %v40033_v31, %v40032_v39 }
 0xce9   :  { %30336 = vmatpush3.bf16.msra.mxu1 %v30335_v49  ;;  %v30347_v56 = vpack.c.bf16 %v7899_v20, %v7892_v7  ;;  %v30350_v49 = vpack.c.bf16 %v35742_v36, %v35739_v28  ;;  %v40035_v7 = vand.u32 4294901760, %v35768_v12  ;;  %v40036_v20 = vand.u32 4294901760, %v35771_v8 }
 0xcea   :  { %30337 = vmatprep.subr.bf16.mxu1 %v39868_v19  ;;  %v40037_v36 = vand.u32 4294901760, %v35801_v11  ;;  %v40038_v28 = vand.u32 4294901760, %v35818_v58  ;;  %v40043_v11 = vand.u32 4294901760, %v35887_v1 }
 0xcec   :  { %v30413_v58 = vpack.c.bf16 %v40043_v11, %v7862_v50 }
 0xced   :  { %30339 = vmatpush3.bf16.msra.mxu1 %v30338_v17  ;;  %v30353_v17 = vpack.c.bf16 %v35771_v8, %v35768_v12  ;;  %v40040_v12 = vand.u32 4294901760, %v35845_v33  ;;  %v30419_v33 = vpack.c.bf16 %v7897_v52, %v7890_v44 }
 0xcee   :  { %30340 = vmatprep.subr.bf16.mxu1 %v39868_v19 }
 0xcf1   :  { %30342 = vmatpush3.bf16.msra.mxu1 %v30341_v61  ;;  %v30368_v61 = vpack.c.bf16 %v35916_v51, %v35903_v34 }
 0xcf2   :  { %30343 = vmatprep.subr.bf16.mxu1 %v39868_v19 }
 0xcf5   :  { %30345 = vmatpush3.bf16.msra.mxu1 %v30344_v45  ;;  %v40034_v45 = vand.u32 4294901760, %v35797_v35 }
 0xcf6   :  { %30346 = vmatprep.subr.bf16.mxu1 %v39868_v19 }
 0xcf9   :  { %30348 = vmatpush3.bf16.msra.mxu1 %v30347_v56  ;;  %v30401_v56 = vpack.c.bf16 %v40036_v20, %v40035_v7 }
 0xcfa   :  { %30349 = vmatprep.subr.bf16.mxu1 %v39868_v19 }
 0xcfc   :  { %25815 = vmatmul.mubr.f32.vlgmr.msra.gmra.mrb[16].mxu1 %v35754_v29 }
 0xcfd   :  { %30351 = vmatpush3.bf16.msra.mxu1 %v30350_v49  ;;  %25849 = vmatprep.mubr.msk.f32.mxu1 %vm33090_vm1, %v39869_v3  ;;  %v30404_v49 = vpack.c.bf16 %v40038_v28, %v40037_v36 }
 0xcfe   :  { %30352 = vmatprep.subr.bf16.mxu1 %v39868_v19 }
 0xd01   :  { %30354 = vmatpush3.bf16.msra.mxu1 %v30353_v17  ;;  %v40041_v17 = vand.u32 4294901760, %v35860_v5 }
 0xd02   :  { %30355 = vmatprep.subr.bf16.mxu1 %v39868_v19 }
 0xd05   :  { %30357 = vmatpush3.bf16.msra.mxu1 %v30356_v18  ;;  %v40042_v18 = vand.u32 4294901760, %v35867_v24 }
 0xd06   :  { %30358 = vmatprep.subr.bf16.mxu1 %v39868_v19 }
 0xd09   :  { %30360 = vmatpush3.bf16.msra.mxu1 %v30359_v42  ;;  %v30410_v42 = vpack.c.bf16 %v40042_v18, %v40041_v17 }
 0xd0a   :  { %30361 = vmatprep.subr.bf16.mxu1 %v39868_v19 }
 0xd0d   :  { %30363 = vmatpush3.bf16.msra.mxu1 %v30362_v4 }
 0xd0e   :  { %30364 = vmatprep.subr.bf16.mxu1 %v39868_v19 }
 0xd11   :  { %30366 = vmatpush3.bf16.msra.mxu1 %v30365_v38  ;;  %v40044_v38 = vmov 1326507024  }
 0xd12   :  { %30367 = vmatprep.subr.bf16.mxu1 %v39868_v19 }
 0xd15   :  { %30369 = vmatpush3.bf16.msra.mxu1 %v30368_v61 }
 0xd16   :  { %30370 = vmatprep.subr.bf16.mxu1 %v39868_v19 }
 0xd19   :  { %30372 = vmatpush3.bf16.msra.mxu1 %v30371_v14 }
 0xd1a   :  { %30373 = vmatprep.subr.bf16.mxu1 %v39868_v19 }
 0xd1c   :  { %25850 = vmatmul.mubr.f32.vlgmr.msra.gmra.mrb[16].mxu1 %v35797_v35  ;;  %v40039_v35 = vand.u32 4294901760, %v35832_v25  ;;  %v30416_v25 = vpack.c.bf16 %v7883_v22, %v7876_v26 }
 0xd1d   :  { %30375 = vmatpush3.bf16.msra.mxu1 %v35644_v46  ;;  %25884 = vmatprep.mubr.msk.f32.mxu1 %vm33090_vm1, %v39869_v3 }
 0xd1e   :  { %30376 = vmatprep.subr.bf16.mxu1 %v39868_v19  ;;  %v30407_v8 = vpack.c.bf16 %v40040_v12, %v40039_v35 }
 0xd21   :  { %30378 = vmatpush3.bf16.msra.mxu1 %v35662_v54 }
 0xd22   :  { %30379 = vmatprep.subr.bf16.mxu1 %v39868_v19 }
 0xd25   :  { %30381 = vmatpush3.bf16.msra.mxu1 %v35687_v63 }
 0xd26   :  { %30382 = vmatprep.subr.bf16.mxu1 %v39868_v19 }
 0xd29   :  { %30384 = vmatpush3.bf16.msra.mxu1 %v35714_v27 }
 0xd2a   :  { %30385 = vmatprep.subr.bf16.mxu1 %v39868_v19 }
 0xd2d   :  { %30387 = vmatpush3.bf16.msra.mxu1 %v35750_v55 }
 0xd2e   :  { %30388 = vmatprep.subr.bf16.mxu1 %v39868_v19 }
 0xd31   :  { %30390 = vmatpush3.bf16.msra.mxu1 %v35781_v43 }
 0xd32   :  { %30391 = vmatprep.subr.bf16.mxu1 %v39868_v19 }
 0xd35   :  { %30393 = vmatpush3.bf16.msra.mxu1 %v35825_v57 }
 0xd36   :  { %30394 = vmatprep.subr.bf16.mxu1 %v39868_v19 }
 0xd39   :  { %30396 = vmatpush3.bf16.msra.mxu1 %v35848_v21 }
 0xd3a   :  { %30397 = vmatprep.subr.bf16.mxu1 %v39868_v19 }
 0xd3c   :  { %25885 = vmatmul.mubr.f32.vlgmr.msra.gmra.mrb[16].mxu1 %v40034_v45 }
 0xd3d   :  { %30399 = vmatpush3.bf16.msra.mxu1 %v30398_v30  ;;  %25919 = vmatprep.mubr.msk.f32.mxu1 %vm33090_vm1, %v39869_v3 }
 0xd3e   :  { %30400 = vmatprep.subr.bf16.mxu1 %v39868_v19 }
 0xd41   :  { %30402 = vmatpush3.bf16.msra.mxu1 %v30401_v56 }
 0xd42   :  { %30403 = vmatprep.subr.bf16.mxu1 %v39868_v19 }
 0xd45   :  { %30405 = vmatpush3.bf16.msra.mxu1 %v30404_v49 }
 0xd46   :  { %30406 = vmatprep.subr.bf16.mxu1 %v39868_v19 }
 0xd49   :  { %30408 = vmatpush3.bf16.msra.mxu1 %v30407_v8 }
 0xd4a   :  { %30409 = vmatprep.subr.bf16.mxu1 %v39868_v19 }
 0xd4d   :  { %30411 = vmatpush3.bf16.msra.mxu1 %v30410_v42 }
 0xd4e   :  { %30412 = vmatprep.subr.bf16.mxu1 %v39868_v19 }
 0xd51   :  { %30414 = vmatpush3.bf16.msra.mxu1 %v30413_v58 }
 0xd52   :  { %30415 = vmatprep.subr.bf16.mxu1 %v39868_v19 }
 0xd55   :  { %30417 = vmatpush3.bf16.msra.mxu1 %v30416_v25 }
 0xd56   :  { %30418 = vmatprep.subr.bf16.mxu1 %v39868_v19 }
 0xd59   :  { %30420 = vmatpush3.bf16.msra.mxu1 %v30419_v33 }
 0xd5a   :  { %30421 = vmatprep.subr.bf16.mxu1 %v39868_v19 }
 0xd5c   :  { %25920 = vmatmul.mubr.f32.vlgmr.msra.gmra.mrb[16].mxu1 %v35754_v29 }
 0xd5d   :  { %30423 = vmatpush3.bf16.msra.mxu1 %v35644_v46  ;;  %25954 = vmatprep.mubr.msk.f32.mxu1 %vm33090_vm1, %v39869_v3 }
 0xd5e   :  { %30424 = vmatprep.subr.bf16.mxu1 %v39868_v19 }
 0xd61   :  { %30426 = vmatpush3.bf16.msra.mxu1 %v35662_v54 }
 0xd62   :  { %30427 = vmatprep.subr.bf16.mxu1 %v39868_v19 }
 0xd65   :  { %30429 = vmatpush3.bf16.msra.mxu1 %v35687_v63 }
 0xd66   :  { %30430 = vmatprep.subr.bf16.mxu1 %v39868_v19 }
 0xd69   :  { %30432 = vmatpush3.bf16.msra.mxu1 %v35714_v27  ;;  %v21396_v27 = vld [vmem:[%s39438_s3] ss:$0 sm:$0xff] }
 0xd6a   :  { %30433 = vmatprep.subr.bf16.mxu1 %v39868_v19 }
 0xd6d   :  { %30435 = vmatpush3.bf16.msra.mxu1 %v35750_v55 }
 0xd6e   :  { %30436 = vmatprep.subr.bf16.mxu1 %v39868_v19 }
 0xd71   :  { %30438 = vmatpush3.bf16.msra.mxu1 %v35781_v43 }
 0xd72   :  { %30439 = vmatprep.subr.bf16.mxu1 %v39868_v19 }
 0xd75   :  { %30441 = vmatpush3.bf16.msra.mxu1 %v35825_v57 }
 0xd76   :  { %30442 = vmatprep.subr.bf16.mxu1 %v39868_v19 }
 0xd79   :  { %30444 = vmatpush3.bf16.msra.mxu1 %v35848_v21 }
 0xd7a   :  { %30709 = vmatprep.subr.bf16.mxu1 %v39868_v19 }
 0xd7c   :  { %25955 = vmatmul.mubr.f32.vlgmr.msra.gmra.mrb[16].mxu1 %v35754_v29 }
 0xd7d   :  { %30711 = vmatpush3.bf16.msra.mxu1 %v34224_v10  ;;  %26313 = vmatprep.mubr.msk.f32.mxu1 %vm33090_vm1, %v39869_v3 }
 0xd7e   :  { %30712 = vmatprep.subr.bf16.mxu1 %v39868_v19 }
 0xd81   :  { %30714 = vmatpush3.bf16.msra.mxu1 %v34234_v16 }
 0xd82   :  { %30715 = vmatprep.subr.bf16.mxu1 %v39868_v19 }
 0xd85   :  { %30717 = vmatpush3.bf16.msra.mxu1 %v34244_v15 }
 0xd86   :  { %30718 = vmatprep.subr.bf16.mxu1 %v39868_v19 }
 0xd89   :  { %30720 = vmatpush3.bf16.msra.mxu1 %v34254_v47 }
 0xd8a   :  { %30721 = vmatprep.subr.bf16.mxu1 %v39868_v19 }
 0xd8d   :  { %30723 = vmatpush3.bf16.msra.mxu1 %v34264_v40 }
 0xd8e   :  { %30724 = vmatprep.subr.bf16.mxu1 %v39868_v19 }
 0xd8f   :  { %v6970_v63 = vpop.f32.mrb[14].mxu1 }
 0xd90   :  { %v36078_v54 = vadd.f32 %v21396_v27, %v6970_v63  ;;  %v25680_v46 = vpop.f32.mrb[15].mxu1 }
 0xd91   :  { %30726 = vmatpush3.bf16.msra.mxu1 %v34280_v23 }
 0xd92   :  { %v6978_v55 = vand.u32 2139095040, %v36078_v54  ;;  %30727 = vmatprep.subr.bf16.mxu1 %v39868_v19  ;;  %v6975_v21 = vand.u32 2147483647, %v36078_v54  ;;  %vm6977_vm9 = vcmp.lt.s32.totalorder %v36078_v54, 0 }
 0xd94   :  { %v6979_v29 = vshrl.u32 %v6978_v55, 23  ;;  %v6982_v48 = vand.u32 8388607, %v6975_v21  ;;  %vm6976_vm10 = vcmp.le.f32.partialorder %v6975_v21, 0.7853982 }
 0xd95   :  { %30729 = vmatpush3.bf16.msra.mxu1 %v34300_v62 }
 0xd96   :  { %v21397_v57 = vadd.s32 4294967169, %v6979_v29  ;;  %30730 = vmatprep.subr.bf16.mxu1 %v39868_v19  ;;  %v6983_v14 = vor.u32 8388608, %v6982_v48 }
 0xd98   :  { %v6985_v43 = vadd.s32 1, %v21397_v57  ;;  %v7023_v17 = vshll.u32 %v6983_v14, 8 }
 0xd99   :  { %30732 = vmatpush3.bf16.msra.mxu1 %v34326_v37 }
 0xd9a   :  { %vm6986_vm2 = vcmp.gt.s32.totalorder %v6985_v43, 0  ;;  %30733 = vmatprep.subr.bf16.mxu1 %v39868_v19 }
 0xd9b   :  { %v6987_v5 = vsel %vm6986_vm2, %v6985_v43, 0 }
 0xd9c   :  { %v6989_v24 = vand.u32 31, %v6987_v5  ;;  %v6988_v13 = vshrl.u32 %v6987_v5, 5 }
 0xd9e   :  { %v6990_v1 = vsub.s32 32, %v6989_v24  ;;  %v6992_v34 = vshll.u32 %v39926_v2, %v6989_v24  ;;  %v6995_v50 = vshll.u32 %v39927_v53, %v6989_v24  ;;  %v6998_v26 = vshll.u32 %v39928_v60, %v6989_v24 }
 0xd9f   :  { %v7001_v44 = vshll.u32 %v39929_v0, %v6989_v24  ;;  %v7004_v4 = vshll.u32 %v39930_v32, %v6989_v24  ;;  %vm7007_vm3 = vcmp.lt.s32.totalorder %v6988_v13, 1  ;;  %vm7010_vm4 = vcmp.lt.s32.totalorder %v6988_v13, 4 }
 0xda0   :  { %v6993_v51 = vshrl.u32 %v39927_v53, %v6990_v1  ;;  %v6996_v6 = vshrl.u32 %v39928_v60, %v6990_v1  ;;  %v6999_v22 = vshrl.u32 %v39929_v0, %v6990_v1  ;;  %v7002_v52 = vshrl.u32 %v39930_v32, %v6990_v1 }
 0xda1   :  { %v7005_v61 = vshrl.u32 %v40044_v38, %v6990_v1  ;;  %v6991_v28 = vshrl.u32 %v39926_v2, %v6990_v1  ;;  %vm7009_vm5 = vcmp.lt.s32.totalorder %v6988_v13, 3  ;;  %vm7008_vm6 = vcmp.lt.s32.totalorder %v6988_v13, 2 }
 0xda2   :  { %v6994_v39 = vor.u32 %v6993_v51, %v6992_v34  ;;  %v6997_v31 = vor.u32 %v6996_v6, %v6995_v50  ;;  %v7000_v30 = vor.u32 %v6999_v22, %v6998_v26  ;;  %v7003_v45 = vor.u32 %v7002_v52, %v7001_v44 }
 0xda3   :  { %v7006_v7 = vor.u32 %v7005_v61, %v7004_v4 }
 0xda4   :  { %v7012_v20 = vsel %vm7010_vm4, %v7000_v30, 2102212464  ;;  %v7015_v56 = vsel %vm7007_vm3, %v6994_v39, %v6997_v31  ;;  %v7019_v36 = vsel %vm7007_vm3, %v6997_v31, %v7000_v30  ;;  %v7016_v49 = vsel %vm7010_vm4, %v7003_v45, 920167782 }
 0xda5   :  { %v7020_v35 = vsel %vm7010_vm4, %v7006_v7, 1326507024  ;;  %v7017_v12 = vsel %vm7009_vm5, %v7000_v30, %v7016_v49  ;;  %v7011_v18 = vsel %vm7007_vm3, %v6991_v28, %v6994_v39  ;;  %v7013_v42 = vsel %vm7009_vm5, %v6997_v31, %v7012_v20  ;;  %v36107_v46 = vpop.f32.mrb[20].mxu0 }
 0xda6   :  { %v7021_v8 = vsel %vm7009_vm5, %v7003_v45, %v7020_v35  ;;  %v7018_v11 = vsel %vm7008_vm6, %v7015_v56, %v7017_v12  ;;  %v7014_v55 = vsel %vm7008_vm6, %v7011_v18, %v7013_v42  ;;  %v25746_v29 = vpop.f32.mrb[21].mxu0  ;;  %vm7067_vm4 = vweird.f32 %v36078_v54 }
 0xda7   :  { %v7022_v58 = vsel %vm7008_vm6, %v7019_v36, %v7021_v8  ;;  %v36104_v27 = vmul.u32.u64.low %v7023_v17, %v7018_v11  ;;  %v36105_v63 = vmul.u32.u64.high %v7023_v17, %v7018_v11, %v36104_v27  ;;  %v7030_v43 = vmul.u32 %v7023_v17, %v7014_v55  ;;  %v7079_v29 = vld [vmem:[%s39440_s2] sm:$0xff] }
 0xda8   :  { %v36101_v25 = vmul.u32.u64.low %v7023_v17, %v7022_v58  ;;  %v36102_v33 = vmul.u32.u64.high %v7023_v17, %v7022_v58, %v36101_v25 }
 0xda9   :  { %v7033_v57 = vadd.s32 1, %v36105_v63 }
 0xdaa   :  { %vm7032_vm7 = vc.u32 %v36102_v33, %v36104_v27  ;;  %v7031_v44 = vadd.s32 %v36104_v27, %v36102_v33 }
 0xdab   :  { %v7034_v5 = vsel %vm7032_vm7, %v7033_v57, %v36105_v63  ;;  %v6974_v63 = vld [vmem:[%s39439_s1] sm:$0xff] }
 0xdac   :  { %v7035_v24 = vadd.s32 %v7034_v5, %v7030_v43 }
 0xdae   :  { %v7036_v48 = vadd.s32 536870912, %v7035_v24 }
 0xdb0   :  { %v7037_v1 = vshrl.u32 %v7036_v48, 30 }
 0xdb2   :  { %v7038_v13 = vshll.u32 %v7037_v1, 30  ;;  %v7061_v36 = vsub.s32 4, %v7037_v1 }
 0xdb4   :  { %v7039_v34 = vsub.s32 %v7035_v24, %v7038_v13  ;;  %v7062_v35 = vsel %vm6977_vm9, %v7061_v36, %v7037_v1 }
 0xdb5   :  { %v7064_v8 = vsel %vm6976_vm10, 0, %v7062_v35 }
 0xdb6   :  { %v7041_v50 = vsub.s32 0, %v7039_v34  ;;  %v7173_v17 = vadd.s32 3, %v7064_v8  ;;  %v7068_v18 = vand.u32 3, %v7064_v8 }
 0xdb8   :  { %v21398_v51 = vmin.u32 %v7041_v50, %v7039_v34  ;;  %v7174_v42 = vand.u32 3, %v7173_v17  ;;  %vm7073_vm11 = vcmp.eq.s32.totalorder %v7068_v18, 2  ;;  %vm7070_vm13 = vcmp.eq.s32.totalorder %v7068_v18, 0  ;;  %v8472_v50 = vld [vmem:[%s39429_s7] sm:$0xff] }
 0xdb9   :  { %vm7069_vm2 = vcmp.lt.s32.totalorder %v7068_v18, 2 }
 0xdba   :  { %v7043_v6 = vclz %v21398_v51  ;;  %vm7179_vm12 = vcmp.eq.s32.totalorder %v7174_v42, 2  ;;  %vm7176_vm14 = vcmp.eq.s32.totalorder %v7174_v42, 0  ;;  %vm7175_vm3 = vcmp.lt.s32.totalorder %v7174_v42, 2 }
 0xdbb   :  { %v8484_v51 = vand.u32 4294901760, %v8472_v50 }
 0xdbc   :  { %v21399_v26 = vadd.s32 4294967294, %v7043_v6 }
 0xdbe   :  { %vm21400_vm8 = vcmp.lt.s32.totalorder %v21399_v26, 0 }
 0xdbf   :  { %v7046_v22 = vsel %vm21400_vm8, 0, %v21399_v26  ;;  %v8474_v26 = vld [vmem:[%s39429_s7 + $0x10] sm:$0xff] }
 0xdc0   :  { %v7047_v52 = vsub.s32 32, %v7046_v22  ;;  %v7051_v4 = vsub.s32 4294967266, %v7046_v22  ;;  %v7048_v61 = vshll.u32 %v7039_v34, %v7046_v22  ;;  %v8475_v22 = vld [vmem:[%s39429_s7 + $0x18] sm:$0xff] }
 0xdc2   :  { %v7049_v14 = vshrl.u32 %v7031_v44, %v7047_v52  ;;  %v7052_v39 = vadd.s32 127, %v7051_v4  ;;  %v8476_v44 = vld [vmem:[%s39429_s7 + $0x20] sm:$0xff]  ;;  %v8490_v52 = vand.u32 4294901760, %v8474_v26  ;;  %v8493_v4 = vand.u32 4294901760, %v8475_v22 }
 0xdc4   :  { %v7050_v31 = vor.u32 %v7049_v14, %v7048_v61  ;;  %v7053_v30 = vshll.u32 %v7052_v39, 23  ;;  %v8477_v61 = vld [vmem:[%s39429_s7 + $0x28] sm:$0xff]  ;;  %v8496_v14 = vand.u32 4294901760, %v8476_v44  ;;  %v8478_v39 = vld [vmem:[%s39429_s7 + $0x30] sm:$0xff]  ;;  %v36160_v36 = vsub.f32 %v8475_v22, %v8493_v4 }
 0xdc6   :  { %v7054_v45 = vor.u32 4788187, %v7053_v30  ;;  %v7057_v20 = vcvt.s32.f32 %v7050_v31  ;;  %v8479_v31 = vld [vmem:[%s39429_s7 + $0x38] sm:$0xff] }
 0xdc7   :  { %v8505_v8 = vand.u32 4294901760, %v8479_v31 }
 0xdc8   :  { %v7055_v7 = vand.u32 2147483647, %v7054_v45  ;;  %v36154_v45 = vsub.f32 %v8472_v50, %v8484_v51 }
 0xdc9   :  { %v36172_v18 = vsub.f32 %v8479_v31, %v8505_v8 }
 0xdca   :  { %v7058_v56 = vmul.f32 %v7057_v20, %v7055_v7  ;;  %v8499_v20 = vand.u32 4294901760, %v8477_v61 }
 0xdcb   :  { %v39671_v22 = vand.u32 4294901760, %v36172_v18 }
 0xdcc   :  { %v7059_v28 = vxor.u32 2147483648, %v7058_v56  ;;  %v36167_v35 = vsub.f32 %v8477_v61, %v8499_v20  ;;  %v36175_v42 = vpack.c.bf16 %v8499_v20, %v8496_v14 }
 0xdce   :  { %v7060_v49 = vsel %vm6977_vm9, %v7059_v28, %v7058_v56  ;;  %v36158_v56 = vsub.f32 %v8474_v26, %v8490_v52  ;;  %v36162_v28 = vsub.f32 %v8476_v44, %v8496_v14 }
 0xdcf   :  { %v7063_v12 = vsel %vm6976_vm10, %v36078_v54, %v7060_v49  ;;  %v8473_v54 = vld [vmem:[%s39429_s7 + $0x8] sm:$0xff]  ;;  %v36165_v49 = vpack.c.bf16 %v8493_v4, %v8490_v52  ;;  %v8619_v4 = vsub.f32 %v36172_v18, %v39671_v22 }
 0xdd0   :  { %33047 = vcosq.f32 %v7063_v12  ;;  %v8487_v6 = vand.u32 4294901760, %v8473_v54 }
 0xdd1   :  { %33049 = vsinq.f32 %v7063_v12  ;;  %v8502_v12 = vand.u32 4294901760, %v8478_v39  ;;  %v8620_v14 = vand.u32 4294901760, %v8619_v4 }
 0xdd2   :  { %v36152_v30 = vpack.c.bf16 %v8487_v6, %v8484_v51  ;;  %v36156_v7 = vsub.f32 %v8473_v54, %v8487_v6 }
 0xdd3   :  { %v36170_v17 = vsub.f32 %v8478_v39, %v8502_v12 }
 0xdd4   :  { %30447 = vmatpush3.bf16.msra.mxu0 %v36152_v30 }
 0xdd5   :  { %30448 = vmatprep.subr.bf16.mxu0 %v39868_v19  ;;  %v39672_v26 = vand.u32 4294901760, %v36170_v17 }
 0xdd7   :  { %v8612_v52 = vsub.f32 %v36170_v17, %v39672_v26 }
 0xdd8   :  { %30450 = vmatpush3.bf16.msra.mxu0 %v36165_v49 }
 0xdd9   :  { %30451 = vmatprep.subr.bf16.mxu0 %v39868_v19  ;;  %v8613_v61 = vand.u32 4294901760, %v8612_v52 }
 0xdda   :  { %v33048_v11 = vpop.eup %33047 }
 0xddb   :  { %v33050_v58 = vpop.eup %33049  ;;  %v7074_v25 = vxor.u32 2147483648, %v33048_v11  ;;  %v36222_v39 = vpack.c.bf16 %v8620_v14, %v8613_v61 }
 0xddc   :  { %v7071_v33 = vxor.u32 2147483648, %v33050_v58  ;;  %30453 = vmatpush3.bf16.msra.mxu0 %v36175_v42 }
 0xddd   :  { %v7075_v27 = vsel %vm7073_vm11, %v7074_v25, %v33050_v58  ;;  %v7181_v21 = vsel %vm7179_vm12, %v7074_v25, %v33050_v58  ;;  %v39678_v58 = vand.u32 4294901760, %v36154_v45  ;;  %v39677_v25 = vand.u32 4294901760, %v36156_v7  ;;  %30454 = vmatprep.subr.bf16.mxu0 %v39868_v19 }
 0xdde   :  { %v7072_v55 = vsel %vm7070_vm13, %v33048_v11, %v7071_v33  ;;  %v7178_v57 = vsel %vm7176_vm14, %v33048_v11, %v7071_v33  ;;  %v36179_v11 = vpack.c.bf16 %v8505_v8, %v8502_v12 }
 0xddf   :  { %v7076_v43 = vsel %vm7069_vm2, %v7072_v55, %v7075_v27  ;;  %v7182_v5 = vsel %vm7175_vm3, %v7178_v57, %v7181_v21  ;;  %v8570_v33 = vsub.f32 %v36154_v45, %v39678_v58  ;;  %v8577_v27 = vsub.f32 %v36156_v7, %v39677_v25 }
 0xde0   :  { %v7077_v24 = vsel %vm7067_vm4, nan, %v7076_v43  ;;  %v7183_v48 = vsel %vm7067_vm4, nan, %v7182_v5  ;;  %30456 = vmatpush3.bf16.msra.mxu0 %v36179_v11  ;;  %v39676_v55 = vand.u32 4294901760, %v36158_v56 }
 0xde1   :  { %v7078_v1 = vmul.f32 %v7077_v24, %v6974_v63  ;;  %v7184_v13 = vmul.f32 %v7183_v48, %v7079_v29  ;;  %v8571_v21 = vand.u32 4294901760, %v8570_v33  ;;  %v8578_v63 = vand.u32 4294901760, %v8577_v27  ;;  %30457 = vmatprep.subr.bf16.mxu0 %v39868_v19 }
 0xde2   :  { %v39675_v29 = vand.u32 4294901760, %v36160_v36  ;;  %v8584_v43 = vsub.f32 %v36158_v56, %v39676_v55 }
 0xde3   :  { %v7185_v34 = vadd.f32 %v7184_v13, %v7078_v1  ;;  %v36194_v57 = vpack.c.bf16 %v8578_v63, %v8571_v21  ;;  %v39674_v1 = vand.u32 4294901760, %v36162_v28  ;;  %v39673_v13 = vand.u32 4294901760, %v36167_v35 }
 0xde4   :  { %v8591_v5 = vsub.f32 %v36160_v36, %v39675_v29  ;;  %v8585_v24 = vand.u32 4294901760, %v8584_v43 }
 0xde5   :  { %7186 = vst.msk [vmem:[%s39441_s16] sm:$0xff] %vm1391_vm15, %v7185_v34  ;;  %v8598_v50 = vsub.f32 %v36162_v28, %v39674_v1  ;;  %v8605_v54 = vsub.f32 %v36167_v35, %v39673_v13 }
 0xde6   :  { %v8592_v48 = vand.u32 4294901760, %v8591_v5 }
 0xde7   :  { %v8599_v51 = vand.u32 4294901760, %v8598_v50  ;;  %v8606_v6 = vand.u32 4294901760, %v8605_v54 }
 0xde8   :  { %v36204_v34 = vpack.c.bf16 %v8592_v48, %v8585_v24 }
 0xde9   :  { %v36214_v44 = vpack.c.bf16 %v8606_v6, %v8599_v51 }
 0xe4f   :  { %v8335_v20 = vpop.f32.mrb[16].mxu1 }
 0xe50   :  { %v36229_v8 = vsub.f32 %v36107_v46, %v8335_v20  ;;  %v25956_v33 = vpop.f32.mrb[17].mxu1 }
 0xe52   :  { %v8343_v27 = vand.u32 2139095040, %v36229_v8  ;;  %v39670_v48 = vand.u32 2147483647, %v36229_v8  ;;  %vm8342_vm12 = vcmp.lt.s32.totalorder %v36229_v8, 0  ;;  %vm8432_vm4 = vweird.f32 %v36229_v8 }
 0xe54   :  { %v8344_v63 = vshrl.u32 %v8343_v27, 23  ;;  %v8347_v46 = vand.u32 8388607, %v39670_v48 }
 0xe56   :  { %v21406_v43 = vadd.s32 4294967169, %v8344_v63 }
 0xe58   :  { %v8350_v24 = vadd.s32 1, %v21406_v43 }
 0xe5a   :  { %vm8351_vm5 = vcmp.gt.s32.totalorder %v8350_v24, 0 }
 0xe5b   :  { %v8352_v50 = vsel %vm8351_vm5, %v8350_v24, 0 }
 0xe5c   :  { %v8354_v54 = vand.u32 31, %v8352_v50  ;;  %v8353_v6 = vshrl.u32 %v8352_v50, 5  ;;  %v8348_v50 = vor.u32 8388608, %v8347_v46 }
 0xe5e   :  { %v8355_v51 = vsub.s32 32, %v8354_v54  ;;  %v8357_v52 = vshll.u32 %v39926_v2, %v8354_v54  ;;  %v8360_v4 = vshll.u32 %v39927_v53, %v8354_v54  ;;  %v8363_v20 = vshll.u32 %v39928_v60, %v8354_v54 }
 0xe5f   :  { %v8366_v27 = vshll.u32 %v39929_v0, %v8354_v54  ;;  %v8369_v43 = vshll.u32 %v39930_v32, %v8354_v54  ;;  %vm8372_vm6 = vcmp.lt.s32.totalorder %v8353_v6, 1  ;;  %vm8375_vm7 = vcmp.lt.s32.totalorder %v8353_v6, 4 }
 0xe60   :  { %v8358_v61 = vshrl.u32 %v39927_v53, %v8355_v51  ;;  %v8361_v14 = vshrl.u32 %v39928_v60, %v8355_v51  ;;  %v8364_v33 = vshrl.u32 %v39929_v0, %v8355_v51  ;;  %v8367_v63 = vshrl.u32 %v39930_v32, %v8355_v51 }
 0xe61   :  { %v8370_v24 = vshrl.u32 %v40044_v38, %v8355_v51  ;;  %v8356_v1 = vshrl.u32 %v39926_v2, %v8355_v51  ;;  %vm8374_vm8 = vcmp.lt.s32.totalorder %v8353_v6, 3  ;;  %vm8373_vm9 = vcmp.lt.s32.totalorder %v8353_v6, 2 }
 0xe62   :  { %v8359_v5 = vor.u32 %v8358_v61, %v8357_v52  ;;  %v8362_v21 = vor.u32 %v8361_v14, %v8360_v4  ;;  %v8365_v12 = vor.u32 %v8364_v33, %v8363_v20  ;;  %v8368_v31 = vor.u32 %v8367_v63, %v8366_v27 }
 0xe63   :  { %v8371_v48 = vor.u32 %v8370_v24, %v8369_v43  ;;  %v8388_v58 = vshll.u32 %v8348_v50, 8  ;;  %v40050_v6 = vand.u32 4294901760, %v36167_v35 }
 0xe64   :  { %v8377_v22 = vsel %vm8375_vm7, %v8365_v12, 2102212464  ;;  %v8380_v26 = vsel %vm8372_vm6, %v8359_v5, %v8362_v21  ;;  %v8384_v13 = vsel %vm8372_vm6, %v8362_v21, %v8365_v12  ;;  %v8381_v29 = vsel %vm8375_vm7, %v8368_v31, 920167782 }
 0xe65   :  { %v8385_v55 = vsel %vm8375_vm7, %v8371_v48, 1326507024  ;;  %v8382_v54 = vsel %vm8374_vm8, %v8365_v12, %v8381_v29  ;;  %v8376_v46 = vsel %vm8372_vm6, %v8356_v1, %v8359_v5  ;;  %v8378_v52 = vsel %vm8374_vm8, %v8362_v21, %v8377_v22 }
 0xe66   :  { %v8386_v25 = vsel %vm8374_vm8, %v8368_v31, %v8385_v55  ;;  %v8383_v4 = vsel %vm8373_vm9, %v8380_v26, %v8382_v54  ;;  %v8379_v63 = vsel %vm8373_vm9, %v8376_v46, %v8378_v52  ;;  %v40045_v48 = vand.u32 4294901760, %v36154_v45 }
 0xe67   :  { %v8387_v61 = vsel %vm8373_vm9, %v8384_v13, %v8386_v25  ;;  %v36253_v33 = vmul.u32.u64.low %v8388_v58, %v8383_v4  ;;  %v36254_v27 = vmul.u32.u64.high %v8388_v58, %v8383_v4, %v36253_v33  ;;  %v40046_v55 = vand.u32 4294901760, %v36156_v7 }
 0xe68   :  { %v36250_v14 = vmul.u32.u64.low %v8388_v58, %v8387_v61  ;;  %v36251_v20 = vmul.u32.u64.high %v8388_v58, %v8387_v61, %v36250_v14  ;;  %v8395_v1 = vmul.u32 %v8388_v58, %v8379_v63  ;;  %v40047_v26 = vand.u32 4294901760, %v36158_v56 }
 0xe69   :  { %v8398_v51 = vadd.s32 1, %v36254_v27  ;;  %v36262_v29 = vpack.c.bf16 %v40046_v55, %v40045_v48  ;;  %v40048_v22 = vand.u32 4294901760, %v36160_v36  ;;  %v40049_v5 = vand.u32 4294901760, %v36162_v28 }
 0xe6a   :  { %vm8397_vm10 = vc.u32 %v36251_v20, %v36253_v33  ;;  %v40051_v58 = vand.u32 4294901760, %v36170_v17  ;;  %v40052_v54 = vand.u32 4294901760, %v36172_v18  ;;  %v8396_v63 = vadd.s32 %v36253_v33, %v36251_v20 }
 0xe6b   :  { %v8399_v25 = vsel %vm8397_vm10, %v8398_v51, %v36254_v27  ;;  %v36269_v31 = vpack.c.bf16 %v40048_v22, %v40047_v26  ;;  %v36275_v43 = vpack.c.bf16 %v40050_v6, %v40049_v5 }
 0xe6c   :  { %v8400_v13 = vadd.s32 %v8399_v25, %v8395_v1  ;;  %v36281_v46 = vpack.c.bf16 %v40052_v54, %v40051_v58  ;;  %v40053_v58 = vand.u32 2147483647, %v36229_v8 }
 0xe6e   :  { %v8401_v12 = vadd.s32 536870912, %v8400_v13  ;;  %vm8341_vm13 = vcmp.le.f32.partialorder %v40053_v58, 0.7853982  ;;  %v21411_v58 = vld [vmem:[%s39431_s9] ss:$0 sm:$0xff] }
 0xe70   :  { %v8402_v21 = vshrl.u32 %v8401_v12, 30 }
 0xe72   :  { %v8403_v24 = vshll.u32 %v8402_v21, 30 }
 0xe74   :  { %v8404_v50 = vsub.s32 %v8400_v13, %v8403_v24 }
 0xe76   :  { %v8406_v52 = vsub.s32 0, %v8404_v50 }
 0xe78   :  { %v21407_v4 = vmin.u32 %v8406_v52, %v8404_v50  ;;  %v8426_v52 = vsub.s32 4, %v8402_v21 }
 0xe7a   :  { %v8408_v61 = vclz %v21407_v4  ;;  %v8427_v33 = vsel %vm8342_vm12, %v8426_v52, %v8402_v21 }
 0xe7c   :  { %v21408_v14 = vadd.s32 4294967294, %v8408_v61 }
 0xe7e   :  { %vm21409_vm11 = vcmp.lt.s32.totalorder %v21408_v14, 0 }
 0xe7f   :  { %v8411_v27 = vsel %vm21409_vm11, 0, %v21408_v14 }
 0xe80   :  { %v8412_v51 = vsub.s32 32, %v8411_v27  ;;  %v8416_v48 = vsub.s32 4294967266, %v8411_v27  ;;  %v8413_v55 = vshll.u32 %v8404_v50, %v8411_v27  ;;  %v8429_v50 = vsel %vm8341_vm13, 0, %v8427_v33 }
 0xe81   :  { %v8433_v4 = vand.u32 3, %v8429_v50 }
 0xe82   :  { %v8414_v1 = vshrl.u32 %v8396_v63, %v8412_v51  ;;  %v8417_v25 = vadd.s32 127, %v8416_v48  ;;  %v8446_v51 = vld [vmem:[%s39430_s8] sm:$0x1] }
 0xe83   :  { %vm8438_vm14 = vcmp.eq.s32.totalorder %v8433_v4, 2  ;;  %vm8435_vm2 = vcmp.eq.s32.totalorder %v8433_v4, 0  ;;  %vm8434_vm3 = vcmp.lt.s32.totalorder %v8433_v4, 2 }
 0xe84   :  { %v8415_v13 = vor.u32 %v8414_v1, %v8413_v55  ;;  %v8418_v26 = vshll.u32 %v8417_v25, 23  ;;  %v8448_v25 = vsub.f32 -1.0, %v8446_v51 }
 0xe86   :  { %v8419_v22 = vor.u32 4788187, %v8418_v26  ;;  %v8422_v5 = vcvt.s32.f32 %v8415_v13 }
 0xe88   :  { %v8420_v12 = vand.u32 2147483647, %v8419_v22  ;;  %v8453_v22 = vrot.slane %v8448_v25, %v33734_v59  ;;  %v40067_v25 = vld [vmem:[#allocation24_spill] sm:$0xff] }
 0xe8a   :  { %v8423_v6 = vmul.f32 %v8422_v5, %v8420_v12  ;;  %v8460_v12 = vrot.slane %v8446_v51, %v33734_v59 }
 0xe8c   :  { %v8424_v24 = vxor.u32 2147483648, %v8423_v6 }
 0xe8e   :  { %v8425_v54 = vsel %vm8342_vm12, %v8424_v24, %v8423_v6 }
 0xe8f   :  { %v8428_v20 = vsel %vm8341_vm13, %v36229_v8, %v8425_v54 }
 0xe90   :  { %33051 = vcosq.f32 %v8428_v20 }
 0xe91   :  { %33053 = vsinq.f32 %v8428_v20 }
 0xe9a   :  { %v33052_v61 = vpop.eup %33051 }
 0xe9b   :  { %v33054_v14 = vpop.eup %33053  ;;  %v8439_v27 = vxor.u32 2147483648, %v33052_v61 }
 0xe9c   :  { %v8436_v63 = vxor.u32 2147483648, %v33054_v14 }
 0xe9d   :  { %v8440_v48 = vsel %vm8438_vm14, %v8439_v27, %v33054_v14 }
 0xe9e   :  { %v8437_v55 = vsel %vm8435_vm2, %v33052_v61, %v8436_v63 }
 0xe9f   :  { %v8441_v1 = vsel %vm8434_vm3, %v8437_v55, %v8440_v48  ;;  %v40065_v55 = vld [vmem:[#allocation13_spill] sm:$0xff] }
 0xea0   :  { %v8442_v21 = vsel %vm8432_vm4, nan, %v8441_v1  ;;  %v40066_v1 = vld [vmem:[#allocation14_spill] sm:$0xff] }
 0xea1   :  { %v8443_v13 = vmul.f32 2.0, %v8442_v21  ;;  %v8455_v6 = vadd.f32 %v8453_v22, %v8442_v21  ;;  %v40071_v22 = vld [vmem:[#allocation17_spill] sm:$0xff] }
 0xea3   :  { %v8444_v26 = vmul.f32 %v8443_v13, %v8442_v21  ;;  %v40068_v21 = vld [vmem:[#allocation25_spill] sm:$0xff]  ;;  %v40069_v13 = vld [vmem:[#allocation15_spill] sm:$0xff] }
 0xea5   :  { %v21410_v5 = vadd.f32 -1.0, %v8444_v26  ;;  %v40070_v26 = vld [vmem:[#allocation16_spill] sm:$0xff] }
 0xea7   :  { %v8462_v24 = vmul.f32 %v21410_v5, %v8460_v12  ;;  %v40072_v12 = vld [vmem:[#allocation18_spill] sm:$0xff]  ;;  %v40073_v5 = vld [vmem:[#allocation19_spill] sm:$0xff] }
 0xea9   :  { %v8463_v54 = vadd.f32 %v8462_v24, %v8455_v6  ;;  %v40074_v6 = vld [vmem:[#allocation20_spill] sm:$0xff]  ;;  %v40075_v24 = vld [vmem:[#allocation26_spill] sm:$0xff] }
 0xeab   :  { %v8470_v52 = vmul.f32 %v21411_v58, %v8463_v54  ;;  %v40076_v58 = vld [vmem:[#allocation27_spill] sm:$0xff]  ;;  %v40077_v54 = vld [vmem:[#allocation21_spill] sm:$0xff] }
 0xead   :  { %v8471_v20 = vadd.f32 1.0, %v8470_v52  ;;  %v40078_v52 = vld [vmem:[#allocation22_spill] sm:$0xff] }
 0xeaf   :  { %v8481_v8 = vsel %vm1391_vm15, %v8471_v20, 0  ;;  %v40079_v20 = vld [vmem:[#allocation23_spill] sm:$0xff] }
 0xeb0   :  { %v8556_v33 = vand.u32 4294901760, %v8481_v8 }
 0xeb2   :  { %v8557_v50 = vsub.f32 %v8481_v8, %v8556_v33  ;;  %v40080_v8 = vld [vmem:[#allocation28_spill] sm:$0xff] }
 0xeb4   :  { %v8558_v4 = vand.u32 4294901760, %v8557_v50 }
 0xeb6   :  { %v8559_v61 = vsub.f32 %v8557_v50, %v8558_v4 }
 0xeb8   :  { %v8560_v14 = vand.u32 4294901760, %v8559_v61  ;;  %v40084_v61 = vld [vmem:[#allocation32_spill] sm:$0xff] }
 0xeba   :  { %25974 = vmatmul.mubr.f32.vlgmr.msra.gmra.mrb[22].mxu0 %v8560_v14  ;;  %v40085_v14 = vld [vmem:[#allocation33_spill] sm:$0xff] }
 0xebb   :  { %30459 = vmatpush3.bf16.msra.mxu0 %v36194_v57  ;;  %25992 = vmatprep.mubr.msk.f32.mxu0 %vm33090_vm1, %v39869_v3  ;;  %v40054_v57 = vpack.c.bf16 %v36156_v7, %v36154_v45  ;;  %v40057_v45 = vpack.c.bf16 %v36172_v18, %v36170_v17  ;;  %v40059_v7 = vld [vmem:[#allocation7_spill] sm:$0xff] }
 0xebc   :  { %30460 = vmatprep.subr.bf16.mxu0 %v39868_v19 }
 0xebf   :  { %30462 = vmatpush3.bf16.msra.mxu0 %v36204_v34  ;;  %v40055_v34 = vpack.c.bf16 %v36160_v36, %v36158_v56  ;;  %v40060_v56 = vld [vmem:[#allocation8_spill] sm:$0xff]  ;;  %v40061_v36 = vld [vmem:[#allocation9_spill] sm:$0xff] }
 0xec0   :  { %30463 = vmatprep.subr.bf16.mxu0 %v39868_v19 }
 0xec3   :  { %30465 = vmatpush3.bf16.msra.mxu0 %v36214_v44  ;;  %v40056_v44 = vpack.c.bf16 %v36167_v35, %v36162_v28  ;;  %v40062_v28 = vld [vmem:[#allocation10_spill] sm:$0xff]  ;;  %v40064_v35 = vld [vmem:[#allocation12_spill] sm:$0xff] }
 0xec4   :  { %30466 = vmatprep.subr.bf16.mxu0 %v39868_v19 }
 0xec7   :  { %30468 = vmatpush3.bf16.msra.mxu0 %v36222_v39 }
 0xec8   :  { %30469 = vmatprep.subr.bf16.mxu0 %v39868_v19 }
 0xeca   :  { %25993 = vmatmul.mubr.f32.vlgmr.msra.gmra.mrb[22].mxu0 %v8556_v33 }
 0xecb   :  { %30471 = vmatpush3.bf16.msra.mxu0 %v40054_v57  ;;  %26011 = vmatprep.mubr.msk.f32.mxu0 %vm33090_vm1, %v39869_v3  ;;  %v40086_v57 = vld [vmem:[#allocation34_spill] sm:$0xff] }
 0xecc   :  { %30472 = vmatprep.subr.bf16.mxu0 %v39868_v19 }
 0xecf   :  { %30474 = vmatpush3.bf16.msra.mxu0 %v40055_v34  ;;  %v40087_v34 = vld [vmem:[#allocation35_spill] sm:$0xff] }
 0xed0   :  { %30475 = vmatprep.subr.bf16.mxu0 %v39868_v19 }
 0xed3   :  { %30477 = vmatpush3.bf16.msra.mxu0 %v40056_v44 }
 0xed4   :  { %30478 = vmatprep.subr.bf16.mxu0 %v39868_v19 }
 0xed7   :  { %30480 = vmatpush3.bf16.msra.mxu0 %v40057_v45 }
 0xed8   :  { %30481 = vmatprep.subr.bf16.mxu0 %v39868_v19 }
 0xeda   :  { %26012 = vmatmul.mubr.f32.vlgmr.msra.gmra.mrb[22].mxu0 %v8557_v50  ;;  %v40082_v50 = vld [vmem:[#allocation30_spill] sm:$0xff] }
 0xedb   :  { %30483 = vmatpush3.bf16.msra.mxu0 %v36152_v30  ;;  %26030 = vmatprep.mubr.msk.f32.mxu0 %vm33090_vm1, %v39869_v3 }
 0xedc   :  { %30484 = vmatprep.subr.bf16.mxu0 %v39868_v19 }
 0xedf   :  { %30486 = vmatpush3.bf16.msra.mxu0 %v36165_v49 }
 0xee0   :  { %30487 = vmatprep.subr.bf16.mxu0 %v39868_v19 }
 0xee3   :  { %30489 = vmatpush3.bf16.msra.mxu0 %v36175_v42 }
 0xee4   :  { %30490 = vmatprep.subr.bf16.mxu0 %v39868_v19 }
 0xee7   :  { %30492 = vmatpush3.bf16.msra.mxu0 %v36179_v11 }
 0xee8   :  { %30493 = vmatprep.subr.bf16.mxu0 %v39868_v19 }
 0xeea   :  { %26031 = vmatmul.mubr.f32.vlgmr.msra.gmra.mrb[22].mxu0 %v8558_v4  ;;  %v40083_v4 = vld [vmem:[#allocation31_spill] sm:$0xff] }
 0xeeb   :  { %30495 = vmatpush3.bf16.msra.mxu0 %v36262_v29  ;;  %26049 = vmatprep.mubr.msk.f32.mxu0 %vm33090_vm1, %v39869_v3 }
 0xeec   :  { %30496 = vmatprep.subr.bf16.mxu0 %v39868_v19 }
 0xeef   :  { %30498 = vmatpush3.bf16.msra.mxu0 %v36269_v31 }
 0xef0   :  { %30499 = vmatprep.subr.bf16.mxu0 %v39868_v19 }
 0xef3   :  { %30501 = vmatpush3.bf16.msra.mxu0 %v36275_v43 }
 0xef4   :  { %30502 = vmatprep.subr.bf16.mxu0 %v39868_v19 }
 0xef7   :  { %30504 = vmatpush3.bf16.msra.mxu0 %v36281_v46 }
 0xef8   :  { %30505 = vmatprep.subr.bf16.mxu0 %v39868_v19 }
 0xefa   :  { %26050 = vmatmul.mubr.f32.vlgmr.msra.gmra.mrb[22].mxu0 %v8556_v33 }
 0xefb   :  { %30507 = vmatpush3.bf16.msra.mxu0 %v36152_v30  ;;  %26068 = vmatprep.mubr.msk.f32.mxu0 %vm33090_vm1, %v39869_v3  ;;  %v40058_v30 = vld [vmem:[#allocation6_spill] sm:$0xff] }
 0xefc   :  { %30508 = vmatprep.subr.bf16.mxu0 %v39868_v19 }
 0xeff   :  { %30510 = vmatpush3.bf16.msra.mxu0 %v36165_v49  ;;  %v40063_v49 = vld [vmem:[#allocation11_spill] sm:$0xff] }
 0xf00   :  { %30511 = vmatprep.subr.bf16.mxu0 %v39868_v19 }
 0xf03   :  { %30513 = vmatpush3.bf16.msra.mxu0 %v36175_v42 }
 0xf04   :  { %30514 = vmatprep.subr.bf16.mxu0 %v39868_v19 }
 0xf07   :  { %30516 = vmatpush3.bf16.msra.mxu0 %v36179_v11 }
 0xf08   :  { %30518 = vmatprep.subr.bf16.mxu0 %v33813_v9 }
 0xf0a   :  { %26069 = vmatmul.mubr.f32.vlgmr.msra.gmra.mrb[22].mxu0 %v8556_v33  ;;  %v40081_v33 = vld [vmem:[#allocation29_spill] sm:$0xff] }
 0xf0b   :  { %30520 = vmatpush3.bf16.msra.mxu0 %v33813_v9 }
 0xf0c   :  { %30522 = vmatprep.subr.bf16.mxu0 %v33817_v41 }
 0xf0f   :  { %30524 = vmatpush3.bf16.msra.mxu0 %v33817_v41 }
 0xf10   :  { %30526 = vmatprep.subr.bf16.mxu0 %v40058_v30 }
 0xf13   :  { %30528 = vmatpush3.bf16.msra.mxu0 %v40058_v30 }
 0xf14   :  { %30530 = vmatprep.subr.bf16.mxu0 %v40059_v7 }
 0xf17   :  { %30532 = vmatpush3.bf16.msra.mxu0 %v40059_v7 }
 0xf18   :  { %30534 = vmatprep.subr.bf16.mxu0 %v40060_v56 }
 0xf1b   :  { %30536 = vmatpush3.bf16.msra.mxu0 %v40060_v56 }
 0xf1c   :  { %30538 = vmatprep.subr.bf16.mxu0 %v40061_v36 }
 0xf1f   :  { %30540 = vmatpush3.bf16.msra.mxu0 %v40061_v36 }
 0xf20   :  { %30542 = vmatprep.subr.bf16.mxu0 %v40062_v28 }
 0xf23   :  { %30544 = vmatpush3.bf16.msra.mxu0 %v40062_v28 }
 0xf24   :  { %30546 = vmatprep.subr.bf16.mxu0 %v40063_v49 }
 0xf27   :  { %30548 = vmatpush3.bf16.msra.mxu0 %v40063_v49 }
 0xf28   :  { %30550 = vmatprep.subr.bf16.mxu0 %v40064_v35 }
 0xfdd   :  { %v36372_v17 = vpop.f32.mrb[22].mxu0 }
 0xfde   :  { %v9020_v18 = vmul.f32 %v36372_v17, %v36372_v17  ;;  %v36377_v42 = vand.u32 4294901760, %v36372_v17  ;;  %v26070_v11 = vpop.f32.mrb[23].mxu0 }
 0xfe0   :  { %v9103_v39 = vsub.f32 %v36372_v17, %v36377_v42  ;;  %v36381_v29 = vand.u32 4294901760, %v9020_v18 }
 0xfe2   :  { %v9113_v31 = vsub.f32 %v9020_v18, %v36381_v29  ;;  %v9104_v43 = vand.u32 4294901760, %v9103_v39 }
 0xfe4   :  { %v9105_v46 = vsub.f32 %v9103_v39, %v9104_v43  ;;  %v9114_v27 = vand.u32 4294901760, %v9113_v31 }
 0xfe6   :  { %v9106_v63 = vand.u32 4294901760, %v9105_v46  ;;  %v9115_v51 = vsub.f32 %v9113_v31, %v9114_v27 }
 0xfe8   :  { %26103 = vmatprep.mubr.f32.mxu0 %v9106_v63  ;;  %v9116_v48 = vand.u32 4294901760, %v9115_v51 }
 0xfea   :  { %26104 = vmatmul.mubr.f32.vlgmr.msra.gmra.mrb[24].mxu0 %v9116_v48 }
 0xfeb   :  { %30552 = vmatpush3.bf16.msra.mxu0 %v40064_v35  ;;  %26138 = vmatprep.mubr.f32.mxu0 %v36377_v42 }
 0xfec   :  { %30554 = vmatprep.subr.bf16.mxu0 %v40065_v55 }
 0xfef   :  { %30556 = vmatpush3.bf16.msra.mxu0 %v40065_v55 }
 0xff0   :  { %30558 = vmatprep.subr.bf16.mxu0 %v40066_v1 }
 0xff3   :  { %30560 = vmatpush3.bf16.msra.mxu0 %v40066_v1 }
 0xff4   :  { %30562 = vmatprep.subr.bf16.mxu0 %v40067_v25 }
 0xff7   :  { %30564 = vmatpush3.bf16.msra.mxu0 %v40067_v25 }
 0xff8   :  { %30566 = vmatprep.subr.bf16.mxu0 %v40068_v21 }
 0xffb   :  { %30568 = vmatpush3.bf16.msra.mxu0 %v40068_v21 }
 0xffc   :  { %30570 = vmatprep.subr.bf16.mxu0 %v40069_v13 }
 0xfff   :  { %30572 = vmatpush3.bf16.msra.mxu0 %v40069_v13  ;;  %v36701_v13 = vld [vmem:[%s39427_s5 + $0xe0] sm:$0xff] }
0x1000   :  { %30574 = vmatprep.subr.bf16.mxu0 %v40070_v26  ;;  %v10917_v1 = vand.u32 4294901760, %v36701_v13 }
0x1003   :  { %30576 = vmatpush3.bf16.msra.mxu0 %v40070_v26 }
0x1004   :  { %30578 = vmatprep.subr.bf16.mxu0 %v40071_v22 }
0x1007   :  { %30580 = vmatpush3.bf16.msra.mxu0 %v40071_v22 }
0x1008   :  { %30582 = vmatprep.subr.bf16.mxu0 %v40072_v12 }
0x100a   :  { %26139 = vmatmul.mubr.f32.vlgmr.msra.gmra.mrb[24].mxu0 %v36381_v29 }
0x100b   :  { %30584 = vmatpush3.bf16.msra.mxu0 %v40072_v12  ;;  %26173 = vmatprep.mubr.f32.mxu0 %v9103_v39 }
0x100c   :  { %30586 = vmatprep.subr.bf16.mxu0 %v40073_v5 }
0x100f   :  { %30588 = vmatpush3.bf16.msra.mxu0 %v40073_v5 }
0x1010   :  { %30590 = vmatprep.subr.bf16.mxu0 %v40074_v6 }
0x1013   :  { %30592 = vmatpush3.bf16.msra.mxu0 %v40074_v6  ;;  %v21429_v6 = vld [vmem:[%s39427_s5 + $0xd8] sm:$0xff] }
0x1014   :  { %30594 = vmatprep.subr.bf16.mxu0 %v40075_v24 }
0x1017   :  { %30596 = vmatpush3.bf16.msra.mxu0 %v40075_v24  ;;  %v21428_v24 = vld [vmem:[%s39427_s5 + $0xd0] sm:$0xff] }
0x1018   :  { %30598 = vmatprep.subr.bf16.mxu0 %v40076_v58  ;;  %v10911_v26 = vand.u32 4294901760, %v21428_v24 }
0x101b   :  { %30600 = vmatpush3.bf16.msra.mxu0 %v40076_v58 }
0x101c   :  { %30602 = vmatprep.subr.bf16.mxu0 %v40077_v54 }
0x101f   :  { %30604 = vmatpush3.bf16.msra.mxu0 %v40077_v54 }
0x1020   :  { %30606 = vmatprep.subr.bf16.mxu0 %v40078_v52 }
0x1023   :  { %30608 = vmatpush3.bf16.msra.mxu0 %v40078_v52 }
0x1024   :  { %30610 = vmatprep.subr.bf16.mxu0 %v40079_v20 }
0x1027   :  { %30612 = vmatpush3.bf16.msra.mxu0 %v40079_v20 }
0x1028   :  { %30614 = vmatprep.subr.bf16.mxu0 %v33813_v9 }
0x102a   :  { %26174 = vmatmul.mubr.f32.vlgmr.msra.gmra.mrb[24].mxu0 %v9113_v31 }
0x102b   :  { %30616 = vmatpush3.bf16.msra.mxu0 %v33813_v9  ;;  %26208 = vmatprep.mubr.f32.mxu0 %v9104_v43  ;;  %v21412_v43 = vld [vmem:[%s39434_s10] ss:$0 sm:$0xff] }
0x102c   :  { %30618 = vmatprep.subr.bf16.mxu0 %v33817_v41 }
0x102f   :  { %30620 = vmatpush3.bf16.msra.mxu0 %v33817_v41 }
0x1030   :  { %30622 = vmatprep.subr.bf16.mxu0 %v40058_v30 }
0x1033   :  { %30624 = vmatpush3.bf16.msra.mxu0 %v40058_v30 }
0x1034   :  { %30626 = vmatprep.subr.bf16.mxu0 %v40059_v7 }
0x1037   :  { %30628 = vmatpush3.bf16.msra.mxu0 %v40059_v7 }
0x1038   :  { %30630 = vmatprep.subr.bf16.mxu0 %v40060_v56 }
0x103b   :  { %30632 = vmatpush3.bf16.msra.mxu0 %v40060_v56 }
0x103c   :  { %30634 = vmatprep.subr.bf16.mxu0 %v40061_v36 }
0x103f   :  { %30636 = vmatpush3.bf16.msra.mxu0 %v40061_v36 }
0x1040   :  { %30638 = vmatprep.subr.bf16.mxu0 %v40062_v28 }
0x1043   :  { %30640 = vmatpush3.bf16.msra.mxu0 %v40062_v28 }
0x1044   :  { %30642 = vmatprep.subr.bf16.mxu0 %v40063_v49 }
0x1047   :  { %30644 = vmatpush3.bf16.msra.mxu0 %v40063_v49 }
0x1048   :  { %30646 = vmatprep.subr.bf16.mxu0 %v40080_v8 }
0x104a   :  { %26209 = vmatmul.mubr.f32.vlgmr.msra.gmra.mrb[24].mxu0 %v9114_v27 }
0x104b   :  { %30648 = vmatpush3.bf16.msra.mxu0 %v40080_v8  ;;  %26243 = vmatprep.mubr.f32.mxu0 %v36377_v42 }
0x104c   :  { %30650 = vmatprep.subr.bf16.mxu0 %v40081_v33 }
0x104f   :  { %30652 = vmatpush3.bf16.msra.mxu0 %v40081_v33 }
0x1050   :  { %30654 = vmatprep.subr.bf16.mxu0 %v40082_v50 }
0x1053   :  { %30656 = vmatpush3.bf16.msra.mxu0 %v40082_v50 }
0x1054   :  { %30658 = vmatprep.subr.bf16.mxu0 %v40083_v4 }
0x1057   :  { %30660 = vmatpush3.bf16.msra.mxu0 %v40083_v4 }
0x1058   :  { %30662 = vmatprep.subr.bf16.mxu0 %v40084_v61 }
0x105b   :  { %30664 = vmatpush3.bf16.msra.mxu0 %v40084_v61 }
0x105c   :  { %30666 = vmatprep.subr.bf16.mxu0 %v40085_v14 }
0x105f   :  { %30668 = vmatpush3.bf16.msra.mxu0 %v40085_v14 }
0x1060   :  { %30670 = vmatprep.subr.bf16.mxu0 %v40086_v57 }
0x1063   :  { %30672 = vmatpush3.bf16.msra.mxu0 %v40086_v57 }
0x1064   :  { %30674 = vmatprep.subr.bf16.mxu0 %v40087_v34 }
0x1067   :  { %30676 = vmatpush3.bf16.msra.mxu0 %v40087_v34 }
0x1068   :  { %30678 = vmatprep.subr.bf16.mxu0 %v33813_v9 }
0x106a   :  { %26244 = vmatmul.mubr.f32.vlgmr.msra.gmra.mrb[24].mxu0 %v36381_v29 }
0x106b   :  { %30680 = vmatpush3.bf16.msra.mxu0 %v33813_v9  ;;  %26278 = vmatprep.mubr.f32.mxu0 %v36377_v42 }
0x106c   :  { %30682 = vmatprep.subr.bf16.mxu0 %v33817_v41 }
0x106f   :  { %30684 = vmatpush3.bf16.msra.mxu0 %v33817_v41 }
0x1070   :  { %30686 = vmatprep.subr.bf16.mxu0 %v40058_v30 }
0x1073   :  { %30688 = vmatpush3.bf16.msra.mxu0 %v40058_v30 }
0x1074   :  { %30690 = vmatprep.subr.bf16.mxu0 %v40059_v7 }
0x1077   :  { %30692 = vmatpush3.bf16.msra.mxu0 %v40059_v7 }
0x1078   :  { %30694 = vmatprep.subr.bf16.mxu0 %v40060_v56 }
0x107b   :  { %30696 = vmatpush3.bf16.msra.mxu0 %v40060_v56 }
0x107c   :  { %30698 = vmatprep.subr.bf16.mxu0 %v40061_v36 }
0x107f   :  { %30700 = vmatpush3.bf16.msra.mxu0 %v40061_v36 }
0x1080   :  { %30702 = vmatprep.subr.bf16.mxu0 %v40062_v28 }
0x1083   :  { %30704 = vmatpush3.bf16.msra.mxu0 %v40062_v28 }
0x1084   :  { %30706 = vmatprep.subr.bf16.mxu0 %v40063_v49 }
0x1087   :  { %30708 = vmatpush3.bf16.msra.mxu0 %v40063_v49 }
0x1088   :  { %30853 = vmatprep.subr.bf16.mxu0 %v39868_v19 }
0x108a   :  { %26279 = vmatmul.mubr.f32.vlgmr.msra.gmra.mrb[24].mxu0 %v36381_v29  ;;  %v21413_v29 = vld [vmem:[%s39435_s11] ss:$0 sm:$0xff] }
0x108b   :  { %26499 = vmatprep.mubr.msk.f32.mxu0 %vm33090_vm1, %v39869_v3 }
0x115d   :  { %v26280_v44 = vpop.f32.mrb[24].mxu0 }
0x115e   :  { %v9695_v45 = vpop.f32.mrb[25].mxu0 }
0x115f   :  { %v9705_v18 = vmul.f32 %v9695_v45, %v9695_v45  ;;  %v9707_v42 = vsub.f32 %v36372_v17, %v9695_v45 }
0x1161   :  { %v9706_v11 = vsub.f32 %v26280_v44, %v9705_v18  ;;  %v40089_v18 = vld [vmem:[#allocation36_spill] sm:$0xff] }
0x1163   :  { %v9708_v39 = vadd.f32 1e-05, %v9706_v11  ;;  %v40091_v11 = vld [vmem:[#allocation38_spill] sm:$0xff] }
0x1165   :  { %33055 = vrsqrt.f32 %v9708_v39  ;;  %v40092_v39 = vld [vmem:[#allocation39_spill] sm:$0xff] }
0x116f   :  { %v33056_v31 = vpop.eup %33055 }
0x1170   :  { %v9710_v46 = vmul.f32 %v33056_v31, %v9707_v42  ;;  %v40090_v42 = vld [vmem:[#allocation37_spill] sm:$0xff]  ;;  %v40093_v31 = vld [vmem:[#allocation40_spill] sm:$0xff] }
0x1172   :  { %v9718_v27 = vmul.f32 %v21412_v43, %v9710_v46  ;;  %v40094_v43 = vld [vmem:[#allocation41_spill] sm:$0xff]  ;;  %v40095_v46 = vld [vmem:[#allocation42_spill] sm:$0xff] }
0x1174   :  { %v36479_v63 = vadd.f32 %v21413_v29, %v9718_v27  ;;  %v40096_v29 = vld [vmem:[#allocation43_spill] sm:$0xff]  ;;  %v40097_v27 = vld [vmem:[#allocation44_spill] sm:$0xff] }
0x1176   :  { %40088 = vst [vmem:[#allocation61_spill] sm:$0xff] %v36479_v63  ;;  %v36482_v51 = vand.u32 4294901760, %v36479_v63 }
0x1178   :  { %v9811_v17 = vsub.f32 %v36479_v63, %v36482_v51  ;;  %v40100_v63 = vld [vmem:[#allocation47_spill] sm:$0xff] }
0x117a   :  { %v9812_v48 = vand.u32 4294901760, %v9811_v17 }
0x117c   :  { %v9813_v44 = vsub.f32 %v9811_v17, %v9812_v48 }
0x117e   :  { %v9814_v45 = vand.u32 4294901760, %v9813_v44  ;;  %v40098_v44 = vld [vmem:[#allocation45_spill] sm:$0xff] }
0x1180   :  { %26314 = vmatmul.mubr.f32.vlgmr.msra.gmra.mrb[18].mxu1 %v9814_v45  ;;  %v40099_v45 = vld [vmem:[#allocation46_spill] sm:$0xff] }
0x1181   :  { %30735 = vmatpush3.bf16.msra.mxu1 %v40089_v18  ;;  %26348 = vmatprep.mubr.msk.f32.mxu1 %vm33090_vm1, %v39869_v3 }
0x1182   :  { %30736 = vmatprep.subr.bf16.mxu1 %v39868_v19 }
0x1185   :  { %30738 = vmatpush3.bf16.msra.mxu1 %v40090_v42 }
0x1186   :  { %30739 = vmatprep.subr.bf16.mxu1 %v39868_v19 }
0x1189   :  { %30741 = vmatpush3.bf16.msra.mxu1 %v40091_v11 }
0x118a   :  { %30742 = vmatprep.subr.bf16.mxu1 %v39868_v19 }
0x118d   :  { %30744 = vmatpush3.bf16.msra.mxu1 %v40092_v39 }
0x118e   :  { %30745 = vmatprep.subr.bf16.mxu1 %v39868_v19 }
0x1191   :  { %30747 = vmatpush3.bf16.msra.mxu1 %v40093_v31  ;;  %v21415_v31 = vld [vmem:[%s39829_s23 + $0x28] sm:$0xff] }
0x1192   :  { %30748 = vmatprep.subr.bf16.mxu1 %v39868_v19  ;;  %v10382_v11 = vand.u32 4294901760, %v21415_v31 }
0x1195   :  { %30750 = vmatpush3.bf16.msra.mxu1 %v40094_v43  ;;  %v21414_v43 = vld [vmem:[%s39829_s23 + $0x20] sm:$0xff] }
0x1196   :  { %30751 = vmatprep.subr.bf16.mxu1 %v39868_v19  ;;  %v10379_v39 = vand.u32 4294901760, %v21414_v43 }
0x1198   :  { %v36587_v42 = vpack.c.bf16 %v10382_v11, %v10379_v39  ;;  %v10459_v18 = vsub.f32 %v21414_v43, %v10379_v39 }
0x1199   :  { %30753 = vmatpush3.bf16.msra.mxu1 %v40095_v46  ;;  %v40103_v46 = vld [vmem:[#allocation50_spill] sm:$0xff] }
0x119a   :  { %30754 = vmatprep.subr.bf16.mxu1 %v39868_v19  ;;  %30855 = vmatpush3.bf16.msra.mxu0 %v36587_v42 }
0x119b   :  { %30856 = vmatprep.subr.bf16.mxu0 %v39868_v19 }
0x119d   :  { %30756 = vmatpush3.bf16.msra.mxu1 %v40096_v29  ;;  %v40101_v29 = vld [vmem:[#allocation48_spill] sm:$0xff] }
0x119e   :  { %30757 = vmatprep.subr.bf16.mxu1 %v39868_v19 }
0x11a0   :  { %26349 = vmatmul.mubr.f32.vlgmr.msra.gmra.mrb[18].mxu1 %v36482_v51 }
0x11a1   :  { %30759 = vmatpush3.bf16.msra.mxu1 %v40097_v27  ;;  %26383 = vmatprep.mubr.msk.f32.mxu1 %vm33090_vm1, %v39869_v3  ;;  %v40102_v27 = vld [vmem:[#allocation49_spill] sm:$0xff] }
0x11a2   :  { %30760 = vmatprep.subr.bf16.mxu1 %v39868_v19 }
0x11a5   :  { %30762 = vmatpush3.bf16.msra.mxu1 %v40098_v44  ;;  %v40104_v44 = vld [vmem:[#allocation51_spill] sm:$0xff] }
0x11a6   :  { %30763 = vmatprep.subr.bf16.mxu1 %v39868_v19 }
0x11a9   :  { %30765 = vmatpush3.bf16.msra.mxu1 %v40099_v45  ;;  %v40112_v45 = vld [vmem:[#allocation60_spill] sm:$0xff] }
0x11aa   :  { %30766 = vmatprep.subr.bf16.mxu1 %v39868_v19 }
0x11ad   :  { %30768 = vmatpush3.bf16.msra.mxu1 %v40100_v63  ;;  %v40111_v63 = vld [vmem:[#allocation59_spill] sm:$0xff] }
0x11ae   :  { %30769 = vmatprep.subr.bf16.mxu1 %v39868_v19 }
0x11b1   :  { %30771 = vmatpush3.bf16.msra.mxu1 %v40101_v29  ;;  %v40110_v29 = vld [vmem:[#allocation58_spill] sm:$0xff] }
0x11b2   :  { %30772 = vmatprep.subr.bf16.mxu1 %v39868_v19 }
0x11b5   :  { %30774 = vmatpush3.bf16.msra.mxu1 %v40102_v27  ;;  %v40108_v27 = vld [vmem:[#allocation56_spill] sm:$0xff] }
0x11b6   :  { %30775 = vmatprep.subr.bf16.mxu1 %v39868_v19 }
0x11b9   :  { %30777 = vmatpush3.bf16.msra.mxu1 %v40103_v46  ;;  %v40107_v46 = vld [vmem:[#allocation55_spill] sm:$0xff] }
0x11ba   :  { %30778 = vmatprep.subr.bf16.mxu1 %v39868_v19 }
0x11bd   :  { %30780 = vmatpush3.bf16.msra.mxu1 %v40104_v44  ;;  %v40106_v44 = vld [vmem:[#allocation54_spill] sm:$0xff] }
0x11be   :  { %30781 = vmatprep.subr.bf16.mxu1 %v39868_v19 }
0x11c0   :  { %26384 = vmatmul.mubr.f32.vlgmr.msra.gmra.mrb[18].mxu1 %v9811_v17  ;;  %v40105_v17 = vld [vmem:[#allocation53_spill] sm:$0xff] }
0x11c1   :  { %30783 = vmatpush3.bf16.msra.mxu1 %v34224_v10  ;;  %26418 = vmatprep.mubr.msk.f32.mxu1 %vm33090_vm1, %v39869_v3 }
0x11c2   :  { %30784 = vmatprep.subr.bf16.mxu1 %v39868_v19 }
0x11c5   :  { %30786 = vmatpush3.bf16.msra.mxu1 %v34234_v16 }
0x11c6   :  { %30787 = vmatprep.subr.bf16.mxu1 %v39868_v19 }
0x11c9   :  { %30789 = vmatpush3.bf16.msra.mxu1 %v34244_v15 }
0x11ca   :  { %30790 = vmatprep.subr.bf16.mxu1 %v39868_v19 }
0x11cd   :  { %30792 = vmatpush3.bf16.msra.mxu1 %v34254_v47 }
0x11ce   :  { %30793 = vmatprep.subr.bf16.mxu1 %v39868_v19 }
0x11d1   :  { %30795 = vmatpush3.bf16.msra.mxu1 %v34264_v40 }
0x11d2   :  { %30796 = vmatprep.subr.bf16.mxu1 %v39868_v19 }
0x11d5   :  { %30798 = vmatpush3.bf16.msra.mxu1 %v34280_v23 }
0x11d6   :  { %30799 = vmatprep.subr.bf16.mxu1 %v39868_v19 }
0x11d9   :  { %30801 = vmatpush3.bf16.msra.mxu1 %v34300_v62 }
0x11da   :  { %30802 = vmatprep.subr.bf16.mxu1 %v39868_v19 }
0x11dd   :  { %30804 = vmatpush3.bf16.msra.mxu1 %v34326_v37 }
0x11de   :  { %30805 = vmatprep.subr.bf16.mxu1 %v39868_v19 }
0x11e0   :  { %26419 = vmatmul.mubr.f32.vlgmr.msra.gmra.mrb[18].mxu1 %v9812_v48  ;;  %v40109_v48 = vld [vmem:[#allocation57_spill] sm:$0xff] }
0x11e1   :  { %30807 = vmatpush3.bf16.msra.mxu1 %v40105_v17  ;;  %26453 = vmatprep.mubr.msk.f32.mxu1 %vm33090_vm1, %v39869_v3 }
0x11e2   :  { %30808 = vmatprep.subr.bf16.mxu1 %v39868_v19 }
0x11e5   :  { %30810 = vmatpush3.bf16.msra.mxu1 %v40106_v44 }
0x11e6   :  { %30811 = vmatprep.subr.bf16.mxu1 %v39868_v19 }
0x11e9   :  { %30813 = vmatpush3.bf16.msra.mxu1 %v40107_v46 }
0x11ea   :  { %30814 = vmatprep.subr.bf16.mxu1 %v39868_v19 }
0x11ed   :  { %30816 = vmatpush3.bf16.msra.mxu1 %v40108_v27  ;;  %v10460_v27 = vand.u32 4294901760, %v10459_v18 }
0x11ee   :  { %30817 = vmatprep.subr.bf16.mxu1 %v39868_v19 }
0x11f1   :  { %30819 = vmatpush3.bf16.msra.mxu1 %v40109_v48 }
0x11f2   :  { %30820 = vmatprep.subr.bf16.mxu1 %v39868_v19 }
0x11f5   :  { %30822 = vmatpush3.bf16.msra.mxu1 %v40110_v29 }
0x11f6   :  { %30823 = vmatprep.subr.bf16.mxu1 %v39868_v19 }
0x11f9   :  { %30825 = vmatpush3.bf16.msra.mxu1 %v40111_v63  ;;  %v21417_v63 = vld [vmem:[%s39829_s23 + $0x38] sm:$0xff] }
0x11fa   :  { %30826 = vmatprep.subr.bf16.mxu1 %v39868_v19  ;;  %v10388_v48 = vand.u32 4294901760, %v21417_v63 }
0x11fd   :  { %30828 = vmatpush3.bf16.msra.mxu1 %v40112_v45  ;;  %v10466_v45 = vsub.f32 %v21415_v31, %v10382_v11  ;;  %v10480_v11 = vsub.f32 %v21417_v63, %v10388_v48  ;;  %v10461_v31 = vsub.f32 %v10459_v18, %v10460_v27 }
0x11fe   :  { %30829 = vmatprep.subr.bf16.mxu1 %v39868_v19 }
0x11ff   :  { %v10467_v46 = vand.u32 4294901760, %v10466_v45  ;;  %v10462_v17 = vand.u32 4294901760, %v10461_v31  ;;  %v10481_v14 = vand.u32 4294901760, %v10480_v11  ;;  %v30866_v52 = vpack.c.bf16 %v10466_v45, %v10459_v18 }
0x1200   :  { %26454 = vmatmul.mubr.f32.vlgmr.msra.gmra.mrb[18].mxu1 %v36482_v51 }
0x1201   :  { %30831 = vmatpush3.bf16.msra.mxu1 %v34224_v10  ;;  %26488 = vmatprep.mubr.msk.f32.mxu1 %vm33090_vm1, %v39869_v3  ;;  %v10468_v43 = vsub.f32 %v10466_v45, %v10467_v46  ;;  %v10482_v50 = vsub.f32 %v10480_v11, %v10481_v14 }
0x1202   :  { %30832 = vmatprep.subr.bf16.mxu1 %v39868_v19 }
0x1203   :  { %v10469_v34 = vand.u32 4294901760, %v10468_v43  ;;  %v10483_v8 = vand.u32 4294901760, %v10482_v50 }
0x1205   :  { %30834 = vmatpush3.bf16.msra.mxu1 %v34234_v16  ;;  %v30860_v61 = vpack.c.bf16 %v10469_v34, %v10462_v17 }
0x1206   :  { %30835 = vmatprep.subr.bf16.mxu1 %v39868_v19 }
0x1209   :  { %30837 = vmatpush3.bf16.msra.mxu1 %v34244_v15 }
0x120a   :  { %30838 = vmatprep.subr.bf16.mxu1 %v39868_v19 }
0x120d   :  { %30840 = vmatpush3.bf16.msra.mxu1 %v34254_v47 }
0x120e   :  { %30841 = vmatprep.subr.bf16.mxu1 %v39868_v19 }
0x1211   :  { %30843 = vmatpush3.bf16.msra.mxu1 %v34264_v40 }
0x1212   :  { %30844 = vmatprep.subr.bf16.mxu1 %v39868_v19 }
0x1215   :  { %30846 = vmatpush3.bf16.msra.mxu1 %v34280_v23 }
0x1216   :  { %30847 = vmatprep.subr.bf16.mxu1 %v39868_v19 }
0x1219   :  { %30849 = vmatpush3.bf16.msra.mxu1 %v34300_v62 }
0x121a   :  { %30850 = vmatprep.subr.bf16.mxu1 %v39868_v19 }
0x121d   :  { %30852 = vmatpush3.bf16.msra.mxu1 %v34326_v37 }
0x121e   :  { %31033 = vmatprep.subr.bf16.mxu1 %v39868_v19 }
0x1220   :  { %26489 = vmatmul.mubr.f32.vlgmr.msra.gmra.mrb[18].mxu1 %v36482_v51  ;;  %v21416_v51 = vld [vmem:[%s39829_s23 + $0x30] sm:$0xff] }
0x1221   :  { %26783 = vmatprep.mubr.msk.f32.mxu1 %vm33090_vm1, %v39869_v3  ;;  %v10385_v29 = vand.u32 4294901760, %v21416_v51 }
0x1223   :  { %v36597_v44 = vpack.c.bf16 %v10388_v48, %v10385_v29  ;;  %v10473_v39 = vsub.f32 %v21416_v51, %v10385_v29  ;;  %v30878_v29 = vpack.c.bf16 %v10467_v46, %v10460_v27  ;;  %v33084_v51 = vld [vmem:[%s39426_s0 + $0x8] sm:$0xff] }
0x1224   :  { %v21423_v46 = vld [vmem:[%s39427_s5 + $0xa8] sm:$0xff] }
0x1225   :  { %30858 = vmatpush3.bf16.msra.mxu0 %v36597_v44  ;;  %v10474_v57 = vand.u32 4294901760, %v10473_v39  ;;  %v30869_v54 = vpack.c.bf16 %v10480_v11, %v10473_v39  ;;  %v10896_v45 = vand.u32 4294901760, %v21423_v46  ;;  %v21425_v11 = vld [vmem:[%s39427_s5 + $0xb8] sm:$0xff] }
0x1226   :  { %30859 = vmatprep.subr.bf16.mxu0 %v39868_v19 }
0x1227   :  { %v10475_v4 = vsub.f32 %v10473_v39, %v10474_v57  ;;  %v30881_v63 = vpack.c.bf16 %v10481_v14, %v10474_v57  ;;  %v21424_v39 = vld [vmem:[%s39427_s5 + $0xb0] sm:$0xff]  ;;  %v36743_v56 = vsub.f32 %v21423_v46, %v10896_v45 }
0x1229   :  { %v10476_v33 = vand.u32 4294901760, %v10475_v4 }
0x122b   :  { %v30863_v20 = vpack.c.bf16 %v10483_v8, %v10476_v33  ;;  %v21420_v33 = vld [vmem:[%s39427_s5 + $0x90] sm:$0xff] }
0x122c   :  { %v10887_v57 = vand.u32 4294901760, %v21420_v33 }
0x12f3   :  { %v36601_v48 = vpop.f32.mrb[18].mxu1 }
0x12f4   :  { %40113 = vst [vmem:[#allocation52_spill] sm:$0xff] %v36601_v48  ;;  %v10370_v31 = vsub.f32 %v33084_v51, %v36601_v48  ;;  %v26490_v43 = vpop.f32.mrb[19].mxu1  ;;  %v10902_v51 = vand.u32 4294901760, %v21425_v11 }
0x12f5   :  { %v21427_v43 = vld [vmem:[%s39427_s5 + $0xc8] sm:$0xff] }
0x12f6   :  { %v10376_v34 = vsel %vm103_vm0, %v10370_v31, 0  ;;  %v21426_v31 = vld [vmem:[%s39427_s5 + $0xc0] sm:$0xff]  ;;  %v36760_v41 = vsub.f32 %v21425_v11, %v10902_v51 }
0x12f7   :  { %v10447_v17 = vand.u32 4294901760, %v10376_v34 }
0x12f9   :  { %v10448_v58 = vsub.f32 %v10376_v34, %v10447_v17 }
0x12fb   :  { %v10449_v4 = vand.u32 4294901760, %v10448_v58 }
0x12fd   :  { %v10450_v50 = vsub.f32 %v10448_v58, %v10449_v4 }
0x12ff   :  { %v10451_v8 = vand.u32 4294901760, %v10450_v50  ;;  %v33085_v50 = vld [vmem:[%s39437_s15] ss:$0 sm:$0xff] }
0x1301   :  { %26500 = vmatmul.mubr.f32.vlgmr.msra.gmra.mrb[26].mxu0 %v10451_v8  ;;  %v40114_v8 = vld [vmem:[#allocation62_spill] sm:$0xff] }
0x1302   :  { %30861 = vmatpush3.bf16.msra.mxu0 %v30860_v61  ;;  %26510 = vmatprep.mubr.msk.f32.mxu0 %vm33090_vm1, %v39869_v3  ;;  %v21421_v61 = vld [vmem:[%s39427_s5 + $0x98] sm:$0xff]  ;;  %v5835_v48 = vsub.f32 %v40114_v8, %v33085_v50  ;;  %v10914_v50 = vand.u32 4294901760, %v21429_v6 }
0x1303   :  { %30862 = vmatprep.subr.bf16.mxu0 %v39868_v19  ;;  %v10890_v18 = vand.u32 4294901760, %v21421_v61 }
0x1304   :  { %v36695_v8 = vand.u32 4294901760, %v5835_v48  ;;  %v36715_v25 = vpack.c.bf16 %v10914_v50, %v10911_v26 }
0x1305   :  { %v36653_v27 = vpack.c.bf16 %v10890_v18, %v10887_v57 }
0x1306   :  { %30864 = vmatpush3.bf16.msra.mxu0 %v30863_v20 }
0x1307   :  { %30865 = vmatprep.subr.bf16.mxu0 %v39868_v19 }
0x1309   :  { %26511 = vmatmul.mubr.f32.vlgmr.msra.gmra.mrb[26].mxu0 %v10447_v17 }
0x130a   :  { %30867 = vmatpush3.bf16.msra.mxu0 %v30866_v52  ;;  %26521 = vmatprep.mubr.msk.f32.mxu0 %vm33090_vm1, %v39869_v3 }
0x130b   :  { %30868 = vmatprep.subr.bf16.mxu0 %v39868_v19 }
0x130e   :  { %30870 = vmatpush3.bf16.msra.mxu0 %v30869_v54  ;;  %v21419_v54 = vld [vmem:[%s39427_s5 + $0x88] sm:$0xff] }
0x130f   :  { %30871 = vmatprep.subr.bf16.mxu0 %v39868_v19  ;;  %v10884_v20 = vand.u32 4294901760, %v21419_v54 }
0x1311   :  { %26522 = vmatmul.mubr.f32.vlgmr.msra.gmra.mrb[26].mxu0 %v10448_v58  ;;  %v21418_v58 = vld [vmem:[%s39427_s5 + $0x80] sm:$0xff]  ;;  %v36690_v12 = vsub.f32 %v21419_v54, %v10884_v20  ;;  %v36708_v54 = vsub.f32 %v21420_v33, %v10887_v57  ;;  %v36723_v33 = vld [vmem:[%s39427_s5 + $0xf0] sm:$0xff]  ;;  %v36731_v57 = vsub.f32 %v5835_v48, %v36695_v8 }
0x1312   :  { %30873 = vmatpush3.bf16.msra.mxu0 %v36587_v42  ;;  %26532 = vmatprep.mubr.msk.f32.mxu0 %vm33090_vm1, %v39869_v3  ;;  %v10881_v52 = vand.u32 4294901760, %v21418_v58 }
0x1313   :  { %30874 = vmatprep.subr.bf16.mxu0 %v39868_v19  ;;  %v40115_v35 = vand.u32 4294901760, %v36690_v12  ;;  %v40116_v36 = vand.u32 4294901760, %v36708_v54 }
0x1314   :  { %v36643_v14 = vpack.c.bf16 %v10884_v20, %v10881_v52  ;;  %v36688_v5 = vsub.f32 %v21418_v58, %v10881_v52  ;;  %v36706_v58 = vld [vmem:[%s39427_s5 + $0xe8] sm:$0xff]  ;;  %v36710_v52 = vsub.f32 %v21421_v61, %v10890_v18  ;;  %v36728_v61 = vld [vmem:[%s39427_s5 + $0xf8] sm:$0xff] }
0x1315   :  { %v10920_v55 = vand.u32 4294901760, %v36706_v58  ;;  %v10982_v49 = vsub.f32 %v36690_v12, %v40115_v35  ;;  %v10989_v46 = vsub.f32 %v36708_v54, %v40116_v36 }
0x1316   :  { %30876 = vmatpush3.bf16.msra.mxu0 %v36597_v44  ;;  %v39709_v20 = vand.u32 4294901760, %v36688_v5 }
0x1317   :  { %30877 = vmatprep.subr.bf16.mxu0 %v39868_v19  ;;  %v36746_v48 = vpack.c.bf16 %v10920_v55, %v10917_v1  ;;  %v10983_v28 = vand.u32 4294901760, %v10982_v49  ;;  %v40118_v49 = vand.u32 4294901760, %v36731_v57 }
0x1318   :  { %v10975_v21 = vsub.f32 %v36688_v5, %v39709_v20 }
0x1319   :  { %26533 = vmatmul.mubr.f32.vlgmr.msra.gmra.mrb[26].mxu0 %v10449_v4  ;;  %v10908_v4 = vand.u32 4294901760, %v21427_v43  ;;  %v10964_v36 = vsub.f32 %v36731_v57, %v40118_v49 }
0x131a   :  { %30879 = vmatpush3.bf16.msra.mxu0 %v30878_v29  ;;  %26543 = vmatprep.mubr.msk.f32.mxu0 %vm33090_vm1, %v39869_v3  ;;  %v10976_v35 = vand.u32 4294901760, %v10975_v21 }
0x131b   :  { %30880 = vmatprep.subr.bf16.mxu0 %v39868_v19 }
0x131c   :  { %v30914_v11 = vpack.c.bf16 %v10983_v28, %v10976_v35  ;;  %v36785_v28 = vsub.f32 %v21428_v24, %v10911_v26 }
0x131e   :  { %30882 = vmatpush3.bf16.msra.mxu0 %v30881_v63  ;;  %v10899_v63 = vand.u32 4294901760, %v21424_v39  ;;  %v11044_v24 = vand.u32 4294901760, %v36785_v28 }
0x131f   :  { %30883 = vmatprep.subr.bf16.mxu0 %v39868_v19 }
0x1320   :  { %v36675_v34 = vpack.c.bf16 %v10902_v51, %v10899_v63  ;;  %v36752_v7 = vsub.f32 %v21424_v39, %v10899_v63  ;;  %v39720_v39 = vand.u32 4294901760, %v36743_v56  ;;  %v36773_v63 = vsub.f32 %v21427_v43, %v10908_v4 }
0x1321   :  { %26544 = vmatmul.mubr.f32.vlgmr.msra.gmra.mrb[26].mxu0 %v10447_v17  ;;  %v10990_v51 = vand.u32 4294901760, %v10989_v46 }
0x1322   :  { %30885 = vmatpush3.bf16.msra.mxu0 %v36587_v42  ;;  %26554 = vmatprep.mubr.msk.f32.mxu0 %vm33090_vm1, %v39869_v3  ;;  %v21422_v42 = vld [vmem:[%s39427_s5 + $0xa0] sm:$0xff]  ;;  %v11010_v38 = vsub.f32 %v36743_v56, %v39720_v39  ;;  %v11016_v32 = vand.u32 4294901760, %v36752_v7  ;;  %v39721_v35 = vand.u32 4294901760, %v36773_v63 }
0x1323   :  { %30886 = vmatprep.subr.bf16.mxu0 %v39868_v19 }
0x1324   :  { %v11011_v49 = vand.u32 4294901760, %v11010_v38  ;;  %v11017_v39 = vsub.f32 %v36752_v7, %v11016_v32  ;;  %v11038_v38 = vsub.f32 %v36773_v63, %v39721_v35  ;;  %v11045_v35 = vsub.f32 %v36785_v28, %v11044_v24 }
0x1326   :  { %30888 = vmatpush3.bf16.msra.mxu0 %v36597_v44  ;;  %v10893_v44 = vand.u32 4294901760, %v21422_v42 }
0x1327   :  { %30889 = vmatprep.subr.bf16.mxu0 %v39868_v19 }
0x1328   :  { %v36665_v29 = vpack.c.bf16 %v10896_v45, %v10893_v44  ;;  %v36733_v18 = vsub.f32 %v21422_v42, %v10893_v44  ;;  %v10923_v42 = vand.u32 4294901760, %v36723_v33  ;;  %v10926_v44 = vand.u32 4294901760, %v36728_v61 }
0x1329   :  { %26555 = vmatmul.mubr.f32.vlgmr.msra.gmra.mrb[26].mxu0 %v10447_v17  ;;  %v10905_v17 = vand.u32 4294901760, %v21426_v31  ;;  %v40117_v45 = vand.u32 4294901760, %v36710_v52 }
0x132a   :  { %30891 = vmatpush3.bf16.msra.mxu0 %v36643_v14  ;;  %26589 = vmatprep.mubr.msk.f32.mxu0 %vm33090_vm1, %v39869_v3  ;;  %v36763_v9 = vpack.c.bf16 %v10926_v44, %v10923_v42  ;;  %v11002_v20 = vand.u32 4294901760, %v36733_v18 }
0x132b   :  { %30892 = vmatprep.subr.bf16.mxu0 %v39868_v19  ;;  %v36693_v22 = vpack.c.bf16 %v10908_v4, %v10905_v17  ;;  %v10996_v30 = vsub.f32 %v36710_v52, %v40117_v45  ;;  %v36771_v21 = vsub.f32 %v21426_v31, %v10905_v17  ;;  %v11023_v31 = vand.u32 4294901760, %v36760_v41 }
0x132c   :  { %v11003_v59 = vsub.f32 %v36733_v18, %v11002_v20  ;;  %v10965_v17 = vand.u32 4294901760, %v10964_v36  ;;  %v36812_v36 = vsub.f32 %v36706_v58, %v10920_v55  ;;  %v36825_v58 = vsub.f32 %v36728_v61, %v10926_v44 }
0x132d   :  { %v10997_v45 = vand.u32 4294901760, %v10996_v30  ;;  %v36787_v30 = vsub.f32 %v21429_v6, %v10914_v50  ;;  %v11030_v4 = vand.u32 4294901760, %v36771_v21  ;;  %v11024_v26 = vsub.f32 %v36760_v41, %v11023_v31 }
0x132e   :  { %30894 = vmatpush3.bf16.msra.mxu0 %v36653_v27  ;;  %v11004_v46 = vand.u32 4294901760, %v11003_v59  ;;  %v36801_v6 = vsub.f32 %v36701_v13, %v10917_v1  ;;  %v36816_v13 = vsub.f32 %v36723_v33, %v10923_v42  ;;  %v11065_v33 = vand.u32 4294901760, %v36812_v36 }
0x132f   :  { %30895 = vmatprep.subr.bf16.mxu0 %v39868_v19  ;;  %v30917_v43 = vpack.c.bf16 %v10997_v45, %v10990_v51  ;;  %v11031_v59 = vsub.f32 %v36771_v21, %v11030_v4  ;;  %v11051_v50 = vand.u32 4294901760, %v36787_v30  ;;  %v11018_v51 = vand.u32 4294901760, %v11017_v39 }
0x1330   :  { %v11025_v1 = vand.u32 4294901760, %v11024_v26  ;;  %v11066_v61 = vsub.f32 %v36812_v36, %v11065_v33  ;;  %v11072_v44 = vand.u32 4294901760, %v36816_v13 }
0x1331   :  { %v11032_v45 = vand.u32 4294901760, %v11031_v59  ;;  %v11052_v55 = vsub.f32 %v36787_v30, %v11051_v50  ;;  %v11079_v59 = vand.u32 4294901760, %v36825_v58 }
0x1332   :  { %30897 = vmatpush3.bf16.msra.mxu0 %v36665_v29  ;;  %v30923_v39 = vpack.c.bf16 %v11025_v1, %v11018_v51  ;;  %v11073_v51 = vsub.f32 %v36816_v13, %v11072_v44 }
0x1333   :  { %30898 = vmatprep.subr.bf16.mxu0 %v39868_v19  ;;  %v11080_v1 = vsub.f32 %v36825_v58, %v11079_v59 }
0x1336   :  { %30900 = vmatpush3.bf16.msra.mxu0 %v36675_v34 }
0x1337   :  { %30901 = vmatprep.subr.bf16.mxu0 %v39868_v19 }
0x133a   :  { %30903 = vmatpush3.bf16.msra.mxu0 %v36693_v22 }
0x133b   :  { %30904 = vmatprep.subr.bf16.mxu0 %v39868_v19 }
0x133e   :  { %30906 = vmatpush3.bf16.msra.mxu0 %v36715_v25 }
0x133f   :  { %30907 = vmatprep.subr.bf16.mxu0 %v39868_v19 }
0x1342   :  { %30909 = vmatpush3.bf16.msra.mxu0 %v36746_v48 }
0x1343   :  { %30910 = vmatprep.subr.bf16.mxu0 %v39868_v19 }
0x1346   :  { %30912 = vmatpush3.bf16.msra.mxu0 %v36763_v9 }
0x1347   :  { %30913 = vmatprep.subr.bf16.mxu0 %v39868_v19 }
0x1349   :  { %26590 = vmatmul.mubr.f32.vlgmr.msra.gmra.mrb[28].mxu0 %v10965_v17  ;;  %v11039_v17 = vand.u32 4294901760, %v11038_v38 }
0x134a   :  { %30915 = vmatpush3.bf16.msra.mxu0 %v30914_v11  ;;  %26624 = vmatprep.mubr.msk.f32.mxu0 %vm33090_vm1, %v39869_v3  ;;  %v30920_v11 = vpack.c.bf16 %v11011_v49, %v11004_v46  ;;  %v11046_v46 = vand.u32 4294901760, %v11045_v35  ;;  %v11053_v49 = vand.u32 4294901760, %v11052_v55  ;;  %v11067_v35 = vand.u32 4294901760, %v11066_v61 }
0x134b   :  { %30916 = vmatprep.subr.bf16.mxu0 %v39868_v19  ;;  %v30926_v42 = vpack.c.bf16 %v11039_v17, %v11032_v45  ;;  %v11074_v17 = vand.u32 4294901760, %v11073_v51  ;;  %v11081_v55 = vand.u32 4294901760, %v11080_v1  ;;  %v30950_v61 = vpack.c.bf16 %v36773_v63, %v36771_v21 }
0x134c   :  { %v30929_v38 = vpack.c.bf16 %v11053_v49, %v11046_v46  ;;  %v30941_v46 = vpack.c.bf16 %v36710_v52, %v36708_v54  ;;  %v30944_v49 = vpack.c.bf16 %v36743_v56, %v36733_v18  ;;  %v40119_v51 = vand.u32 4294901760, %v36688_v5 }
0x134d   :  { %v40120_v1 = vand.u32 4294901760, %v36690_v12 }
0x134e   :  { %30918 = vmatpush3.bf16.msra.mxu0 %v30917_v43  ;;  %v11058_v43 = vand.u32 4294901760, %v36801_v6 }
0x134f   :  { %30919 = vmatprep.subr.bf16.mxu0 %v39868_v19 }
0x1350   :  { %v11059_v26 = vsub.f32 %v36801_v6, %v11058_v43 }
0x1352   :  { %30921 = vmatpush3.bf16.msra.mxu0 %v30920_v11  ;;  %v11060_v11 = vand.u32 4294901760, %v11059_v26  ;;  %v30947_v26 = vpack.c.bf16 %v36760_v41, %v36752_v7  ;;  %v31004_v41 = vpack.c.bf16 %v11065_v33, %v11058_v43 }
0x1353   :  { %30922 = vmatprep.subr.bf16.mxu0 %v39868_v19 }
0x1354   :  { %v30932_v45 = vpack.c.bf16 %v11067_v35, %v11060_v11  ;;  %v30956_v11 = vpack.c.bf16 %v36812_v36, %v36801_v6  ;;  %v30959_v35 = vpack.c.bf16 %v36825_v58, %v36816_v13 }
0x1356   :  { %30924 = vmatpush3.bf16.msra.mxu0 %v30923_v39  ;;  %v30935_v39 = vpack.c.bf16 %v11081_v55, %v11074_v17  ;;  %v40121_v17 = vand.u32 4294901760, %v36731_v57  ;;  %v40122_v55 = vand.u32 4294901760, %v36708_v54  ;;  %v30995_v54 = vpack.c.bf16 %v11023_v31, %v11016_v32  ;;  %v21449_v31 = vld [vmem:[%s39429_s7 + $0x78] sm:$0xff] }
0x1357   :  { %30925 = vmatprep.subr.bf16.mxu0 %v39868_v19  ;;  %v31007_v32 = vpack.c.bf16 %v11079_v59, %v11072_v44  ;;  %v11687_v33 = vand.u32 4294901760, %v21449_v31 }
0x1359   :  { %v37023_v59 = vsub.f32 %v21449_v31, %v11687_v33 }
0x135a   :  { %30927 = vmatpush3.bf16.msra.mxu0 %v30926_v42  ;;  %v30938_v42 = vpack.c.bf16 %v36690_v12, %v36688_v5  ;;  %v40124_v12 = vand.u32 4294901760, %v36743_v56  ;;  %v31001_v56 = vpack.c.bf16 %v11051_v50, %v11044_v24 }
0x135b   :  { %30928 = vmatprep.subr.bf16.mxu0 %v39868_v19 }
0x135c   :  { %v30992_v5 = vpack.c.bf16 %v40124_v12, %v11002_v20 }
0x135e   :  { %30930 = vmatpush3.bf16.msra.mxu0 %v30929_v38  ;;  %v30953_v38 = vpack.c.bf16 %v36787_v30, %v36785_v28 }
0x135f   :  { %30931 = vmatprep.subr.bf16.mxu0 %v39868_v19 }
0x1362   :  { %30933 = vmatpush3.bf16.msra.mxu0 %v30932_v45  ;;  %v30986_v45 = vpack.c.bf16 %v40120_v1, %v40119_v51 }
0x1363   :  { %30934 = vmatprep.subr.bf16.mxu0 %v39868_v19 }
0x1366   :  { %30936 = vmatpush3.bf16.msra.mxu0 %v30935_v39  ;;  %v40123_v39 = vand.u32 4294901760, %v36710_v52  ;;  %v40125_v52 = vand.u32 4294901760, %v36773_v63  ;;  %v21448_v63 = vld [vmem:[%s39429_s7 + $0x70] sm:$0xff] }
0x1367   :  { %30937 = vmatprep.subr.bf16.mxu0 %v39868_v19  ;;  %v11684_v43 = vand.u32 4294901760, %v21448_v63 }
0x1369   :  { %26625 = vmatmul.mubr.f32.vlgmr.msra.gmra.mrb[28].mxu0 %v36695_v8  ;;  %v37021_v44 = vsub.f32 %v21448_v63, %v11684_v43 }
0x136a   :  { %30939 = vmatpush3.bf16.msra.mxu0 %v30938_v42  ;;  %26659 = vmatprep.mubr.msk.f32.mxu0 %vm33090_vm1, %v39869_v3  ;;  %v30989_v42 = vpack.c.bf16 %v40123_v39, %v40122_v55 }
0x136b   :  { %30940 = vmatprep.subr.bf16.mxu0 %v39868_v19 }
0x136e   :  { %30942 = vmatpush3.bf16.msra.mxu0 %v30941_v46 }
0x136f   :  { %30943 = vmatprep.subr.bf16.mxu0 %v39868_v19 }
0x1372   :  { %30945 = vmatpush3.bf16.msra.mxu0 %v30944_v49  ;;  %v37030_v49 = vpack.c.bf16 %v11687_v33, %v11684_v43 }
0x1373   :  { %30946 = vmatprep.subr.bf16.mxu0 %v39868_v19 }
0x1376   :  { %30948 = vmatpush3.bf16.msra.mxu0 %v30947_v26 }
0x1377   :  { %30949 = vmatprep.subr.bf16.mxu0 %v39868_v19 }
0x137a   :  { %30951 = vmatpush3.bf16.msra.mxu0 %v30950_v61 }
0x137b   :  { %30952 = vmatprep.subr.bf16.mxu0 %v39868_v19 }
0x137e   :  { %30954 = vmatpush3.bf16.msra.mxu0 %v30953_v38 }
0x137f   :  { %30955 = vmatprep.subr.bf16.mxu0 %v39868_v19 }
0x1382   :  { %30957 = vmatpush3.bf16.msra.mxu0 %v30956_v11 }
0x1383   :  { %30958 = vmatprep.subr.bf16.mxu0 %v39868_v19 }
0x1386   :  { %30960 = vmatpush3.bf16.msra.mxu0 %v30959_v35 }
0x1387   :  { %30961 = vmatprep.subr.bf16.mxu0 %v39868_v19 }
0x1389   :  { %26660 = vmatmul.mubr.f32.vlgmr.msra.gmra.mrb[28].mxu0 %v36731_v57  ;;  %v30998_v57 = vpack.c.bf16 %v40125_v52, %v11030_v4 }
0x138a   :  { %30963 = vmatpush3.bf16.msra.mxu0 %v36643_v14  ;;  %26694 = vmatprep.mubr.msk.f32.mxu0 %vm33090_vm1, %v39869_v3 }
0x138b   :  { %30964 = vmatprep.subr.bf16.mxu0 %v39868_v19 }
0x138e   :  { %30966 = vmatpush3.bf16.msra.mxu0 %v36653_v27 }
0x138f   :  { %30967 = vmatprep.subr.bf16.mxu0 %v39868_v19 }
0x1392   :  { %30969 = vmatpush3.bf16.msra.mxu0 %v36665_v29 }
0x1393   :  { %30970 = vmatprep.subr.bf16.mxu0 %v39868_v19 }
0x1396   :  { %30972 = vmatpush3.bf16.msra.mxu0 %v36675_v34 }
0x1397   :  { %30973 = vmatprep.subr.bf16.mxu0 %v39868_v19 }
0x139a   :  { %30975 = vmatpush3.bf16.msra.mxu0 %v36693_v22 }
0x139b   :  { %30976 = vmatprep.subr.bf16.mxu0 %v39868_v19 }
0x139e   :  { %30978 = vmatpush3.bf16.msra.mxu0 %v36715_v25 }
0x139f   :  { %30979 = vmatprep.subr.bf16.mxu0 %v39868_v19 }
0x13a2   :  { %30981 = vmatpush3.bf16.msra.mxu0 %v36746_v48 }
0x13a3   :  { %30982 = vmatprep.subr.bf16.mxu0 %v39868_v19 }
0x13a6   :  { %30984 = vmatpush3.bf16.msra.mxu0 %v36763_v9 }
0x13a7   :  { %30985 = vmatprep.subr.bf16.mxu0 %v39868_v19 }
0x13a9   :  { %26695 = vmatmul.mubr.f32.vlgmr.msra.gmra.mrb[28].mxu0 %v40121_v17 }
0x13aa   :  { %30987 = vmatpush3.bf16.msra.mxu0 %v30986_v45  ;;  %26729 = vmatprep.mubr.msk.f32.mxu0 %vm33090_vm1, %v39869_v3 }
0x13ab   :  { %30988 = vmatprep.subr.bf16.mxu0 %v39868_v19 }
0x13ae   :  { %30990 = vmatpush3.bf16.msra.mxu0 %v30989_v42 }
0x13af   :  { %30991 = vmatprep.subr.bf16.mxu0 %v39868_v19 }
0x13b2   :  { %30993 = vmatpush3.bf16.msra.mxu0 %v30992_v5 }
0x13b3   :  { %30994 = vmatprep.subr.bf16.mxu0 %v39868_v19 }
0x13b6   :  { %30996 = vmatpush3.bf16.msra.mxu0 %v30995_v54 }
0x13b7   :  { %30997 = vmatprep.subr.bf16.mxu0 %v39868_v19 }
0x13ba   :  { %30999 = vmatpush3.bf16.msra.mxu0 %v30998_v57 }
0x13bb   :  { %31000 = vmatprep.subr.bf16.mxu0 %v39868_v19 }
0x13be   :  { %31002 = vmatpush3.bf16.msra.mxu0 %v31001_v56 }
0x13bf   :  { %31003 = vmatprep.subr.bf16.mxu0 %v39868_v19 }
0x13c2   :  { %31005 = vmatpush3.bf16.msra.mxu0 %v31004_v41 }
0x13c3   :  { %31006 = vmatprep.subr.bf16.mxu0 %v39868_v19 }
0x13c6   :  { %31008 = vmatpush3.bf16.msra.mxu0 %v31007_v32 }
0x13c7   :  { %31009 = vmatprep.subr.bf16.mxu0 %v39868_v19 }
0x13c9   :  { %26730 = vmatmul.mubr.f32.vlgmr.msra.gmra.mrb[28].mxu0 %v36695_v8 }
0x13ca   :  { %31011 = vmatpush3.bf16.msra.mxu0 %v36643_v14  ;;  %26764 = vmatprep.mubr.msk.f32.mxu0 %vm33090_vm1, %v39869_v3 }
0x13cb   :  { %31012 = vmatprep.subr.bf16.mxu0 %v39868_v19 }
0x13ce   :  { %31014 = vmatpush3.bf16.msra.mxu0 %v36653_v27 }
0x13cf   :  { %31015 = vmatprep.subr.bf16.mxu0 %v39868_v19 }
0x13d2   :  { %31017 = vmatpush3.bf16.msra.mxu0 %v36665_v29  ;;  %v21444_v29 = vld [vmem:[%s39429_s7 + $0x50] sm:$0xff] }
0x13d3   :  { %31018 = vmatprep.subr.bf16.mxu0 %v39868_v19  ;;  %v11672_v20 = vand.u32 4294901760, %v21444_v29 }
0x13d5   :  { %v37009_v24 = vsub.f32 %v21444_v29, %v11672_v20 }
0x13d6   :  { %31020 = vmatpush3.bf16.msra.mxu0 %v36675_v34  ;;  %v21445_v34 = vld [vmem:[%s39429_s7 + $0x58] sm:$0xff] }
0x13d7   :  { %31021 = vmatprep.subr.bf16.mxu0 %v39868_v19  ;;  %v11675_v18 = vand.u32 4294901760, %v21445_v34  ;;  %v11765_v1 = vand.u32 4294901760, %v37009_v24 }
0x13d9   :  { %v37011_v50 = vsub.f32 %v21445_v34, %v11675_v18  ;;  %v37016_v13 = vpack.c.bf16 %v11675_v18, %v11672_v20  ;;  %v11766_v55 = vsub.f32 %v37009_v24, %v11765_v1 }
0x13da   :  { %31023 = vmatpush3.bf16.msra.mxu0 %v36693_v22  ;;  %v21443_v22 = vld [vmem:[%s39429_s7 + $0x48] sm:$0xff] }
0x13db   :  { %31024 = vmatprep.subr.bf16.mxu0 %v39868_v19  ;;  %v11669_v27 = vand.u32 4294901760, %v21443_v22  ;;  %v39727_v45 = vand.u32 4294901760, %v37011_v50  ;;  %v11767_v42 = vand.u32 4294901760, %v11766_v55 }
0x13dd   :  { %v37007_v4 = vsub.f32 %v21443_v22, %v11669_v27  ;;  %v11773_v39 = vsub.f32 %v37011_v50, %v39727_v45 }
0x13de   :  { %31026 = vmatpush3.bf16.msra.mxu0 %v36715_v25  ;;  %v21442_v25 = vld [vmem:[%s39429_s7 + $0x40] sm:$0xff] }
0x13df   :  { %31027 = vmatprep.subr.bf16.mxu0 %v39868_v19  ;;  %v11666_v14 = vand.u32 4294901760, %v21442_v25  ;;  %v11758_v61 = vand.u32 4294901760, %v37007_v4  ;;  %v11774_v12 = vand.u32 4294901760, %v11773_v39 }
0x13e1   :  { %v37003_v28 = vpack.c.bf16 %v11669_v27, %v11666_v14  ;;  %v37005_v30 = vsub.f32 %v21442_v25, %v11666_v14  ;;  %v11759_v11 = vsub.f32 %v37007_v4, %v11758_v61  ;;  %v37055_v52 = vpack.c.bf16 %v11774_v12, %v11767_v42 }
0x13e2   :  { %31029 = vmatpush3.bf16.msra.mxu0 %v36746_v48  ;;  %v21447_v48 = vld [vmem:[%s39429_s7 + $0x68] sm:$0xff]  ;;  %v39723_v25 = vand.u32 4294901760, %v37023_v59 }
0x13e3   :  { %31030 = vmatprep.subr.bf16.mxu0 %v39868_v19  ;;  %v11681_v6 = vand.u32 4294901760, %v21447_v48  ;;  %31035 = vmatpush3.bf16.msra.mxu1 %v37003_v28  ;;  %v11751_v26 = vand.u32 4294901760, %v37005_v30  ;;  %v11760_v51 = vand.u32 4294901760, %v11759_v11 }
0x13e4   :  { %31036 = vmatprep.subr.bf16.mxu1 %v39868_v19  ;;  %v11801_v27 = vsub.f32 %v37023_v59, %v39723_v25 }
0x13e5   :  { %v37018_v58 = vsub.f32 %v21447_v48, %v11681_v6  ;;  %v11752_v38 = vsub.f32 %v37005_v30, %v11751_v26 }
0x13e6   :  { %31032 = vmatpush3.bf16.msra.mxu0 %v36763_v9  ;;  %v11802_v34 = vand.u32 4294901760, %v11801_v27 }
0x13e7   :  { %31297 = vmatprep.subr.bf16.mxu0 %v39868_v19  ;;  %31038 = vmatpush3.bf16.msra.mxu1 %v37016_v13  ;;  %v11753_v35 = vand.u32 4294901760, %v11752_v38  ;;  %v39725_v54 = vand.u32 4294901760, %v37018_v58 }
0x13e8   :  { %31039 = vmatprep.subr.bf16.mxu1 %v39868_v19 }
0x13e9   :  { %26765 = vmatmul.mubr.f32.vlgmr.msra.gmra.mrb[28].mxu0 %v36695_v8  ;;  %v21446_v8 = vld [vmem:[%s39429_s7 + $0x60] sm:$0xff]  ;;  %v37045_v17 = vpack.c.bf16 %v11760_v51, %v11753_v35  ;;  %v11787_v56 = vsub.f32 %v37018_v58, %v39725_v54 }
0x13ea   :  { %31299 = vmatpush3.bf16.msra.mxu0 %v34224_v10  ;;  %27123 = vmatprep.mubr.msk.f32.mxu0 %vm33090_vm1, %v39869_v3  ;;  %v11678_v21 = vand.u32 4294901760, %v21446_v8 }
0x13eb   :  { %31300 = vmatprep.subr.bf16.mxu0 %v39868_v19  ;;  %v11788_v32 = vand.u32 4294901760, %v11787_v56 }
0x13ec   :  { %v37013_v36 = vsub.f32 %v21446_v8, %v11678_v21  ;;  %v37026_v46 = vpack.c.bf16 %v11681_v6, %v11678_v21 }
0x13ee   :  { %31302 = vmatpush3.bf16.msra.mxu0 %v34234_v16  ;;  %31041 = vmatpush3.bf16.msra.mxu1 %v37026_v46  ;;  %v39726_v5 = vand.u32 4294901760, %v37013_v36 }
0x13ef   :  { %31303 = vmatprep.subr.bf16.mxu0 %v39868_v19  ;;  %31042 = vmatprep.subr.bf16.mxu1 %v39868_v19 }
0x13f0   :  { %v11780_v57 = vsub.f32 %v37013_v36, %v39726_v5 }
0x13f2   :  { %31305 = vmatpush3.bf16.msra.mxu0 %v34244_v15  ;;  %31044 = vmatpush3.bf16.msra.mxu1 %v37030_v49  ;;  %v11781_v41 = vand.u32 4294901760, %v11780_v57 }
0x13f3   :  { %31306 = vmatprep.subr.bf16.mxu0 %v39868_v19  ;;  %31045 = vmatprep.subr.bf16.mxu1 %v39868_v19 }
0x13f4   :  { %v37065_v22 = vpack.c.bf16 %v11788_v32, %v11781_v41 }
0x13f6   :  { %31308 = vmatpush3.bf16.msra.mxu0 %v34254_v47 }
0x13f7   :  { %31309 = vmatprep.subr.bf16.mxu0 %v39868_v19 }
0x13fa   :  { %31311 = vmatpush3.bf16.msra.mxu0 %v34264_v40 }
0x13fb   :  { %31312 = vmatprep.subr.bf16.mxu0 %v39868_v19 }
0x13fc   :  { %v36971_v9 = vpop.f32.mrb[26].mxu0 }
0x13fd   :  { %v26556_v7 = vpop.f32.mrb[27].mxu0 }
0x13fe   :  { %31314 = vmatpush3.bf16.msra.mxu0 %v34280_v23  ;;  %v39724_v7 = vand.u32 4294901760, %v37021_v44 }
0x13ff   :  { %31315 = vmatprep.subr.bf16.mxu0 %v39868_v19 }
0x1400   :  { %v11794_v14 = vsub.f32 %v37021_v44, %v39724_v7 }
0x1402   :  { %31317 = vmatpush3.bf16.msra.mxu0 %v34300_v62  ;;  %v11795_v29 = vand.u32 4294901760, %v11794_v14 }
0x1403   :  { %31318 = vmatprep.subr.bf16.mxu0 %v39868_v19 }
0x1404   :  { %v37073_v8 = vpack.c.bf16 %v11802_v34, %v11795_v29  ;;  %v40126_v29 = vmov 920167782  }
0x1406   :  { %31320 = vmatpush3.bf16.msra.mxu0 %v34326_v37 }
0x1407   :  { %31321 = vmatprep.subr.bf16.mxu0 %v39868_v19 }
0x14bc   :  { %v11517_v18 = vpop.f32.mrb[28].mxu0 }
0x14bd   :  { %v37080_v21 = vsub.f32 %v36971_v9, %v11517_v18  ;;  %v26766_v63 = vpop.f32.mrb[29].mxu0 }
0x14be   :  { %v40127_v63 = vmov 1326507024  }
0x14bf   :  { %v11525_v31 = vand.u32 2139095040, %v37080_v21  ;;  %v39722_v35 = vand.u32 2147483647, %v37080_v21  ;;  %vm11524_vm12 = vcmp.lt.s32.totalorder %v37080_v21, 0  ;;  %vm11614_vm4 = vweird.f32 %v37080_v21 }
0x14c1   :  { %v11526_v43 = vshrl.u32 %v11525_v31, 23  ;;  %v11529_v9 = vand.u32 8388607, %v39722_v35 }
0x14c3   :  { %v21434_v33 = vadd.s32 4294967169, %v11526_v43  ;;  %v11530_v43 = vor.u32 8388608, %v11529_v9 }
0x14c5   :  { %v11532_v11 = vadd.s32 1, %v21434_v33  ;;  %v11570_v45 = vshll.u32 %v11530_v43, 8 }
0x14c7   :  { %vm11533_vm5 = vcmp.gt.s32.totalorder %v11532_v11, 0 }
0x14c8   :  { %v11534_v51 = vsel %vm11533_vm5, %v11532_v11, 0 }
0x14c9   :  { %v11536_v55 = vand.u32 31, %v11534_v51  ;;  %v11535_v42 = vshrl.u32 %v11534_v51, 5 }
0x14cb   :  { %v11537_v39 = vsub.s32 32, %v11536_v55  ;;  %v11539_v12 = vshll.u32 %v39926_v2, %v11536_v55  ;;  %v11542_v57 = vshll.u32 %v39927_v53, %v11536_v55  ;;  %v11545_v32 = vshll.u32 %v39928_v60, %v11536_v55 }
0x14cc   :  { %v11548_v27 = vshll.u32 %v39929_v0, %v11536_v55  ;;  %v11551_v18 = vshll.u32 %v40126_v29, %v11536_v55  ;;  %vm11554_vm6 = vcmp.lt.s32.totalorder %v11535_v42, 1  ;;  %vm11557_vm7 = vcmp.lt.s32.totalorder %v11535_v42, 4 }
0x14cd   :  { %v11540_v56 = vshrl.u32 %v39927_v53, %v11537_v39  ;;  %v11543_v41 = vshrl.u32 %v39928_v60, %v11537_v39  ;;  %v11546_v14 = vshrl.u32 %v39929_v0, %v11537_v39  ;;  %v11549_v34 = vshrl.u32 %v40126_v29, %v11537_v39 }
0x14ce   :  { %v11552_v31 = vshrl.u32 %v40127_v63, %v11537_v39  ;;  %v11538_v25 = vshrl.u32 %v39926_v2, %v11537_v39  ;;  %vm11556_vm8 = vcmp.lt.s32.totalorder %v11535_v42, 3  ;;  %vm11555_vm9 = vcmp.lt.s32.totalorder %v11535_v42, 2 }
0x14cf   :  { %v11541_v33 = vor.u32 %v11540_v56, %v11539_v12  ;;  %v11544_v11 = vor.u32 %v11543_v41, %v11542_v57  ;;  %v11547_v51 = vor.u32 %v11546_v14, %v11545_v32  ;;  %v11550_v38 = vor.u32 %v11549_v34, %v11548_v27 }
0x14d0   :  { %v11553_v6 = vor.u32 %v11552_v31, %v11551_v18  ;;  %v40130_v42 = vand.u32 4294901760, %v37018_v58  ;;  %v40132_v31 = vand.u32 4294901760, %v37023_v59 }
0x14d1   :  { %v11559_v48 = vsel %vm11557_vm7, %v11547_v51, 2102212464  ;;  %v11562_v20 = vsel %vm11554_vm6, %v11541_v33, %v11544_v11  ;;  %v11566_v35 = vsel %vm11554_vm6, %v11544_v11, %v11547_v51  ;;  %v11563_v7 = vsel %vm11557_vm7, %v11550_v38, 920167782 }
0x14d2   :  { %v11567_v54 = vsel %vm11557_vm7, %v11553_v6, 1326507024  ;;  %v11564_v55 = vsel %vm11556_vm8, %v11547_v51, %v11563_v7  ;;  %v11558_v9 = vsel %vm11554_vm6, %v11538_v25, %v11541_v33  ;;  %v11560_v12 = vsel %vm11556_vm8, %v11544_v11, %v11559_v48 }
0x14d3   :  { %v11568_v5 = vsel %vm11556_vm8, %v11550_v38, %v11567_v54  ;;  %v11565_v57 = vsel %vm11555_vm9, %v11562_v20, %v11564_v55  ;;  %v11561_v34 = vsel %vm11555_vm9, %v11558_v9, %v11560_v12  ;;  %v37113_v54 = vpack.c.bf16 %v11758_v61, %v11751_v26 }
0x14d4   :  { %v11569_v56 = vsel %vm11555_vm9, %v11566_v35, %v11568_v5  ;;  %v37104_v14 = vmul.u32.u64.low %v11570_v45, %v11565_v57  ;;  %v37105_v27 = vmul.u32.u64.high %v11570_v45, %v11565_v57, %v37104_v14  ;;  %v11577_v7 = vmul.u32 %v11570_v45, %v11561_v34 }
0x14d5   :  { %v37101_v41 = vmul.u32.u64.low %v11570_v45, %v11569_v56  ;;  %v37102_v32 = vmul.u32.u64.high %v11570_v45, %v11569_v56, %v37101_v41  ;;  %v40128_v20 = vand.u32 4294901760, %v37011_v50  ;;  %v40129_v35 = vand.u32 4294901760, %v37013_v36 }
0x14d6   :  { %v11580_v39 = vadd.s32 1, %v37105_v27  ;;  %v40131_v45 = vand.u32 4294901760, %v37021_v44 }
0x14d7   :  { %vm11579_vm10 = vc.u32 %v37102_v32, %v37104_v14  ;;  %v37120_v48 = vpack.c.bf16 %v40128_v20, %v11765_v1  ;;  %v37126_v18 = vpack.c.bf16 %v40130_v42, %v40129_v35  ;;  %v11578_v9 = vadd.s32 %v37104_v14, %v37102_v32 }
0x14d8   :  { %v11581_v5 = vsel %vm11579_vm10, %v11580_v39, %v37105_v27  ;;  %v37132_v43 = vpack.c.bf16 %v40132_v31, %v40131_v45  ;;  %v40133_v35 = vand.u32 2147483647, %v37080_v21 }
0x14d9   :  { %v11582_v25 = vadd.s32 %v11581_v5, %v11577_v7 }
0x14da   :  { %vm11523_vm13 = vcmp.le.f32.partialorder %v40133_v35, 0.7853982 }
0x14db   :  { %v11583_v6 = vadd.s32 536870912, %v11582_v25 }
0x14dd   :  { %v11584_v38 = vshrl.u32 %v11583_v6, 30 }
0x14df   :  { %v11585_v26 = vshll.u32 %v11584_v38, 30 }
0x14e1   :  { %v11586_v61 = vsub.s32 %v11582_v25, %v11585_v26  ;;  %v11608_v26 = vsub.s32 4, %v11584_v38 }
0x14e3   :  { %v11588_v33 = vsub.s32 0, %v11586_v61  ;;  %v11609_v14 = vsel %vm11524_vm12, %v11608_v26, %v11584_v38 }
0x14e5   :  { %v21435_v11 = vmin.u32 %v11588_v33, %v11586_v61 }
0x14e7   :  { %v11590_v1 = vclz %v21435_v11 }
0x14e9   :  { %v21436_v51 = vadd.s32 4294967294, %v11590_v1 }
0x14eb   :  { %vm21437_vm11 = vcmp.lt.s32.totalorder %v21436_v51, 0 }
0x14ec   :  { %v11593_v55 = vsel %vm21437_vm11, 0, %v21436_v51  ;;  %v21439_v51 = vld [vmem:[%s39430_s8 + $0x1] sm:$0x1] }
0x14ed   :  { %v11594_v12 = vsub.s32 32, %v11593_v55  ;;  %v11598_v57 = vsub.s32 4294967266, %v11593_v55  ;;  %v11595_v56 = vshll.u32 %v11586_v61, %v11593_v55  ;;  %v11611_v61 = vsel %vm11523_vm13, 0, %v11609_v14 }
0x14ee   :  { %v11615_v45 = vand.u32 3, %v11611_v61 }
0x14ef   :  { %v11596_v41 = vshrl.u32 %v11578_v9, %v11594_v12  ;;  %v11599_v27 = vadd.s32 127, %v11598_v57  ;;  %v11630_v57 = vsub.f32 -1.0, %v21439_v51 }
0x14f0   :  { %vm11620_vm14 = vcmp.eq.s32.totalorder %v11615_v45, 2  ;;  %vm11617_vm2 = vcmp.eq.s32.totalorder %v11615_v45, 0  ;;  %vm11616_vm3 = vcmp.lt.s32.totalorder %v11615_v45, 2 }
0x14f1   :  { %v11597_v34 = vor.u32 %v11596_v41, %v11595_v56  ;;  %v11600_v39 = vshll.u32 %v11599_v27, 23  ;;  %v40134_v27 = vld [vmem:[#allocation3_spill] sm:$0xff] }
0x14f3   :  { %v11601_v7 = vor.u32 4788187, %v11600_v39  ;;  %v11604_v25 = vcvt.s32.f32 %v11597_v34  ;;  %v11635_v34 = vrot.slane %v11630_v57, %v40134_v27  ;;  %v11642_v39 = vrot.slane %v21439_v51, %v40134_v27  ;;  %v40150_v57 = vld [vmem:[#allocation24_spill] sm:$0xff] }
0x14f5   :  { %v11602_v5 = vand.u32 2147483647, %v11601_v7 }
0x14f7   :  { %v11605_v20 = vmul.f32 %v11604_v25, %v11602_v5 }
0x14f9   :  { %v11606_v6 = vxor.u32 2147483648, %v11605_v20 }
0x14fb   :  { %v11607_v42 = vsel %vm11524_vm12, %v11606_v6, %v11605_v20  ;;  %v21441_v20 = vld [vmem:[%s39431_s9 + $0x1] ss:$0 sm:$0xff] }
0x14fc   :  { %v11610_v32 = vsel %vm11523_vm13, %v37080_v21, %v11607_v42 }
0x14fd   :  { %33057 = vcosq.f32 %v11610_v32 }
0x14fe   :  { %33059 = vsinq.f32 %v11610_v32 }
0x1507   :  { %v33058_v31 = vpop.eup %33057 }
0x1508   :  { %v33060_v33 = vpop.eup %33059  ;;  %v11621_v11 = vxor.u32 2147483648, %v33058_v31 }
0x1509   :  { %v11618_v1 = vxor.u32 2147483648, %v33060_v33 }
0x150a   :  { %v11622_v55 = vsel %vm11620_vm14, %v11621_v11, %v33060_v33 }
0x150b   :  { %v11619_v9 = vsel %vm11617_vm2, %v33058_v31, %v11618_v1 }
0x150c   :  { %v11623_v12 = vsel %vm11616_vm3, %v11619_v9, %v11622_v55  ;;  %v40148_v9 = vld [vmem:[#allocation13_spill] sm:$0xff] }
0x150d   :  { %v11624_v38 = vsel %vm11614_vm4, nan, %v11623_v12  ;;  %v40149_v12 = vld [vmem:[#allocation14_spill] sm:$0xff] }
0x150e   :  { %v11625_v56 = vmul.f32 2.0, %v11624_v38  ;;  %v11637_v5 = vadd.f32 %v11635_v34, %v11624_v38  ;;  %v40154_v34 = vld [vmem:[#allocation17_spill] sm:$0xff] }
0x1510   :  { %v11626_v41 = vmul.f32 %v11625_v56, %v11624_v38  ;;  %v40151_v38 = vld [vmem:[#allocation25_spill] sm:$0xff]  ;;  %v40152_v56 = vld [vmem:[#allocation15_spill] sm:$0xff] }
0x1512   :  { %v21438_v7 = vadd.f32 -1.0, %v11626_v41  ;;  %v40153_v41 = vld [vmem:[#allocation16_spill] sm:$0xff] }
0x1514   :  { %v11644_v25 = vmul.f32 %v21438_v7, %v11642_v39  ;;  %v40155_v39 = vld [vmem:[#allocation18_spill] sm:$0xff]  ;;  %v40156_v7 = vld [vmem:[#allocation19_spill] sm:$0xff] }
0x1516   :  { %v11645_v6 = vadd.f32 %v11644_v25, %v11637_v5  ;;  %v40157_v5 = vld [vmem:[#allocation20_spill] sm:$0xff]  ;;  %v40158_v25 = vld [vmem:[#allocation26_spill] sm:$0xff] }
0x1518   :  { %v11652_v35 = vmul.f32 %v21441_v20, %v11645_v6  ;;  %v40159_v20 = vld [vmem:[#allocation27_spill] sm:$0xff]  ;;  %v40160_v6 = vld [vmem:[#allocation21_spill] sm:$0xff] }
0x151a   :  { %v11653_v42 = vadd.f32 1.0, %v11652_v35  ;;  %v40161_v35 = vld [vmem:[#allocation22_spill] sm:$0xff] }
0x151c   :  { %v11663_v21 = vsel %vm1391_vm15, %v11653_v42, 0  ;;  %v40162_v42 = vld [vmem:[#allocation23_spill] sm:$0xff] }
0x151d   :  { %v11738_v26 = vand.u32 4294901760, %v11663_v21 }
0x151f   :  { %v11739_v32 = vsub.f32 %v11663_v21, %v11738_v26  ;;  %v40163_v21 = vld [vmem:[#allocation28_spill] sm:$0xff] }
0x1521   :  { %v11740_v14 = vand.u32 4294901760, %v11739_v32 }
0x1523   :  { %v11741_v61 = vsub.f32 %v11739_v32, %v11740_v14 }
0x1525   :  { %v11742_v45 = vand.u32 4294901760, %v11741_v61  ;;  %v40167_v61 = vld [vmem:[#allocation32_spill] sm:$0xff] }
0x1527   :  { %26784 = vmatmul.mubr.f32.vlgmr.msra.gmra.mrb[20].mxu1 %v11742_v45  ;;  %v40168_v45 = vld [vmem:[#allocation33_spill] sm:$0xff] }
0x1528   :  { %31047 = vmatpush3.bf16.msra.mxu1 %v37045_v17  ;;  %26802 = vmatprep.mubr.msk.f32.mxu1 %vm33090_vm1, %v39869_v3  ;;  %v40135_v17 = vpack.c.bf16 %v37007_v4, %v37005_v30  ;;  %v40138_v30 = vpack.c.bf16 %v37023_v59, %v37021_v44  ;;  %v40139_v4 = vld [vmem:[#allocation4_spill] sm:$0xff]  ;;  %v40146_v44 = vld [vmem:[#allocation11_spill] sm:$0xff] }
0x1529   :  { %31048 = vmatprep.subr.bf16.mxu1 %v39868_v19  ;;  %v40147_v59 = vld [vmem:[#allocation12_spill] sm:$0xff] }
0x152c   :  { %31050 = vmatpush3.bf16.msra.mxu1 %v37055_v52  ;;  %v40136_v52 = vpack.c.bf16 %v37011_v50, %v37009_v24  ;;  %v40141_v24 = vld [vmem:[#allocation6_spill] sm:$0xff]  ;;  %v40142_v50 = vld [vmem:[#allocation7_spill] sm:$0xff] }
0x152d   :  { %31051 = vmatprep.subr.bf16.mxu1 %v39868_v19 }
0x1530   :  { %31053 = vmatpush3.bf16.msra.mxu1 %v37065_v22  ;;  %v40137_v22 = vpack.c.bf16 %v37018_v58, %v37013_v36  ;;  %v40143_v36 = vld [vmem:[#allocation8_spill] sm:$0xff]  ;;  %v40145_v58 = vld [vmem:[#allocation10_spill] sm:$0xff] }
0x1531   :  { %31054 = vmatprep.subr.bf16.mxu1 %v39868_v19 }
0x1534   :  { %31056 = vmatpush3.bf16.msra.mxu1 %v37073_v8 }
0x1535   :  { %31057 = vmatprep.subr.bf16.mxu1 %v39868_v19 }
0x1537   :  { %26803 = vmatmul.mubr.f32.vlgmr.msra.gmra.mrb[20].mxu1 %v11738_v26 }
0x1538   :  { %31059 = vmatpush3.bf16.msra.mxu1 %v40135_v17  ;;  %26821 = vmatprep.mubr.msk.f32.mxu1 %vm33090_vm1, %v39869_v3  ;;  %v40169_v17 = vld [vmem:[#allocation34_spill] sm:$0xff] }
0x1539   :  { %31060 = vmatprep.subr.bf16.mxu1 %v39868_v19 }
0x153c   :  { %31062 = vmatpush3.bf16.msra.mxu1 %v40136_v52  ;;  %v40170_v52 = vld [vmem:[#allocation35_spill] sm:$0xff] }
0x153d   :  { %31063 = vmatprep.subr.bf16.mxu1 %v39868_v19 }
0x1540   :  { %31065 = vmatpush3.bf16.msra.mxu1 %v40137_v22  ;;  %v40171_v22 = vld [vmem:[#allocation53_spill] sm:$0xff] }
0x1541   :  { %31066 = vmatprep.subr.bf16.mxu1 %v39868_v19 }
0x1544   :  { %31068 = vmatpush3.bf16.msra.mxu1 %v40138_v30  ;;  %v40172_v30 = vld [vmem:[#allocation54_spill] sm:$0xff] }
0x1545   :  { %31069 = vmatprep.subr.bf16.mxu1 %v39868_v19 }
0x1547   :  { %26822 = vmatmul.mubr.f32.vlgmr.msra.gmra.mrb[20].mxu1 %v11739_v32  ;;  %v40165_v32 = vld [vmem:[#allocation30_spill] sm:$0xff] }
0x1548   :  { %31071 = vmatpush3.bf16.msra.mxu1 %v37003_v28  ;;  %26840 = vmatprep.mubr.msk.f32.mxu1 %vm33090_vm1, %v39869_v3 }
0x1549   :  { %31072 = vmatprep.subr.bf16.mxu1 %v39868_v19 }
0x154c   :  { %31074 = vmatpush3.bf16.msra.mxu1 %v37016_v13 }
0x154d   :  { %31075 = vmatprep.subr.bf16.mxu1 %v39868_v19 }
0x1550   :  { %31077 = vmatpush3.bf16.msra.mxu1 %v37026_v46 }
0x1551   :  { %31078 = vmatprep.subr.bf16.mxu1 %v39868_v19 }
0x1554   :  { %31080 = vmatpush3.bf16.msra.mxu1 %v37030_v49 }
0x1555   :  { %31081 = vmatprep.subr.bf16.mxu1 %v39868_v19 }
0x1557   :  { %26841 = vmatmul.mubr.f32.vlgmr.msra.gmra.mrb[20].mxu1 %v11740_v14  ;;  %v40166_v14 = vld [vmem:[#allocation31_spill] sm:$0xff] }
0x1558   :  { %31083 = vmatpush3.bf16.msra.mxu1 %v37113_v54  ;;  %26859 = vmatprep.mubr.msk.f32.mxu1 %vm33090_vm1, %v39869_v3 }
0x1559   :  { %31084 = vmatprep.subr.bf16.mxu1 %v39868_v19 }
0x155c   :  { %31086 = vmatpush3.bf16.msra.mxu1 %v37120_v48 }
0x155d   :  { %31087 = vmatprep.subr.bf16.mxu1 %v39868_v19 }
0x1560   :  { %31089 = vmatpush3.bf16.msra.mxu1 %v37126_v18 }
0x1561   :  { %31090 = vmatprep.subr.bf16.mxu1 %v39868_v19 }
0x1564   :  { %31092 = vmatpush3.bf16.msra.mxu1 %v37132_v43 }
0x1565   :  { %31093 = vmatprep.subr.bf16.mxu1 %v39868_v19 }
0x1567   :  { %26860 = vmatmul.mubr.f32.vlgmr.msra.gmra.mrb[20].mxu1 %v11738_v26 }
0x1568   :  { %31095 = vmatpush3.bf16.msra.mxu1 %v37003_v28  ;;  %26878 = vmatprep.mubr.msk.f32.mxu1 %vm33090_vm1, %v39869_v3  ;;  %v40140_v28 = vld [vmem:[#allocation5_spill] sm:$0xff] }
0x1569   :  { %31096 = vmatprep.subr.bf16.mxu1 %v39868_v19 }
0x156c   :  { %31098 = vmatpush3.bf16.msra.mxu1 %v37016_v13  ;;  %v40144_v13 = vld [vmem:[#allocation9_spill] sm:$0xff] }
0x156d   :  { %31099 = vmatprep.subr.bf16.mxu1 %v39868_v19 }
0x1570   :  { %31101 = vmatpush3.bf16.msra.mxu1 %v37026_v46 }
0x1571   :  { %31102 = vmatprep.subr.bf16.mxu1 %v39868_v19 }
0x1574   :  { %31104 = vmatpush3.bf16.msra.mxu1 %v37030_v49 }
0x1575   :  { %31106 = vmatprep.subr.bf16.mxu1 %v40139_v4 }
0x1577   :  { %26879 = vmatmul.mubr.f32.vlgmr.msra.gmra.mrb[20].mxu1 %v11738_v26  ;;  %v40164_v26 = vld [vmem:[#allocation29_spill] sm:$0xff] }
0x1578   :  { %31108 = vmatpush3.bf16.msra.mxu1 %v40139_v4 }
0x1579   :  { %31110 = vmatprep.subr.bf16.mxu1 %v40140_v28 }
0x157c   :  { %31112 = vmatpush3.bf16.msra.mxu1 %v40140_v28 }
0x157d   :  { %31114 = vmatprep.subr.bf16.mxu1 %v40141_v24 }
0x1580   :  { %31116 = vmatpush3.bf16.msra.mxu1 %v40141_v24 }
0x1581   :  { %31118 = vmatprep.subr.bf16.mxu1 %v40142_v50 }
0x1584   :  { %31120 = vmatpush3.bf16.msra.mxu1 %v40142_v50 }
0x1585   :  { %31122 = vmatprep.subr.bf16.mxu1 %v40143_v36 }
0x1588   :  { %31124 = vmatpush3.bf16.msra.mxu1 %v40143_v36 }
0x1589   :  { %31126 = vmatprep.subr.bf16.mxu1 %v40144_v13 }
0x158c   :  { %31128 = vmatpush3.bf16.msra.mxu1 %v40144_v13 }
0x158d   :  { %31130 = vmatprep.subr.bf16.mxu1 %v40145_v58 }
0x1590   :  { %31132 = vmatpush3.bf16.msra.mxu1 %v40145_v58 }
0x1591   :  { %31134 = vmatprep.subr.bf16.mxu1 %v40146_v44 }
0x1594   :  { %31136 = vmatpush3.bf16.msra.mxu1 %v40146_v44 }
0x1595   :  { %31138 = vmatprep.subr.bf16.mxu1 %v40147_v59 }
0x164a   :  { %v37223_v46 = vpop.f32.mrb[20].mxu1 }
0x164b   :  { %v12202_v49 = vmul.f32 %v37223_v46, %v37223_v46  ;;  %v37228_v8 = vand.u32 4294901760, %v37223_v46  ;;  %v26880_v54 = vpop.f32.mrb[21].mxu1 }
0x164c   :  { %v40175_v54 = vld [vmem:[#allocation57_spill] sm:$0xff] }
0x164d   :  { %v12285_v48 = vsub.f32 %v37223_v46, %v37228_v8  ;;  %v37232_v18 = vand.u32 4294901760, %v12202_v49 }
0x164f   :  { %v12295_v43 = vsub.f32 %v12202_v49, %v37232_v18  ;;  %v12286_v31 = vand.u32 4294901760, %v12285_v48  ;;  %v40173_v49 = vld [vmem:[#allocation55_spill] sm:$0xff] }
0x1651   :  { %v12287_v33 = vsub.f32 %v12285_v48, %v12286_v31  ;;  %v12296_v11 = vand.u32 4294901760, %v12295_v43 }
0x1653   :  { %v12288_v1 = vand.u32 4294901760, %v12287_v33  ;;  %v12297_v51 = vsub.f32 %v12295_v43, %v12296_v11 }
0x1655   :  { %26913 = vmatprep.mubr.f32.mxu1 %v12288_v1  ;;  %v12298_v55 = vand.u32 4294901760, %v12297_v51 }
0x1657   :  { %26914 = vmatmul.mubr.f32.vlgmr.msra.gmra.mrb[22].mxu1 %v12298_v55 }
0x1658   :  { %31140 = vmatpush3.bf16.msra.mxu1 %v40147_v59  ;;  %26948 = vmatprep.mubr.f32.mxu1 %v37228_v8 }
0x1659   :  { %31142 = vmatprep.subr.bf16.mxu1 %v40148_v9 }
0x165c   :  { %31144 = vmatpush3.bf16.msra.mxu1 %v40148_v9 }
0x165d   :  { %31146 = vmatprep.subr.bf16.mxu1 %v40149_v12 }
0x1660   :  { %31148 = vmatpush3.bf16.msra.mxu1 %v40149_v12 }
0x1661   :  { %31150 = vmatprep.subr.bf16.mxu1 %v40150_v57 }
0x1664   :  { %31152 = vmatpush3.bf16.msra.mxu1 %v40150_v57 }
0x1665   :  { %31154 = vmatprep.subr.bf16.mxu1 %v40151_v38 }
0x1668   :  { %31156 = vmatpush3.bf16.msra.mxu1 %v40151_v38  ;;  %v33086_v38 = vld [vmem:[%s39437_s15] ss:$0 sm:$0xff] }
0x1669   :  { %31158 = vmatprep.subr.bf16.mxu1 %v40152_v56 }
0x166c   :  { %31160 = vmatpush3.bf16.msra.mxu1 %v40152_v56 }
0x166d   :  { %31162 = vmatprep.subr.bf16.mxu1 %v40153_v41 }
0x1670   :  { %31164 = vmatpush3.bf16.msra.mxu1 %v40153_v41 }
0x1671   :  { %31166 = vmatprep.subr.bf16.mxu1 %v40154_v34 }
0x1674   :  { %31168 = vmatpush3.bf16.msra.mxu1 %v40154_v34 }
0x1675   :  { %31170 = vmatprep.subr.bf16.mxu1 %v40155_v39 }
0x1677   :  { %26949 = vmatmul.mubr.f32.vlgmr.msra.gmra.mrb[22].mxu1 %v37232_v18 }
0x1678   :  { %31172 = vmatpush3.bf16.msra.mxu1 %v40155_v39  ;;  %26983 = vmatprep.mubr.f32.mxu1 %v12285_v48  ;;  %v40176_v48 = vld [vmem:[#allocation58_spill] sm:$0xff] }
0x1679   :  { %31174 = vmatprep.subr.bf16.mxu1 %v40156_v7 }
0x167c   :  { %31176 = vmatpush3.bf16.msra.mxu1 %v40156_v7 }
0x167d   :  { %31178 = vmatprep.subr.bf16.mxu1 %v40157_v5 }
0x1680   :  { %31180 = vmatpush3.bf16.msra.mxu1 %v40157_v5  ;;  %v37624_v5 = vld [vmem:[%s39427_s5 + $0x48] sm:$0xff] }
0x1681   :  { %31182 = vmatprep.subr.bf16.mxu1 %v40158_v25 }
0x1684   :  { %31184 = vmatpush3.bf16.msra.mxu1 %v40158_v25  ;;  %v37619_v25 = vld [vmem:[%s39427_s5 + $0x40] sm:$0xff] }
0x1685   :  { %31186 = vmatprep.subr.bf16.mxu1 %v40159_v20 }
0x1688   :  { %31188 = vmatpush3.bf16.msra.mxu1 %v40159_v20 }
0x1689   :  { %31190 = vmatprep.subr.bf16.mxu1 %v40160_v6 }
0x168c   :  { %31192 = vmatpush3.bf16.msra.mxu1 %v40160_v6 }
0x168d   :  { %31194 = vmatprep.subr.bf16.mxu1 %v40161_v35 }
0x1690   :  { %31196 = vmatpush3.bf16.msra.mxu1 %v40161_v35 }
0x1691   :  { %31198 = vmatprep.subr.bf16.mxu1 %v40162_v42 }
0x1694   :  { %31200 = vmatpush3.bf16.msra.mxu1 %v40162_v42 }
0x1695   :  { %31202 = vmatprep.subr.bf16.mxu1 %v40139_v4 }
0x1697   :  { %26984 = vmatmul.mubr.f32.vlgmr.msra.gmra.mrb[22].mxu1 %v12295_v43  ;;  %v40178_v43 = vld [vmem:[#allocation60_spill] sm:$0xff] }
0x1698   :  { %31204 = vmatpush3.bf16.msra.mxu1 %v40139_v4  ;;  %27018 = vmatprep.mubr.f32.mxu1 %v12286_v31 }
0x1699   :  { %31206 = vmatprep.subr.bf16.mxu1 %v40140_v28 }
0x169c   :  { %31208 = vmatpush3.bf16.msra.mxu1 %v40140_v28 }
0x169d   :  { %31210 = vmatprep.subr.bf16.mxu1 %v40141_v24 }
0x16a0   :  { %31212 = vmatpush3.bf16.msra.mxu1 %v40141_v24 }
0x16a1   :  { %31214 = vmatprep.subr.bf16.mxu1 %v40142_v50 }
0x16a4   :  { %31216 = vmatpush3.bf16.msra.mxu1 %v40142_v50 }
0x16a5   :  { %31218 = vmatprep.subr.bf16.mxu1 %v40143_v36 }
0x16a8   :  { %31220 = vmatpush3.bf16.msra.mxu1 %v40143_v36 }
0x16a9   :  { %31222 = vmatprep.subr.bf16.mxu1 %v40144_v13 }
0x16ac   :  { %31224 = vmatpush3.bf16.msra.mxu1 %v40144_v13 }
0x16ad   :  { %31226 = vmatprep.subr.bf16.mxu1 %v40145_v58 }
0x16b0   :  { %31228 = vmatpush3.bf16.msra.mxu1 %v40145_v58 }
0x16b1   :  { %31230 = vmatprep.subr.bf16.mxu1 %v40146_v44 }
0x16b4   :  { %31232 = vmatpush3.bf16.msra.mxu1 %v40146_v44 }
0x16b5   :  { %31234 = vmatprep.subr.bf16.mxu1 %v40163_v21 }
0x16b7   :  { %27019 = vmatmul.mubr.f32.vlgmr.msra.gmra.mrb[22].mxu1 %v12296_v11 }
0x16b8   :  { %31236 = vmatpush3.bf16.msra.mxu1 %v40163_v21  ;;  %27053 = vmatprep.mubr.f32.mxu1 %v37228_v8 }
0x16b9   :  { %31238 = vmatprep.subr.bf16.mxu1 %v40164_v26 }
0x16bc   :  { %31240 = vmatpush3.bf16.msra.mxu1 %v40164_v26 }
0x16bd   :  { %31242 = vmatprep.subr.bf16.mxu1 %v40165_v32 }
0x16c0   :  { %31244 = vmatpush3.bf16.msra.mxu1 %v40165_v32 }
0x16c1   :  { %31246 = vmatprep.subr.bf16.mxu1 %v40166_v14 }
0x16c4   :  { %31248 = vmatpush3.bf16.msra.mxu1 %v40166_v14  ;;  %v40198_v14 = vld [vmem:[#allocation52_spill] sm:$0xff] }
0x16c5   :  { %31250 = vmatprep.subr.bf16.mxu1 %v40167_v61 }
0x16c8   :  { %31252 = vmatpush3.bf16.msra.mxu1 %v40167_v61 }
0x16c9   :  { %31254 = vmatprep.subr.bf16.mxu1 %v40168_v45 }
0x16cc   :  { %31256 = vmatpush3.bf16.msra.mxu1 %v40168_v45 }
0x16cd   :  { %31258 = vmatprep.subr.bf16.mxu1 %v40169_v17 }
0x16d0   :  { %31260 = vmatpush3.bf16.msra.mxu1 %v40169_v17 }
0x16d1   :  { %31262 = vmatprep.subr.bf16.mxu1 %v40170_v52 }
0x16d4   :  { %31264 = vmatpush3.bf16.msra.mxu1 %v40170_v52 }
0x16d5   :  { %31266 = vmatprep.subr.bf16.mxu1 %v40139_v4 }
0x16d7   :  { %27054 = vmatmul.mubr.f32.vlgmr.msra.gmra.mrb[22].mxu1 %v37232_v18 }
0x16d8   :  { %31268 = vmatpush3.bf16.msra.mxu1 %v40139_v4  ;;  %27088 = vmatprep.mubr.f32.mxu1 %v37228_v8  ;;  %v40174_v8 = vld [vmem:[#allocation56_spill] sm:$0xff] }
0x16d9   :  { %31270 = vmatprep.subr.bf16.mxu1 %v40140_v28 }
0x16dc   :  { %31272 = vmatpush3.bf16.msra.mxu1 %v40140_v28 }
0x16dd   :  { %31274 = vmatprep.subr.bf16.mxu1 %v40141_v24 }
0x16e0   :  { %31276 = vmatpush3.bf16.msra.mxu1 %v40141_v24 }
0x16e1   :  { %31278 = vmatprep.subr.bf16.mxu1 %v40142_v50 }
0x16e4   :  { %31280 = vmatpush3.bf16.msra.mxu1 %v40142_v50 }
0x16e5   :  { %31282 = vmatprep.subr.bf16.mxu1 %v40143_v36 }
0x16e8   :  { %31284 = vmatpush3.bf16.msra.mxu1 %v40143_v36 }
0x16e9   :  { %31286 = vmatprep.subr.bf16.mxu1 %v40144_v13 }
0x16ec   :  { %31288 = vmatpush3.bf16.msra.mxu1 %v40144_v13 }
0x16ed   :  { %31290 = vmatprep.subr.bf16.mxu1 %v40145_v58 }
0x16f0   :  { %31292 = vmatpush3.bf16.msra.mxu1 %v40145_v58 }
0x16f1   :  { %31294 = vmatprep.subr.bf16.mxu1 %v40146_v44 }
0x16f4   :  { %31296 = vmatpush3.bf16.msra.mxu1 %v40146_v44 }
0x16f5   :  { %31393 = vmatprep.subr.bf16.mxu1 %v39868_v19 }
0x16f7   :  { %27089 = vmatmul.mubr.f32.vlgmr.msra.gmra.mrb[22].mxu1 %v37232_v18  ;;  %v40177_v18 = vld [vmem:[#allocation59_spill] sm:$0xff] }
0x16f8   :  { %31395 = vmatpush3.bf16.msra.mxu1 %v40171_v22  ;;  %27263 = vmatprep.mubr.msk.f32.mxu1 %vm33090_vm1, %v39869_v3  ;;  %v40191_v22 = vld [vmem:[#allocation45_spill] sm:$0xff] }
0x16f9   :  { %31396 = vmatprep.subr.bf16.mxu1 %v39868_v19 }
0x16fc   :  { %31398 = vmatpush3.bf16.msra.mxu1 %v40172_v30 }
0x16fd   :  { %31399 = vmatprep.subr.bf16.mxu1 %v39868_v19 }
0x1700   :  { %31401 = vmatpush3.bf16.msra.mxu1 %v40173_v49 }
0x1701   :  { %31402 = vmatprep.subr.bf16.mxu1 %v39868_v19 }
0x1704   :  { %31404 = vmatpush3.bf16.msra.mxu1 %v40174_v8 }
0x1705   :  { %31405 = vmatprep.subr.bf16.mxu1 %v39868_v19 }
0x1708   :  { %31407 = vmatpush3.bf16.msra.mxu1 %v40175_v54 }
0x1709   :  { %31408 = vmatprep.subr.bf16.mxu1 %v39868_v19 }
0x170c   :  { %31410 = vmatpush3.bf16.msra.mxu1 %v40176_v48  ;;  %v21451_v48 = vld [vmem:[%s39434_s10 + $0x1] ss:$0 sm:$0xff] }
0x170d   :  { %31411 = vmatprep.subr.bf16.mxu1 %v39868_v19 }
0x1710   :  { %31413 = vmatpush3.bf16.msra.mxu1 %v40177_v18 }
0x1711   :  { %31414 = vmatprep.subr.bf16.mxu1 %v39868_v19 }
0x1714   :  { %31416 = vmatpush3.bf16.msra.mxu1 %v40178_v43  ;;  %v21453_v43 = vld [vmem:[%s39435_s11 + $0x1] ss:$0 sm:$0xff] }
0x1715   :  { %31441 = vmatprep.subr.bf16.mxu1 %v39868_v19 }
0x17ca   :  { %v27090_v31 = vpop.f32.mrb[22].mxu1 }
0x17cb   :  { %v12877_v33 = vpop.f32.mrb[23].mxu1 }
0x17cc   :  { %v12887_v11 = vmul.f32 %v12877_v33, %v12877_v33  ;;  %v12889_v1 = vsub.f32 %v37223_v46, %v12877_v33  ;;  %v40183_v33 = vld [vmem:[#allocation37_spill] sm:$0xff] }
0x17ce   :  { %v12888_v51 = vsub.f32 %v27090_v31, %v12887_v11  ;;  %v40180_v31 = vld [vmem:[#allocation63_spill] sm:$0xff]  ;;  %v40184_v11 = vld [vmem:[#allocation38_spill] sm:$0xff] }
0x17d0   :  { %v12890_v55 = vadd.f32 1e-05, %v12888_v51  ;;  %v40186_v51 = vld [vmem:[#allocation40_spill] sm:$0xff] }
0x17d2   :  { %33061 = vrsqrt.f32 %v12890_v55  ;;  %v40187_v55 = vld [vmem:[#allocation41_spill] sm:$0xff] }
0x17dc   :  { %v33062_v54 = vpop.eup %33061 }
0x17dd   :  { %v12892_v18 = vmul.f32 %v33062_v54, %v12889_v1  ;;  %v40185_v1 = vld [vmem:[#allocation39_spill] sm:$0xff] }
0x17df   :  { %v12900_v8 = vmul.f32 %v21451_v48, %v12892_v18  ;;  %v40181_v48 = vld [vmem:[#allocation64_spill] sm:$0xff] }
0x17e1   :  { %v37346_v49 = vadd.f32 %v21453_v43, %v12900_v8  ;;  %v40182_v43 = vld [vmem:[#allocation36_spill] sm:$0xff] }
0x17e3   :  { %40179 = vst [vmem:[#allocation62_spill] sm:$0xff] %v37346_v49  ;;  %v37349_v30 = vand.u32 4294901760, %v37346_v49 }
0x17e5   :  { %27264 = vmatmul.mubr.f32.vlgmr.msra.gmra.mrb[24].mxu1 %v37349_v30  ;;  %v37354_v46 = vsub.f32 %v37346_v49, %v37349_v30  ;;  %v40190_v49 = vld [vmem:[#allocation44_spill] sm:$0xff] }
0x17e6   :  { %31443 = vmatpush3.bf16.msra.mxu1 %v40180_v31  ;;  %27309 = vmatprep.mubr.msk.f32.mxu1 %vm33090_vm1, %v39869_v3 }
0x17e7   :  { %v12994_v54 = vand.u32 4294901760, %v37354_v46  ;;  %31444 = vmatprep.subr.bf16.mxu1 %v39868_v19 }
0x17e9   :  { %v12995_v8 = vsub.f32 %v37354_v46, %v12994_v54 }
0x17ea   :  { %31446 = vmatpush3.bf16.msra.mxu1 %v40181_v48 }
0x17eb   :  { %v12996_v18 = vand.u32 4294901760, %v12995_v8  ;;  %31447 = vmatprep.subr.bf16.mxu1 %v39868_v19  ;;  %v40188_v8 = vld [vmem:[#allocation42_spill] sm:$0xff] }
0x17ed   :  { %27124 = vmatmul.mubr.f32.vlgmr.msra.gmra.mrb[30].mxu0 %v12996_v18  ;;  %v40189_v18 = vld [vmem:[#allocation43_spill] sm:$0xff] }
0x17ee   :  { %31323 = vmatpush3.bf16.msra.mxu0 %v40182_v43  ;;  %27158 = vmatprep.mubr.msk.f32.mxu0 %vm33090_vm1, %v39869_v3 }
0x17ef   :  { %31324 = vmatprep.subr.bf16.mxu0 %v39868_v19 }
0x17f2   :  { %31326 = vmatpush3.bf16.msra.mxu0 %v40183_v33 }
0x17f3   :  { %31327 = vmatprep.subr.bf16.mxu0 %v39868_v19 }
0x17f6   :  { %31329 = vmatpush3.bf16.msra.mxu0 %v40184_v11 }
0x17f7   :  { %31330 = vmatprep.subr.bf16.mxu0 %v39868_v19 }
0x17fa   :  { %31332 = vmatpush3.bf16.msra.mxu0 %v40185_v1 }
0x17fb   :  { %31333 = vmatprep.subr.bf16.mxu0 %v39868_v19 }
0x17fe   :  { %31335 = vmatpush3.bf16.msra.mxu0 %v40186_v51  ;;  %v40196_v51 = vld [vmem:[#allocation50_spill] sm:$0xff] }
0x17ff   :  { %31336 = vmatprep.subr.bf16.mxu0 %v39868_v19 }
0x1802   :  { %31338 = vmatpush3.bf16.msra.mxu0 %v40187_v55  ;;  %v40194_v55 = vld [vmem:[#allocation48_spill] sm:$0xff] }
0x1803   :  { %31339 = vmatprep.subr.bf16.mxu0 %v39868_v19 }
0x1806   :  { %31341 = vmatpush3.bf16.msra.mxu0 %v40188_v8  ;;  %v40192_v8 = vld [vmem:[#allocation46_spill] sm:$0xff] }
0x1807   :  { %31342 = vmatprep.subr.bf16.mxu0 %v39868_v19 }
0x180a   :  { %31344 = vmatpush3.bf16.msra.mxu0 %v40189_v18  ;;  %v40193_v18 = vld [vmem:[#allocation47_spill] sm:$0xff] }
0x180b   :  { %31345 = vmatprep.subr.bf16.mxu0 %v39868_v19 }
0x180d   :  { %27159 = vmatmul.mubr.f32.vlgmr.msra.gmra.mrb[32].mxu0 %v37349_v30 }
0x180e   :  { %31347 = vmatpush3.bf16.msra.mxu0 %v40190_v49  ;;  %27193 = vmatprep.mubr.msk.f32.mxu0 %vm33090_vm1, %v39869_v3  ;;  %v40195_v49 = vld [vmem:[#allocation49_spill] sm:$0xff] }
0x180f   :  { %31348 = vmatprep.subr.bf16.mxu0 %v39868_v19 }
0x1812   :  { %31350 = vmatpush3.bf16.msra.mxu0 %v40191_v22  ;;  %v40197_v22 = vld [vmem:[#allocation51_spill] sm:$0xff] }
0x1813   :  { %31351 = vmatprep.subr.bf16.mxu0 %v39868_v19 }
0x1816   :  { %31353 = vmatpush3.bf16.msra.mxu0 %v40192_v8 }
0x1817   :  { %31354 = vmatprep.subr.bf16.mxu0 %v39868_v19 }
0x181a   :  { %31356 = vmatpush3.bf16.msra.mxu0 %v40193_v18 }
0x181b   :  { %31357 = vmatprep.subr.bf16.mxu0 %v39868_v19 }
0x181e   :  { %31359 = vmatpush3.bf16.msra.mxu0 %v40194_v55 }
0x181f   :  { %31360 = vmatprep.subr.bf16.mxu0 %v39868_v19 }
0x1822   :  { %31362 = vmatpush3.bf16.msra.mxu0 %v40195_v49 }
0x1823   :  { %31363 = vmatprep.subr.bf16.mxu0 %v39868_v19 }
0x1826   :  { %31365 = vmatpush3.bf16.msra.mxu0 %v40196_v51 }
0x1827   :  { %31366 = vmatprep.subr.bf16.mxu0 %v39868_v19 }
0x182a   :  { %31368 = vmatpush3.bf16.msra.mxu0 %v40197_v22 }
0x182b   :  { %31369 = vmatprep.subr.bf16.mxu0 %v39868_v19 }
0x182d   :  { %27194 = vmatmul.mubr.f32.vlgmr.msra.gmra.mrb[34].mxu0 %v37354_v46 }
0x182e   :  { %31371 = vmatpush3.bf16.msra.mxu0 %v34224_v10  ;;  %27228 = vmatprep.mubr.msk.f32.mxu0 %vm33090_vm1, %v39869_v3 }
0x182f   :  { %31372 = vmatprep.subr.bf16.mxu0 %v39868_v19 }
0x1832   :  { %31374 = vmatpush3.bf16.msra.mxu0 %v34234_v16 }
0x1833   :  { %31375 = vmatprep.subr.bf16.mxu0 %v39868_v19 }
0x1836   :  { %31377 = vmatpush3.bf16.msra.mxu0 %v34244_v15 }
0x1837   :  { %31378 = vmatprep.subr.bf16.mxu0 %v39868_v19 }
0x183a   :  { %31380 = vmatpush3.bf16.msra.mxu0 %v34254_v47 }
0x183b   :  { %31381 = vmatprep.subr.bf16.mxu0 %v39868_v19 }
0x183e   :  { %31383 = vmatpush3.bf16.msra.mxu0 %v34264_v40 }
0x183f   :  { %31384 = vmatprep.subr.bf16.mxu0 %v39868_v19 }
0x1842   :  { %31386 = vmatpush3.bf16.msra.mxu0 %v34280_v23 }
0x1843   :  { %31387 = vmatprep.subr.bf16.mxu0 %v39868_v19 }
0x1846   :  { %31389 = vmatpush3.bf16.msra.mxu0 %v34300_v62 }
0x1847   :  { %31390 = vmatprep.subr.bf16.mxu0 %v39868_v19 }
0x184a   :  { %31392 = vmatpush3.bf16.msra.mxu0 %v34326_v37 }
0x184b   :  { %31417 = vmatprep.subr.bf16.mxu0 %v39868_v19 }
0x184d   :  { %27229 = vmatmul.mubr.f32.vlgmr.msra.gmra.mrb[36].mxu0 %v12994_v54 }
0x184e   :  { %31419 = vmatpush3.bf16.msra.mxu0 %v34224_v10  ;;  %27298 = vmatprep.mubr.msk.f32.mxu0 %vm33090_vm1, %v39869_v3 }
0x184f   :  { %31420 = vmatprep.subr.bf16.mxu0 %v39868_v19 }
0x1852   :  { %31422 = vmatpush3.bf16.msra.mxu0 %v34234_v16 }
0x1853   :  { %31423 = vmatprep.subr.bf16.mxu0 %v39868_v19 }
0x1856   :  { %31425 = vmatpush3.bf16.msra.mxu0 %v34244_v15 }
0x1857   :  { %31426 = vmatprep.subr.bf16.mxu0 %v39868_v19 }
0x185a   :  { %31428 = vmatpush3.bf16.msra.mxu0 %v34254_v47 }
0x185b   :  { %31429 = vmatprep.subr.bf16.mxu0 %v39868_v19 }
0x185e   :  { %31431 = vmatpush3.bf16.msra.mxu0 %v34264_v40 }
0x185f   :  { %31432 = vmatprep.subr.bf16.mxu0 %v39868_v19 }
0x1862   :  { %31434 = vmatpush3.bf16.msra.mxu0 %v34280_v23 }
0x1863   :  { %31435 = vmatprep.subr.bf16.mxu0 %v39868_v19 }
0x1866   :  { %31437 = vmatpush3.bf16.msra.mxu0 %v34300_v62 }
0x1867   :  { %31438 = vmatprep.subr.bf16.mxu0 %v39868_v19 }
0x186a   :  { %31440 = vmatpush3.bf16.msra.mxu0 %v34326_v37 }
0x186b   :  { %31477 = vmatprep.subr.bf16.mxu0 %v39868_v19 }
0x186d   :  { %27299 = vmatmul.mubr.f32.vlgmr.msra.gmra.mrb[38].mxu0 %v37349_v30 }
0x186e   :  { %27375 = vmatprep.mubr.msk.f32.mxu0 %vm33090_vm1, %v39869_v3 }
0x18b8   :  { %v13461_v46 = vpop.f32.mrb[24].mxu1 }
0x18b9   :  { %v27265_v54 = vpop.f32.mrb[25].mxu1 }
0x18c0   :  { %v12998_v22 = vpop.f32.mrb[30].mxu0 }
0x18c1   :  { %v27125_v51 = vpop.f32.mrb[31].mxu0 }
0x18e0   :  { %v13149_v49 = vpop.f32.mrb[32].mxu0 }
0x18e1   :  { %v13150_v55 = vadd.f32 %v13149_v49, %v12998_v22  ;;  %v27160_v18 = vpop.f32.mrb[33].mxu0 }
0x1900   :  { %v13253_v8 = vpop.f32.mrb[34].mxu0 }
0x1901   :  { %v13254_v1 = vadd.f32 %v13253_v8, %v13150_v55  ;;  %v27195_v11 = vpop.f32.mrb[35].mxu0 }
0x1902   :  { %v40199_v11 = vld [vmem:[#allocation65_spill] sm:$0xff] }
0x1920   :  { %v13342_v33 = vpop.f32.mrb[36].mxu0 }
0x1921   :  { %v13343_v43 = vadd.f32 %v13342_v33, %v13254_v1  ;;  %v27230_v52 = vpop.f32.mrb[37].mxu0  ;;  %v40202_v33 = vld [vmem:[#allocation68_spill] sm:$0xff] }
0x1923   :  { %v13462_v17 = vadd.f32 %v13461_v46, %v13343_v43 }
0x1940   :  { %v13548_v45 = vpop.f32.mrb[38].mxu0 }
0x1941   :  { %v13549_v61 = vadd.f32 %v13548_v45, %v13462_v17  ;;  %v27300_v30 = vpop.f32.mrb[39].mxu0  ;;  %v40200_v45 = vld [vmem:[#allocation66_spill] sm:$0xff] }
0x1942   :  { %v14269_v30 = vld [vmem:[%s39829_s23 + $0x10] sm:$0xff] }
0x1943   :  { %v13552_v32 = vadd.f32 %v13549_v61, %v40198_v14  ;;  %v14268_v14 = vld [vmem:[%s39829_s23 + $0x8] sm:$0xff]  ;;  %v21467_v61 = vld [vmem:[%s39426_s0 + $0x10] sm:$0xff] }
0x1944   :  { %v14278_v52 = vand.u32 4294901760, %v14268_v14  ;;  %v14272_v43 = vsel %vm103_vm0, %v21467_v61, 0  ;;  %v14281_v61 = vand.u32 4294901760, %v14269_v30 }
0x1945   :  { %v13562_v26 = vsel %vm103_vm0, %v13552_v32, 0  ;;  %v40201_v32 = vld [vmem:[#allocation67_spill] sm:$0xff]  ;;  %v37468_v1 = vand.u32 4294901760, %v14272_v43 }
0x1946   :  { %v37443_v54 = vand.u32 4294901760, %v13562_v26  ;;  %v37475_v46 = vsub.f32 %v14268_v14, %v14278_v52 }
0x1948   :  { %v13634_v51 = vsub.f32 %v13562_v26, %v37443_v54  ;;  %v14267_v26 = vld [vmem:[%s39829_s23] sm:$0xff]  ;;  %v40207_v7 = vand.u32 4294901760, %v37475_v46 }
0x1949   :  { %v14275_v17 = vand.u32 4294901760, %v14267_v26 }
0x194a   :  { %v13635_v22 = vand.u32 4294901760, %v13634_v51 }
0x194b   :  { %v37471_v55 = vpack.c.bf16 %v14278_v52, %v14275_v17  ;;  %v37473_v8 = vsub.f32 %v14267_v26, %v14275_v17  ;;  %v37497_v52 = vsub.f32 %v14269_v30, %v14281_v61 }
0x194c   :  { %v13636_v49 = vsub.f32 %v13634_v51, %v13635_v22 }
0x194d   :  { %31479 = vmatpush3.bf16.msra.mxu0 %v37471_v55  ;;  %v39738_v26 = vand.u32 4294901760, %v37473_v8  ;;  %v39742_v21 = vand.u32 4294901760, %v37497_v52 }
0x194e   :  { %v13637_v18 = vand.u32 4294901760, %v13636_v49  ;;  %v14270_v49 = vld [vmem:[%s39829_s23 + $0x18] sm:$0xff]  ;;  %31480 = vmatprep.subr.bf16.mxu0 %v39868_v19 }
0x1950   :  { %27310 = vmatmul.mubr.f32.vlgmr.msra.gmra.mrb[26].mxu1 %v13637_v18  ;;  %v37484_v18 = vsub.f32 %v14272_v43, %v37468_v1 }
0x1951   :  { %31449 = vmatpush3.bf16.msra.mxu1 %v40199_v11  ;;  %27320 = vmatprep.mubr.msk.f32.mxu1 %vm33090_vm1, %v39869_v3 }
0x1952   :  { %31450 = vmatprep.subr.bf16.mxu1 %v39868_v19  ;;  %v39737_v17 = vand.u32 4294901760, %v37484_v18 }
0x1954   :  { %v14346_v14 = vsub.f32 %v37484_v18, %v39737_v17  ;;  %v14371_v17 = vsub.f32 %v37497_v52, %v39742_v21  ;;  %v37581_v21 = vld [vmem:[%s39427_s5 + $0x28] sm:$0xff] }
0x1955   :  { %31452 = vmatpush3.bf16.msra.mxu1 %v40200_v45  ;;  %v40203_v45 = vand.u32 4294901760, %v37475_v46 }
0x1956   :  { %31453 = vmatprep.subr.bf16.mxu1 %v39868_v19  ;;  %v14372_v42 = vand.u32 4294901760, %v14371_v17  ;;  %v37539_v17 = vld [vmem:[%s39427_s5 + $0x8] sm:$0xff] }
0x1957   :  { %v14364_v11 = vsub.f32 %v37475_v46, %v40203_v45 }
0x1958   :  { %27321 = vmatmul.mubr.f32.vlgmr.msra.gmra.mrb[26].mxu1 %v37443_v54 }
0x1959   :  { %31455 = vmatpush3.bf16.msra.mxu1 %v40201_v32  ;;  %27331 = vmatprep.mubr.msk.f32.mxu1 %vm33090_vm1, %v39869_v3  ;;  %v14357_v32 = vsub.f32 %v37473_v8, %v39738_v26 }
0x195a   :  { %31456 = vmatprep.subr.bf16.mxu1 %v39868_v19 }
0x195d   :  { %31458 = vmatpush3.bf16.msra.mxu1 %v40202_v33  ;;  %v14284_v33 = vand.u32 4294901760, %v14270_v49 }
0x195e   :  { %31459 = vmatprep.subr.bf16.mxu1 %v39868_v19 }
0x195f   :  { %v37499_v43 = vsub.f32 %v14270_v49, %v14284_v33  ;;  %v14358_v49 = vand.u32 4294901760, %v14357_v32  ;;  %v40204_v32 = vld [vmem:[#allocation69_spill] sm:$0xff] }
0x1960   :  { %27332 = vmatmul.mubr.f32.vlgmr.msra.gmra.mrb[26].mxu1 %v13634_v51  ;;  %v37495_v51 = vpack.c.bf16 %v14284_v33, %v14281_v61  ;;  %v14347_v33 = vand.u32 4294901760, %v14346_v14  ;;  %v14365_v61 = vand.u32 4294901760, %v14364_v11  ;;  %v40205_v14 = vld [vmem:[#allocation70_spill] sm:$0xff] }
0x1961   :  { %31461 = vmatpush3.bf16.msra.mxu1 %v40180_v31  ;;  %27342 = vmatprep.mubr.msk.f32.mxu1 %vm33090_vm1, %v39869_v3  ;;  %v39741_v30 = vand.u32 4294901760, %v37499_v43 }
0x1962   :  { %31462 = vmatprep.subr.bf16.mxu1 %v39868_v19  ;;  %31482 = vmatpush3.bf16.msra.mxu0 %v37495_v51  ;;  %v31484_v26 = vpack.c.bf16 %v14365_v61, %v14358_v49  ;;  %v37559_v49 = vld [vmem:[%s39427_s5 + $0x18] sm:$0xff]  ;;  %v31493_v61 = vpack.c.bf16 %v37499_v43, %v37497_v52 }
0x1963   :  { %31483 = vmatprep.subr.bf16.mxu0 %v39868_v19  ;;  %v14378_v45 = vsub.f32 %v37499_v43, %v39741_v30  ;;  %v14786_v30 = vand.u32 4294901760, %v37559_v49 }
0x1965   :  { %31464 = vmatpush3.bf16.msra.mxu1 %v40181_v48  ;;  %27376 = vmatmul.mubr.f32.vlgmr.msra.gmra.mrb[40].mxu0 %v14347_v33  ;;  %v14379_v35 = vand.u32 4294901760, %v14378_v45  ;;  %v37554_v33 = vld [vmem:[%s39427_s5 + $0x10] sm:$0xff] }
0x1966   :  { %31465 = vmatprep.subr.bf16.mxu1 %v39868_v19  ;;  %27386 = vmatprep.mubr.msk.f32.mxu0 %vm33090_vm1, %v39869_v3 }
0x1967   :  { %31485 = vmatpush3.bf16.msra.mxu0 %v31484_v26  ;;  %v31487_v11 = vpack.c.bf16 %v14379_v35, %v14372_v42  ;;  %v31490_v35 = vpack.c.bf16 %v37475_v46, %v37473_v8  ;;  %v14780_v26 = vand.u32 4294901760, %v37539_v17  ;;  %v40209_v46 = vand.u32 4294901760, %v37484_v18 }
0x1968   :  { %27343 = vmatmul.mubr.f32.vlgmr.msra.gmra.mrb[26].mxu1 %v13635_v22  ;;  %31486 = vmatprep.subr.bf16.mxu0 %v39868_v19  ;;  %v37534_v22 = vld [vmem:[%s39427_s5] sm:$0xff] }
0x1969   :  { %31467 = vmatpush3.bf16.msra.mxu1 %v40204_v32  ;;  %27353 = vmatprep.mubr.msk.f32.mxu1 %vm33090_vm1, %v39869_v3  ;;  %v14777_v42 = vand.u32 4294901760, %v37534_v22  ;;  %v37666_v41 = vsub.f32 %v37539_v17, %v14780_v26  ;;  %v37689_v17 = vld [vmem:[%s39427_s5 + $0x68] sm:$0xff] }
0x196a   :  { %31468 = vmatprep.subr.bf16.mxu1 %v39868_v19 }
0x196b   :  { %31488 = vmatpush3.bf16.msra.mxu0 %v31487_v11  ;;  %v37568_v45 = vpack.c.bf16 %v14780_v26, %v14777_v42  ;;  %v14783_v11 = vand.u32 4294901760, %v37554_v33  ;;  %v37663_v56 = vsub.f32 %v37534_v22, %v14777_v42  ;;  %v37684_v22 = vld [vmem:[%s39427_s5 + $0x60] sm:$0xff]  ;;  %v37695_v26 = vsub.f32 %v37559_v49, %v14786_v30  ;;  %v37718_v49 = vld [vmem:[%s39427_s5 + $0x78] sm:$0xff] }
0x196c   :  { %31489 = vmatprep.subr.bf16.mxu0 %v39868_v19 }
0x196d   :  { %31470 = vmatpush3.bf16.msra.mxu1 %v40205_v14  ;;  %v37586_v14 = vpack.c.bf16 %v14786_v30, %v14783_v11  ;;  %v37692_v42 = vsub.f32 %v37554_v33, %v14783_v11  ;;  %v37713_v30 = vld [vmem:[%s39427_s5 + $0x70] sm:$0xff] }
0x196e   :  { %31471 = vmatprep.subr.bf16.mxu1 %v39868_v19  ;;  %27387 = vmatmul.mubr.f32.vlgmr.msra.gmra.mrb[40].mxu0 %v37468_v1 }
0x196f   :  { %31491 = vmatpush3.bf16.msra.mxu0 %v31490_v35  ;;  %27397 = vmatprep.mubr.msk.f32.mxu0 %vm33090_vm1, %v39869_v3  ;;  %v37576_v35 = vld [vmem:[%s39427_s5 + $0x20] sm:$0xff]  ;;  %v40217_v59 = vand.u32 4294901760, %v37692_v42 }
0x1970   :  { %27354 = vmatmul.mubr.f32.vlgmr.msra.gmra.mrb[26].mxu1 %v37443_v54  ;;  %31492 = vmatprep.subr.bf16.mxu0 %v39868_v19  ;;  %v14789_v32 = vand.u32 4294901760, %v37576_v35 }
0x1971   :  { %31473 = vmatpush3.bf16.msra.mxu1 %v40180_v31  ;;  %27364 = vmatprep.mubr.msk.f32.mxu1 %vm33090_vm1, %v39869_v3 }
0x1972   :  { %31474 = vmatprep.subr.bf16.mxu1 %v39868_v19 }
0x1973   :  { %31494 = vmatpush3.bf16.msra.mxu0 %v31493_v61  ;;  %v37596_v61 = vld [vmem:[%s39427_s5 + $0x30] sm:$0xff] }
0x1974   :  { %31495 = vmatprep.subr.bf16.mxu0 %v39868_v19  ;;  %v14795_v6 = vand.u32 4294901760, %v37596_v61 }
0x1975   :  { %31476 = vmatpush3.bf16.msra.mxu1 %v40181_v48  ;;  %v39749_v48 = vand.u32 4294901760, %v37581_v21 }
0x1976   :  { %31513 = vmatprep.subr.bf16.mxu1 %v39868_v19  ;;  %27398 = vmatmul.mubr.f32.vlgmr.msra.gmra.mrb[40].mxu0 %v37484_v18  ;;  %v40213_v18 = vand.u32 4294901760, %v37624_v5  ;;  %v37756_v9 = vsub.f32 %v37596_v61, %v14795_v6 }
0x1977   :  { %31497 = vmatpush3.bf16.msra.mxu0 %v37471_v55  ;;  %27408 = vmatprep.mubr.msk.f32.mxu0 %vm33090_vm1, %v39869_v3  ;;  %v37611_v31 = vpack.c.bf16 %v39749_v48, %v14789_v32  ;;  %v40206_v48 = vand.u32 4294901760, %v37473_v8  ;;  %v40208_v8 = vld [vmem:[#allocation61_spill] sm:$0xff] }
0x1978   :  { %27365 = vmatmul.mubr.f32.vlgmr.msra.gmra.mrb[26].mxu1 %v37443_v54  ;;  %v37601_v54 = vld [vmem:[%s39427_s5 + $0x38] sm:$0xff]  ;;  %31498 = vmatprep.subr.bf16.mxu0 %v39868_v19  ;;  %v9727_v57 = vsub.f32 %v40208_v8, %v33086_v38  ;;  %v40211_v38 = vand.u32 4294901760, %v37499_v43  ;;  %v39772_v36 = vand.u32 4294901760, %v37756_v9 }
0x1979   :  { %31515 = vmatpush3.bf16.msra.mxu1 %v37568_v45  ;;  %27465 = vmatprep.mubr.msk.f32.mxu1 %vm33090_vm1, %v39869_v3  ;;  %v39757_v20 = vand.u32 4294901760, %v37601_v54  ;;  %v31502_v39 = vpack.c.bf16 %v40207_v7, %v40206_v48  ;;  %v37647_v7 = vld [vmem:[%s39427_s5 + $0x50] sm:$0xff]  ;;  %v37652_v48 = vld [vmem:[%s39427_s5 + $0x58] sm:$0xff]  ;;  %v40219_v58 = vand.u32 4294901760, %v37601_v54 }
0x197a   :  { %31516 = vmatprep.subr.bf16.mxu1 %v39868_v19  ;;  %v39758_v43 = vand.u32 4294901760, %v37652_v48  ;;  %v14913_v50 = vsub.f32 %v37756_v9, %v39772_v36 }
0x197b   :  { %31500 = vmatpush3.bf16.msra.mxu0 %v37495_v51  ;;  %v37635_v34 = vpack.c.bf16 %v39757_v20, %v14795_v6  ;;  %v40210_v20 = vand.u32 4294901760, %v37497_v52  ;;  %v37769_v33 = vsub.f32 %v37601_v54, %v40219_v58  ;;  %v40222_v54 = vand.u32 4294901760, %v37624_v5 }
0x197c   :  { %31501 = vmatprep.subr.bf16.mxu0 %v39868_v19 }
0x197d   :  { %31518 = vmatpush3.bf16.msra.mxu1 %v37586_v14  ;;  %v31505_v8 = vpack.c.bf16 %v40211_v38, %v40210_v20  ;;  %v39759_v20 = vand.u32 4294901760, %v37647_v7  ;;  %v39760_v38 = vand.u32 4294901760, %v37663_v56 }
0x197e   :  { %31519 = vmatprep.subr.bf16.mxu1 %v39868_v19  ;;  %27409 = vmatmul.mubr.f32.vlgmr.msra.gmra.mrb[40].mxu0 %v40209_v46  ;;  %v37678_v46 = vand.u32 4294901760, %v9727_v57 }
0x197f   :  { %31503 = vmatpush3.bf16.msra.mxu0 %v31502_v39  ;;  %27419 = vmatprep.mubr.msk.f32.mxu0 %vm33090_vm1, %v39869_v3  ;;  %v40212_v39 = vand.u32 4294901760, %v37619_v25 }
0x1980   :  { %31504 = vmatprep.subr.bf16.mxu0 %v39868_v19 }
0x1981   :  { %31521 = vmatpush3.bf16.msra.mxu1 %v37611_v31  ;;  %v37674_v52 = vpack.c.bf16 %v40213_v18, %v40212_v39  ;;  %v39762_v39 = vand.u32 4294901760, %v37666_v41  ;;  %v37705_v18 = vpack.c.bf16 %v39758_v43, %v39759_v20  ;;  %v37725_v43 = vsub.f32 %v37576_v35, %v14789_v32 }
0x1982   :  { %31522 = vmatprep.subr.bf16.mxu1 %v39868_v19  ;;  %v14871_v20 = vsub.f32 %v37663_v56, %v39760_v38  ;;  %v40214_v32 = vand.u32 4294901760, %v37581_v21  ;;  %v40215_v35 = vand.u32 4294901760, %v37684_v22  ;;  %v40216_v38 = vand.u32 4294901760, %v37689_v17 }
0x1983   :  { %31506 = vmatpush3.bf16.msra.mxu0 %v31505_v8  ;;  %v37721_v8 = vsub.f32 %v9727_v57, %v37678_v46  ;;  %v14878_v11 = vsub.f32 %v37666_v41, %v39762_v39  ;;  %v14819_v39 = vand.u32 4294901760, %v37713_v30  ;;  %v14822_v57 = vand.u32 4294901760, %v37718_v49 }
0x1984   :  { %31507 = vmatprep.subr.bf16.mxu0 %v39868_v19  ;;  %v37749_v12 = vpack.c.bf16 %v40216_v38, %v40215_v35  ;;  %v14885_v38 = vsub.f32 %v37692_v42, %v40217_v59  ;;  %v40218_v35 = vand.u32 4294901760, %v37695_v26 }
0x1985   :  { %31524 = vmatpush3.bf16.msra.mxu1 %v37635_v34  ;;  %v37772_v6 = vpack.c.bf16 %v14822_v57, %v14819_v39  ;;  %v40220_v59 = vand.u32 4294901760, %v37721_v8 }
0x1986   :  { %31525 = vmatprep.subr.bf16.mxu1 %v39868_v19  ;;  %27420 = vmatmul.mubr.f32.vlgmr.msra.gmra.mrb[40].mxu0 %v37468_v1  ;;  %v14892_v44 = vsub.f32 %v37695_v26, %v40218_v35  ;;  %v37791_v35 = vsub.f32 %v37624_v5, %v40222_v54  ;;  %v40225_v5 = vand.u32 4294901760, %v37647_v7 }
0x1987   :  { %31509 = vmatpush3.bf16.msra.mxu0 %v37471_v55  ;;  %27430 = vmatprep.mubr.msk.f32.mxu0 %vm33090_vm1, %v39869_v3  ;;  %v37742_v55 = vsub.f32 %v37581_v21, %v40214_v32  ;;  %v14872_v21 = vand.u32 4294901760, %v14871_v20  ;;  %v14879_v32 = vand.u32 4294901760, %v14878_v11  ;;  %v14860_v20 = vsub.f32 %v37721_v8, %v40220_v59 }
0x1988   :  { %31510 = vmatprep.subr.bf16.mxu0 %v39868_v19  ;;  %v40221_v11 = vand.u32 4294901760, %v37619_v25  ;;  %v14893_v13 = vand.u32 4294901760, %v14892_v44  ;;  %v37806_v44 = vsub.f32 %v37647_v7, %v40225_v5  ;;  %v40227_v7 = vand.u32 4294901760, %v37769_v33 }
0x1989   :  { %31527 = vmatpush3.bf16.msra.mxu1 %v37674_v52  ;;  %v31538_v61 = vpack.c.bf16 %v14879_v32, %v14872_v21  ;;  %v14861_v24 = vand.u32 4294901760, %v14860_v20  ;;  %v40226_v21 = vand.u32 4294901760, %v37652_v48 }
0x198a   :  { %31528 = vmatprep.subr.bf16.mxu1 %v39868_v19  ;;  %v37784_v58 = vsub.f32 %v37619_v25, %v40221_v11  ;;  %v40224_v25 = vand.u32 4294901760, %v37742_v55  ;;  %v14920_v5 = vsub.f32 %v37769_v33, %v40227_v7  ;;  %v14914_v7 = vand.u32 4294901760, %v14913_v50 }
0x198b   :  { %31512 = vmatpush3.bf16.msra.mxu0 %v37495_v51  ;;  %v14886_v51 = vand.u32 4294901760, %v14885_v38  ;;  %v37811_v32 = vsub.f32 %v37652_v48, %v40226_v21 }
0x198c   :  { %31657 = vmatprep.subr.bf16.mxu0 %v39868_v19  ;;  %v14906_v11 = vsub.f32 %v37742_v55, %v40224_v25  ;;  %v39771_v54 = vand.u32 4294901760, %v37784_v58 }
0x198d   :  { %31530 = vmatpush3.bf16.msra.mxu1 %v37705_v18  ;;  %v31541_v38 = vpack.c.bf16 %v14893_v13, %v14886_v51  ;;  %v40230_v28 = vand.u32 4294901760, %v37811_v32 }
0x198e   :  { %31531 = vmatprep.subr.bf16.mxu1 %v39868_v19  ;;  %27431 = vmatmul.mubr.f32.vlgmr.msra.gmra.mrb[40].mxu0 %v37468_v1  ;;  %v40223_v1 = vand.u32 4294901760, %v37725_v43  ;;  %v14907_v25 = vand.u32 4294901760, %v14906_v11  ;;  %v14927_v48 = vsub.f32 %v37784_v58, %v39771_v54  ;;  %v40229_v11 = vand.u32 4294901760, %v37689_v17 }
0x198f   :  { %27659 = vmatprep.mubr.msk.f32.mxu0 %vm33090_vm1, %v39869_v3  ;;  %v37844_v54 = vsub.f32 %v37713_v30, %v14819_v39 }
0x1990   :  { %v14899_v59 = vsub.f32 %v37725_v43, %v40223_v1  ;;  %v39773_v1 = vand.u32 4294901760, %v37791_v35  ;;  %v37840_v21 = vsub.f32 %v37689_v17, %v40229_v11  ;;  %v14928_v36 = vand.u32 4294901760, %v14927_v48 }
0x1991   :  { %31533 = vmatpush3.bf16.msra.mxu1 %v37749_v12  ;;  %v14948_v17 = vsub.f32 %v37811_v32, %v40230_v28 }
0x1992   :  { %31534 = vmatprep.subr.bf16.mxu1 %v39868_v19  ;;  %v14900_v20 = vand.u32 4294901760, %v14899_v59  ;;  %v14934_v51 = vsub.f32 %v37791_v35, %v39773_v1  ;;  %v14961_v39 = vand.u32 4294901760, %v37840_v21 }
0x1994   :  { %v14935_v1 = vand.u32 4294901760, %v14934_v51  ;;  %v14962_v28 = vsub.f32 %v37840_v21, %v14961_v39 }
0x1995   :  { %31536 = vmatpush3.bf16.msra.mxu1 %v37772_v6 }
0x1996   :  { %31537 = vmatprep.subr.bf16.mxu1 %v39868_v19  ;;  %v31550_v30 = vpack.c.bf16 %v14935_v1, %v14928_v36  ;;  %v14963_v1 = vand.u32 4294901760, %v14962_v28  ;;  %v31577_v28 = vpack.c.bf16 %v37811_v32, %v37806_v44 }
0x1998   :  { %27466 = vmatmul.mubr.f32.vlgmr.msra.gmra.mrb[28].mxu1 %v14861_v24  ;;  %v40228_v24 = vand.u32 4294901760, %v37684_v22 }
0x1999   :  { %31539 = vmatpush3.bf16.msra.mxu1 %v31538_v61  ;;  %27500 = vmatprep.mubr.msk.f32.mxu1 %vm33090_vm1, %v39869_v3  ;;  %v14940_v61 = vand.u32 4294901760, %v37806_v44 }
0x199a   :  { %31540 = vmatprep.subr.bf16.mxu1 %v39868_v19  ;;  %v37827_v13 = vsub.f32 %v37684_v22, %v40228_v24  ;;  %v31544_v22 = vpack.c.bf16 %v14907_v25, %v14900_v20  ;;  %v14921_v24 = vand.u32 4294901760, %v14920_v5  ;;  %v14949_v5 = vand.u32 4294901760, %v14948_v17 }
0x199b   :  { %v14941_v59 = vsub.f32 %v37806_v44, %v14940_v61 }
0x199c   :  { %v31547_v50 = vpack.c.bf16 %v14921_v24, %v14914_v7  ;;  %v14954_v20 = vand.u32 4294901760, %v37827_v13 }
0x199d   :  { %31542 = vmatpush3.bf16.msra.mxu1 %v31541_v38  ;;  %v37853_v38 = vsub.f32 %v37718_v49, %v14822_v57  ;;  %v14942_v25 = vand.u32 4294901760, %v14941_v59  ;;  %v14968_v49 = vand.u32 4294901760, %v37844_v54 }
0x199e   :  { %31543 = vmatprep.subr.bf16.mxu1 %v39868_v19  ;;  %v14955_v48 = vsub.f32 %v37827_v13, %v14954_v20 }
0x199f   :  { %v14975_v57 = vand.u32 4294901760, %v37853_v38  ;;  %v31553_v51 = vpack.c.bf16 %v14949_v5, %v14942_v25  ;;  %v14969_v59 = vsub.f32 %v37844_v54, %v14968_v49  ;;  %v31568_v25 = vpack.c.bf16 %v37742_v55, %v37725_v43 }
0x19a0   :  { %v14956_v36 = vand.u32 4294901760, %v14955_v48  ;;  %v31571_v5 = vpack.c.bf16 %v37769_v33, %v37756_v9  ;;  %v31574_v48 = vpack.c.bf16 %v37791_v35, %v37784_v58 }
0x19a1   :  { %31545 = vmatpush3.bf16.msra.mxu1 %v31544_v22  ;;  %v14976_v11 = vsub.f32 %v37853_v38, %v14975_v57  ;;  %v14970_v7 = vand.u32 4294901760, %v14969_v59  ;;  %v40232_v59 = vand.u32 4294901760, %v37666_v41 }
0x19a2   :  { %31546 = vmatprep.subr.bf16.mxu1 %v39868_v19  ;;  %v31556_v22 = vpack.c.bf16 %v14963_v1, %v14956_v36  ;;  %v31583_v36 = vpack.c.bf16 %v37853_v38, %v37844_v54  ;;  %v40231_v1 = vand.u32 4294901760, %v37663_v56 }
0x19a3   :  { %v14977_v24 = vand.u32 4294901760, %v14976_v11 }
0x19a4   :  { %v31610_v11 = vpack.c.bf16 %v40232_v59, %v40231_v1 }
0x19a5   :  { %31548 = vmatpush3.bf16.msra.mxu1 %v31547_v50  ;;  %v31559_v17 = vpack.c.bf16 %v14977_v24, %v14970_v7  ;;  %v31562_v50 = vpack.c.bf16 %v37666_v41, %v37663_v56  ;;  %v40234_v7 = vand.u32 4294901760, %v37692_v42  ;;  %v40235_v24 = vand.u32 4294901760, %v37695_v26 }
0x19a6   :  { %31549 = vmatprep.subr.bf16.mxu1 %v39868_v19  ;;  %v40236_v56 = vand.u32 4294901760, %v37725_v43  ;;  %v40237_v41 = vand.u32 4294901760, %v37742_v55  ;;  %v40242_v43 = vand.u32 4294901760, %v37811_v32 }
0x19a8   :  { %v31625_v55 = vpack.c.bf16 %v40242_v43, %v14940_v61 }
0x19a9   :  { %31551 = vmatpush3.bf16.msra.mxu1 %v31550_v30  ;;  %v31565_v30 = vpack.c.bf16 %v37695_v26, %v37692_v42  ;;  %v40239_v42 = vand.u32 4294901760, %v37769_v33  ;;  %v31631_v33 = vpack.c.bf16 %v14975_v57, %v14968_v49 }
0x19aa   :  { %31552 = vmatprep.subr.bf16.mxu1 %v39868_v19 }
0x19ad   :  { %31554 = vmatpush3.bf16.msra.mxu1 %v31553_v51  ;;  %v31580_v51 = vpack.c.bf16 %v37840_v21, %v37827_v13 }
0x19ae   :  { %31555 = vmatprep.subr.bf16.mxu1 %v39868_v19 }
0x19b1   :  { %31557 = vmatpush3.bf16.msra.mxu1 %v31556_v22  ;;  %v40233_v22 = vand.u32 4294901760, %v37721_v8 }
0x19b2   :  { %31558 = vmatprep.subr.bf16.mxu1 %v39868_v19 }
0x19b5   :  { %31560 = vmatpush3.bf16.msra.mxu1 %v31559_v17  ;;  %v31613_v17 = vpack.c.bf16 %v40235_v24, %v40234_v7 }
0x19b6   :  { %31561 = vmatprep.subr.bf16.mxu1 %v39868_v19 }
0x19b8   :  { %27501 = vmatmul.mubr.f32.vlgmr.msra.gmra.mrb[28].mxu1 %v37678_v46 }
0x19b9   :  { %31563 = vmatpush3.bf16.msra.mxu1 %v31562_v50  ;;  %27535 = vmatprep.mubr.msk.f32.mxu1 %vm33090_vm1, %v39869_v3  ;;  %v31616_v50 = vpack.c.bf16 %v40237_v41, %v40236_v56 }
0x19ba   :  { %31564 = vmatprep.subr.bf16.mxu1 %v39868_v19 }
0x19bd   :  { %31566 = vmatpush3.bf16.msra.mxu1 %v31565_v30  ;;  %v40240_v30 = vand.u32 4294901760, %v37784_v58 }
0x19be   :  { %31567 = vmatprep.subr.bf16.mxu1 %v39868_v19 }
0x19c1   :  { %31569 = vmatpush3.bf16.msra.mxu1 %v31568_v25  ;;  %v40241_v25 = vand.u32 4294901760, %v37791_v35 }
0x19c2   :  { %31570 = vmatprep.subr.bf16.mxu1 %v39868_v19 }
0x19c5   :  { %31572 = vmatpush3.bf16.msra.mxu1 %v31571_v5  ;;  %v31622_v5 = vpack.c.bf16 %v40241_v25, %v40240_v30 }
0x19c6   :  { %31573 = vmatprep.subr.bf16.mxu1 %v39868_v19 }
0x19c9   :  { %31575 = vmatpush3.bf16.msra.mxu1 %v31574_v48 }
0x19ca   :  { %31576 = vmatprep.subr.bf16.mxu1 %v39868_v19 }
0x19cd   :  { %31578 = vmatpush3.bf16.msra.mxu1 %v31577_v28 }
0x19ce   :  { %31579 = vmatprep.subr.bf16.mxu1 %v39868_v19 }
0x19d1   :  { %31581 = vmatpush3.bf16.msra.mxu1 %v31580_v51 }
0x19d2   :  { %31582 = vmatprep.subr.bf16.mxu1 %v39868_v19 }
0x19d5   :  { %31584 = vmatpush3.bf16.msra.mxu1 %v31583_v36 }
0x19d6   :  { %31585 = vmatprep.subr.bf16.mxu1 %v39868_v19 }
0x19d8   :  { %27536 = vmatmul.mubr.f32.vlgmr.msra.gmra.mrb[28].mxu1 %v37721_v8  ;;  %v40238_v8 = vand.u32 4294901760, %v37756_v9  ;;  %v31628_v9 = vpack.c.bf16 %v14961_v39, %v14954_v20 }
0x19d9   :  { %31587 = vmatpush3.bf16.msra.mxu1 %v37568_v45  ;;  %27570 = vmatprep.mubr.msk.f32.mxu1 %vm33090_vm1, %v39869_v3 }
0x19da   :  { %31588 = vmatprep.subr.bf16.mxu1 %v39868_v19  ;;  %v31619_v26 = vpack.c.bf16 %v40239_v42, %v40238_v8 }
0x19dd   :  { %31590 = vmatpush3.bf16.msra.mxu1 %v37586_v14 }
0x19de   :  { %31591 = vmatprep.subr.bf16.mxu1 %v39868_v19 }
0x19e1   :  { %31593 = vmatpush3.bf16.msra.mxu1 %v37611_v31 }
0x19e2   :  { %31594 = vmatprep.subr.bf16.mxu1 %v39868_v19 }
0x19e5   :  { %31596 = vmatpush3.bf16.msra.mxu1 %v37635_v34 }
0x19e6   :  { %31597 = vmatprep.subr.bf16.mxu1 %v39868_v19 }
0x19e9   :  { %31599 = vmatpush3.bf16.msra.mxu1 %v37674_v52 }
0x19ea   :  { %31600 = vmatprep.subr.bf16.mxu1 %v39868_v19 }
0x19ed   :  { %31602 = vmatpush3.bf16.msra.mxu1 %v37705_v18 }
0x19ee   :  { %31603 = vmatprep.subr.bf16.mxu1 %v39868_v19 }
0x19f1   :  { %31605 = vmatpush3.bf16.msra.mxu1 %v37749_v12 }
0x19f2   :  { %31606 = vmatprep.subr.bf16.mxu1 %v39868_v19 }
0x19f5   :  { %31608 = vmatpush3.bf16.msra.mxu1 %v37772_v6 }
0x19f6   :  { %31609 = vmatprep.subr.bf16.mxu1 %v39868_v19 }
0x19f8   :  { %27571 = vmatmul.mubr.f32.vlgmr.msra.gmra.mrb[28].mxu1 %v40233_v22 }
0x19f9   :  { %31611 = vmatpush3.bf16.msra.mxu1 %v31610_v11  ;;  %27605 = vmatprep.mubr.msk.f32.mxu1 %vm33090_vm1, %v39869_v3 }
0x19fa   :  { %31612 = vmatprep.subr.bf16.mxu1 %v39868_v19 }
0x19fd   :  { %31614 = vmatpush3.bf16.msra.mxu1 %v31613_v17 }
0x19fe   :  { %31615 = vmatprep.subr.bf16.mxu1 %v39868_v19 }
0x1a01   :  { %31617 = vmatpush3.bf16.msra.mxu1 %v31616_v50 }
0x1a02   :  { %31618 = vmatprep.subr.bf16.mxu1 %v39868_v19 }
0x1a05   :  { %31620 = vmatpush3.bf16.msra.mxu1 %v31619_v26 }
0x1a06   :  { %31621 = vmatprep.subr.bf16.mxu1 %v39868_v19 }
0x1a09   :  { %31623 = vmatpush3.bf16.msra.mxu1 %v31622_v5 }
0x1a0a   :  { %31624 = vmatprep.subr.bf16.mxu1 %v39868_v19 }
0x1a0d   :  { %31626 = vmatpush3.bf16.msra.mxu1 %v31625_v55 }
0x1a0e   :  { %31627 = vmatprep.subr.bf16.mxu1 %v39868_v19 }
0x1a11   :  { %31629 = vmatpush3.bf16.msra.mxu1 %v31628_v9 }
0x1a12   :  { %31630 = vmatprep.subr.bf16.mxu1 %v39868_v19 }
0x1a15   :  { %31632 = vmatpush3.bf16.msra.mxu1 %v31631_v33 }
0x1a16   :  { %31633 = vmatprep.subr.bf16.mxu1 %v39868_v19 }
0x1a18   :  { %27606 = vmatmul.mubr.f32.vlgmr.msra.gmra.mrb[28].mxu1 %v37678_v46 }
0x1a19   :  { %31635 = vmatpush3.bf16.msra.mxu1 %v37568_v45  ;;  %27640 = vmatprep.mubr.msk.f32.mxu1 %vm33090_vm1, %v39869_v3 }
0x1a1a   :  { %31636 = vmatprep.subr.bf16.mxu1 %v39868_v19 }
0x1a1d   :  { %31638 = vmatpush3.bf16.msra.mxu1 %v37586_v14 }
0x1a1e   :  { %31639 = vmatprep.subr.bf16.mxu1 %v39868_v19 }
0x1a21   :  { %31641 = vmatpush3.bf16.msra.mxu1 %v37611_v31 }
0x1a22   :  { %31642 = vmatprep.subr.bf16.mxu1 %v39868_v19 }
0x1a25   :  { %31644 = vmatpush3.bf16.msra.mxu1 %v37635_v34 }
0x1a26   :  { %31645 = vmatprep.subr.bf16.mxu1 %v39868_v19 }
0x1a29   :  { %31647 = vmatpush3.bf16.msra.mxu1 %v37674_v52 }
0x1a2a   :  { %31648 = vmatprep.subr.bf16.mxu1 %v39868_v19 }
0x1a2d   :  { %31650 = vmatpush3.bf16.msra.mxu1 %v37705_v18 }
0x1a2e   :  { %31651 = vmatprep.subr.bf16.mxu1 %v39868_v19 }
0x1a31   :  { %31653 = vmatpush3.bf16.msra.mxu1 %v37749_v12  ;;  %v21455_v12 = vld [vmem:[%s39438_s3 + $0x1] ss:$0 sm:$0xff] }
0x1a32   :  { %31654 = vmatprep.subr.bf16.mxu1 %v39868_v19 }
0x1a35   :  { %31656 = vmatpush3.bf16.msra.mxu1 %v37772_v6 }
0x1a36   :  { %31921 = vmatprep.subr.bf16.mxu1 %v39868_v19 }
0x1a38   :  { %27641 = vmatmul.mubr.f32.vlgmr.msra.gmra.mrb[28].mxu1 %v37678_v46 }
0x1a39   :  { %31923 = vmatpush3.bf16.msra.mxu1 %v34224_v10  ;;  %27999 = vmatprep.mubr.msk.f32.mxu1 %vm33090_vm1, %v39869_v3 }
0x1a3a   :  { %31924 = vmatprep.subr.bf16.mxu1 %v39868_v19 }
0x1a3d   :  { %31926 = vmatpush3.bf16.msra.mxu1 %v34234_v16 }
0x1a3e   :  { %31927 = vmatprep.subr.bf16.mxu1 %v39868_v19 }
0x1a41   :  { %31929 = vmatpush3.bf16.msra.mxu1 %v34244_v15 }
0x1a42   :  { %31930 = vmatprep.subr.bf16.mxu1 %v39868_v19 }
0x1a45   :  { %31932 = vmatpush3.bf16.msra.mxu1 %v34254_v47 }
0x1a46   :  { %31933 = vmatprep.subr.bf16.mxu1 %v39868_v19 }
0x1a49   :  { %31935 = vmatpush3.bf16.msra.mxu1 %v34264_v40 }
0x1a4a   :  { %31936 = vmatprep.subr.bf16.mxu1 %v39868_v19 }
0x1a4b   :  { %v14045_v34 = vpop.f32.mrb[26].mxu1 }
0x1a4c   :  { %v38002_v31 = vadd.f32 %v21455_v12, %v14045_v34  ;;  %v27366_v14 = vpop.f32.mrb[27].mxu1 }
0x1a4d   :  { %31938 = vmatpush3.bf16.msra.mxu1 %v34280_v23 }
0x1a4e   :  { %v14054_v45 = vand.u32 2139095040, %v38002_v31  ;;  %31939 = vmatprep.subr.bf16.mxu1 %v39868_v19  ;;  %v14051_v6 = vand.u32 2147483647, %v38002_v31  ;;  %vm14053_vm12 = vcmp.lt.s32.totalorder %v38002_v31, 0 }
0x1a50   :  { %v14055_v52 = vshrl.u32 %v14054_v45, 23  ;;  %v14058_v44 = vand.u32 8388607, %v14051_v6  ;;  %vm14052_vm13 = vcmp.le.f32.partialorder %v14051_v6, 0.7853982 }
0x1a51   :  { %31941 = vmatpush3.bf16.msra.mxu1 %v34300_v62 }
0x1a52   :  { %v21457_v46 = vadd.s32 4294967169, %v14055_v52  ;;  %31942 = vmatprep.subr.bf16.mxu1 %v39868_v19  ;;  %v14059_v51 = vor.u32 8388608, %v14058_v44 }
0x1a54   :  { %v14061_v18 = vadd.s32 1, %v21457_v46  ;;  %v14099_v26 = vshll.u32 %v14059_v51, 8 }
0x1a55   :  { %31944 = vmatpush3.bf16.msra.mxu1 %v34326_v37 }
0x1a56   :  { %vm14062_vm5 = vcmp.gt.s32.totalorder %v14061_v18, 0  ;;  %31945 = vmatprep.subr.bf16.mxu1 %v39868_v19 }
0x1a57   :  { %v14063_v58 = vsel %vm14062_vm5, %v14061_v18, 0 }
0x1a58   :  { %v14065_v35 = vand.u32 31, %v14063_v58  ;;  %v14064_v54 = vshrl.u32 %v14063_v58, 5 }
0x1a5a   :  { %v14066_v32 = vsub.s32 32, %v14065_v35  ;;  %v14068_v13 = vshll.u32 %v39926_v2, %v14065_v35  ;;  %v14071_v61 = vshll.u32 %v39927_v53, %v14065_v35  ;;  %v14074_v20 = vshll.u32 %v39928_v60, %v14065_v35 }
0x1a5b   :  { %v14077_v49 = vshll.u32 %v39929_v0, %v14065_v35  ;;  %v14080_v48 = vshll.u32 %v40126_v29, %v14065_v35  ;;  %vm14083_vm6 = vcmp.lt.s32.totalorder %v14064_v54, 1  ;;  %vm14086_vm7 = vcmp.lt.s32.totalorder %v14064_v54, 4 }
0x1a5c   :  { %v14069_v21 = vshrl.u32 %v39927_v53, %v14066_v32  ;;  %v14072_v38 = vshrl.u32 %v39928_v60, %v14066_v32  ;;  %v14075_v39 = vshrl.u32 %v39929_v0, %v14066_v32  ;;  %v14078_v57 = vshrl.u32 %v40126_v29, %v14066_v32 }
0x1a5d   :  { %v14081_v28 = vshrl.u32 %v40127_v63, %v14066_v32  ;;  %v14067_v56 = vshrl.u32 %v39926_v2, %v14066_v32  ;;  %vm14085_vm8 = vcmp.lt.s32.totalorder %v14064_v54, 3  ;;  %vm14084_vm9 = vcmp.lt.s32.totalorder %v14064_v54, 2 }
0x1a5e   :  { %v14070_v36 = vor.u32 %v14069_v21, %v14068_v13  ;;  %v14073_v1 = vor.u32 %v14072_v38, %v14071_v61  ;;  %v14076_v59 = vor.u32 %v14075_v39, %v14074_v20  ;;  %v14079_v11 = vor.u32 %v14078_v57, %v14077_v49 }
0x1a5f   :  { %v14082_v22 = vor.u32 %v14081_v28, %v14080_v48 }
0x1a60   :  { %v14088_v7 = vsel %vm14086_vm7, %v14076_v59, 2102212464  ;;  %v14091_v24 = vsel %vm14083_vm6, %v14070_v36, %v14073_v1  ;;  %v14095_v17 = vsel %vm14083_vm6, %v14073_v1, %v14076_v59  ;;  %v14092_v41 = vsel %vm14086_vm7, %v14079_v11, 920167782 }
0x1a61   :  { %v14096_v50 = vsel %vm14086_vm7, %v14082_v22, 1326507024  ;;  %v14093_v8 = vsel %vm14085_vm8, %v14076_v59, %v14092_v41  ;;  %v14087_v30 = vsel %vm14083_vm6, %v14067_v56, %v14070_v36  ;;  %v14089_v25 = vsel %vm14085_vm8, %v14073_v1, %v14088_v7  ;;  %v38031_v34 = vpop.f32.mrb[40].mxu0 }
0x1a62   :  { %v14097_v42 = vsel %vm14085_vm8, %v14079_v11, %v14096_v50  ;;  %v14094_v5 = vsel %vm14084_vm9, %v14091_v24, %v14093_v8  ;;  %v14090_v14 = vsel %vm14084_vm9, %v14087_v30, %v14089_v25  ;;  %v27432_v45 = vpop.f32.mrb[41].mxu0  ;;  %vm14143_vm7 = vweird.f32 %v38002_v31 }
0x1a63   :  { %v14098_v43 = vsel %vm14084_vm9, %v14095_v17, %v14097_v42  ;;  %v38028_v33 = vmul.u32.u64.low %v14099_v26, %v14094_v5  ;;  %v38029_v12 = vmul.u32.u64.high %v14099_v26, %v14094_v5, %v38028_v33  ;;  %v14106_v46 = vmul.u32 %v14099_v26, %v14090_v14  ;;  %v21461_v14 = vld [vmem:[%s39440_s2 + $0x8] sm:$0xff] }
0x1a64   :  { %v38025_v55 = vmul.u32.u64.low %v14099_v26, %v14098_v43  ;;  %v38026_v9 = vmul.u32.u64.high %v14099_v26, %v14098_v43, %v38025_v55 }
0x1a65   :  { %v14109_v52 = vadd.s32 1, %v38029_v12 }
0x1a66   :  { %vm14108_vm10 = vc.u32 %v38026_v9, %v38028_v33  ;;  %v14107_v39 = vadd.s32 %v38028_v33, %v38026_v9  ;;  %v21456_v33 = vld [vmem:[%s39439_s1 + $0x8] sm:$0xff] }
0x1a67   :  { %v14110_v18 = vsel %vm14108_vm10, %v14109_v52, %v38029_v12 }
0x1a68   :  { %v14111_v58 = vadd.s32 %v14110_v18, %v14106_v46 }
0x1a6a   :  { %v14112_v35 = vadd.s32 536870912, %v14111_v58 }
0x1a6c   :  { %v14113_v44 = vshrl.u32 %v14112_v35, 30 }
0x1a6e   :  { %v14114_v32 = vshll.u32 %v14113_v44, 30  ;;  %v14137_v24 = vsub.s32 4, %v14113_v44 }
0x1a70   :  { %v14115_v54 = vsub.s32 %v14111_v58, %v14114_v32  ;;  %v14138_v41 = vsel %vm14053_vm12, %v14137_v24, %v14113_v44 }
0x1a71   :  { %v14140_v8 = vsel %vm14052_vm13, 0, %v14138_v41 }
0x1a72   :  { %v14117_v13 = vsub.s32 0, %v14115_v54  ;;  %v14250_v42 = vadd.s32 3, %v14140_v8  ;;  %v14144_v26 = vand.u32 3, %v14140_v8 }
0x1a74   :  { %v21458_v61 = vmin.u32 %v14117_v13, %v14115_v54  ;;  %v14251_v30 = vand.u32 3, %v14250_v42  ;;  %vm14149_vm14 = vcmp.eq.s32.totalorder %v14144_v26, 2  ;;  %vm14146_vm3 = vcmp.eq.s32.totalorder %v14144_v26, 0 }
0x1a75   :  { %vm14145_vm5 = vcmp.lt.s32.totalorder %v14144_v26, 2 }
0x1a76   :  { %v14119_v21 = vclz %v21458_v61  ;;  %vm14256_vm2 = vcmp.eq.s32.totalorder %v14251_v30, 2  ;;  %vm14253_vm4 = vcmp.eq.s32.totalorder %v14251_v30, 0  ;;  %vm14252_vm6 = vcmp.lt.s32.totalorder %v14251_v30, 2 }
0x1a78   :  { %v21459_v38 = vadd.s32 4294967294, %v14119_v21  ;;  %v15552_v21 = vld [vmem:[%s39429_s7 + $0x10] sm:$0xff] }
0x1a7a   :  { %vm21460_vm11 = vcmp.lt.s32.totalorder %v21459_v38, 0 }
0x1a7b   :  { %v14122_v20 = vsel %vm21460_vm11, 0, %v21459_v38  ;;  %v15553_v38 = vld [vmem:[%s39429_s7 + $0x18] sm:$0xff] }
0x1a7c   :  { %v14123_v49 = vsub.s32 32, %v14122_v20  ;;  %v14127_v57 = vsub.s32 4294967266, %v14122_v20  ;;  %v14124_v48 = vshll.u32 %v14115_v54, %v14122_v20  ;;  %v15550_v54 = vld [vmem:[%s39429_s7] sm:$0xff] }
0x1a7d   :  { %v15562_v13 = vand.u32 4294901760, %v15550_v54  ;;  %v15554_v20 = vld [vmem:[%s39429_s7 + $0x20] sm:$0xff] }
0x1a7e   :  { %v14125_v28 = vshrl.u32 %v14107_v39, %v14123_v49  ;;  %v14128_v51 = vadd.s32 127, %v14127_v57  ;;  %v15568_v39 = vand.u32 4294901760, %v15552_v21  ;;  %v15571_v49 = vand.u32 4294901760, %v15553_v38  ;;  %v15555_v57 = vld [vmem:[%s39429_s7 + $0x28] sm:$0xff] }
0x1a80   :  { %v14126_v36 = vor.u32 %v14125_v28, %v14124_v48  ;;  %v14129_v1 = vshll.u32 %v14128_v51, 23  ;;  %v15574_v48 = vand.u32 4294901760, %v15554_v20  ;;  %v15556_v28 = vld [vmem:[%s39429_s7 + $0x30] sm:$0xff]  ;;  %v15557_v51 = vld [vmem:[%s39429_s7 + $0x38] sm:$0xff] }
0x1a81   :  { %v15580_v41 = vand.u32 4294901760, %v15556_v28 }
0x1a82   :  { %v14130_v59 = vor.u32 4788187, %v14129_v1  ;;  %v14133_v22 = vcvt.s32.f32 %v14126_v36  ;;  %v38078_v1 = vsub.f32 %v15550_v54, %v15562_v13  ;;  %v38086_v24 = vsub.f32 %v15554_v20, %v15574_v48 }
0x1a83   :  { %v38094_v8 = vsub.f32 %v15556_v28, %v15580_v41 }
0x1a84   :  { %v14131_v11 = vand.u32 2147483647, %v14130_v59 }
0x1a86   :  { %v14134_v7 = vmul.f32 %v14133_v22, %v14131_v11  ;;  %v15577_v11 = vand.u32 4294901760, %v15555_v57  ;;  %v38082_v22 = vsub.f32 %v15552_v21, %v15568_v39 }
0x1a88   :  { %v14135_v17 = vxor.u32 2147483648, %v14134_v7  ;;  %v38099_v26 = vpack.c.bf16 %v15577_v11, %v15574_v48 }
0x1a8a   :  { %v14136_v56 = vsel %vm14053_vm12, %v14135_v17, %v14134_v7  ;;  %v38084_v7 = vsub.f32 %v15553_v38, %v15571_v49  ;;  %v38089_v17 = vpack.c.bf16 %v15571_v49, %v15568_v39 }
0x1a8b   :  { %v14139_v50 = vsel %vm14052_vm13, %v38002_v31, %v14136_v56  ;;  %v15551_v31 = vld [vmem:[%s39429_s7 + $0x8] sm:$0xff]  ;;  %v38091_v56 = vsub.f32 %v15555_v57, %v15577_v11 }
0x1a8c   :  { %33063 = vcosq.f32 %v14139_v50  ;;  %v15565_v61 = vand.u32 4294901760, %v15551_v31 }
0x1a8d   :  { %33065 = vsinq.f32 %v14139_v50  ;;  %v15583_v50 = vand.u32 4294901760, %v15557_v51 }
0x1a8e   :  { %v38076_v36 = vpack.c.bf16 %v15565_v61, %v15562_v13  ;;  %v38080_v59 = vsub.f32 %v15551_v31, %v15565_v61  ;;  %v39777_v61 = vand.u32 4294901760, %v38094_v8 }
0x1a8f   :  { %v38096_v42 = vsub.f32 %v15557_v51, %v15583_v50  ;;  %v38103_v30 = vpack.c.bf16 %v15583_v50, %v15580_v41 }
0x1a90   :  { %31659 = vmatpush3.bf16.msra.mxu0 %v38076_v36  ;;  %v15690_v20 = vsub.f32 %v38094_v8, %v39777_v61 }
0x1a91   :  { %31660 = vmatprep.subr.bf16.mxu0 %v39868_v19  ;;  %v39776_v21 = vand.u32 4294901760, %v38096_v42 }
0x1a92   :  { %v15691_v49 = vand.u32 4294901760, %v15690_v20 }
0x1a93   :  { %v15697_v39 = vsub.f32 %v38096_v42, %v39776_v21 }
0x1a94   :  { %31662 = vmatpush3.bf16.msra.mxu0 %v38089_v17 }
0x1a95   :  { %31663 = vmatprep.subr.bf16.mxu0 %v39868_v19  ;;  %v15698_v57 = vand.u32 4294901760, %v15697_v39 }
0x1a96   :  { %v33064_v25 = vpop.eup %33063 }
0x1a97   :  { %v33066_v5 = vpop.eup %33065  ;;  %v14150_v43 = vxor.u32 2147483648, %v33064_v25  ;;  %v38146_v48 = vpack.c.bf16 %v15698_v57, %v15691_v49 }
0x1a98   :  { %v14147_v55 = vxor.u32 2147483648, %v33066_v5  ;;  %31665 = vmatpush3.bf16.msra.mxu0 %v38099_v26 }
0x1a99   :  { %v14151_v9 = vsel %vm14149_vm14, %v14150_v43, %v33066_v5  ;;  %v14258_v6 = vsel %vm14256_vm2, %v14150_v43, %v33066_v5  ;;  %v39782_v5 = vand.u32 4294901760, %v38080_v59  ;;  %31666 = vmatprep.subr.bf16.mxu0 %v39868_v19 }
0x1a9a   :  { %v14148_v12 = vsel %vm14146_vm3, %v33064_v25, %v14147_v55  ;;  %v14255_v45 = vsel %vm14253_vm4, %v33064_v25, %v14147_v55  ;;  %v15647_v25 = vand.u32 4294901760, %v38078_v1 }
0x1a9b   :  { %v14152_v52 = vsel %vm14145_vm5, %v14148_v12, %v14151_v9  ;;  %v14259_v46 = vsel %vm14252_vm6, %v14255_v45, %v14258_v6  ;;  %v15655_v55 = vsub.f32 %v38080_v59, %v39782_v5  ;;  %v39780_v12 = vand.u32 4294901760, %v38084_v7 }
0x1a9c   :  { %v14153_v18 = vsel %vm14143_vm7, nan, %v14152_v52  ;;  %v14260_v58 = vsel %vm14143_vm7, nan, %v14259_v46  ;;  %v15648_v43 = vsub.f32 %v38078_v1, %v15647_v25  ;;  %31668 = vmatpush3.bf16.msra.mxu0 %v38103_v30 }
0x1a9d   :  { %v14154_v35 = vmul.f32 %v21456_v33, %v14153_v18  ;;  %v14261_v44 = vmul.f32 %v21461_v14, %v14260_v58  ;;  %v15656_v6 = vand.u32 4294901760, %v15655_v55  ;;  %v39781_v33 = vand.u32 4294901760, %v38082_v22  ;;  %31669 = vmatprep.subr.bf16.mxu0 %v39868_v19 }
0x1a9e   :  { %v15649_v9 = vand.u32 4294901760, %v15648_v43  ;;  %v15669_v52 = vsub.f32 %v38084_v7, %v39780_v12  ;;  %v39779_v58 = vand.u32 4294901760, %v38086_v24 }
0x1a9f   :  { %v14262_v32 = vadd.f32 %v14261_v44, %v14154_v35  ;;  %v15662_v45 = vsub.f32 %v38082_v22, %v39781_v33  ;;  %v39778_v35 = vand.u32 4294901760, %v38091_v56 }
0x1aa0   :  { %v38118_v14 = vpack.c.bf16 %v15656_v6, %v15649_v9  ;;  %v15670_v18 = vand.u32 4294901760, %v15669_v52 }
0x1aa1   :  { %21466 = vst.msk [vmem:[%s39441_s16 + $0x8] sm:$0xff] %vm1391_vm15, %v14262_v32  ;;  %v15663_v46 = vand.u32 4294901760, %v15662_v45  ;;  %v15676_v32 = vsub.f32 %v38086_v24, %v39779_v58  ;;  %v15683_v54 = vsub.f32 %v38091_v56, %v39778_v35 }
0x1aa3   :  { %v38128_v44 = vpack.c.bf16 %v15670_v18, %v15663_v46  ;;  %v15677_v31 = vand.u32 4294901760, %v15676_v32  ;;  %v15684_v13 = vand.u32 4294901760, %v15683_v54 }
0x1aa5   :  { %v38138_v38 = vpack.c.bf16 %v15684_v13, %v15677_v31 }
0x1b0b   :  { %v15413_v51 = vpop.f32.mrb[28].mxu1 }
0x1b0c   :  { %v38153_v41 = vsub.f32 %v38031_v34, %v15413_v51  ;;  %v27642_v50 = vpop.f32.mrb[29].mxu1 }
0x1b0e   :  { %v15421_v43 = vand.u32 2139095040, %v38153_v41  ;;  %v39775_v46 = vand.u32 2147483647, %v38153_v41  ;;  %vm15420_vm2 = vcmp.lt.s32.totalorder %v38153_v41, 0  ;;  %vm15510_vm7 = vweird.f32 %v38153_v41 }
0x1b10   :  { %v15422_v9 = vshrl.u32 %v15421_v43, 23  ;;  %v15425_v34 = vand.u32 8388607, %v39775_v46 }
0x1b12   :  { %v21468_v6 = vadd.s32 4294967169, %v15422_v9 }
0x1b14   :  { %v15428_v52 = vadd.s32 1, %v21468_v6 }
0x1b16   :  { %vm15429_vm8 = vcmp.gt.s32.totalorder %v15428_v52, 0 }
0x1b17   :  { %v15430_v18 = vsel %vm15429_vm8, %v15428_v52, 0  ;;  %v15426_v52 = vor.u32 8388608, %v15425_v34 }
0x1b18   :  { %v15432_v32 = vand.u32 31, %v15430_v18  ;;  %v15431_v31 = vshrl.u32 %v15430_v18, 5 }
0x1b19   :  { %v15466_v5 = vshll.u32 %v15426_v52, 8  ;;  %v40249_v52 = vand.u32 4294901760, %v38096_v42 }
0x1b1a   :  { %v15433_v54 = vsub.s32 32, %v15432_v32  ;;  %v15435_v13 = vshll.u32 %v39926_v2, %v15432_v32  ;;  %v15438_v20 = vshll.u32 %v39927_v53, %v15432_v32  ;;  %v15441_v57 = vshll.u32 %v39928_v60, %v15432_v32 }
0x1b1b   :  { %v15444_v50 = vshll.u32 %v39929_v0, %v15432_v32  ;;  %v15447_v9 = vshll.u32 %v40126_v29, %v15432_v32  ;;  %vm15450_vm9 = vcmp.lt.s32.totalorder %v15431_v31, 1  ;;  %vm15453_vm10 = vcmp.lt.s32.totalorder %v15431_v31, 4 }
0x1b1c   :  { %v15436_v39 = vshrl.u32 %v39927_v53, %v15433_v54  ;;  %v15439_v49 = vshrl.u32 %v39928_v60, %v15433_v54  ;;  %v15442_v51 = vshrl.u32 %v39929_v0, %v15433_v54  ;;  %v15445_v43 = vshrl.u32 %v40126_v29, %v15433_v54 }
0x1b1d   :  { %v15448_v6 = vshrl.u32 %v40127_v63, %v15433_v54  ;;  %v15434_v35 = vshrl.u32 %v39926_v2, %v15433_v54  ;;  %vm15452_vm11 = vcmp.lt.s32.totalorder %v15431_v31, 3  ;;  %vm15451_vm12 = vcmp.lt.s32.totalorder %v15431_v31, 2 }
0x1b1e   :  { %v15437_v18 = vor.u32 %v15436_v39, %v15435_v13  ;;  %v15440_v45 = vor.u32 %v15439_v49, %v15438_v20  ;;  %v15443_v55 = vor.u32 %v15442_v51, %v15441_v57  ;;  %v15446_v11 = vor.u32 %v15445_v43, %v15444_v50 }
0x1b1f   :  { %v15449_v28 = vor.u32 %v15448_v6, %v15447_v9  ;;  %v40247_v31 = vand.u32 4294901760, %v38091_v56 }
0x1b20   :  { %v15455_v46 = vsel %vm15453_vm10, %v15443_v55, 2102212464  ;;  %v15458_v21 = vsel %vm15450_vm9, %v15437_v18, %v15440_v45  ;;  %v15462_v61 = vsel %vm15450_vm9, %v15440_v45, %v15443_v55  ;;  %v15459_v58 = vsel %vm15453_vm10, %v15446_v11, 920167782 }
0x1b21   :  { %v15463_v12 = vsel %vm15453_vm10, %v15449_v28, 1326507024  ;;  %v15460_v32 = vsel %vm15452_vm11, %v15443_v55, %v15459_v58  ;;  %v15454_v34 = vsel %vm15450_vm9, %v15434_v35, %v15437_v18  ;;  %v15456_v13 = vsel %vm15452_vm11, %v15440_v45, %v15455_v46 }
0x1b22   :  { %v15464_v33 = vsel %vm15452_vm11, %v15446_v11, %v15463_v12  ;;  %v15461_v20 = vsel %vm15451_vm12, %v15458_v21, %v15460_v32  ;;  %v15457_v43 = vsel %vm15451_vm12, %v15454_v34, %v15456_v13  ;;  %v40243_v12 = vand.u32 4294901760, %v38080_v59 }
0x1b23   :  { %v15465_v39 = vsel %vm15451_vm12, %v15462_v61, %v15464_v33  ;;  %v38177_v51 = vmul.u32.u64.low %v15466_v5, %v15461_v20  ;;  %v38178_v50 = vmul.u32.u64.high %v15466_v5, %v15461_v20, %v38177_v51  ;;  %v15473_v35 = vmul.u32 %v15466_v5, %v15457_v43 }
0x1b24   :  { %v38174_v49 = vmul.u32.u64.low %v15466_v5, %v15465_v39  ;;  %v38175_v57 = vmul.u32.u64.high %v15466_v5, %v15465_v39, %v38174_v49  ;;  %v38186_v58 = vpack.c.bf16 %v40243_v12, %v15647_v25  ;;  %v40244_v21 = vand.u32 4294901760, %v38082_v22 }
0x1b25   :  { %v15476_v54 = vadd.s32 1, %v38178_v50  ;;  %v40245_v28 = vand.u32 4294901760, %v38084_v7  ;;  %v40246_v46 = vand.u32 4294901760, %v38086_v24  ;;  %v40248_v5 = vand.u32 4294901760, %v38094_v8 }
0x1b26   :  { %vm15475_vm13 = vc.u32 %v38175_v57, %v38177_v51  ;;  %v15474_v49 = vadd.s32 %v38177_v51, %v38175_v57 }
0x1b27   :  { %v15477_v33 = vsel %vm15475_vm13, %v15476_v54, %v38178_v50  ;;  %v38193_v11 = vpack.c.bf16 %v40245_v28, %v40244_v21  ;;  %v38199_v9 = vpack.c.bf16 %v40247_v31, %v40246_v46  ;;  %v38205_v18 = vpack.c.bf16 %v40249_v52, %v40248_v5 }
0x1b28   :  { %v15478_v61 = vadd.s32 %v15477_v33, %v15473_v35 }
0x1b2a   :  { %v15479_v55 = vadd.s32 536870912, %v15478_v61 }
0x1b2c   :  { %v15480_v45 = vshrl.u32 %v15479_v55, 30 }
0x1b2e   :  { %v15481_v25 = vshll.u32 %v15480_v45, 30  ;;  %v15504_v52 = vsub.s32 4, %v15480_v45 }
0x1b30   :  { %v15482_v6 = vsub.s32 %v15478_v61, %v15481_v25  ;;  %v40250_v25 = vand.u32 2147483647, %v38153_v41  ;;  %v15505_v51 = vsel %vm15420_vm2, %v15504_v52, %v15480_v45 }
0x1b32   :  { %v15484_v32 = vsub.s32 0, %v15482_v6  ;;  %vm15419_vm3 = vcmp.le.f32.partialorder %v40250_v25, 0.7853982 }
0x1b34   :  { %v21469_v34 = vmin.u32 %v15484_v32, %v15482_v6 }
0x1b36   :  { %v15486_v13 = vclz %v21469_v34 }
0x1b38   :  { %v21470_v20 = vadd.s32 4294967294, %v15486_v13 }
0x1b3a   :  { %vm21471_vm14 = vcmp.lt.s32.totalorder %v21470_v20, 0 }
0x1b3b   :  { %v15489_v39 = vsel %vm21471_vm14, 0, %v21470_v20 }
0x1b3c   :  { %v15490_v50 = vsub.s32 32, %v15489_v39  ;;  %v15494_v43 = vsub.s32 4294967266, %v15489_v39  ;;  %v15491_v54 = vshll.u32 %v15482_v6, %v15489_v39  ;;  %v15507_v6 = vsel %vm15419_vm3, 0, %v15505_v51 }
0x1b3d   :  { %v15511_v32 = vand.u32 3, %v15507_v6 }
0x1b3e   :  { %v15492_v12 = vshrl.u32 %v15474_v49, %v15490_v50  ;;  %v15495_v35 = vadd.s32 127, %v15494_v43  ;;  %v15524_v49 = vld [vmem:[%s39430_s8] sm:$0x1] }
0x1b3f   :  { %vm15516_vm4 = vcmp.eq.s32.totalorder %v15511_v32, 2  ;;  %vm15513_vm5 = vcmp.eq.s32.totalorder %v15511_v32, 0  ;;  %vm15512_vm6 = vcmp.lt.s32.totalorder %v15511_v32, 2 }
0x1b40   :  { %v15493_v33 = vor.u32 %v15492_v12, %v15491_v54  ;;  %v15496_v61 = vshll.u32 %v15495_v35, 23  ;;  %v15526_v12 = vsub.f32 -1.0, %v15524_v49 }
0x1b42   :  { %v15497_v21 = vor.u32 4788187, %v15496_v61  ;;  %v15500_v55 = vcvt.s32.f32 %v15493_v33  ;;  %v15531_v61 = vrot.slane %v15526_v12, %v40134_v27  ;;  %v40265_v12 = vld [vmem:[#allocation24_spill] sm:$0xff] }
0x1b44   :  { %v15498_v28 = vand.u32 2147483647, %v15497_v21  ;;  %v15538_v21 = vrot.slane %v15524_v49, %v40134_v27 }
0x1b46   :  { %v15501_v46 = vmul.f32 %v15500_v55, %v15498_v28 }
0x1b48   :  { %v15502_v31 = vxor.u32 2147483648, %v15501_v46 }
0x1b4a   :  { %v15503_v5 = vsel %vm15420_vm2, %v15502_v31, %v15501_v46  ;;  %v21473_v31 = vld [vmem:[%s39431_s9] ss:$0 sm:$0xff] }
0x1b4b   :  { %v15506_v57 = vsel %vm15419_vm3, %v38153_v41, %v15503_v5 }
0x1b4c   :  { %33067 = vcosq.f32 %v15506_v57 }
0x1b4d   :  { %33069 = vsinq.f32 %v15506_v57 }
0x1b56   :  { %v33068_v34 = vpop.eup %33067 }
0x1b57   :  { %v33070_v13 = vpop.eup %33069  ;;  %v15517_v20 = vxor.u32 2147483648, %v33068_v34 }
0x1b58   :  { %v15514_v39 = vxor.u32 2147483648, %v33070_v13 }
0x1b59   :  { %v15518_v50 = vsel %vm15516_vm4, %v15517_v20, %v33070_v13 }
0x1b5a   :  { %v15515_v43 = vsel %vm15513_vm5, %v33068_v34, %v15514_v39 }
0x1b5b   :  { %v15519_v54 = vsel %vm15512_vm6, %v15515_v43, %v15518_v50  ;;  %v40263_v43 = vld [vmem:[#allocation13_spill] sm:$0xff] }
0x1b5c   :  { %v15520_v45 = vsel %vm15510_vm7, nan, %v15519_v54  ;;  %v40264_v54 = vld [vmem:[#allocation14_spill] sm:$0xff] }
0x1b5d   :  { %v15521_v35 = vmul.f32 2.0, %v15520_v45  ;;  %v15533_v55 = vadd.f32 %v15531_v61, %v15520_v45  ;;  %v40269_v61 = vld [vmem:[#allocation17_spill] sm:$0xff] }
0x1b5f   :  { %v15522_v33 = vmul.f32 %v15521_v35, %v15520_v45  ;;  %v40266_v45 = vld [vmem:[#allocation25_spill] sm:$0xff]  ;;  %v40267_v35 = vld [vmem:[#allocation15_spill] sm:$0xff] }
0x1b61   :  { %v21472_v28 = vadd.f32 -1.0, %v15522_v33  ;;  %v40268_v33 = vld [vmem:[#allocation16_spill] sm:$0xff] }
0x1b63   :  { %v15540_v46 = vmul.f32 %v21472_v28, %v15538_v21  ;;  %v40270_v21 = vld [vmem:[#allocation18_spill] sm:$0xff]  ;;  %v40271_v28 = vld [vmem:[#allocation19_spill] sm:$0xff] }
0x1b65   :  { %v15541_v25 = vadd.f32 %v15540_v46, %v15533_v55  ;;  %v40272_v55 = vld [vmem:[#allocation20_spill] sm:$0xff]  ;;  %v40273_v46 = vld [vmem:[#allocation26_spill] sm:$0xff] }
0x1b67   :  { %v15548_v5 = vmul.f32 %v21473_v31, %v15541_v25  ;;  %v40274_v31 = vld [vmem:[#allocation27_spill] sm:$0xff]  ;;  %v40275_v25 = vld [vmem:[#allocation21_spill] sm:$0xff] }
0x1b69   :  { %v15549_v52 = vadd.f32 1.0, %v15548_v5  ;;  %v40276_v5 = vld [vmem:[#allocation22_spill] sm:$0xff] }
0x1b6b   :  { %v15559_v41 = vsel %vm1391_vm15, %v15549_v52, 0  ;;  %v40277_v52 = vld [vmem:[#allocation23_spill] sm:$0xff] }
0x1b6c   :  { %v15634_v57 = vand.u32 4294901760, %v15559_v41 }
0x1b6e   :  { %v15635_v51 = vsub.f32 %v15559_v41, %v15634_v57  ;;  %v40278_v41 = vld [vmem:[#allocation28_spill] sm:$0xff] }
0x1b70   :  { %v15636_v6 = vand.u32 4294901760, %v15635_v51 }
0x1b72   :  { %v15637_v32 = vsub.f32 %v15635_v51, %v15636_v6 }
0x1b74   :  { %v15638_v34 = vand.u32 4294901760, %v15637_v32  ;;  %v40282_v32 = vld [vmem:[#allocation32_spill] sm:$0xff] }
0x1b76   :  { %27660 = vmatmul.mubr.f32.vlgmr.msra.gmra.mrb[42].mxu0 %v15638_v34  ;;  %v40283_v34 = vld [vmem:[#allocation33_spill] sm:$0xff] }
0x1b77   :  { %31671 = vmatpush3.bf16.msra.mxu0 %v38118_v14  ;;  %27678 = vmatprep.mubr.msk.f32.mxu0 %vm33090_vm1, %v39869_v3  ;;  %v40251_v14 = vpack.c.bf16 %v38080_v59, %v38078_v1  ;;  %v40254_v1 = vpack.c.bf16 %v38096_v42, %v38094_v8  ;;  %v40256_v59 = vld [vmem:[#allocation6_spill] sm:$0xff]  ;;  %v40262_v8 = vld [vmem:[#allocation12_spill] sm:$0xff] }
0x1b78   :  { %31672 = vmatprep.subr.bf16.mxu0 %v39868_v19 }
0x1b7b   :  { %31674 = vmatpush3.bf16.msra.mxu0 %v38128_v44  ;;  %v40252_v44 = vpack.c.bf16 %v38084_v7, %v38082_v22  ;;  %v40257_v22 = vld [vmem:[#allocation7_spill] sm:$0xff]  ;;  %v40258_v7 = vld [vmem:[#allocation8_spill] sm:$0xff] }
0x1b7c   :  { %31675 = vmatprep.subr.bf16.mxu0 %v39868_v19 }
0x1b7f   :  { %31677 = vmatpush3.bf16.msra.mxu0 %v38138_v38  ;;  %v40253_v38 = vpack.c.bf16 %v38091_v56, %v38086_v24  ;;  %v40259_v24 = vld [vmem:[#allocation9_spill] sm:$0xff]  ;;  %v40261_v56 = vld [vmem:[#allocation11_spill] sm:$0xff] }
0x1b80   :  { %31678 = vmatprep.subr.bf16.mxu0 %v39868_v19 }
0x1b83   :  { %31680 = vmatpush3.bf16.msra.mxu0 %v38146_v48 }
0x1b84   :  { %31681 = vmatprep.subr.bf16.mxu0 %v39868_v19 }
0x1b86   :  { %27679 = vmatmul.mubr.f32.vlgmr.msra.gmra.mrb[42].mxu0 %v15634_v57 }
0x1b87   :  { %31683 = vmatpush3.bf16.msra.mxu0 %v40251_v14  ;;  %27697 = vmatprep.mubr.msk.f32.mxu0 %vm33090_vm1, %v39869_v3  ;;  %v40284_v14 = vld [vmem:[#allocation34_spill] sm:$0xff] }
0x1b88   :  { %31684 = vmatprep.subr.bf16.mxu0 %v39868_v19 }
0x1b8b   :  { %31686 = vmatpush3.bf16.msra.mxu0 %v40252_v44  ;;  %v40285_v44 = vld [vmem:[#allocation35_spill] sm:$0xff] }
0x1b8c   :  { %31687 = vmatprep.subr.bf16.mxu0 %v39868_v19 }
0x1b8f   :  { %31689 = vmatpush3.bf16.msra.mxu0 %v40253_v38 }
0x1b90   :  { %31690 = vmatprep.subr.bf16.mxu0 %v39868_v19 }
0x1b93   :  { %31692 = vmatpush3.bf16.msra.mxu0 %v40254_v1 }
0x1b94   :  { %31693 = vmatprep.subr.bf16.mxu0 %v39868_v19 }
0x1b96   :  { %27698 = vmatmul.mubr.f32.vlgmr.msra.gmra.mrb[42].mxu0 %v15635_v51  ;;  %v40280_v51 = vld [vmem:[#allocation30_spill] sm:$0xff] }
0x1b97   :  { %31695 = vmatpush3.bf16.msra.mxu0 %v38076_v36  ;;  %27716 = vmatprep.mubr.msk.f32.mxu0 %vm33090_vm1, %v39869_v3 }
0x1b98   :  { %31696 = vmatprep.subr.bf16.mxu0 %v39868_v19 }
0x1b9b   :  { %31698 = vmatpush3.bf16.msra.mxu0 %v38089_v17 }
0x1b9c   :  { %31699 = vmatprep.subr.bf16.mxu0 %v39868_v19 }
0x1b9f   :  { %31701 = vmatpush3.bf16.msra.mxu0 %v38099_v26 }
0x1ba0   :  { %31702 = vmatprep.subr.bf16.mxu0 %v39868_v19 }
0x1ba3   :  { %31704 = vmatpush3.bf16.msra.mxu0 %v38103_v30 }
0x1ba4   :  { %31705 = vmatprep.subr.bf16.mxu0 %v39868_v19 }
0x1ba6   :  { %27717 = vmatmul.mubr.f32.vlgmr.msra.gmra.mrb[42].mxu0 %v15636_v6  ;;  %v40281_v6 = vld [vmem:[#allocation31_spill] sm:$0xff] }
0x1ba7   :  { %31707 = vmatpush3.bf16.msra.mxu0 %v38186_v58  ;;  %27735 = vmatprep.mubr.msk.f32.mxu0 %vm33090_vm1, %v39869_v3 }
0x1ba8   :  { %31708 = vmatprep.subr.bf16.mxu0 %v39868_v19 }
0x1bab   :  { %31710 = vmatpush3.bf16.msra.mxu0 %v38193_v11 }
0x1bac   :  { %31711 = vmatprep.subr.bf16.mxu0 %v39868_v19 }
0x1baf   :  { %31713 = vmatpush3.bf16.msra.mxu0 %v38199_v9 }
0x1bb0   :  { %31714 = vmatprep.subr.bf16.mxu0 %v39868_v19 }
0x1bb3   :  { %31716 = vmatpush3.bf16.msra.mxu0 %v38205_v18 }
0x1bb4   :  { %31717 = vmatprep.subr.bf16.mxu0 %v39868_v19 }
0x1bb6   :  { %27736 = vmatmul.mubr.f32.vlgmr.msra.gmra.mrb[42].mxu0 %v15634_v57 }
0x1bb7   :  { %31719 = vmatpush3.bf16.msra.mxu0 %v38076_v36  ;;  %27754 = vmatprep.mubr.msk.f32.mxu0 %vm33090_vm1, %v39869_v3  ;;  %v40255_v36 = vld [vmem:[#allocation5_spill] sm:$0xff] }
0x1bb8   :  { %31720 = vmatprep.subr.bf16.mxu0 %v39868_v19 }
0x1bbb   :  { %31722 = vmatpush3.bf16.msra.mxu0 %v38089_v17  ;;  %v40260_v17 = vld [vmem:[#allocation10_spill] sm:$0xff] }
0x1bbc   :  { %31723 = vmatprep.subr.bf16.mxu0 %v39868_v19 }
0x1bbf   :  { %31725 = vmatpush3.bf16.msra.mxu0 %v38099_v26 }
0x1bc0   :  { %31726 = vmatprep.subr.bf16.mxu0 %v39868_v19 }
0x1bc3   :  { %31728 = vmatpush3.bf16.msra.mxu0 %v38103_v30 }
0x1bc4   :  { %31730 = vmatprep.subr.bf16.mxu0 %v40139_v4 }
0x1bc6   :  { %27755 = vmatmul.mubr.f32.vlgmr.msra.gmra.mrb[42].mxu0 %v15634_v57  ;;  %v40279_v57 = vld [vmem:[#allocation29_spill] sm:$0xff] }
0x1bc7   :  { %31732 = vmatpush3.bf16.msra.mxu0 %v40139_v4 }
0x1bc8   :  { %31734 = vmatprep.subr.bf16.mxu0 %v40255_v36 }
0x1bcb   :  { %31736 = vmatpush3.bf16.msra.mxu0 %v40255_v36 }
0x1bcc   :  { %31738 = vmatprep.subr.bf16.mxu0 %v40256_v59 }
0x1bcf   :  { %31740 = vmatpush3.bf16.msra.mxu0 %v40256_v59 }
0x1bd0   :  { %31742 = vmatprep.subr.bf16.mxu0 %v40257_v22 }
0x1bd3   :  { %31744 = vmatpush3.bf16.msra.mxu0 %v40257_v22 }
0x1bd4   :  { %31746 = vmatprep.subr.bf16.mxu0 %v40258_v7 }
0x1bd7   :  { %31748 = vmatpush3.bf16.msra.mxu0 %v40258_v7 }
0x1bd8   :  { %31750 = vmatprep.subr.bf16.mxu0 %v40259_v24 }
0x1bdb   :  { %31752 = vmatpush3.bf16.msra.mxu0 %v40259_v24 }
0x1bdc   :  { %31754 = vmatprep.subr.bf16.mxu0 %v40260_v17 }
0x1bdf   :  { %31756 = vmatpush3.bf16.msra.mxu0 %v40260_v17 }
0x1be0   :  { %31758 = vmatprep.subr.bf16.mxu0 %v40261_v56 }
0x1be3   :  { %31760 = vmatpush3.bf16.msra.mxu0 %v40261_v56 }
0x1be4   :  { %31762 = vmatprep.subr.bf16.mxu0 %v40262_v8 }
0x1c99   :  { %v38296_v42 = vpop.f32.mrb[42].mxu0 }
0x1c9a   :  { %v16098_v26 = vmul.f32 %v38296_v42, %v38296_v42  ;;  %v38301_v30 = vand.u32 4294901760, %v38296_v42  ;;  %v27756_v48 = vpop.f32.mrb[43].mxu0 }
0x1c9c   :  { %v16181_v58 = vsub.f32 %v38296_v42, %v38301_v30  ;;  %v38305_v11 = vand.u32 4294901760, %v16098_v26 }
0x1c9e   :  { %v16191_v9 = vsub.f32 %v16098_v26, %v38305_v11  ;;  %v16182_v18 = vand.u32 4294901760, %v16181_v58 }
0x1ca0   :  { %v16183_v13 = vsub.f32 %v16181_v58, %v16182_v18  ;;  %v16192_v20 = vand.u32 4294901760, %v16191_v9 }
0x1ca2   :  { %v16184_v39 = vand.u32 4294901760, %v16183_v13  ;;  %v16193_v49 = vsub.f32 %v16191_v9, %v16192_v20 }
0x1ca4   :  { %27789 = vmatprep.mubr.f32.mxu0 %v16184_v39  ;;  %v16194_v50 = vand.u32 4294901760, %v16193_v49 }
0x1ca6   :  { %27790 = vmatmul.mubr.f32.vlgmr.msra.gmra.mrb[44].mxu0 %v16194_v50 }
0x1ca7   :  { %31764 = vmatpush3.bf16.msra.mxu0 %v40262_v8  ;;  %27824 = vmatprep.mubr.f32.mxu0 %v38301_v30 }
0x1ca8   :  { %31766 = vmatprep.subr.bf16.mxu0 %v40263_v43 }
0x1cab   :  { %31768 = vmatpush3.bf16.msra.mxu0 %v40263_v43 }
0x1cac   :  { %31770 = vmatprep.subr.bf16.mxu0 %v40264_v54 }
0x1caf   :  { %31772 = vmatpush3.bf16.msra.mxu0 %v40264_v54 }
0x1cb0   :  { %31774 = vmatprep.subr.bf16.mxu0 %v40265_v12 }
0x1cb3   :  { %31776 = vmatpush3.bf16.msra.mxu0 %v40265_v12 }
0x1cb4   :  { %31778 = vmatprep.subr.bf16.mxu0 %v40266_v45 }
0x1cb7   :  { %31780 = vmatpush3.bf16.msra.mxu0 %v40266_v45 }
0x1cb8   :  { %31782 = vmatprep.subr.bf16.mxu0 %v40267_v35 }
0x1cbb   :  { %31784 = vmatpush3.bf16.msra.mxu0 %v40267_v35  ;;  %v38621_v35 = vld [vmem:[%s39427_s5 + $0xe0] sm:$0xff] }
0x1cbc   :  { %31786 = vmatprep.subr.bf16.mxu0 %v40268_v33  ;;  %v17995_v54 = vand.u32 4294901760, %v38621_v35 }
0x1cbf   :  { %31788 = vmatpush3.bf16.msra.mxu0 %v40268_v33 }
0x1cc0   :  { %31790 = vmatprep.subr.bf16.mxu0 %v40269_v61 }
0x1cc3   :  { %31792 = vmatpush3.bf16.msra.mxu0 %v40269_v61 }
0x1cc4   :  { %31794 = vmatprep.subr.bf16.mxu0 %v40270_v21 }
0x1cc6   :  { %27825 = vmatmul.mubr.f32.vlgmr.msra.gmra.mrb[44].mxu0 %v38305_v11 }
0x1cc7   :  { %31796 = vmatpush3.bf16.msra.mxu0 %v40270_v21  ;;  %27859 = vmatprep.mubr.f32.mxu0 %v16181_v58 }
0x1cc8   :  { %31798 = vmatprep.subr.bf16.mxu0 %v40271_v28 }
0x1ccb   :  { %31800 = vmatpush3.bf16.msra.mxu0 %v40271_v28 }
0x1ccc   :  { %31802 = vmatprep.subr.bf16.mxu0 %v40272_v55 }
0x1ccf   :  { %31804 = vmatpush3.bf16.msra.mxu0 %v40272_v55  ;;  %v21491_v55 = vld [vmem:[%s39427_s5 + $0xd8] sm:$0xff] }
0x1cd0   :  { %31806 = vmatprep.subr.bf16.mxu0 %v40273_v46 }
0x1cd3   :  { %31808 = vmatpush3.bf16.msra.mxu0 %v40273_v46  ;;  %v21490_v46 = vld [vmem:[%s39427_s5 + $0xd0] sm:$0xff] }
0x1cd4   :  { %31810 = vmatprep.subr.bf16.mxu0 %v40274_v31  ;;  %v17989_v33 = vand.u32 4294901760, %v21490_v46 }
0x1cd7   :  { %31812 = vmatpush3.bf16.msra.mxu0 %v40274_v31 }
0x1cd8   :  { %31814 = vmatprep.subr.bf16.mxu0 %v40275_v25 }
0x1cdb   :  { %31816 = vmatpush3.bf16.msra.mxu0 %v40275_v25 }
0x1cdc   :  { %31818 = vmatprep.subr.bf16.mxu0 %v40276_v5 }
0x1cdf   :  { %31820 = vmatpush3.bf16.msra.mxu0 %v40276_v5 }
0x1ce0   :  { %31822 = vmatprep.subr.bf16.mxu0 %v40277_v52 }
0x1ce3   :  { %31824 = vmatpush3.bf16.msra.mxu0 %v40277_v52 }
0x1ce4   :  { %31826 = vmatprep.subr.bf16.mxu0 %v40139_v4 }
0x1ce6   :  { %27860 = vmatmul.mubr.f32.vlgmr.msra.gmra.mrb[44].mxu0 %v16191_v9 }
0x1ce7   :  { %31828 = vmatpush3.bf16.msra.mxu0 %v40139_v4  ;;  %27894 = vmatprep.mubr.f32.mxu0 %v16182_v18  ;;  %v21474_v18 = vld [vmem:[%s39434_s10] ss:$0 sm:$0xff] }
0x1ce8   :  { %31830 = vmatprep.subr.bf16.mxu0 %v40255_v36 }
0x1ceb   :  { %31832 = vmatpush3.bf16.msra.mxu0 %v40255_v36 }
0x1cec   :  { %31834 = vmatprep.subr.bf16.mxu0 %v40256_v59 }
0x1cef   :  { %31836 = vmatpush3.bf16.msra.mxu0 %v40256_v59 }
0x1cf0   :  { %31838 = vmatprep.subr.bf16.mxu0 %v40257_v22 }
0x1cf3   :  { %31840 = vmatpush3.bf16.msra.mxu0 %v40257_v22 }
0x1cf4   :  { %31842 = vmatprep.subr.bf16.mxu0 %v40258_v7 }
0x1cf7   :  { %31844 = vmatpush3.bf16.msra.mxu0 %v40258_v7 }
0x1cf8   :  { %31846 = vmatprep.subr.bf16.mxu0 %v40259_v24 }
0x1cfb   :  { %31848 = vmatpush3.bf16.msra.mxu0 %v40259_v24 }
0x1cfc   :  { %31850 = vmatprep.subr.bf16.mxu0 %v40260_v17 }
0x1cff   :  { %31852 = vmatpush3.bf16.msra.mxu0 %v40260_v17 }
0x1d00   :  { %31854 = vmatprep.subr.bf16.mxu0 %v40261_v56 }
0x1d03   :  { %31856 = vmatpush3.bf16.msra.mxu0 %v40261_v56 }
0x1d04   :  { %31858 = vmatprep.subr.bf16.mxu0 %v40278_v41 }
0x1d06   :  { %27895 = vmatmul.mubr.f32.vlgmr.msra.gmra.mrb[44].mxu0 %v16192_v20 }
0x1d07   :  { %31860 = vmatpush3.bf16.msra.mxu0 %v40278_v41  ;;  %27929 = vmatprep.mubr.f32.mxu0 %v38301_v30 }
0x1d08   :  { %31862 = vmatprep.subr.bf16.mxu0 %v40279_v57 }
0x1d0b   :  { %31864 = vmatpush3.bf16.msra.mxu0 %v40279_v57 }
0x1d0c   :  { %31866 = vmatprep.subr.bf16.mxu0 %v40280_v51 }
0x1d0f   :  { %31868 = vmatpush3.bf16.msra.mxu0 %v40280_v51 }
0x1d10   :  { %31870 = vmatprep.subr.bf16.mxu0 %v40281_v6 }
0x1d13   :  { %31872 = vmatpush3.bf16.msra.mxu0 %v40281_v6 }
0x1d14   :  { %31874 = vmatprep.subr.bf16.mxu0 %v40282_v32 }
0x1d17   :  { %31876 = vmatpush3.bf16.msra.mxu0 %v40282_v32 }
0x1d18   :  { %31878 = vmatprep.subr.bf16.mxu0 %v40283_v34 }
0x1d1b   :  { %31880 = vmatpush3.bf16.msra.mxu0 %v40283_v34 }
0x1d1c   :  { %31882 = vmatprep.subr.bf16.mxu0 %v40284_v14 }
0x1d1f   :  { %31884 = vmatpush3.bf16.msra.mxu0 %v40284_v14 }
0x1d20   :  { %31886 = vmatprep.subr.bf16.mxu0 %v40285_v44 }
0x1d23   :  { %31888 = vmatpush3.bf16.msra.mxu0 %v40285_v44 }
0x1d24   :  { %31890 = vmatprep.subr.bf16.mxu0 %v40139_v4 }
0x1d26   :  { %27930 = vmatmul.mubr.f32.vlgmr.msra.gmra.mrb[44].mxu0 %v38305_v11 }
0x1d27   :  { %31892 = vmatpush3.bf16.msra.mxu0 %v40139_v4  ;;  %27964 = vmatprep.mubr.f32.mxu0 %v38301_v30 }
0x1d28   :  { %31894 = vmatprep.subr.bf16.mxu0 %v40255_v36 }
0x1d2b   :  { %31896 = vmatpush3.bf16.msra.mxu0 %v40255_v36 }
0x1d2c   :  { %31898 = vmatprep.subr.bf16.mxu0 %v40256_v59 }
0x1d2f   :  { %31900 = vmatpush3.bf16.msra.mxu0 %v40256_v59 }
0x1d30   :  { %31902 = vmatprep.subr.bf16.mxu0 %v40257_v22 }
0x1d33   :  { %31904 = vmatpush3.bf16.msra.mxu0 %v40257_v22 }
0x1d34   :  { %31906 = vmatprep.subr.bf16.mxu0 %v40258_v7 }
0x1d37   :  { %31908 = vmatpush3.bf16.msra.mxu0 %v40258_v7 }
0x1d38   :  { %31910 = vmatprep.subr.bf16.mxu0 %v40259_v24 }
0x1d3b   :  { %31912 = vmatpush3.bf16.msra.mxu0 %v40259_v24 }
0x1d3c   :  { %31914 = vmatprep.subr.bf16.mxu0 %v40260_v17 }
0x1d3f   :  { %31916 = vmatpush3.bf16.msra.mxu0 %v40260_v17 }
0x1d40   :  { %31918 = vmatprep.subr.bf16.mxu0 %v40261_v56 }
0x1d43   :  { %31920 = vmatpush3.bf16.msra.mxu0 %v40261_v56 }
0x1d44   :  { %32065 = vmatprep.subr.bf16.mxu0 %v39868_v19 }
0x1d46   :  { %27965 = vmatmul.mubr.f32.vlgmr.msra.gmra.mrb[44].mxu0 %v38305_v11  ;;  %v21475_v11 = vld [vmem:[%s39435_s11] ss:$0 sm:$0xff] }
0x1d47   :  { %28185 = vmatprep.mubr.msk.f32.mxu0 %vm33090_vm1, %v39869_v3 }
0x1e19   :  { %v27966_v38 = vpop.f32.mrb[44].mxu0 }
0x1e1a   :  { %v16773_v1 = vpop.f32.mrb[45].mxu0 }
0x1e1b   :  { %v16783_v26 = vmul.f32 %v16773_v1, %v16773_v1  ;;  %v16785_v30 = vsub.f32 %v38296_v42, %v16773_v1 }
0x1e1d   :  { %v16784_v48 = vsub.f32 %v27966_v38, %v16783_v26  ;;  %v40286_v26 = vld [vmem:[#allocation36_spill] sm:$0xff] }
0x1e1f   :  { %v16786_v58 = vadd.f32 1e-05, %v16784_v48  ;;  %v40288_v48 = vld [vmem:[#allocation38_spill] sm:$0xff] }
0x1e21   :  { %33071 = vrsqrt.f32 %v16786_v58  ;;  %v40289_v58 = vld [vmem:[#allocation39_spill] sm:$0xff] }
0x1e2b   :  { %v33072_v9 = vpop.eup %33071 }
0x1e2c   :  { %v16788_v13 = vmul.f32 %v33072_v9, %v16785_v30  ;;  %v40287_v30 = vld [vmem:[#allocation37_spill] sm:$0xff]  ;;  %v40290_v9 = vld [vmem:[#allocation40_spill] sm:$0xff] }
0x1e2e   :  { %v16796_v20 = vmul.f32 %v21474_v18, %v16788_v13  ;;  %v40291_v18 = vld [vmem:[#allocation41_spill] sm:$0xff]  ;;  %v40292_v13 = vld [vmem:[#allocation42_spill] sm:$0xff] }
0x1e30   :  { %v16804_v39 = vadd.f32 %v21475_v11, %v16796_v20  ;;  %v40293_v11 = vld [vmem:[#allocation43_spill] sm:$0xff]  ;;  %v40294_v20 = vld [vmem:[#allocation44_spill] sm:$0xff] }
0x1e32   :  { %v38403_v49 = vand.u32 4294901760, %v16804_v39 }
0x1e34   :  { %v16889_v50 = vsub.f32 %v16804_v39, %v38403_v49  ;;  %v40295_v39 = vld [vmem:[#allocation45_spill] sm:$0xff] }
0x1e36   :  { %v16890_v42 = vand.u32 4294901760, %v16889_v50 }
0x1e38   :  { %v16891_v38 = vsub.f32 %v16889_v50, %v16890_v42 }
0x1e3a   :  { %v16892_v1 = vand.u32 4294901760, %v16891_v38  ;;  %v40296_v38 = vld [vmem:[#allocation46_spill] sm:$0xff] }
0x1e3c   :  { %28000 = vmatmul.mubr.f32.vlgmr.msra.gmra.mrb[30].mxu1 %v16892_v1  ;;  %v40297_v1 = vld [vmem:[#allocation47_spill] sm:$0xff] }
0x1e3d   :  { %31947 = vmatpush3.bf16.msra.mxu1 %v40286_v26  ;;  %28034 = vmatprep.mubr.msk.f32.mxu1 %vm33090_vm1, %v39869_v3 }
0x1e3e   :  { %31948 = vmatprep.subr.bf16.mxu1 %v39868_v19 }
0x1e41   :  { %31950 = vmatpush3.bf16.msra.mxu1 %v40287_v30 }
0x1e42   :  { %31951 = vmatprep.subr.bf16.mxu1 %v39868_v19 }
0x1e45   :  { %31953 = vmatpush3.bf16.msra.mxu1 %v40288_v48 }
0x1e46   :  { %31954 = vmatprep.subr.bf16.mxu1 %v39868_v19 }
0x1e49   :  { %31956 = vmatpush3.bf16.msra.mxu1 %v40289_v58 }
0x1e4a   :  { %31957 = vmatprep.subr.bf16.mxu1 %v39868_v19 }
0x1e4d   :  { %31959 = vmatpush3.bf16.msra.mxu1 %v40290_v9 }
0x1e4e   :  { %31960 = vmatprep.subr.bf16.mxu1 %v39868_v19 }
0x1e51   :  { %31962 = vmatpush3.bf16.msra.mxu1 %v40291_v18 }
0x1e52   :  { %31963 = vmatprep.subr.bf16.mxu1 %v39868_v19 }
0x1e55   :  { %31965 = vmatpush3.bf16.msra.mxu1 %v40292_v13  ;;  %v40300_v13 = vld [vmem:[#allocation50_spill] sm:$0xff] }
0x1e56   :  { %31966 = vmatprep.subr.bf16.mxu1 %v39868_v19 }
0x1e59   :  { %31968 = vmatpush3.bf16.msra.mxu1 %v40293_v11  ;;  %v40298_v11 = vld [vmem:[#allocation48_spill] sm:$0xff] }
0x1e5a   :  { %31969 = vmatprep.subr.bf16.mxu1 %v39868_v19 }
0x1e5c   :  { %28035 = vmatmul.mubr.f32.vlgmr.msra.gmra.mrb[30].mxu1 %v38403_v49 }
0x1e5d   :  { %31971 = vmatpush3.bf16.msra.mxu1 %v40294_v20  ;;  %28069 = vmatprep.mubr.msk.f32.mxu1 %vm33090_vm1, %v39869_v3  ;;  %v40299_v20 = vld [vmem:[#allocation49_spill] sm:$0xff] }
0x1e5e   :  { %31972 = vmatprep.subr.bf16.mxu1 %v39868_v19 }
0x1e61   :  { %31974 = vmatpush3.bf16.msra.mxu1 %v40295_v39  ;;  %v40301_v39 = vld [vmem:[#allocation51_spill] sm:$0xff] }
0x1e62   :  { %31975 = vmatprep.subr.bf16.mxu1 %v39868_v19 }
0x1e65   :  { %31977 = vmatpush3.bf16.msra.mxu1 %v40296_v38  ;;  %v21479_v38 = vld [vmem:[%s39829_s23 + $0x38] sm:$0xff] }
0x1e66   :  { %31978 = vmatprep.subr.bf16.mxu1 %v39868_v19  ;;  %v17466_v9 = vand.u32 4294901760, %v21479_v38 }
0x1e69   :  { %31980 = vmatpush3.bf16.msra.mxu1 %v40297_v1 }
0x1e6a   :  { %31981 = vmatprep.subr.bf16.mxu1 %v39868_v19 }
0x1e6d   :  { %31983 = vmatpush3.bf16.msra.mxu1 %v40298_v11  ;;  %v40308_v11 = vld [vmem:[#allocation59_spill] sm:$0xff] }
0x1e6e   :  { %31984 = vmatprep.subr.bf16.mxu1 %v39868_v19 }
0x1e71   :  { %31986 = vmatpush3.bf16.msra.mxu1 %v40299_v20  ;;  %v40305_v20 = vld [vmem:[#allocation56_spill] sm:$0xff] }
0x1e72   :  { %31987 = vmatprep.subr.bf16.mxu1 %v39868_v19 }
0x1e75   :  { %31989 = vmatpush3.bf16.msra.mxu1 %v40300_v13  ;;  %v40304_v13 = vld [vmem:[#allocation55_spill] sm:$0xff] }
0x1e76   :  { %31990 = vmatprep.subr.bf16.mxu1 %v39868_v19 }
0x1e79   :  { %31992 = vmatpush3.bf16.msra.mxu1 %v40301_v39  ;;  %v40303_v39 = vld [vmem:[#allocation54_spill] sm:$0xff] }
0x1e7a   :  { %31993 = vmatprep.subr.bf16.mxu1 %v39868_v19 }
0x1e7c   :  { %28070 = vmatmul.mubr.f32.vlgmr.msra.gmra.mrb[30].mxu1 %v16889_v50  ;;  %v40302_v50 = vld [vmem:[#allocation53_spill] sm:$0xff] }
0x1e7d   :  { %31995 = vmatpush3.bf16.msra.mxu1 %v34224_v10  ;;  %28104 = vmatprep.mubr.msk.f32.mxu1 %vm33090_vm1, %v39869_v3 }
0x1e7e   :  { %31996 = vmatprep.subr.bf16.mxu1 %v39868_v19 }
0x1e81   :  { %31998 = vmatpush3.bf16.msra.mxu1 %v34234_v16 }
0x1e82   :  { %31999 = vmatprep.subr.bf16.mxu1 %v39868_v19 }
0x1e85   :  { %32001 = vmatpush3.bf16.msra.mxu1 %v34244_v15 }
0x1e86   :  { %32002 = vmatprep.subr.bf16.mxu1 %v39868_v19 }
0x1e89   :  { %32004 = vmatpush3.bf16.msra.mxu1 %v34254_v47 }
0x1e8a   :  { %32005 = vmatprep.subr.bf16.mxu1 %v39868_v19 }
0x1e8d   :  { %32007 = vmatpush3.bf16.msra.mxu1 %v34264_v40 }
0x1e8e   :  { %32008 = vmatprep.subr.bf16.mxu1 %v39868_v19 }
0x1e91   :  { %32010 = vmatpush3.bf16.msra.mxu1 %v34280_v23 }
0x1e92   :  { %32011 = vmatprep.subr.bf16.mxu1 %v39868_v19 }
0x1e95   :  { %32013 = vmatpush3.bf16.msra.mxu1 %v34300_v62 }
0x1e96   :  { %32014 = vmatprep.subr.bf16.mxu1 %v39868_v19 }
0x1e99   :  { %32016 = vmatpush3.bf16.msra.mxu1 %v34326_v37 }
0x1e9a   :  { %32017 = vmatprep.subr.bf16.mxu1 %v39868_v19 }
0x1e9c   :  { %28105 = vmatmul.mubr.f32.vlgmr.msra.gmra.mrb[30].mxu1 %v16890_v42  ;;  %v40306_v42 = vld [vmem:[#allocation57_spill] sm:$0xff] }
0x1e9d   :  { %32019 = vmatpush3.bf16.msra.mxu1 %v40302_v50  ;;  %28139 = vmatprep.mubr.msk.f32.mxu1 %vm33090_vm1, %v39869_v3  ;;  %v40307_v50 = vld [vmem:[#allocation58_spill] sm:$0xff] }
0x1e9e   :  { %32020 = vmatprep.subr.bf16.mxu1 %v39868_v19 }
0x1ea1   :  { %32022 = vmatpush3.bf16.msra.mxu1 %v40303_v39  ;;  %v40309_v39 = vld [vmem:[#allocation60_spill] sm:$0xff] }
0x1ea2   :  { %32023 = vmatprep.subr.bf16.mxu1 %v39868_v19 }
0x1ea5   :  { %32025 = vmatpush3.bf16.msra.mxu1 %v40304_v13 }
0x1ea6   :  { %32026 = vmatprep.subr.bf16.mxu1 %v39868_v19 }
0x1ea9   :  { %32028 = vmatpush3.bf16.msra.mxu1 %v40305_v20 }
0x1eaa   :  { %32029 = vmatprep.subr.bf16.mxu1 %v39868_v19 }
0x1ead   :  { %32031 = vmatpush3.bf16.msra.mxu1 %v40306_v42 }
0x1eae   :  { %32032 = vmatprep.subr.bf16.mxu1 %v39868_v19 }
0x1eb1   :  { %32034 = vmatpush3.bf16.msra.mxu1 %v40307_v50 }
0x1eb2   :  { %32035 = vmatprep.subr.bf16.mxu1 %v39868_v19 }
0x1eb5   :  { %32037 = vmatpush3.bf16.msra.mxu1 %v40308_v11  ;;  %v21477_v11 = vld [vmem:[%s39829_s23 + $0x28] sm:$0xff] }
0x1eb6   :  { %32038 = vmatprep.subr.bf16.mxu1 %v39868_v19  ;;  %v17460_v42 = vand.u32 4294901760, %v21477_v11 }
0x1eb8   :  { %v17544_v1 = vsub.f32 %v21477_v11, %v17460_v42  ;;  %v17558_v11 = vsub.f32 %v21479_v38, %v17466_v9 }
0x1eb9   :  { %32040 = vmatpush3.bf16.msra.mxu1 %v40309_v39  ;;  %v21476_v39 = vld [vmem:[%s39829_s23 + $0x20] sm:$0xff] }
0x1eba   :  { %32041 = vmatprep.subr.bf16.mxu1 %v39868_v19  ;;  %v17457_v50 = vand.u32 4294901760, %v21476_v39  ;;  %v17545_v48 = vand.u32 4294901760, %v17544_v1  ;;  %v17559_v34 = vand.u32 4294901760, %v17558_v11 }
0x1ebc   :  { %28140 = vmatmul.mubr.f32.vlgmr.msra.gmra.mrb[30].mxu1 %v38403_v49  ;;  %v38507_v20 = vpack.c.bf16 %v17460_v42, %v17457_v50  ;;  %v17537_v13 = vsub.f32 %v21476_v39, %v17457_v50  ;;  %v17546_v42 = vsub.f32 %v17544_v1, %v17545_v48  ;;  %v17560_v51 = vsub.f32 %v17558_v11, %v17559_v34 }
0x1ebd   :  { %32043 = vmatpush3.bf16.msra.mxu1 %v34224_v10  ;;  %28174 = vmatprep.mubr.msk.f32.mxu1 %vm33090_vm1, %v39869_v3 }
0x1ebe   :  { %32044 = vmatprep.subr.bf16.mxu1 %v39868_v19  ;;  %32067 = vmatpush3.bf16.msra.mxu0 %v38507_v20  ;;  %v17538_v58 = vand.u32 4294901760, %v17537_v13  ;;  %v17547_v44 = vand.u32 4294901760, %v17546_v42  ;;  %v17561_v41 = vand.u32 4294901760, %v17560_v51  ;;  %v32078_v5 = vpack.c.bf16 %v17544_v1, %v17537_v13 }
0x1ebf   :  { %32068 = vmatprep.subr.bf16.mxu0 %v39868_v19 }
0x1ec0   :  { %v17539_v50 = vsub.f32 %v17537_v13, %v17538_v58  ;;  %v21485_v13 = vld [vmem:[%s39427_s5 + $0xa8] sm:$0xff] }
0x1ec1   :  { %32046 = vmatpush3.bf16.msra.mxu1 %v34234_v16  ;;  %v17974_v1 = vand.u32 4294901760, %v21485_v13 }
0x1ec2   :  { %32047 = vmatprep.subr.bf16.mxu1 %v39868_v19  ;;  %v17540_v26 = vand.u32 4294901760, %v17539_v50 }
0x1ec3   :  { %v38663_v7 = vsub.f32 %v21485_v13, %v17974_v1 }
0x1ec4   :  { %v32072_v32 = vpack.c.bf16 %v17547_v44, %v17540_v26 }
0x1ec5   :  { %32049 = vmatpush3.bf16.msra.mxu1 %v34244_v15 }
0x1ec6   :  { %32050 = vmatprep.subr.bf16.mxu1 %v39868_v19 }
0x1ec9   :  { %32052 = vmatpush3.bf16.msra.mxu1 %v34254_v47 }
0x1eca   :  { %32053 = vmatprep.subr.bf16.mxu1 %v39868_v19 }
0x1ecd   :  { %32055 = vmatpush3.bf16.msra.mxu1 %v34264_v40 }
0x1ece   :  { %32056 = vmatprep.subr.bf16.mxu1 %v39868_v19 }
0x1ed1   :  { %32058 = vmatpush3.bf16.msra.mxu1 %v34280_v23 }
0x1ed2   :  { %32059 = vmatprep.subr.bf16.mxu1 %v39868_v19 }
0x1ed5   :  { %32061 = vmatpush3.bf16.msra.mxu1 %v34300_v62 }
0x1ed6   :  { %32062 = vmatprep.subr.bf16.mxu1 %v39868_v19 }
0x1ed9   :  { %32064 = vmatpush3.bf16.msra.mxu1 %v34326_v37 }
0x1eda   :  { %32245 = vmatprep.subr.bf16.mxu1 %v39868_v19 }
0x1edc   :  { %28175 = vmatmul.mubr.f32.vlgmr.msra.gmra.mrb[30].mxu1 %v38403_v49  ;;  %v21478_v49 = vld [vmem:[%s39829_s23 + $0x30] sm:$0xff] }
0x1edd   :  { %28469 = vmatprep.mubr.msk.f32.mxu1 %vm33090_vm1, %v39869_v3  ;;  %v17463_v18 = vand.u32 4294901760, %v21478_v49 }
0x1edf   :  { %v38517_v30 = vpack.c.bf16 %v17466_v9, %v17463_v18  ;;  %v17551_v39 = vsub.f32 %v21478_v49, %v17463_v18  ;;  %v32090_v18 = vpack.c.bf16 %v17545_v48, %v17538_v58  ;;  %v33087_v49 = vld [vmem:[%s39426_s0 + $0x10] sm:$0xff]  ;;  %v21484_v58 = vld [vmem:[%s39427_s5 + $0xa0] sm:$0xff] }
0x1ee1   :  { %32070 = vmatpush3.bf16.msra.mxu0 %v38517_v30  ;;  %v17552_v14 = vand.u32 4294901760, %v17551_v39  ;;  %v32081_v25 = vpack.c.bf16 %v17558_v11, %v17551_v39  ;;  %v21487_v11 = vld [vmem:[%s39427_s5 + $0xb8] sm:$0xff] }
0x1ee2   :  { %32071 = vmatprep.subr.bf16.mxu0 %v39868_v19 }
0x1ee3   :  { %v17553_v6 = vsub.f32 %v17551_v39, %v17552_v14  ;;  %v32093_v9 = vpack.c.bf16 %v17559_v34, %v17552_v14  ;;  %v21486_v39 = vld [vmem:[%s39427_s5 + $0xb0] sm:$0xff] }
0x1ee5   :  { %v17554_v57 = vand.u32 4294901760, %v17553_v6 }
0x1ee7   :  { %v32075_v52 = vpack.c.bf16 %v17561_v41, %v17554_v57  ;;  %v21482_v57 = vld [vmem:[%s39427_s5 + $0x90] sm:$0xff] }
0x1ee8   :  { %v17965_v14 = vand.u32 4294901760, %v21482_v57 }
0x1faf   :  { %v38521_v38 = vpop.f32.mrb[30].mxu1 }
0x1fb0   :  { %40310 = vst [vmem:[#allocation52_spill] sm:$0xff] %v38521_v38  ;;  %v17448_v50 = vsub.f32 %v33087_v49, %v38521_v38  ;;  %v28176_v42 = vpop.f32.mrb[31].mxu1  ;;  %v17980_v49 = vand.u32 4294901760, %v21487_v11 }
0x1fb1   :  { %v21489_v42 = vld [vmem:[%s39427_s5 + $0xc8] sm:$0xff] }
0x1fb2   :  { %v17454_v44 = vsel %vm103_vm0, %v17448_v50, 0  ;;  %v21488_v50 = vld [vmem:[%s39427_s5 + $0xc0] sm:$0xff]  ;;  %v38680_v36 = vsub.f32 %v21487_v11, %v17980_v49 }
0x1fb3   :  { %v17525_v26 = vand.u32 4294901760, %v17454_v44 }
0x1fb5   :  { %v17526_v31 = vsub.f32 %v17454_v44, %v17525_v26 }
0x1fb7   :  { %v17527_v6 = vand.u32 4294901760, %v17526_v31 }
0x1fb9   :  { %v17528_v51 = vsub.f32 %v17526_v31, %v17527_v6 }
0x1fbb   :  { %v17529_v41 = vand.u32 4294901760, %v17528_v51  ;;  %v33088_v51 = vld [vmem:[%s39437_s15] ss:$0 sm:$0xff] }
0x1fbd   :  { %28186 = vmatmul.mubr.f32.vlgmr.msra.gmra.mrb[46].mxu0 %v17529_v41  ;;  %v40311_v41 = vld [vmem:[#allocation62_spill] sm:$0xff] }
0x1fbe   :  { %32073 = vmatpush3.bf16.msra.mxu0 %v32072_v32  ;;  %28196 = vmatprep.mubr.msk.f32.mxu0 %vm33090_vm1, %v39869_v3  ;;  %v21483_v32 = vld [vmem:[%s39427_s5 + $0x98] sm:$0xff]  ;;  %v12909_v38 = vsub.f32 %v40311_v41, %v33088_v51  ;;  %v17992_v51 = vand.u32 4294901760, %v21491_v55 }
0x1fbf   :  { %32074 = vmatprep.subr.bf16.mxu0 %v39868_v19  ;;  %v17968_v48 = vand.u32 4294901760, %v21483_v32 }
0x1fc0   :  { %v38615_v41 = vand.u32 4294901760, %v12909_v38  ;;  %v38635_v12 = vpack.c.bf16 %v17992_v51, %v17989_v33 }
0x1fc2   :  { %32076 = vmatpush3.bf16.msra.mxu0 %v32075_v52 }
0x1fc3   :  { %32077 = vmatprep.subr.bf16.mxu0 %v39868_v19 }
0x1fc5   :  { %28197 = vmatmul.mubr.f32.vlgmr.msra.gmra.mrb[46].mxu0 %v17525_v26 }
0x1fc6   :  { %32079 = vmatpush3.bf16.msra.mxu0 %v32078_v5  ;;  %28207 = vmatprep.mubr.msk.f32.mxu0 %vm33090_vm1, %v39869_v3 }
0x1fc7   :  { %32080 = vmatprep.subr.bf16.mxu0 %v39868_v19 }
0x1fca   :  { %32082 = vmatpush3.bf16.msra.mxu0 %v32081_v25  ;;  %v21481_v25 = vld [vmem:[%s39427_s5 + $0x88] sm:$0xff] }
0x1fcb   :  { %32083 = vmatprep.subr.bf16.mxu0 %v39868_v19  ;;  %v17962_v52 = vand.u32 4294901760, %v21481_v25 }
0x1fcd   :  { %28208 = vmatmul.mubr.f32.vlgmr.msra.gmra.mrb[46].mxu0 %v17526_v31  ;;  %v21480_v31 = vld [vmem:[%s39427_s5 + $0x80] sm:$0xff]  ;;  %v38610_v21 = vsub.f32 %v21481_v25, %v17962_v52  ;;  %v38628_v25 = vsub.f32 %v21482_v57, %v17965_v14  ;;  %v38643_v57 = vld [vmem:[%s39427_s5 + $0xf0] sm:$0xff] }
0x1fce   :  { %32085 = vmatpush3.bf16.msra.mxu0 %v38507_v20  ;;  %28218 = vmatprep.mubr.msk.f32.mxu0 %vm33090_vm1, %v39869_v3  ;;  %v17959_v5 = vand.u32 4294901760, %v21480_v31 }
0x1fcf   :  { %32086 = vmatprep.subr.bf16.mxu0 %v39868_v19  ;;  %v40312_v8 = vand.u32 4294901760, %v38610_v21  ;;  %v40313_v24 = vand.u32 4294901760, %v38628_v25 }
0x1fd0   :  { %v38563_v34 = vpack.c.bf16 %v17962_v52, %v17959_v5  ;;  %v38608_v28 = vsub.f32 %v21480_v31, %v17959_v5  ;;  %v38626_v31 = vld [vmem:[%s39427_s5 + $0xe8] sm:$0xff]  ;;  %v38630_v5 = vsub.f32 %v21483_v32, %v17968_v48  ;;  %v38648_v32 = vld [vmem:[%s39427_s5 + $0xf8] sm:$0xff] }
0x1fd1   :  { %v17998_v43 = vand.u32 4294901760, %v38626_v31  ;;  %v18060_v56 = vsub.f32 %v38610_v21, %v40312_v8  ;;  %v18067_v13 = vsub.f32 %v38628_v25, %v40313_v24 }
0x1fd2   :  { %32088 = vmatpush3.bf16.msra.mxu0 %v38517_v30  ;;  %v39812_v52 = vand.u32 4294901760, %v38608_v28 }
0x1fd3   :  { %32089 = vmatprep.subr.bf16.mxu0 %v39868_v19  ;;  %v18061_v17 = vand.u32 4294901760, %v18060_v56 }
0x1fd4   :  { %v18053_v45 = vsub.f32 %v38608_v28, %v39812_v52 }
0x1fd5   :  { %28219 = vmatmul.mubr.f32.vlgmr.msra.gmra.mrb[46].mxu0 %v17527_v6  ;;  %v17986_v6 = vand.u32 4294901760, %v21489_v42 }
0x1fd6   :  { %32091 = vmatpush3.bf16.msra.mxu0 %v32090_v18  ;;  %28229 = vmatprep.mubr.msk.f32.mxu0 %vm33090_vm1, %v39869_v3  ;;  %v18054_v8 = vand.u32 4294901760, %v18053_v45 }
0x1fd7   :  { %32092 = vmatprep.subr.bf16.mxu0 %v39868_v19 }
0x1fd8   :  { %v32126_v11 = vpack.c.bf16 %v18061_v17, %v18054_v8  ;;  %v38705_v17 = vsub.f32 %v21490_v46, %v17989_v33 }
0x1fda   :  { %32094 = vmatpush3.bf16.msra.mxu0 %v32093_v9  ;;  %v17977_v9 = vand.u32 4294901760, %v21486_v39  ;;  %v18122_v46 = vand.u32 4294901760, %v38705_v17 }
0x1fdb   :  { %32095 = vmatprep.subr.bf16.mxu0 %v39868_v19 }
0x1fdc   :  { %v38595_v44 = vpack.c.bf16 %v17980_v49, %v17977_v9  ;;  %v38672_v22 = vsub.f32 %v21486_v39, %v17977_v9  ;;  %v39820_v39 = vand.u32 4294901760, %v38663_v7  ;;  %v38693_v9 = vsub.f32 %v21489_v42, %v17986_v6 }
0x1fdd   :  { %28230 = vmatmul.mubr.f32.vlgmr.msra.gmra.mrb[46].mxu0 %v17525_v26  ;;  %v18068_v49 = vand.u32 4294901760, %v18067_v13 }
0x1fde   :  { %32097 = vmatpush3.bf16.msra.mxu0 %v38507_v20  ;;  %28240 = vmatprep.mubr.msk.f32.mxu0 %vm33090_vm1, %v39869_v3  ;;  %v38573_v20 = vpack.c.bf16 %v17968_v48, %v17965_v14  ;;  %v38651_v14 = vsub.f32 %v12909_v38, %v38615_v41  ;;  %v38666_v38 = vpack.c.bf16 %v17998_v43, %v17995_v54  ;;  %v18094_v29 = vand.u32 4294901760, %v38672_v22 }
0x1fdf   :  { %32098 = vmatprep.subr.bf16.mxu0 %v39868_v19  ;;  %v18088_v63 = vsub.f32 %v38663_v7, %v39820_v39  ;;  %v39821_v8 = vand.u32 4294901760, %v38693_v9 }
0x1fe0   :  { %v40315_v56 = vand.u32 4294901760, %v38651_v14  ;;  %v18095_v39 = vsub.f32 %v38672_v22, %v18094_v29 }
0x1fe2   :  { %32100 = vmatpush3.bf16.msra.mxu0 %v38517_v30  ;;  %v17971_v30 = vand.u32 4294901760, %v21484_v58  ;;  %v18042_v24 = vsub.f32 %v38651_v14, %v40315_v56  ;;  %v18089_v56 = vand.u32 4294901760, %v18088_v63 }
0x1fe3   :  { %32101 = vmatprep.subr.bf16.mxu0 %v39868_v19 }
0x1fe4   :  { %v38585_v18 = vpack.c.bf16 %v17974_v1, %v17971_v30  ;;  %v38653_v48 = vsub.f32 %v21484_v58, %v17971_v30  ;;  %v18001_v58 = vand.u32 4294901760, %v38643_v57  ;;  %v18004_v30 = vand.u32 4294901760, %v38648_v32 }
0x1fe5   :  { %28241 = vmatmul.mubr.f32.vlgmr.msra.gmra.mrb[46].mxu0 %v17525_v26  ;;  %v17983_v26 = vand.u32 4294901760, %v21488_v50  ;;  %v40314_v1 = vand.u32 4294901760, %v38630_v5 }
0x1fe6   :  { %32103 = vmatpush3.bf16.msra.mxu0 %v38563_v34  ;;  %28275 = vmatprep.mubr.msk.f32.mxu0 %vm33090_vm1, %v39869_v3  ;;  %v38683_v4 = vpack.c.bf16 %v18004_v30, %v18001_v58  ;;  %v18080_v52 = vand.u32 4294901760, %v38653_v48 }
0x1fe7   :  { %32104 = vmatprep.subr.bf16.mxu0 %v39868_v19  ;;  %v38613_v61 = vpack.c.bf16 %v17986_v6, %v17983_v26  ;;  %v18074_v59 = vsub.f32 %v38630_v5, %v40314_v1  ;;  %v38691_v45 = vsub.f32 %v21488_v50, %v17983_v26  ;;  %v18101_v50 = vand.u32 4294901760, %v38680_v36 }
0x1fe8   :  { %v18081_v27 = vsub.f32 %v38653_v48, %v18080_v52  ;;  %v18043_v26 = vand.u32 4294901760, %v18042_v24  ;;  %v38732_v24 = vsub.f32 %v38626_v31, %v17998_v43  ;;  %v38745_v31 = vsub.f32 %v38648_v32, %v18004_v30 }
0x1fe9   :  { %v18075_v1 = vand.u32 4294901760, %v18074_v59  ;;  %v38707_v59 = vsub.f32 %v21491_v55, %v17992_v51  ;;  %v18108_v6 = vand.u32 4294901760, %v38691_v45  ;;  %v18102_v33 = vsub.f32 %v38680_v36, %v18101_v50 }
0x1fea   :  { %32106 = vmatpush3.bf16.msra.mxu0 %v38573_v20  ;;  %v18082_v13 = vand.u32 4294901760, %v18081_v27  ;;  %v38721_v55 = vsub.f32 %v38621_v35, %v17995_v54  ;;  %v18116_v27 = vsub.f32 %v38693_v9, %v39821_v8  ;;  %v38736_v35 = vsub.f32 %v38643_v57, %v18001_v58 }
0x1feb   :  { %32107 = vmatprep.subr.bf16.mxu0 %v39868_v19  ;;  %v32129_v42 = vpack.c.bf16 %v18075_v1, %v18068_v49  ;;  %v18109_v63 = vsub.f32 %v38691_v45, %v18108_v6  ;;  %v18129_v51 = vand.u32 4294901760, %v38707_v59  ;;  %v18096_v49 = vand.u32 4294901760, %v18095_v39 }
0x1fec   :  { %v18103_v54 = vand.u32 4294901760, %v18102_v33  ;;  %v18123_v8 = vsub.f32 %v38705_v17, %v18122_v46  ;;  %v18143_v57 = vand.u32 4294901760, %v38732_v24  ;;  %v18150_v30 = vand.u32 4294901760, %v38736_v35 }
0x1fed   :  { %v18110_v1 = vand.u32 4294901760, %v18109_v63  ;;  %v18130_v43 = vsub.f32 %v38707_v59, %v18129_v51  ;;  %v18157_v63 = vand.u32 4294901760, %v38745_v31 }
0x1fee   :  { %32109 = vmatpush3.bf16.msra.mxu0 %v38585_v18  ;;  %v32135_v39 = vpack.c.bf16 %v18103_v54, %v18096_v49  ;;  %v18144_v32 = vsub.f32 %v38732_v24, %v18143_v57  ;;  %v18151_v49 = vsub.f32 %v38736_v35, %v18150_v30 }
0x1fef   :  { %32110 = vmatprep.subr.bf16.mxu0 %v39868_v19  ;;  %v18158_v54 = vsub.f32 %v38745_v31, %v18157_v63 }
0x1ff2   :  { %32112 = vmatpush3.bf16.msra.mxu0 %v38595_v44 }
0x1ff3   :  { %32113 = vmatprep.subr.bf16.mxu0 %v39868_v19 }
0x1ff6   :  { %32115 = vmatpush3.bf16.msra.mxu0 %v38613_v61 }
0x1ff7   :  { %32116 = vmatprep.subr.bf16.mxu0 %v39868_v19 }
0x1ffa   :  { %32118 = vmatpush3.bf16.msra.mxu0 %v38635_v12 }
0x1ffb   :  { %32119 = vmatprep.subr.bf16.mxu0 %v39868_v19 }
0x1ffe   :  { %32121 = vmatpush3.bf16.msra.mxu0 %v38666_v38 }
0x1fff   :  { %32122 = vmatprep.subr.bf16.mxu0 %v39868_v19 }
0x2002   :  { %32124 = vmatpush3.bf16.msra.mxu0 %v38683_v4 }
0x2003   :  { %32125 = vmatprep.subr.bf16.mxu0 %v39868_v19 }
0x2005   :  { %28276 = vmatmul.mubr.f32.vlgmr.msra.gmra.mrb[48].mxu0 %v18043_v26  ;;  %v18117_v26 = vand.u32 4294901760, %v18116_v27 }
0x2006   :  { %32127 = vmatpush3.bf16.msra.mxu0 %v32126_v11  ;;  %28310 = vmatprep.mubr.msk.f32.mxu0 %vm33090_vm1, %v39869_v3  ;;  %v32132_v11 = vpack.c.bf16 %v18089_v56, %v18082_v13  ;;  %v18124_v13 = vand.u32 4294901760, %v18123_v8  ;;  %v18131_v56 = vand.u32 4294901760, %v18130_v43  ;;  %v18145_v8 = vand.u32 4294901760, %v18144_v32 }
0x2007   :  { %32128 = vmatprep.subr.bf16.mxu0 %v39868_v19  ;;  %v32138_v58 = vpack.c.bf16 %v18117_v26, %v18110_v1  ;;  %v18152_v26 = vand.u32 4294901760, %v18151_v49  ;;  %v18159_v43 = vand.u32 4294901760, %v18158_v54  ;;  %v32162_v32 = vpack.c.bf16 %v38693_v9, %v38691_v45 }
0x2008   :  { %v32141_v27 = vpack.c.bf16 %v18131_v56, %v18124_v13  ;;  %v32153_v13 = vpack.c.bf16 %v38630_v5, %v38628_v25  ;;  %v32156_v56 = vpack.c.bf16 %v38663_v7, %v38653_v48  ;;  %v40316_v49 = vand.u32 4294901760, %v38608_v28 }
0x2009   :  { %v40317_v54 = vand.u32 4294901760, %v38610_v21 }
0x200a   :  { %32130 = vmatpush3.bf16.msra.mxu0 %v32129_v42  ;;  %v18136_v42 = vand.u32 4294901760, %v38721_v55 }
0x200b   :  { %32131 = vmatprep.subr.bf16.mxu0 %v39868_v19 }
0x200c   :  { %v18137_v33 = vsub.f32 %v38721_v55, %v18136_v42 }
0x200e   :  { %32133 = vmatpush3.bf16.msra.mxu0 %v32132_v11  ;;  %v18138_v11 = vand.u32 4294901760, %v18137_v33  ;;  %v32159_v33 = vpack.c.bf16 %v38680_v36, %v38672_v22  ;;  %v32219_v36 = vpack.c.bf16 %v18157_v63, %v18150_v30 }
0x200f   :  { %32134 = vmatprep.subr.bf16.mxu0 %v39868_v19 }
0x2010   :  { %v32144_v1 = vpack.c.bf16 %v18145_v8, %v18138_v11  ;;  %v32168_v11 = vpack.c.bf16 %v38732_v24, %v38721_v55  ;;  %v32171_v8 = vpack.c.bf16 %v38745_v31, %v38736_v35 }
0x2012   :  { %32136 = vmatpush3.bf16.msra.mxu0 %v32135_v39  ;;  %v32147_v39 = vpack.c.bf16 %v18159_v43, %v18152_v26  ;;  %v40318_v26 = vand.u32 4294901760, %v38651_v14  ;;  %v40319_v43 = vand.u32 4294901760, %v38628_v25  ;;  %v32207_v25 = vpack.c.bf16 %v18101_v50, %v18094_v29  ;;  %v21511_v50 = vld [vmem:[%s39429_s7 + $0x78] sm:$0xff] }
0x2013   :  { %32137 = vmatprep.subr.bf16.mxu0 %v39868_v19  ;;  %v32216_v29 = vpack.c.bf16 %v18143_v57, %v18136_v42  ;;  %v18765_v57 = vand.u32 4294901760, %v21511_v50 }
0x2015   :  { %v38943_v63 = vsub.f32 %v21511_v50, %v18765_v57 }
0x2016   :  { %32139 = vmatpush3.bf16.msra.mxu0 %v32138_v58  ;;  %v32150_v58 = vpack.c.bf16 %v38610_v21, %v38608_v28  ;;  %v40321_v21 = vand.u32 4294901760, %v38663_v7  ;;  %v32213_v7 = vpack.c.bf16 %v18129_v51, %v18122_v46 }
0x2017   :  { %32140 = vmatprep.subr.bf16.mxu0 %v39868_v19 }
0x2018   :  { %v32204_v28 = vpack.c.bf16 %v40321_v21, %v18080_v52 }
0x201a   :  { %32142 = vmatpush3.bf16.msra.mxu0 %v32141_v27  ;;  %v32165_v27 = vpack.c.bf16 %v38707_v59, %v38705_v17 }
0x201b   :  { %32143 = vmatprep.subr.bf16.mxu0 %v39868_v19 }
0x201e   :  { %32145 = vmatpush3.bf16.msra.mxu0 %v32144_v1  ;;  %v32198_v1 = vpack.c.bf16 %v40317_v54, %v40316_v49 }
0x201f   :  { %32146 = vmatprep.subr.bf16.mxu0 %v39868_v19 }
0x2022   :  { %32148 = vmatpush3.bf16.msra.mxu0 %v32147_v39  ;;  %v40320_v39 = vand.u32 4294901760, %v38630_v5  ;;  %v40322_v5 = vand.u32 4294901760, %v38693_v9  ;;  %v21510_v9 = vld [vmem:[%s39429_s7 + $0x70] sm:$0xff] }
0x2023   :  { %32149 = vmatprep.subr.bf16.mxu0 %v39868_v19  ;;  %v18762_v42 = vand.u32 4294901760, %v21510_v9 }
0x2025   :  { %28311 = vmatmul.mubr.f32.vlgmr.msra.gmra.mrb[48].mxu0 %v38615_v41  ;;  %v38941_v30 = vsub.f32 %v21510_v9, %v18762_v42 }
0x2026   :  { %32151 = vmatpush3.bf16.msra.mxu0 %v32150_v58  ;;  %28345 = vmatprep.mubr.msk.f32.mxu0 %vm33090_vm1, %v39869_v3  ;;  %v32201_v58 = vpack.c.bf16 %v40320_v39, %v40319_v43 }
0x2027   :  { %32152 = vmatprep.subr.bf16.mxu0 %v39868_v19 }
0x202a   :  { %32154 = vmatpush3.bf16.msra.mxu0 %v32153_v13 }
0x202b   :  { %32155 = vmatprep.subr.bf16.mxu0 %v39868_v19 }
0x202e   :  { %32157 = vmatpush3.bf16.msra.mxu0 %v32156_v56  ;;  %v38950_v56 = vpack.c.bf16 %v18765_v57, %v18762_v42 }
0x202f   :  { %32158 = vmatprep.subr.bf16.mxu0 %v39868_v19 }
0x2032   :  { %32160 = vmatpush3.bf16.msra.mxu0 %v32159_v33 }
0x2033   :  { %32161 = vmatprep.subr.bf16.mxu0 %v39868_v19 }
0x2036   :  { %32163 = vmatpush3.bf16.msra.mxu0 %v32162_v32 }
0x2037   :  { %32164 = vmatprep.subr.bf16.mxu0 %v39868_v19 }
0x203a   :  { %32166 = vmatpush3.bf16.msra.mxu0 %v32165_v27 }
0x203b   :  { %32167 = vmatprep.subr.bf16.mxu0 %v39868_v19 }
0x203e   :  { %32169 = vmatpush3.bf16.msra.mxu0 %v32168_v11 }
0x203f   :  { %32170 = vmatprep.subr.bf16.mxu0 %v39868_v19 }
0x2042   :  { %32172 = vmatpush3.bf16.msra.mxu0 %v32171_v8 }
0x2043   :  { %32173 = vmatprep.subr.bf16.mxu0 %v39868_v19 }
0x2045   :  { %28346 = vmatmul.mubr.f32.vlgmr.msra.gmra.mrb[48].mxu0 %v38651_v14  ;;  %v32210_v14 = vpack.c.bf16 %v40322_v5, %v18108_v6 }
0x2046   :  { %32175 = vmatpush3.bf16.msra.mxu0 %v38563_v34  ;;  %28380 = vmatprep.mubr.msk.f32.mxu0 %vm33090_vm1, %v39869_v3 }
0x2047   :  { %32176 = vmatprep.subr.bf16.mxu0 %v39868_v19 }
0x204a   :  { %32178 = vmatpush3.bf16.msra.mxu0 %v38573_v20 }
0x204b   :  { %32179 = vmatprep.subr.bf16.mxu0 %v39868_v19 }
0x204e   :  { %32181 = vmatpush3.bf16.msra.mxu0 %v38585_v18 }
0x204f   :  { %32182 = vmatprep.subr.bf16.mxu0 %v39868_v19 }
0x2052   :  { %32184 = vmatpush3.bf16.msra.mxu0 %v38595_v44 }
0x2053   :  { %32185 = vmatprep.subr.bf16.mxu0 %v39868_v19 }
0x2056   :  { %32187 = vmatpush3.bf16.msra.mxu0 %v38613_v61 }
0x2057   :  { %32188 = vmatprep.subr.bf16.mxu0 %v39868_v19 }
0x205a   :  { %32190 = vmatpush3.bf16.msra.mxu0 %v38635_v12 }
0x205b   :  { %32191 = vmatprep.subr.bf16.mxu0 %v39868_v19 }
0x205e   :  { %32193 = vmatpush3.bf16.msra.mxu0 %v38666_v38 }
0x205f   :  { %32194 = vmatprep.subr.bf16.mxu0 %v39868_v19 }
0x2062   :  { %32196 = vmatpush3.bf16.msra.mxu0 %v38683_v4 }
0x2063   :  { %32197 = vmatprep.subr.bf16.mxu0 %v39868_v19 }
0x2065   :  { %28381 = vmatmul.mubr.f32.vlgmr.msra.gmra.mrb[48].mxu0 %v40318_v26 }
0x2066   :  { %32199 = vmatpush3.bf16.msra.mxu0 %v32198_v1  ;;  %28415 = vmatprep.mubr.msk.f32.mxu0 %vm33090_vm1, %v39869_v3 }
0x2067   :  { %32200 = vmatprep.subr.bf16.mxu0 %v39868_v19 }
0x206a   :  { %32202 = vmatpush3.bf16.msra.mxu0 %v32201_v58 }
0x206b   :  { %32203 = vmatprep.subr.bf16.mxu0 %v39868_v19 }
0x206e   :  { %32205 = vmatpush3.bf16.msra.mxu0 %v32204_v28 }
0x206f   :  { %32206 = vmatprep.subr.bf16.mxu0 %v39868_v19 }
0x2072   :  { %32208 = vmatpush3.bf16.msra.mxu0 %v32207_v25 }
0x2073   :  { %32209 = vmatprep.subr.bf16.mxu0 %v39868_v19 }
0x2076   :  { %32211 = vmatpush3.bf16.msra.mxu0 %v32210_v14 }
0x2077   :  { %32212 = vmatprep.subr.bf16.mxu0 %v39868_v19 }
0x207a   :  { %32214 = vmatpush3.bf16.msra.mxu0 %v32213_v7 }
0x207b   :  { %32215 = vmatprep.subr.bf16.mxu0 %v39868_v19 }
0x207e   :  { %32217 = vmatpush3.bf16.msra.mxu0 %v32216_v29 }
0x207f   :  { %32218 = vmatprep.subr.bf16.mxu0 %v39868_v19 }
0x2082   :  { %32220 = vmatpush3.bf16.msra.mxu0 %v32219_v36 }
0x2083   :  { %32221 = vmatprep.subr.bf16.mxu0 %v39868_v19 }
0x2085   :  { %28416 = vmatmul.mubr.f32.vlgmr.msra.gmra.mrb[48].mxu0 %v38615_v41 }
0x2086   :  { %32223 = vmatpush3.bf16.msra.mxu0 %v38563_v34  ;;  %28450 = vmatprep.mubr.msk.f32.mxu0 %vm33090_vm1, %v39869_v3 }
0x2087   :  { %32224 = vmatprep.subr.bf16.mxu0 %v39868_v19 }
0x208a   :  { %32226 = vmatpush3.bf16.msra.mxu0 %v38573_v20 }
0x208b   :  { %32227 = vmatprep.subr.bf16.mxu0 %v39868_v19 }
0x208e   :  { %32229 = vmatpush3.bf16.msra.mxu0 %v38585_v18  ;;  %v21506_v18 = vld [vmem:[%s39429_s7 + $0x50] sm:$0xff] }
0x208f   :  { %32230 = vmatprep.subr.bf16.mxu0 %v39868_v19  ;;  %v18750_v52 = vand.u32 4294901760, %v21506_v18 }
0x2091   :  { %v38929_v46 = vsub.f32 %v21506_v18, %v18750_v52 }
0x2092   :  { %32232 = vmatpush3.bf16.msra.mxu0 %v38595_v44  ;;  %v21507_v44 = vld [vmem:[%s39429_s7 + $0x58] sm:$0xff] }
0x2093   :  { %32233 = vmatprep.subr.bf16.mxu0 %v39868_v19  ;;  %v18753_v48 = vand.u32 4294901760, %v21507_v44  ;;  %v18843_v54 = vand.u32 4294901760, %v38929_v46 }
0x2095   :  { %v38931_v51 = vsub.f32 %v21507_v44, %v18753_v48  ;;  %v38936_v35 = vpack.c.bf16 %v18753_v48, %v18750_v52  ;;  %v18844_v43 = vsub.f32 %v38929_v46, %v18843_v54 }
0x2096   :  { %32235 = vmatpush3.bf16.msra.mxu0 %v38613_v61  ;;  %v21505_v61 = vld [vmem:[%s39429_s7 + $0x48] sm:$0xff] }
0x2097   :  { %32236 = vmatprep.subr.bf16.mxu0 %v39868_v19  ;;  %v18747_v20 = vand.u32 4294901760, %v21505_v61  ;;  %v39827_v1 = vand.u32 4294901760, %v38931_v51  ;;  %v18845_v58 = vand.u32 4294901760, %v18844_v43 }
0x2099   :  { %v38927_v6 = vsub.f32 %v21505_v61, %v18747_v20  ;;  %v18851_v39 = vsub.f32 %v38931_v51, %v39827_v1 }
0x209a   :  { %32238 = vmatpush3.bf16.msra.mxu0 %v38635_v12  ;;  %v21504_v12 = vld [vmem:[%s39429_s7 + $0x40] sm:$0xff] }
0x209b   :  { %32239 = vmatprep.subr.bf16.mxu0 %v39868_v19  ;;  %v18744_v34 = vand.u32 4294901760, %v21504_v12  ;;  %v18836_v32 = vand.u32 4294901760, %v38927_v6  ;;  %v18852_v21 = vand.u32 4294901760, %v18851_v39 }
0x209d   :  { %v38923_v17 = vpack.c.bf16 %v18747_v20, %v18744_v34  ;;  %v38925_v59 = vsub.f32 %v21504_v12, %v18744_v34  ;;  %v18837_v11 = vsub.f32 %v38927_v6, %v18836_v32  ;;  %v38975_v5 = vpack.c.bf16 %v18852_v21, %v18845_v58 }
0x209e   :  { %32241 = vmatpush3.bf16.msra.mxu0 %v38666_v38  ;;  %v21509_v38 = vld [vmem:[%s39429_s7 + $0x68] sm:$0xff]  ;;  %v39823_v12 = vand.u32 4294901760, %v38943_v63 }
0x209f   :  { %32242 = vmatprep.subr.bf16.mxu0 %v39868_v19  ;;  %v18759_v55 = vand.u32 4294901760, %v21509_v38  ;;  %32247 = vmatpush3.bf16.msra.mxu1 %v38923_v17  ;;  %v18829_v33 = vand.u32 4294901760, %v38925_v59  ;;  %v18838_v49 = vand.u32 4294901760, %v18837_v11 }
0x20a0   :  { %32248 = vmatprep.subr.bf16.mxu1 %v39868_v19  ;;  %v18879_v20 = vsub.f32 %v38943_v63, %v39823_v12 }
0x20a1   :  { %v38938_v31 = vsub.f32 %v21509_v38, %v18759_v55  ;;  %v18830_v27 = vsub.f32 %v38925_v59, %v18829_v33 }
0x20a2   :  { %32244 = vmatpush3.bf16.msra.mxu0 %v38683_v4  ;;  %v18880_v44 = vand.u32 4294901760, %v18879_v20 }
0x20a3   :  { %32509 = vmatprep.subr.bf16.mxu0 %v39868_v19  ;;  %32250 = vmatpush3.bf16.msra.mxu1 %v38936_v35  ;;  %v18831_v8 = vand.u32 4294901760, %v18830_v27  ;;  %v39825_v25 = vand.u32 4294901760, %v38938_v31 }
0x20a4   :  { %32251 = vmatprep.subr.bf16.mxu1 %v39868_v19 }
0x20a5   :  { %28451 = vmatmul.mubr.f32.vlgmr.msra.gmra.mrb[48].mxu0 %v38615_v41  ;;  %v21508_v41 = vld [vmem:[%s39429_s7 + $0x60] sm:$0xff]  ;;  %v38965_v26 = vpack.c.bf16 %v18838_v49, %v18831_v8  ;;  %v18865_v7 = vsub.f32 %v38938_v31, %v39825_v25 }
0x20a6   :  { %32511 = vmatpush3.bf16.msra.mxu0 %v34224_v10  ;;  %28809 = vmatprep.mubr.msk.f32.mxu0 %vm33090_vm1, %v39869_v3  ;;  %v18756_v45 = vand.u32 4294901760, %v21508_v41 }
0x20a7   :  { %32512 = vmatprep.subr.bf16.mxu0 %v39868_v19  ;;  %v18866_v36 = vand.u32 4294901760, %v18865_v7 }
0x20a8   :  { %v38933_v24 = vsub.f32 %v21508_v41, %v18756_v45  ;;  %v38946_v13 = vpack.c.bf16 %v18759_v55, %v18756_v45 }
0x20aa   :  { %32514 = vmatpush3.bf16.msra.mxu0 %v34234_v16  ;;  %32253 = vmatpush3.bf16.msra.mxu1 %v38946_v13  ;;  %v39826_v28 = vand.u32 4294901760, %v38933_v24 }
0x20ab   :  { %32515 = vmatprep.subr.bf16.mxu0 %v39868_v19  ;;  %32254 = vmatprep.subr.bf16.mxu1 %v39868_v19 }
0x20ac   :  { %v18858_v14 = vsub.f32 %v38933_v24, %v39826_v28 }
0x20ae   :  { %32517 = vmatpush3.bf16.msra.mxu0 %v34244_v15  ;;  %32256 = vmatpush3.bf16.msra.mxu1 %v38950_v56  ;;  %v18859_v29 = vand.u32 4294901760, %v18858_v14 }
0x20af   :  { %32518 = vmatprep.subr.bf16.mxu0 %v39868_v19  ;;  %32257 = vmatprep.subr.bf16.mxu1 %v39868_v19 }
0x20b0   :  { %v38985_v61 = vpack.c.bf16 %v18866_v36, %v18859_v29 }
0x20b2   :  { %32520 = vmatpush3.bf16.msra.mxu0 %v34254_v47 }
0x20b3   :  { %32521 = vmatprep.subr.bf16.mxu0 %v39868_v19 }
0x20b6   :  { %32523 = vmatpush3.bf16.msra.mxu0 %v34264_v40 }
0x20b7   :  { %32524 = vmatprep.subr.bf16.mxu0 %v39868_v19 }
0x20b8   :  { %v38891_v4 = vpop.f32.mrb[46].mxu0 }
0x20b9   :  { %v28242_v22 = vpop.f32.mrb[47].mxu0 }
0x20ba   :  { %32526 = vmatpush3.bf16.msra.mxu0 %v34280_v23  ;;  %v39824_v22 = vand.u32 4294901760, %v38941_v30 }
0x20bb   :  { %32527 = vmatprep.subr.bf16.mxu0 %v39868_v19 }
0x20bc   :  { %v18872_v34 = vsub.f32 %v38941_v30, %v39824_v22 }
0x20be   :  { %32529 = vmatpush3.bf16.msra.mxu0 %v34300_v62  ;;  %v18873_v18 = vand.u32 4294901760, %v18872_v34 }
0x20bf   :  { %32530 = vmatprep.subr.bf16.mxu0 %v39868_v19 }
0x20c0   :  { %v38993_v41 = vpack.c.bf16 %v18880_v44, %v18873_v18  ;;  %v40323_v18 = vmov 920167782  }
0x20c2   :  { %32532 = vmatpush3.bf16.msra.mxu0 %v34326_v37 }
0x20c3   :  { %32533 = vmatprep.subr.bf16.mxu0 %v39868_v19 }
0x2178   :  { %v18595_v48 = vpop.f32.mrb[48].mxu0 }
0x2179   :  { %v39000_v45 = vsub.f32 %v38891_v4, %v18595_v48  ;;  %v28452_v9 = vpop.f32.mrb[49].mxu0 }
0x217a   :  { %v40324_v9 = vmov 1326507024  }
0x217b   :  { %v18603_v50 = vand.u32 2139095040, %v39000_v45  ;;  %v39822_v8 = vand.u32 2147483647, %v39000_v45  ;;  %vm18602_vm2 = vcmp.lt.s32.totalorder %v39000_v45, 0  ;;  %vm18692_vm7 = vweird.f32 %v39000_v45 }
0x217d   :  { %v18604_v42 = vshrl.u32 %v18603_v50, 23  ;;  %v18607_v4 = vand.u32 8388607, %v39822_v8 }
0x217f   :  { %v21496_v57 = vadd.s32 4294967169, %v18604_v42  ;;  %v18608_v42 = vor.u32 8388608, %v18607_v4 }
0x2181   :  { %v18610_v11 = vadd.s32 1, %v21496_v57  ;;  %v18648_v1 = vshll.u32 %v18608_v42, 8 }
0x2183   :  { %vm18611_vm8 = vcmp.gt.s32.totalorder %v18610_v11, 0 }
0x2184   :  { %v18612_v49 = vsel %vm18611_vm8, %v18610_v11, 0 }
0x2185   :  { %v18614_v43 = vand.u32 31, %v18612_v49  ;;  %v18613_v58 = vshrl.u32 %v18612_v49, 5 }
0x2187   :  { %v18615_v39 = vsub.s32 32, %v18614_v43  ;;  %v18617_v21 = vshll.u32 %v39926_v2, %v18614_v43  ;;  %v18620_v14 = vshll.u32 %v39927_v53, %v18614_v43  ;;  %v18623_v36 = vshll.u32 %v39928_v60, %v18614_v43 }
0x2188   :  { %v18626_v20 = vshll.u32 %v39929_v0, %v18614_v43  ;;  %v18629_v48 = vshll.u32 %v40323_v18, %v18614_v43  ;;  %vm18632_vm9 = vcmp.lt.s32.totalorder %v18613_v58, 1  ;;  %vm18635_vm10 = vcmp.lt.s32.totalorder %v18613_v58, 4 }
0x2189   :  { %v18618_v7 = vshrl.u32 %v39927_v53, %v18615_v39  ;;  %v18621_v29 = vshrl.u32 %v39928_v60, %v18615_v39  ;;  %v18624_v34 = vshrl.u32 %v39929_v0, %v18615_v39  ;;  %v18627_v44 = vshrl.u32 %v40323_v18, %v18615_v39 }
0x218a   :  { %v18630_v50 = vshrl.u32 %v40324_v9, %v18615_v39  ;;  %v18616_v12 = vshrl.u32 %v39926_v2, %v18615_v39  ;;  %vm18634_vm11 = vcmp.lt.s32.totalorder %v18613_v58, 3  ;;  %vm18633_vm12 = vcmp.lt.s32.totalorder %v18613_v58, 2 }
0x218b   :  { %v18619_v57 = vor.u32 %v18618_v7, %v18617_v21  ;;  %v18622_v11 = vor.u32 %v18621_v29, %v18620_v14  ;;  %v18625_v49 = vor.u32 %v18624_v34, %v18623_v36  ;;  %v18628_v27 = vor.u32 %v18627_v44, %v18626_v20 }
0x218c   :  { %v18631_v55 = vor.u32 %v18630_v50, %v18629_v48  ;;  %v40327_v58 = vand.u32 4294901760, %v38938_v31  ;;  %v40329_v50 = vand.u32 4294901760, %v38943_v63 }
0x218d   :  { %v18637_v38 = vsel %vm18635_vm10, %v18625_v49, 2102212464  ;;  %v18640_v52 = vsel %vm18632_vm9, %v18619_v57, %v18622_v11  ;;  %v18644_v8 = vsel %vm18632_vm9, %v18622_v11, %v18625_v49  ;;  %v18641_v22 = vsel %vm18635_vm10, %v18628_v27, 920167782 }
0x218e   :  { %v18645_v25 = vsel %vm18635_vm10, %v18631_v55, 1326507024  ;;  %v18642_v43 = vsel %vm18634_vm11, %v18625_v49, %v18641_v22  ;;  %v18636_v4 = vsel %vm18632_vm9, %v18616_v12, %v18619_v57  ;;  %v18638_v21 = vsel %vm18634_vm11, %v18622_v11, %v18637_v38 }
0x218f   :  { %v18646_v28 = vsel %vm18634_vm11, %v18628_v27, %v18645_v25  ;;  %v18643_v14 = vsel %vm18633_vm12, %v18640_v52, %v18642_v43  ;;  %v18639_v44 = vsel %vm18633_vm12, %v18636_v4, %v18638_v21  ;;  %v39033_v25 = vpack.c.bf16 %v18836_v32, %v18829_v33 }
0x2190   :  { %v18647_v7 = vsel %vm18633_vm12, %v18644_v8, %v18646_v28  ;;  %v39024_v34 = vmul.u32.u64.low %v18648_v1, %v18643_v14  ;;  %v39025_v20 = vmul.u32.u64.high %v18648_v1, %v18643_v14, %v39024_v34  ;;  %v18655_v22 = vmul.u32 %v18648_v1, %v18639_v44 }
0x2191   :  { %v39021_v29 = vmul.u32.u64.low %v18648_v1, %v18647_v7  ;;  %v39022_v36 = vmul.u32.u64.high %v18648_v1, %v18647_v7, %v39021_v29  ;;  %v40325_v52 = vand.u32 4294901760, %v38931_v51  ;;  %v40326_v8 = vand.u32 4294901760, %v38933_v24 }
0x2192   :  { %v18658_v39 = vadd.s32 1, %v39025_v20  ;;  %v40328_v1 = vand.u32 4294901760, %v38941_v30 }
0x2193   :  { %vm18657_vm13 = vc.u32 %v39022_v36, %v39024_v34  ;;  %v39040_v38 = vpack.c.bf16 %v40325_v52, %v18843_v54  ;;  %v39046_v48 = vpack.c.bf16 %v40327_v58, %v40326_v8  ;;  %v18656_v4 = vadd.s32 %v39024_v34, %v39022_v36 }
0x2194   :  { %v18659_v28 = vsel %vm18657_vm13, %v18658_v39, %v39025_v20  ;;  %v39052_v42 = vpack.c.bf16 %v40329_v50, %v40328_v1  ;;  %v40330_v8 = vand.u32 2147483647, %v39000_v45 }
0x2195   :  { %v18660_v12 = vadd.s32 %v18659_v28, %v18655_v22 }
0x2196   :  { %vm18601_vm3 = vcmp.le.f32.partialorder %v40330_v8, 0.7853982 }
0x2197   :  { %v18661_v55 = vadd.s32 536870912, %v18660_v12 }
0x2199   :  { %v18662_v27 = vshrl.u32 %v18661_v55, 30 }
0x219b   :  { %v18663_v33 = vshll.u32 %v18662_v27, 30 }
0x219d   :  { %v18664_v32 = vsub.s32 %v18660_v12, %v18663_v33  ;;  %v18686_v33 = vsub.s32 4, %v18662_v27 }
0x219f   :  { %v18666_v57 = vsub.s32 0, %v18664_v32  ;;  %v18687_v34 = vsel %vm18602_vm2, %v18686_v33, %v18662_v27 }
0x21a1   :  { %v21497_v11 = vmin.u32 %v18666_v57, %v18664_v32 }
0x21a3   :  { %v18668_v54 = vclz %v21497_v11 }
0x21a5   :  { %v21498_v49 = vadd.s32 4294967294, %v18668_v54 }
0x21a7   :  { %vm21499_vm14 = vcmp.lt.s32.totalorder %v21498_v49, 0 }
0x21a8   :  { %v18671_v43 = vsel %vm21499_vm14, 0, %v21498_v49  ;;  %v21501_v49 = vld [vmem:[%s39430_s8 + $0x1] sm:$0x1] }
0x21a9   :  { %v18672_v21 = vsub.s32 32, %v18671_v43  ;;  %v18676_v14 = vsub.s32 4294967266, %v18671_v43  ;;  %v18673_v7 = vshll.u32 %v18664_v32, %v18671_v43  ;;  %v18689_v32 = vsel %vm18601_vm3, 0, %v18687_v34 }
0x21aa   :  { %v18693_v1 = vand.u32 3, %v18689_v32 }
0x21ab   :  { %v18674_v29 = vshrl.u32 %v18656_v4, %v18672_v21  ;;  %v18677_v20 = vadd.s32 127, %v18676_v14  ;;  %v18708_v14 = vsub.f32 -1.0, %v21501_v49 }
0x21ac   :  { %vm18698_vm4 = vcmp.eq.s32.totalorder %v18693_v1, 2  ;;  %vm18695_vm5 = vcmp.eq.s32.totalorder %v18693_v1, 0  ;;  %vm18694_vm6 = vcmp.lt.s32.totalorder %v18693_v1, 2 }
0x21ad   :  { %v18675_v44 = vor.u32 %v18674_v29, %v18673_v7  ;;  %v18678_v39 = vshll.u32 %v18677_v20, 23  ;;  %v40331_v20 = vld [vmem:[#allocation3_spill] sm:$0xff] }
0x21af   :  { %v18679_v22 = vor.u32 4788187, %v18678_v39  ;;  %v18682_v12 = vcvt.s32.f32 %v18675_v44  ;;  %v18713_v44 = vrot.slane %v18708_v14, %v40331_v20  ;;  %v18720_v39 = vrot.slane %v21501_v49, %v40331_v20  ;;  %v40347_v14 = vld [vmem:[#allocation24_spill] sm:$0xff]  ;;  %v40351_v20 = vld [vmem:[#allocation17_spill] sm:$0xff] }
0x21b1   :  { %v18680_v28 = vand.u32 2147483647, %v18679_v22 }
0x21b3   :  { %v18683_v52 = vmul.f32 %v18682_v12, %v18680_v28 }
0x21b5   :  { %v18684_v55 = vxor.u32 2147483648, %v18683_v52 }
0x21b7   :  { %v18685_v58 = vsel %vm18602_vm2, %v18684_v55, %v18683_v52  ;;  %v21503_v52 = vld [vmem:[%s39431_s9 + $0x1] ss:$0 sm:$0xff] }
0x21b8   :  { %v18688_v36 = vsel %vm18601_vm3, %v39000_v45, %v18685_v58 }
0x21b9   :  { %33073 = vcosq.f32 %v18688_v36 }
0x21ba   :  { %33075 = vsinq.f32 %v18688_v36 }
0x21c3   :  { %v33074_v50 = vpop.eup %33073 }
0x21c4   :  { %v33076_v57 = vpop.eup %33075  ;;  %v18699_v11 = vxor.u32 2147483648, %v33074_v50 }
0x21c5   :  { %v18696_v54 = vxor.u32 2147483648, %v33076_v57 }
0x21c6   :  { %v18700_v43 = vsel %vm18698_vm4, %v18699_v11, %v33076_v57 }
0x21c7   :  { %v18697_v4 = vsel %vm18695_vm5, %v33074_v50, %v18696_v54 }
0x21c8   :  { %v18701_v21 = vsel %vm18694_vm6, %v18697_v4, %v18700_v43  ;;  %v40345_v4 = vld [vmem:[#allocation13_spill] sm:$0xff] }
0x21c9   :  { %v18702_v27 = vsel %vm18692_vm7, nan, %v18701_v21  ;;  %v40346_v21 = vld [vmem:[#allocation14_spill] sm:$0xff] }
0x21ca   :  { %v18703_v7 = vmul.f32 2.0, %v18702_v27  ;;  %v18715_v28 = vadd.f32 %v18713_v44, %v18702_v27  ;;  %v40352_v44 = vld [vmem:[#allocation18_spill] sm:$0xff] }
0x21cc   :  { %v18704_v29 = vmul.f32 %v18703_v7, %v18702_v27  ;;  %v40348_v27 = vld [vmem:[#allocation25_spill] sm:$0xff]  ;;  %v40349_v7 = vld [vmem:[#allocation15_spill] sm:$0xff] }
0x21ce   :  { %v21500_v22 = vadd.f32 -1.0, %v18704_v29  ;;  %v40350_v29 = vld [vmem:[#allocation16_spill] sm:$0xff] }
0x21d0   :  { %v18722_v12 = vmul.f32 %v21500_v22, %v18720_v39  ;;  %v40353_v39 = vld [vmem:[#allocation19_spill] sm:$0xff]  ;;  %v40354_v22 = vld [vmem:[#allocation20_spill] sm:$0xff] }
0x21d2   :  { %v18723_v55 = vadd.f32 %v18722_v12, %v18715_v28  ;;  %v40355_v28 = vld [vmem:[#allocation26_spill] sm:$0xff]  ;;  %v40356_v12 = vld [vmem:[#allocation27_spill] sm:$0xff] }
0x21d4   :  { %v18730_v8 = vmul.f32 %v21503_v52, %v18723_v55  ;;  %v40357_v52 = vld [vmem:[#allocation21_spill] sm:$0xff]  ;;  %v40358_v55 = vld [vmem:[#allocation22_spill] sm:$0xff] }
0x21d6   :  { %v18731_v58 = vadd.f32 1.0, %v18730_v8  ;;  %v40359_v8 = vld [vmem:[#allocation23_spill] sm:$0xff] }
0x21d8   :  { %v18741_v45 = vsel %vm1391_vm15, %v18731_v58, 0  ;;  %v40360_v58 = vld [vmem:[#allocation28_spill] sm:$0xff] }
0x21d9   :  { %v18816_v33 = vand.u32 4294901760, %v18741_v45 }
0x21db   :  { %v18817_v36 = vsub.f32 %v18741_v45, %v18816_v33  ;;  %v40361_v45 = vld [vmem:[#allocation29_spill] sm:$0xff] }
0x21dd   :  { %v18818_v34 = vand.u32 4294901760, %v18817_v36 }
0x21df   :  { %v18819_v32 = vsub.f32 %v18817_v36, %v18818_v34 }
0x21e1   :  { %v18820_v1 = vand.u32 4294901760, %v18819_v32  ;;  %v40365_v32 = vld [vmem:[#allocation33_spill] sm:$0xff] }
0x21e3   :  { %28470 = vmatmul.mubr.f32.vlgmr.msra.gmra.mrb[32].mxu1 %v18820_v1  ;;  %v40366_v1 = vld [vmem:[#allocation34_spill] sm:$0xff] }
0x21e4   :  { %32259 = vmatpush3.bf16.msra.mxu1 %v38965_v26  ;;  %28488 = vmatprep.mubr.msk.f32.mxu1 %vm33090_vm1, %v39869_v3  ;;  %v40332_v26 = vpack.c.bf16 %v38927_v6, %v38925_v59  ;;  %v40335_v59 = vpack.c.bf16 %v38943_v63, %v38941_v30  ;;  %v40336_v6 = vld [vmem:[#allocation4_spill] sm:$0xff]  ;;  %v40343_v30 = vld [vmem:[#allocation11_spill] sm:$0xff] }
0x21e5   :  { %32260 = vmatprep.subr.bf16.mxu1 %v39868_v19  ;;  %v40344_v63 = vld [vmem:[#allocation12_spill] sm:$0xff] }
0x21e8   :  { %32262 = vmatpush3.bf16.msra.mxu1 %v38975_v5  ;;  %v40333_v5 = vpack.c.bf16 %v38931_v51, %v38929_v46  ;;  %v40338_v46 = vld [vmem:[#allocation6_spill] sm:$0xff]  ;;  %v40339_v51 = vld [vmem:[#allocation7_spill] sm:$0xff] }
0x21e9   :  { %32263 = vmatprep.subr.bf16.mxu1 %v39868_v19 }
0x21ec   :  { %32265 = vmatpush3.bf16.msra.mxu1 %v38985_v61  ;;  %v40334_v61 = vpack.c.bf16 %v38938_v31, %v38933_v24  ;;  %v40340_v24 = vld [vmem:[#allocation8_spill] sm:$0xff]  ;;  %v40342_v31 = vld [vmem:[#allocation10_spill] sm:$0xff] }
0x21ed   :  { %32266 = vmatprep.subr.bf16.mxu1 %v39868_v19 }
0x21f0   :  { %32268 = vmatpush3.bf16.msra.mxu1 %v38993_v41 }
0x21f1   :  { %32269 = vmatprep.subr.bf16.mxu1 %v39868_v19 }
0x21f3   :  { %28489 = vmatmul.mubr.f32.vlgmr.msra.gmra.mrb[32].mxu1 %v18816_v33 }
0x21f4   :  { %32271 = vmatpush3.bf16.msra.mxu1 %v40332_v26  ;;  %28507 = vmatprep.mubr.msk.f32.mxu1 %vm33090_vm1, %v39869_v3  ;;  %v40367_v26 = vld [vmem:[#allocation35_spill] sm:$0xff] }
0x21f5   :  { %32272 = vmatprep.subr.bf16.mxu1 %v39868_v19 }
0x21f8   :  { %32274 = vmatpush3.bf16.msra.mxu1 %v40333_v5 }
0x21f9   :  { %32275 = vmatprep.subr.bf16.mxu1 %v39868_v19 }
0x21fc   :  { %32277 = vmatpush3.bf16.msra.mxu1 %v40334_v61 }
0x21fd   :  { %32278 = vmatprep.subr.bf16.mxu1 %v39868_v19 }
0x2200   :  { %32280 = vmatpush3.bf16.msra.mxu1 %v40335_v59 }
0x2201   :  { %32281 = vmatprep.subr.bf16.mxu1 %v39868_v19 }
0x2203   :  { %28508 = vmatmul.mubr.f32.vlgmr.msra.gmra.mrb[32].mxu1 %v18817_v36  ;;  %v40363_v36 = vld [vmem:[#allocation31_spill] sm:$0xff] }
0x2204   :  { %32283 = vmatpush3.bf16.msra.mxu1 %v38923_v17  ;;  %28526 = vmatprep.mubr.msk.f32.mxu1 %vm33090_vm1, %v39869_v3 }
0x2205   :  { %32284 = vmatprep.subr.bf16.mxu1 %v39868_v19 }
0x2208   :  { %32286 = vmatpush3.bf16.msra.mxu1 %v38936_v35 }
0x2209   :  { %32287 = vmatprep.subr.bf16.mxu1 %v39868_v19 }
0x220c   :  { %32289 = vmatpush3.bf16.msra.mxu1 %v38946_v13 }
0x220d   :  { %32290 = vmatprep.subr.bf16.mxu1 %v39868_v19 }
0x2210   :  { %32292 = vmatpush3.bf16.msra.mxu1 %v38950_v56 }
0x2211   :  { %32293 = vmatprep.subr.bf16.mxu1 %v39868_v19 }
0x2213   :  { %28527 = vmatmul.mubr.f32.vlgmr.msra.gmra.mrb[32].mxu1 %v18818_v34  ;;  %v40364_v34 = vld [vmem:[#allocation32_spill] sm:$0xff] }
0x2214   :  { %32295 = vmatpush3.bf16.msra.mxu1 %v39033_v25  ;;  %28545 = vmatprep.mubr.msk.f32.mxu1 %vm33090_vm1, %v39869_v3 }
0x2215   :  { %32296 = vmatprep.subr.bf16.mxu1 %v39868_v19 }
0x2218   :  { %32298 = vmatpush3.bf16.msra.mxu1 %v39040_v38 }
0x2219   :  { %32299 = vmatprep.subr.bf16.mxu1 %v39868_v19 }
0x221c   :  { %32301 = vmatpush3.bf16.msra.mxu1 %v39046_v48 }
0x221d   :  { %32302 = vmatprep.subr.bf16.mxu1 %v39868_v19 }
0x2220   :  { %32304 = vmatpush3.bf16.msra.mxu1 %v39052_v42 }
0x2221   :  { %32305 = vmatprep.subr.bf16.mxu1 %v39868_v19 }
0x2223   :  { %28546 = vmatmul.mubr.f32.vlgmr.msra.gmra.mrb[32].mxu1 %v18816_v33 }
0x2224   :  { %32307 = vmatpush3.bf16.msra.mxu1 %v38923_v17  ;;  %28564 = vmatprep.mubr.msk.f32.mxu1 %vm33090_vm1, %v39869_v3  ;;  %v40337_v17 = vld [vmem:[#allocation5_spill] sm:$0xff] }
0x2225   :  { %32308 = vmatprep.subr.bf16.mxu1 %v39868_v19 }
0x2228   :  { %32310 = vmatpush3.bf16.msra.mxu1 %v38936_v35  ;;  %v40341_v35 = vld [vmem:[#allocation9_spill] sm:$0xff] }
0x2229   :  { %32311 = vmatprep.subr.bf16.mxu1 %v39868_v19 }
0x222c   :  { %32313 = vmatpush3.bf16.msra.mxu1 %v38946_v13 }
0x222d   :  { %32314 = vmatprep.subr.bf16.mxu1 %v39868_v19 }
0x2230   :  { %32316 = vmatpush3.bf16.msra.mxu1 %v38950_v56 }
0x2231   :  { %32318 = vmatprep.subr.bf16.mxu1 %v40336_v6 }
0x2233   :  { %28565 = vmatmul.mubr.f32.vlgmr.msra.gmra.mrb[32].mxu1 %v18816_v33  ;;  %v40362_v33 = vld [vmem:[#allocation30_spill] sm:$0xff] }
0x2234   :  { %32320 = vmatpush3.bf16.msra.mxu1 %v40336_v6 }
0x2235   :  { %32322 = vmatprep.subr.bf16.mxu1 %v40337_v17 }
0x2238   :  { %32324 = vmatpush3.bf16.msra.mxu1 %v40337_v17 }
0x2239   :  { %32326 = vmatprep.subr.bf16.mxu1 %v40338_v46 }
0x223c   :  { %32328 = vmatpush3.bf16.msra.mxu1 %v40338_v46 }
0x223d   :  { %32330 = vmatprep.subr.bf16.mxu1 %v40339_v51 }
0x2240   :  { %32332 = vmatpush3.bf16.msra.mxu1 %v40339_v51 }
0x2241   :  { %32334 = vmatprep.subr.bf16.mxu1 %v40340_v24 }
0x2244   :  { %32336 = vmatpush3.bf16.msra.mxu1 %v40340_v24 }
0x2245   :  { %32338 = vmatprep.subr.bf16.mxu1 %v40341_v35 }
0x2248   :  { %32340 = vmatpush3.bf16.msra.mxu1 %v40341_v35 }
0x2249   :  { %32342 = vmatprep.subr.bf16.mxu1 %v40342_v31 }
0x224c   :  { %32344 = vmatpush3.bf16.msra.mxu1 %v40342_v31 }
0x224d   :  { %32346 = vmatprep.subr.bf16.mxu1 %v40343_v30 }
0x2250   :  { %32348 = vmatpush3.bf16.msra.mxu1 %v40343_v30 }
0x2251   :  { %32350 = vmatprep.subr.bf16.mxu1 %v40344_v63 }
0x2306   :  { %v39143_v13 = vpop.f32.mrb[32].mxu1 }
0x2307   :  { %v19280_v56 = vmul.f32 %v39143_v13, %v39143_v13  ;;  %v39148_v41 = vand.u32 4294901760, %v39143_v13  ;;  %v28566_v25 = vpop.f32.mrb[33].mxu1 }
0x2309   :  { %v19363_v38 = vsub.f32 %v39143_v13, %v39148_v41  ;;  %v39152_v48 = vand.u32 4294901760, %v19280_v56 }
0x230b   :  { %v19373_v42 = vsub.f32 %v19280_v56, %v39152_v48  ;;  %v19364_v50 = vand.u32 4294901760, %v19363_v38 }
0x230d   :  { %v19365_v57 = vsub.f32 %v19363_v38, %v19364_v50  ;;  %v19374_v11 = vand.u32 4294901760, %v19373_v42 }
0x230f   :  { %v19366_v54 = vand.u32 4294901760, %v19365_v57  ;;  %v19375_v49 = vsub.f32 %v19373_v42, %v19374_v11  ;;  %v40371_v57 = vld [vmem:[#allocation39_spill] sm:$0xff] }
0x2311   :  { %28599 = vmatprep.mubr.f32.mxu1 %v19366_v54  ;;  %v19376_v43 = vand.u32 4294901760, %v19375_v49  ;;  %v40373_v54 = vld [vmem:[#allocation41_spill] sm:$0xff]  ;;  %v40374_v49 = vld [vmem:[#allocation42_spill] sm:$0xff] }
0x2313   :  { %28600 = vmatmul.mubr.f32.vlgmr.msra.gmra.mrb[34].mxu1 %v19376_v43  ;;  %v40375_v43 = vld [vmem:[#allocation43_spill] sm:$0xff] }
0x2314   :  { %32352 = vmatpush3.bf16.msra.mxu1 %v40344_v63  ;;  %28634 = vmatprep.mubr.f32.mxu1 %v39148_v41 }
0x2315   :  { %32354 = vmatprep.subr.bf16.mxu1 %v40345_v4 }
0x2318   :  { %32356 = vmatpush3.bf16.msra.mxu1 %v40345_v4  ;;  %v40376_v4 = vld [vmem:[#allocation44_spill] sm:$0xff] }
0x2319   :  { %32358 = vmatprep.subr.bf16.mxu1 %v40346_v21 }
0x231c   :  { %32360 = vmatpush3.bf16.msra.mxu1 %v40346_v21  ;;  %v40377_v21 = vld [vmem:[#allocation45_spill] sm:$0xff] }
0x231d   :  { %32362 = vmatprep.subr.bf16.mxu1 %v40347_v14 }
0x2320   :  { %32364 = vmatpush3.bf16.msra.mxu1 %v40347_v14  ;;  %v40378_v14 = vld [vmem:[#allocation46_spill] sm:$0xff] }
0x2321   :  { %32366 = vmatprep.subr.bf16.mxu1 %v40348_v27 }
0x2324   :  { %32368 = vmatpush3.bf16.msra.mxu1 %v40348_v27  ;;  %v40379_v27 = vld [vmem:[#allocation47_spill] sm:$0xff] }
0x2325   :  { %32370 = vmatprep.subr.bf16.mxu1 %v40349_v7 }
0x2328   :  { %32372 = vmatpush3.bf16.msra.mxu1 %v40349_v7  ;;  %v40380_v7 = vld [vmem:[#allocation48_spill] sm:$0xff] }
0x2329   :  { %32374 = vmatprep.subr.bf16.mxu1 %v40350_v29 }
0x232c   :  { %32376 = vmatpush3.bf16.msra.mxu1 %v40350_v29  ;;  %v40381_v29 = vld [vmem:[#allocation49_spill] sm:$0xff] }
0x232d   :  { %32378 = vmatprep.subr.bf16.mxu1 %v40351_v20 }
0x2330   :  { %32380 = vmatpush3.bf16.msra.mxu1 %v40351_v20  ;;  %v40382_v20 = vld [vmem:[#allocation50_spill] sm:$0xff] }
0x2331   :  { %32382 = vmatprep.subr.bf16.mxu1 %v40352_v44 }
0x2333   :  { %28635 = vmatmul.mubr.f32.vlgmr.msra.gmra.mrb[34].mxu1 %v39152_v48 }
0x2334   :  { %32384 = vmatpush3.bf16.msra.mxu1 %v40352_v44  ;;  %28669 = vmatprep.mubr.f32.mxu1 %v19363_v38  ;;  %v40383_v44 = vld [vmem:[#allocation51_spill] sm:$0xff] }
0x2335   :  { %32386 = vmatprep.subr.bf16.mxu1 %v40353_v39 }
0x2338   :  { %32388 = vmatpush3.bf16.msra.mxu1 %v40353_v39  ;;  %v40392_v39 = vld [vmem:[#allocation63_spill] sm:$0xff] }
0x2339   :  { %32390 = vmatprep.subr.bf16.mxu1 %v40354_v22 }
0x233c   :  { %32392 = vmatpush3.bf16.msra.mxu1 %v40354_v22  ;;  %v40393_v22 = vld [vmem:[#allocation64_spill] sm:$0xff] }
0x233d   :  { %32394 = vmatprep.subr.bf16.mxu1 %v40355_v28 }
0x2340   :  { %32396 = vmatpush3.bf16.msra.mxu1 %v40355_v28 }
0x2341   :  { %32398 = vmatprep.subr.bf16.mxu1 %v40356_v12 }
0x2344   :  { %32400 = vmatpush3.bf16.msra.mxu1 %v40356_v12 }
0x2345   :  { %32402 = vmatprep.subr.bf16.mxu1 %v40357_v52 }
0x2348   :  { %32404 = vmatpush3.bf16.msra.mxu1 %v40357_v52 }
0x2349   :  { %32406 = vmatprep.subr.bf16.mxu1 %v40358_v55 }
0x234c   :  { %32408 = vmatpush3.bf16.msra.mxu1 %v40358_v55 }
0x234d   :  { %32410 = vmatprep.subr.bf16.mxu1 %v40359_v8 }
0x2350   :  { %32412 = vmatpush3.bf16.msra.mxu1 %v40359_v8 }
0x2351   :  { %32414 = vmatprep.subr.bf16.mxu1 %v40336_v6 }
0x2353   :  { %28670 = vmatmul.mubr.f32.vlgmr.msra.gmra.mrb[34].mxu1 %v19373_v42  ;;  %v40369_v42 = vld [vmem:[#allocation37_spill] sm:$0xff] }
0x2354   :  { %32416 = vmatpush3.bf16.msra.mxu1 %v40336_v6  ;;  %28704 = vmatprep.mubr.f32.mxu1 %v19364_v50  ;;  %v40370_v50 = vld [vmem:[#allocation38_spill] sm:$0xff] }
0x2355   :  { %32418 = vmatprep.subr.bf16.mxu1 %v40337_v17 }
0x2358   :  { %32420 = vmatpush3.bf16.msra.mxu1 %v40337_v17 }
0x2359   :  { %32422 = vmatprep.subr.bf16.mxu1 %v40338_v46 }
0x235c   :  { %32424 = vmatpush3.bf16.msra.mxu1 %v40338_v46 }
0x235d   :  { %32426 = vmatprep.subr.bf16.mxu1 %v40339_v51 }
0x2360   :  { %32428 = vmatpush3.bf16.msra.mxu1 %v40339_v51 }
0x2361   :  { %32430 = vmatprep.subr.bf16.mxu1 %v40340_v24 }
0x2364   :  { %32432 = vmatpush3.bf16.msra.mxu1 %v40340_v24 }
0x2365   :  { %32434 = vmatprep.subr.bf16.mxu1 %v40341_v35 }
0x2368   :  { %32436 = vmatpush3.bf16.msra.mxu1 %v40341_v35 }
0x2369   :  { %32438 = vmatprep.subr.bf16.mxu1 %v40342_v31 }
0x236c   :  { %32440 = vmatpush3.bf16.msra.mxu1 %v40342_v31 }
0x236d   :  { %32442 = vmatprep.subr.bf16.mxu1 %v40343_v30 }
0x2370   :  { %32444 = vmatpush3.bf16.msra.mxu1 %v40343_v30 }
0x2371   :  { %32446 = vmatprep.subr.bf16.mxu1 %v40360_v58 }
0x2373   :  { %28705 = vmatmul.mubr.f32.vlgmr.msra.gmra.mrb[34].mxu1 %v19374_v11  ;;  %v40372_v11 = vld [vmem:[#allocation40_spill] sm:$0xff] }
0x2374   :  { %32448 = vmatpush3.bf16.msra.mxu1 %v40360_v58  ;;  %28739 = vmatprep.mubr.f32.mxu1 %v39148_v41 }
0x2375   :  { %32450 = vmatprep.subr.bf16.mxu1 %v40361_v45 }
0x2378   :  { %32452 = vmatpush3.bf16.msra.mxu1 %v40361_v45 }
0x2379   :  { %32454 = vmatprep.subr.bf16.mxu1 %v40362_v33 }
0x237c   :  { %32456 = vmatpush3.bf16.msra.mxu1 %v40362_v33 }
0x237d   :  { %32458 = vmatprep.subr.bf16.mxu1 %v40363_v36 }
0x2380   :  { %32460 = vmatpush3.bf16.msra.mxu1 %v40363_v36 }
0x2381   :  { %32462 = vmatprep.subr.bf16.mxu1 %v40364_v34 }
0x2384   :  { %32464 = vmatpush3.bf16.msra.mxu1 %v40364_v34 }
0x2385   :  { %32466 = vmatprep.subr.bf16.mxu1 %v40365_v32 }
0x2388   :  { %32468 = vmatpush3.bf16.msra.mxu1 %v40365_v32 }
0x2389   :  { %32470 = vmatprep.subr.bf16.mxu1 %v40366_v1 }
0x238c   :  { %32472 = vmatpush3.bf16.msra.mxu1 %v40366_v1 }
0x238d   :  { %32474 = vmatprep.subr.bf16.mxu1 %v40367_v26 }
0x2390   :  { %32476 = vmatpush3.bf16.msra.mxu1 %v40367_v26 }
0x2391   :  { %32478 = vmatprep.subr.bf16.mxu1 %v40336_v6 }
0x2393   :  { %28740 = vmatmul.mubr.f32.vlgmr.msra.gmra.mrb[34].mxu1 %v39152_v48 }
0x2394   :  { %32480 = vmatpush3.bf16.msra.mxu1 %v40336_v6  ;;  %28774 = vmatprep.mubr.f32.mxu1 %v39148_v41 }
0x2395   :  { %32482 = vmatprep.subr.bf16.mxu1 %v40337_v17 }
0x2398   :  { %32484 = vmatpush3.bf16.msra.mxu1 %v40337_v17 }
0x2399   :  { %32486 = vmatprep.subr.bf16.mxu1 %v40338_v46 }
0x239c   :  { %32488 = vmatpush3.bf16.msra.mxu1 %v40338_v46 }
0x239d   :  { %32490 = vmatprep.subr.bf16.mxu1 %v40339_v51 }
0x23a0   :  { %32492 = vmatpush3.bf16.msra.mxu1 %v40339_v51 }
0x23a1   :  { %32494 = vmatprep.subr.bf16.mxu1 %v40340_v24 }
0x23a4   :  { %32496 = vmatpush3.bf16.msra.mxu1 %v40340_v24  ;;  %v21513_v24 = vld [vmem:[%s39434_s10 + $0x1] ss:$0 sm:$0xff] }
0x23a5   :  { %32498 = vmatprep.subr.bf16.mxu1 %v40341_v35 }
0x23a8   :  { %32500 = vmatpush3.bf16.msra.mxu1 %v40341_v35 }
0x23a9   :  { %32502 = vmatprep.subr.bf16.mxu1 %v40342_v31 }
0x23ac   :  { %32504 = vmatpush3.bf16.msra.mxu1 %v40342_v31  ;;  %v21515_v31 = vld [vmem:[%s39435_s11 + $0x1] ss:$0 sm:$0xff] }
0x23ad   :  { %32506 = vmatprep.subr.bf16.mxu1 %v40343_v30 }
0x23b0   :  { %32508 = vmatpush3.bf16.msra.mxu1 %v40343_v30 }
0x23b1   :  { %32629 = vmatprep.subr.bf16.mxu1 %v39868_v19 }
0x23b3   :  { %28775 = vmatmul.mubr.f32.vlgmr.msra.gmra.mrb[34].mxu1 %v39152_v48  ;;  %v40368_v48 = vld [vmem:[#allocation36_spill] sm:$0xff] }
0x23b4   :  { %32631 = vmatpush3.bf16.msra.mxu1 %v34224_v10  ;;  %28984 = vmatprep.mubr.msk.f32.mxu1 %vm33090_vm1, %v39869_v3 }
0x23b5   :  { %32632 = vmatprep.subr.bf16.mxu1 %v39868_v19 }
0x23b8   :  { %32634 = vmatpush3.bf16.msra.mxu1 %v34234_v16 }
0x23b9   :  { %32635 = vmatprep.subr.bf16.mxu1 %v39868_v19 }
0x23bc   :  { %32637 = vmatpush3.bf16.msra.mxu1 %v34244_v15 }
0x23bd   :  { %32638 = vmatprep.subr.bf16.mxu1 %v39868_v19 }
0x23c0   :  { %32640 = vmatpush3.bf16.msra.mxu1 %v34254_v47 }
0x23c1   :  { %32641 = vmatprep.subr.bf16.mxu1 %v39868_v19 }
0x23c4   :  { %32643 = vmatpush3.bf16.msra.mxu1 %v34264_v40 }
0x23c5   :  { %32644 = vmatprep.subr.bf16.mxu1 %v39868_v19 }
0x23c8   :  { %32646 = vmatpush3.bf16.msra.mxu1 %v34280_v23 }
0x23c9   :  { %32647 = vmatprep.subr.bf16.mxu1 %v39868_v19 }
0x23cc   :  { %32649 = vmatpush3.bf16.msra.mxu1 %v34300_v62 }
0x23cd   :  { %32650 = vmatprep.subr.bf16.mxu1 %v39868_v19 }
0x23d0   :  { %32652 = vmatpush3.bf16.msra.mxu1 %v34326_v37 }
0x2486   :  { %v28776_v5 = vpop.f32.mrb[34].mxu1 }
0x2487   :  { %v19955_v61 = vpop.f32.mrb[35].mxu1 }
0x2488   :  { %v19965_v59 = vmul.f32 %v19955_v61, %v19955_v61  ;;  %v19967_v6 = vsub.f32 %v39143_v13, %v19955_v61 }
0x248a   :  { %v19966_v17 = vsub.f32 %v28776_v5, %v19965_v59 }
0x248c   :  { %v19968_v46 = vadd.f32 1e-05, %v19966_v17  ;;  %v40394_v17 = vld [vmem:[#allocation52_spill] sm:$0xff] }
0x248e   :  { %33077 = vrsqrt.f32 %v19968_v46 }
0x2498   :  { %v33078_v51 = vpop.eup %33077 }
0x2499   :  { %v19970_v35 = vmul.f32 %v33078_v51, %v19967_v6 }
0x249b   :  { %v19978_v30 = vmul.f32 %v21513_v24, %v19970_v35 }
0x249d   :  { %v19986_v63 = vadd.f32 %v21515_v31, %v19978_v30 }
0x249f   :  { %v39265_v56 = vand.u32 4294901760, %v19986_v63 }
0x24a1   :  { %28985 = vmatmul.mubr.f32.vlgmr.msra.gmra.mrb[36].mxu1 %v39265_v56  ;;  %v20071_v13 = vsub.f32 %v19986_v63, %v39265_v56 }
0x24a3   :  { %v20072_v41 = vand.u32 4294901760, %v20071_v13 }
0x24a5   :  { %v20073_v25 = vsub.f32 %v20071_v13, %v20072_v41 }
0x24a7   :  { %v20074_v38 = vand.u32 4294901760, %v20073_v25  ;;  %v40398_v25 = vld [vmem:[#allocation68_spill] sm:$0xff] }
0x24a9   :  { %28810 = vmatmul.mubr.f32.vlgmr.msra.gmra.mrb[50].mxu0 %v20074_v38  ;;  %v40399_v38 = vld [vmem:[#allocation69_spill] sm:$0xff] }
0x24aa   :  { %32535 = vmatpush3.bf16.msra.mxu0 %v40368_v48  ;;  %28844 = vmatprep.mubr.msk.f32.mxu0 %vm33090_vm1, %v39869_v3  ;;  %v40400_v48 = vld [vmem:[#allocation70_spill] sm:$0xff] }
0x24ab   :  { %32536 = vmatprep.subr.bf16.mxu0 %v39868_v19 }
0x24ae   :  { %32538 = vmatpush3.bf16.msra.mxu0 %v40369_v42  ;;  %v21517_v42 = vld [vmem:[%s39438_s3 + $0x2] ss:$0 sm:$0xff] }
0x24af   :  { %32539 = vmatprep.subr.bf16.mxu0 %v39868_v19 }
0x24b2   :  { %32541 = vmatpush3.bf16.msra.mxu0 %v40370_v50 }
0x24b3   :  { %32542 = vmatprep.subr.bf16.mxu0 %v39868_v19 }
0x24b6   :  { %32544 = vmatpush3.bf16.msra.mxu0 %v40371_v57 }
0x24b7   :  { %32545 = vmatprep.subr.bf16.mxu0 %v39868_v19 }
0x24ba   :  { %32547 = vmatpush3.bf16.msra.mxu0 %v40372_v11 }
0x24bb   :  { %32548 = vmatprep.subr.bf16.mxu0 %v39868_v19 }
0x24be   :  { %32550 = vmatpush3.bf16.msra.mxu0 %v40373_v54 }
0x24bf   :  { %32551 = vmatprep.subr.bf16.mxu0 %v39868_v19 }
0x24c2   :  { %32553 = vmatpush3.bf16.msra.mxu0 %v40374_v49 }
0x24c3   :  { %32554 = vmatprep.subr.bf16.mxu0 %v39868_v19 }
0x24c6   :  { %32556 = vmatpush3.bf16.msra.mxu0 %v40375_v43 }
0x24c7   :  { %32557 = vmatprep.subr.bf16.mxu0 %v39868_v19 }
0x24c9   :  { %28845 = vmatmul.mubr.f32.vlgmr.msra.gmra.mrb[52].mxu0 %v39265_v56 }
0x24ca   :  { %32559 = vmatpush3.bf16.msra.mxu0 %v40376_v4  ;;  %28879 = vmatprep.mubr.msk.f32.mxu0 %vm33090_vm1, %v39869_v3 }
0x24cb   :  { %32560 = vmatprep.subr.bf16.mxu0 %v39868_v19 }
0x24ce   :  { %32562 = vmatpush3.bf16.msra.mxu0 %v40377_v21 }
0x24cf   :  { %32563 = vmatprep.subr.bf16.mxu0 %v39868_v19 }
0x24d2   :  { %32565 = vmatpush3.bf16.msra.mxu0 %v40378_v14 }
0x24d3   :  { %32566 = vmatprep.subr.bf16.mxu0 %v39868_v19 }
0x24d6   :  { %32568 = vmatpush3.bf16.msra.mxu0 %v40379_v27 }
0x24d7   :  { %32569 = vmatprep.subr.bf16.mxu0 %v39868_v19 }
0x24da   :  { %32571 = vmatpush3.bf16.msra.mxu0 %v40380_v7 }
0x24db   :  { %32572 = vmatprep.subr.bf16.mxu0 %v39868_v19 }
0x24de   :  { %32574 = vmatpush3.bf16.msra.mxu0 %v40381_v29 }
0x24df   :  { %32575 = vmatprep.subr.bf16.mxu0 %v39868_v19 }
0x24e2   :  { %32577 = vmatpush3.bf16.msra.mxu0 %v40382_v20 }
0x24e3   :  { %32578 = vmatprep.subr.bf16.mxu0 %v39868_v19 }
0x24e6   :  { %32580 = vmatpush3.bf16.msra.mxu0 %v40383_v44 }
0x24e7   :  { %32581 = vmatprep.subr.bf16.mxu0 %v39868_v19 }
0x24e9   :  { %28880 = vmatmul.mubr.f32.vlgmr.msra.gmra.mrb[54].mxu0 %v20071_v13  ;;  %v40396_v13 = vld [vmem:[#allocation66_spill] sm:$0xff] }
0x24ea   :  { %32583 = vmatpush3.bf16.msra.mxu0 %v34224_v10  ;;  %28914 = vmatprep.mubr.msk.f32.mxu0 %vm33090_vm1, %v39869_v3  ;;  %v40384_v10 = vld [vmem:[#allocation53_spill] sm:$0xff] }
0x24eb   :  { %32584 = vmatprep.subr.bf16.mxu0 %v39868_v19 }
0x24ee   :  { %32586 = vmatpush3.bf16.msra.mxu0 %v34234_v16  ;;  %v40385_v16 = vld [vmem:[#allocation54_spill] sm:$0xff] }
0x24ef   :  { %32587 = vmatprep.subr.bf16.mxu0 %v39868_v19 }
0x24f2   :  { %32589 = vmatpush3.bf16.msra.mxu0 %v34244_v15  ;;  %v40388_v15 = vld [vmem:[#allocation57_spill] sm:$0xff] }
0x24f3   :  { %32590 = vmatprep.subr.bf16.mxu0 %v39868_v19 }
0x24f6   :  { %32592 = vmatpush3.bf16.msra.mxu0 %v34254_v47  ;;  %v40389_v47 = vld [vmem:[#allocation58_spill] sm:$0xff] }
0x24f7   :  { %32593 = vmatprep.subr.bf16.mxu0 %v39868_v19 }
0x24fa   :  { %32595 = vmatpush3.bf16.msra.mxu0 %v34264_v40  ;;  %v40390_v40 = vld [vmem:[#allocation59_spill] sm:$0xff] }
0x24fb   :  { %32596 = vmatprep.subr.bf16.mxu0 %v39868_v19 }
0x24fe   :  { %32598 = vmatpush3.bf16.msra.mxu0 %v34280_v23  ;;  %v40386_v23 = vld [vmem:[#allocation55_spill] sm:$0xff] }
0x24ff   :  { %32599 = vmatprep.subr.bf16.mxu0 %v39868_v19 }
0x2502   :  { %32601 = vmatpush3.bf16.msra.mxu0 %v34300_v62  ;;  %v40387_v62 = vld [vmem:[#allocation56_spill] sm:$0xff] }
0x2503   :  { %32602 = vmatprep.subr.bf16.mxu0 %v39868_v19 }
0x2506   :  { %32604 = vmatpush3.bf16.msra.mxu0 %v34326_v37  ;;  %v40391_v37 = vld [vmem:[#allocation60_spill] sm:$0xff] }
0x2507   :  { %32605 = vmatprep.subr.bf16.mxu0 %v39868_v19 }
0x2509   :  { %28915 = vmatmul.mubr.f32.vlgmr.msra.gmra.mrb[56].mxu0 %v20072_v41  ;;  %v40397_v41 = vld [vmem:[#allocation67_spill] sm:$0xff] }
0x250a   :  { %32607 = vmatpush3.bf16.msra.mxu0 %v40384_v10  ;;  %28949 = vmatprep.mubr.msk.f32.mxu0 %vm33090_vm1, %v39869_v3 }
0x250b   :  { %32608 = vmatprep.subr.bf16.mxu0 %v39868_v19 }
0x250e   :  { %32610 = vmatpush3.bf16.msra.mxu0 %v40385_v16 }
0x250f   :  { %32611 = vmatprep.subr.bf16.mxu0 %v39868_v19 }
0x2512   :  { %32613 = vmatpush3.bf16.msra.mxu0 %v40386_v23 }
0x2513   :  { %32614 = vmatprep.subr.bf16.mxu0 %v39868_v19 }
0x2516   :  { %32616 = vmatpush3.bf16.msra.mxu0 %v40387_v62 }
0x2517   :  { %32617 = vmatprep.subr.bf16.mxu0 %v39868_v19 }
0x251a   :  { %32619 = vmatpush3.bf16.msra.mxu0 %v40388_v15 }
0x251b   :  { %32620 = vmatprep.subr.bf16.mxu0 %v39868_v19 }
0x251e   :  { %32622 = vmatpush3.bf16.msra.mxu0 %v40389_v47 }
0x251f   :  { %32623 = vmatprep.subr.bf16.mxu0 %v39868_v19 }
0x2522   :  { %32625 = vmatpush3.bf16.msra.mxu0 %v40390_v40 }
0x2523   :  { %32626 = vmatprep.subr.bf16.mxu0 %v39868_v19 }
0x2526   :  { %32628 = vmatpush3.bf16.msra.mxu0 %v40391_v37 }
0x2527   :  { %32653 = vmatprep.subr.bf16.mxu0 %v39868_v19 }
0x2529   :  { %28950 = vmatmul.mubr.f32.vlgmr.msra.gmra.mrb[58].mxu0 %v39265_v56  ;;  %v40395_v56 = vld [vmem:[#allocation65_spill] sm:$0xff] }
0x252a   :  { %32655 = vmatpush3.bf16.msra.mxu0 %v40392_v39  ;;  %28995 = vmatprep.mubr.msk.f32.mxu0 %vm33090_vm1, %v39869_v3 }
0x252b   :  { %32656 = vmatprep.subr.bf16.mxu0 %v39868_v19 }
0x252e   :  { %32658 = vmatpush3.bf16.msra.mxu0 %v40393_v22 }
0x252f   :  { %32659 = vmatprep.subr.bf16.mxu0 %v39868_v19 }
0x2574   :  { %v20626_v28 = vpop.f32.mrb[36].mxu1 }
0x2575   :  { %v28986_v12 = vpop.f32.mrb[37].mxu1 }
0x257c   :  { %v20076_v52 = vpop.f32.mrb[50].mxu0 }
0x257d   :  { %v28811_v55 = vpop.f32.mrb[51].mxu0 }
0x259c   :  { %v20227_v8 = vpop.f32.mrb[52].mxu0 }
0x259d   :  { %v20228_v58 = vadd.f32 %v20227_v8, %v20076_v52  ;;  %v28846_v45 = vpop.f32.mrb[53].mxu0 }
0x25bc   :  { %v20331_v33 = vpop.f32.mrb[54].mxu0 }
0x25bd   :  { %v20332_v36 = vadd.f32 %v20331_v33, %v20228_v58  ;;  %v28881_v34 = vpop.f32.mrb[55].mxu0 }
0x25dc   :  { %v20420_v32 = vpop.f32.mrb[56].mxu0 }
0x25dd   :  { %v20421_v1 = vadd.f32 %v20420_v32, %v20332_v36  ;;  %v28916_v26 = vpop.f32.mrb[57].mxu0 }
0x25fc   :  { %v20539_v5 = vpop.f32.mrb[58].mxu0 }
0x25fd   :  { %v20540_v61 = vadd.f32 %v20539_v5, %v20421_v1  ;;  %v28951_v59 = vpop.f32.mrb[59].mxu0 }
0x25ff   :  { %v20627_v6 = vadd.f32 %v20626_v28, %v20540_v61 }
0x2601   :  { %v20630_v46 = vadd.f32 %v20627_v6, %v40394_v17 }
0x2603   :  { %v20640_v51 = vsel %vm103_vm0, %v20630_v46, 0 }
0x2604   :  { %v20711_v24 = vand.u32 4294901760, %v20640_v51 }
0x2606   :  { %v20712_v35 = vsub.f32 %v20640_v51, %v20711_v24 }
0x2608   :  { %v20713_v31 = vand.u32 4294901760, %v20712_v35 }
0x260a   :  { %v20714_v30 = vsub.f32 %v20712_v35, %v20713_v31 }
0x260c   :  { %v20715_v63 = vand.u32 4294901760, %v20714_v30 }
0x260e   :  { %28996 = vmatmul.mubr.f32.vlgmr.msra.gmra.mrb[60].mxu0 %v20715_v63 }
0x260f   :  { %32661 = vmatpush3.bf16.msra.mxu0 %v40395_v56  ;;  %29006 = vmatprep.mubr.msk.f32.mxu0 %vm33090_vm1, %v39869_v3 }
0x2610   :  { %32662 = vmatprep.subr.bf16.mxu0 %v39868_v19 }
0x2613   :  { %32664 = vmatpush3.bf16.msra.mxu0 %v40396_v13 }
0x2614   :  { %32665 = vmatprep.subr.bf16.mxu0 %v39868_v19 }
0x2616   :  { %29007 = vmatmul.mubr.f32.vlgmr.msra.gmra.mrb[60].mxu0 %v20711_v24 }
0x2617   :  { %32667 = vmatpush3.bf16.msra.mxu0 %v40397_v41  ;;  %29017 = vmatprep.mubr.msk.f32.mxu0 %vm33090_vm1, %v39869_v3 }
0x2618   :  { %32668 = vmatprep.subr.bf16.mxu0 %v39868_v19 }
0x261b   :  { %32670 = vmatpush3.bf16.msra.mxu0 %v40398_v25 }
0x261c   :  { %32671 = vmatprep.subr.bf16.mxu0 %v39868_v19 }
0x261e   :  { %29018 = vmatmul.mubr.f32.vlgmr.msra.gmra.mrb[60].mxu0 %v20712_v35 }
0x261f   :  { %32673 = vmatpush3.bf16.msra.mxu0 %v40392_v39  ;;  %29028 = vmatprep.mubr.msk.f32.mxu0 %vm33090_vm1, %v39869_v3 }
0x2620   :  { %32674 = vmatprep.subr.bf16.mxu0 %v39868_v19 }
0x2623   :  { %32676 = vmatpush3.bf16.msra.mxu0 %v40393_v22 }
0x2624   :  { %32677 = vmatprep.subr.bf16.mxu0 %v39868_v19 }
0x2626   :  { %29029 = vmatmul.mubr.f32.vlgmr.msra.gmra.mrb[60].mxu0 %v20713_v31 }
0x2627   :  { %32679 = vmatpush3.bf16.msra.mxu0 %v40399_v38  ;;  %29039 = vmatprep.mubr.msk.f32.mxu0 %vm33090_vm1, %v39869_v3 }
0x2628   :  { %32680 = vmatprep.subr.bf16.mxu0 %v39868_v19 }
0x262b   :  { %32682 = vmatpush3.bf16.msra.mxu0 %v40400_v48 }
0x262c   :  { %32683 = vmatprep.subr.bf16.mxu0 %v39868_v19 }
0x262e   :  { %29040 = vmatmul.mubr.f32.vlgmr.msra.gmra.mrb[60].mxu0 %v20711_v24 }
0x262f   :  { %32685 = vmatpush3.bf16.msra.mxu0 %v40392_v39  ;;  %29050 = vmatprep.mubr.msk.f32.mxu0 %vm33090_vm1, %v39869_v3 }
0x2630   :  { %32686 = vmatprep.subr.bf16.mxu0 %v39868_v19 }
0x2633   :  { %32688 = vmatpush3.bf16.msra.mxu0 %v40393_v22 }
0x2636   :  { %29051 = vmatmul.mubr.f32.vlgmr.msra.gmra.mrb[60].mxu0 %v20711_v24 }
0x2709   :  { %v21123_v50 = vpop.f32.mrb[60].mxu0 }
0x270a   :  { %v39383_v57 = vadd.f32 %v21517_v42, %v21123_v50  ;;  %v29052_v11 = vpop.f32.mrb[61].mxu0 }
0x270c   :  { %v21132_v54 = vand.u32 2139095040, %v39383_v57  ;;  %v21129_v3 = vand.u32 2147483647, %v39383_v57  ;;  %vm21131_vm13 = vcmp.lt.s32.totalorder %v39383_v57, 0 }
0x270e   :  { %v21133_v49 = vshrl.u32 %v21132_v54, 23  ;;  %v21136_v14 = vand.u32 8388607, %v21129_v3  ;;  %vm21130_vm14 = vcmp.le.f32.partialorder %v21129_v3, 0.7853982 }
0x2710   :  { %v21519_v43 = vadd.s32 4294967169, %v21133_v49  ;;  %v21137_v37 = vor.u32 8388608, %v21136_v14 }
0x2712   :  { %v21139_v4 = vadd.s32 1, %v21519_v43 }
0x2714   :  { %vm21140_vm0 = vcmp.gt.s32.totalorder %v21139_v4, 0 }
0x2715   :  { %v21141_v19 = vsel %vm21140_vm0, %v21139_v4, 0  ;;  %vm21221_vm0 = vweird.f32 %v39383_v57 }
0x2716   :  { %v21143_v21 = vand.u32 31, %v21141_v19  ;;  %v21142_v7 = vshrl.u32 %v21141_v19, 5 }
0x2718   :  { %v21144_v27 = vsub.s32 32, %v21143_v21  ;;  %v21146_v29 = vshll.u32 %v39926_v2, %v21143_v21  ;;  %v21149_v20 = vshll.u32 %v39927_v53, %v21143_v21  ;;  %v21152_v16 = vshll.u32 %v39928_v60, %v21143_v21 }
0x2719   :  { %v21155_v62 = vshll.u32 %v39929_v0, %v21143_v21  ;;  %v21158_v47 = vshll.u32 %v40323_v18, %v21143_v21  ;;  %vm21161_vm1 = vcmp.lt.s32.totalorder %v21142_v7, 1  ;;  %vm21164_vm8 = vcmp.lt.s32.totalorder %v21142_v7, 4 }
0x271a   :  { %v21147_v44 = vshrl.u32 %v39927_v53, %v21144_v27  ;;  %v21150_v10 = vshrl.u32 %v39928_v60, %v21144_v27  ;;  %v21153_v23 = vshrl.u32 %v39929_v0, %v21144_v27  ;;  %v21156_v15 = vshrl.u32 %v40323_v18, %v21144_v27 }
0x271b   :  { %v21159_v40 = vshrl.u32 %v40324_v9, %v21144_v27  ;;  %v21145_v8 = vshrl.u32 %v39926_v2, %v21144_v27  ;;  %vm21163_vm9 = vcmp.lt.s32.totalorder %v21142_v7, 3  ;;  %vm21162_vm10 = vcmp.lt.s32.totalorder %v21142_v7, 2 }
0x271c   :  { %v21148_v39 = vor.u32 %v21147_v44, %v21146_v29  ;;  %v21151_v22 = vor.u32 %v21150_v10, %v21149_v20  ;;  %v21154_v28 = vor.u32 %v21153_v23, %v21152_v16  ;;  %v21157_v12 = vor.u32 %v21156_v15, %v21155_v62 }
0x271d   :  { %v21160_v53 = vor.u32 %v21159_v40, %v21158_v47  ;;  %v21177_v9 = vshll.u32 %v21137_v37, 8 }
0x271e   :  { %v21166_v52 = vsel %vm21164_vm8, %v21154_v28, 2102212464  ;;  %v21169_v60 = vsel %vm21161_vm1, %v21148_v39, %v21151_v22  ;;  %v21173_v55 = vsel %vm21161_vm1, %v21151_v22, %v21154_v28  ;;  %v21170_v0 = vsel %vm21164_vm8, %v21157_v12, 920167782 }
0x271f   :  { %v21174_v58 = vsel %vm21164_vm8, %v21160_v53, 1326507024  ;;  %v21171_v18 = vsel %vm21163_vm9, %v21154_v28, %v21170_v0  ;;  %v21165_v33 = vsel %vm21161_vm1, %v21145_v8, %v21148_v39  ;;  %v21167_v36 = vsel %vm21163_vm9, %v21151_v22, %v21166_v52  ;;  %v21518_v39 = vld [vmem:[%s39439_s1 + $0x10] sm:$0xff] }
0x2720   :  { %v21175_v45 = vsel %vm21163_vm9, %v21157_v12, %v21174_v58  ;;  %v21172_v34 = vsel %vm21162_vm10, %v21169_v60, %v21171_v18  ;;  %v21168_v59 = vsel %vm21162_vm10, %v21165_v33, %v21167_v36  ;;  %v21523_v28 = vld [vmem:[%s39440_s2 + $0x10] sm:$0xff] }
0x2721   :  { %v21176_v32 = vsel %vm21162_vm10, %v21173_v55, %v21175_v45  ;;  %v39403_v5 = vmul.u32.u64.low %v21177_v9, %v21172_v34  ;;  %v39404_v61 = vmul.u32.u64.high %v21177_v9, %v21172_v34, %v39403_v5  ;;  %v21184_v6 = vmul.u32 %v21177_v9, %v21168_v59 }
0x2722   :  { %v39400_v1 = vmul.u32.u64.low %v21177_v9, %v21176_v32  ;;  %v39401_v26 = vmul.u32.u64.high %v21177_v9, %v21176_v32, %v39400_v1 }
0x2723   :  { %v21187_v2 = vadd.s32 1, %v39404_v61 }
0x2724   :  { %vm21186_vm11 = vc.u32 %v39401_v26, %v39403_v5  ;;  %v21185_v25 = vadd.s32 %v39403_v5, %v39401_v26 }
0x2725   :  { %v21188_v17 = vsel %vm21186_vm11, %v21187_v2, %v39404_v61 }
0x2726   :  { %v21189_v46 = vadd.s32 %v21188_v17, %v21184_v6 }
0x2728   :  { %v21190_v51 = vadd.s32 536870912, %v21189_v46 }
0x272a   :  { %v21191_v24 = vshrl.u32 %v21190_v51, 30 }
0x272c   :  { %v21192_v35 = vshll.u32 %v21191_v24, 30  ;;  %v21215_v14 = vsub.s32 4, %v21191_v24 }
0x272e   :  { %v21193_v31 = vsub.s32 %v21189_v46, %v21192_v35  ;;  %v21216_v29 = vsel %vm21131_vm13, %v21215_v14, %v21191_v24 }
0x272f   :  { %v21218_v44 = vsel %vm21130_vm14, 0, %v21216_v29 }
0x2730   :  { %v21195_v30 = vsub.s32 0, %v21193_v31  ;;  %v21328_v10 = vadd.s32 3, %v21218_v44  ;;  %v21222_v16 = vand.u32 3, %v21218_v44 }
0x2732   :  { %v21520_v63 = vmin.u32 %v21195_v30, %v21193_v31  ;;  %v21329_v23 = vand.u32 3, %v21328_v10  ;;  %vm21227_vm2 = vcmp.eq.s32.totalorder %v21222_v16, 2  ;;  %vm21224_vm4 = vcmp.eq.s32.totalorder %v21222_v16, 0 }
0x2733   :  { %vm21223_vm6 = vcmp.lt.s32.totalorder %v21222_v16, 2 }
0x2734   :  { %v21197_v56 = vclz %v21520_v63  ;;  %vm21334_vm3 = vcmp.eq.s32.totalorder %v21329_v23, 2  ;;  %vm21331_vm5 = vcmp.eq.s32.totalorder %v21329_v23, 0  ;;  %vm21330_vm7 = vcmp.lt.s32.totalorder %v21329_v23, 2 }
0x2736   :  { %v21521_v13 = vadd.s32 4294967294, %v21197_v56 }
0x2738   :  { %vm21522_vm12 = vcmp.lt.s32.totalorder %v21521_v13, 0 }
0x2739   :  { %v21200_v41 = vsel %vm21522_vm12, 0, %v21521_v13 }
0x273a   :  { %v21201_v38 = vsub.s32 32, %v21200_v41  ;;  %v21205_v48 = vsub.s32 4294967266, %v21200_v41  ;;  %v21202_v42 = vshll.u32 %v21193_v31, %v21200_v41 }
0x273c   :  { %v21203_v50 = vshrl.u32 %v21185_v25, %v21201_v38  ;;  %v21206_v11 = vadd.s32 127, %v21205_v48 }
0x273e   :  { %v21204_v54 = vor.u32 %v21203_v50, %v21202_v42  ;;  %v21207_v49 = vshll.u32 %v21206_v11, 23 }
0x2740   :  { %v21208_v43 = vor.u32 4788187, %v21207_v49  ;;  %v21211_v19 = vcvt.s32.f32 %v21204_v54 }
0x2742   :  { %v21209_v4 = vand.u32 2147483647, %v21208_v43 }
0x2744   :  { %v21212_v21 = vmul.f32 %v21211_v19, %v21209_v4 }
0x2746   :  { %v21213_v27 = vxor.u32 2147483648, %v21212_v21 }
0x2748   :  { %v21214_v7 = vsel %vm21131_vm13, %v21213_v27, %v21212_v21 }
0x2749   :  { %v21217_v20 = vsel %vm21130_vm14, %v39383_v57, %v21214_v7 }
0x274a   :  { %33079 = vcosq.f32 %v21217_v20 }
0x274b   :  { %33081 = vsinq.f32 %v21217_v20 }
0x2754   :  { %v33080_v62 = vpop.eup %33079 }
0x2755   :  { %v33082_v15 = vpop.eup %33081  ;;  %v21228_v47 = vxor.u32 2147483648, %v33080_v62 }
0x2756   :  { %v21225_v40 = vxor.u32 2147483648, %v33082_v15 }
0x2757   :  { %v21229_v37 = vsel %vm21227_vm2, %v21228_v47, %v33082_v15  ;;  %v21336_v3 = vsel %vm21334_vm3, %v21228_v47, %v33082_v15 }
0x2758   :  { %v21226_v22 = vsel %vm21224_vm4, %v33080_v62, %v21225_v40  ;;  %v21333_v12 = vsel %vm21331_vm5, %v33080_v62, %v21225_v40 }
0x2759   :  { %v21230_v53 = vsel %vm21223_vm6, %v21226_v22, %v21229_v37  ;;  %v21337_v52 = vsel %vm21330_vm7, %v21333_v12, %v21336_v3 }
0x275a   :  { %v21231_v60 = vsel %vm21221_vm0, nan, %v21230_v53  ;;  %v21338_v55 = vsel %vm21221_vm0, nan, %v21337_v52 }
0x275b   :  { %v21232_v8 = vmul.f32 %v21518_v39, %v21231_v60  ;;  %v21339_v0 = vmul.f32 %v21523_v28, %v21338_v55 }
0x275d   :  { %v21340_v58 = vadd.f32 %v21339_v0, %v21232_v8 }
0x275f   :  { %21528 = vst.msk [vmem:[%s39441_s16 + $0x10] sm:$0xff] %vm1391_vm15, %v21340_v58 }

</bundles_post_ra>
